<compile_context>
chip_gen: v5e
topology: v5e:2x2
jax: 0.10.0
libtpu: 0.0.40
codegen_flags: <defaults>
</compile_context>

<pallas_src>
import math

import jax
import jax.numpy as jnp
from jax.experimental import pallas as pl
from jax.experimental.pallas import tpu as pltpu


# ---------------------------------------------------------------------------
# Fused 3x3 conv (padding=1) + folded BN(eval) + ReLU [+ fused MaxPool2d(2,2)]
# ---------------------------------------------------------------------------

def _make_conv_bn_relu_kernel(pool):
    """Kernel over grid (image_block, row_block).

    x_ref   : (Nb, H, W, Cin)       bf16 NHWC input (full image, resident across row blocks)
    w_ref   : (3, 3*Cin, Cout)      bf16 weights, kh-major, (kw, cin) merged on the K axis
    s_ref   : (1, Cout)             f32 per-channel scale (folded BN)
    b_ref   : (1, Cout)             f32 per-channel shift (folded BN + conv bias)
    o_ref   : (Nb, Rbo*Wo, Cout)    flattened output row block
    xpad_ref: (Nb, Rb+2, W+2, Cin)  VMEM scratch, zero-padded band for this row block
    """
    def kernel(x_ref, w_ref, s_ref, b_ref, o_ref, xpad_ref):
        Nb, H, W, Cin = x_ref.shape
        Cout = o_ref.shape[2]
        Rb = xpad_ref.shape[1] - 2
        rb = pl.program_id(1)
        nrb = pl.num_programs(1)
        r0 = pl.multiple_of(rb * Rb, Rb)

        # --- build the zero-padded (Rb+2, W+2) band in VMEM (border-only zero fill) ---
        zcol = jnp.zeros((Nb, Rb + 2, 1, Cin), xpad_ref.dtype)
        xpad_ref[:, :, 0:1, :] = zcol                     # left pad column
        xpad_ref[:, :, W + 1:W + 2, :] = zcol             # right pad column
        # interior rows of the band
        xpad_ref[:, 1:Rb + 1, 1:W + 1, :] = x_ref[:, pl.ds(r0, Rb), :, :]
        # top / bottom halo rows: zero at the image border, neighbouring row otherwise
        zrow = jnp.zeros((Nb, 1, W, Cin), xpad_ref.dtype)

        @pl.when(rb == 0)
        def _():
            xpad_ref[:, 0:1, 1:W + 1, :] = zrow

        @pl.when(rb > 0)
        def _():
            xpad_ref[:, 0:1, 1:W + 1, :] = x_ref[:, pl.ds(r0 - 1, 1), :, :]

        @pl.when(rb == nrb - 1)
        def _():
            xpad_ref[:, Rb + 1:Rb + 2, 1:W + 1, :] = zrow

        @pl.when(rb < nrb - 1)
        def _():
            xpad_ref[:, Rb + 1:Rb + 2, 1:W + 1, :] = x_ref[:, pl.ds(r0 + Rb, 1), :, :]

        # --- 3 matmuls with K = 3*Cin (kw merged into the contraction), f32 acc ---
        M = Nb * Rb * W
        acc = jnp.zeros((M, Cout), jnp.float32)
        for kh in range(3):
            band = jnp.concatenate(
                [xpad_ref[:, kh:kh + Rb, kw:kw + W, :] for kw in range(3)],
                axis=-1)                                   # (Nb, Rb, W, 3*Cin)
            acc = acc + jnp.dot(band.reshape(M, 3 * Cin), w_ref[kh],
                                preferred_element_type=jnp.float32)

        y = jnp.maximum(acc * s_ref[...] + b_ref[...], 0.0)   # (M, Cout) f32

        if pool:
            # fused MaxPool2d(2,2): flat row index is (n*Rb + r)*W + w, so this reshape
            # groups each 2x2 window exactly; reduce the two window axes with max.
            y = y.reshape(Nb, Rb // 2, 2, W // 2, 2, Cout)
            y = jnp.max(jnp.max(y, axis=4), axis=2)            # (Nb, Rb/2, W/2, Cout)
            o_ref[...] = y.reshape(Nb, (Rb // 2) * (W // 2), Cout).astype(o_ref.dtype)
        else:
            o_ref[...] = y.reshape(Nb, Rb * W, Cout).astype(o_ref.dtype)

    return kernel


def _conv_tiles(N, H, W, cout, pool, acc_max=32768):
    """Pick (images, rows) per grid step so the f32 accumulator stays <= acc_max elems
    (~128 KiB) and blocked outputs stay sublane-aligned."""
    def valid_rb(rb):
        if H % rb:
            return False
        if pool and rb % 2:
            return False
        if rb < H:                                   # blocked output: keep rows*8-aligned
            ro = rb // 2 if pool else rb
            wo = W // 2 if pool else W
            if (ro * wo) % 8:
                return False
        return True

    rb_valid = [r for r in range(1, H + 1) if valid_rb(r)]
    rb_fit = [r for r in rb_valid if r * W * cout <= acc_max]
    rb = max(rb_fit) if rb_fit else min(rb_valid)
    nb_fit = [n for n in range(1, N + 1)
              if N % n == 0 and n * rb * W * cout <= acc_max]
    nb = max(nb_fit) if nb_fit else 1
    return nb, rb


def conv3x3_bn_relu(x, w3, scale, shift, pool):
    """x: (N, H, W, Cin) bf16 NHWC -> (N, Ho, Wo, Cout) bf16."""
    N, H, W, Cin = x.shape
    Cout = w3.shape[-1]
    if pool:
        assert H % 2 == 0 and W % 2 == 0, "fused MaxPool2d(2,2) requires even H and W"
    Ho, Wo = (H // 2, W // 2) if pool else (H, W)
    Nb, Rb = _conv_tiles(N, H, W, Cout, pool)
    Rbo = Rb // 2 if pool else Rb

    out = pl.pallas_call(
        _make_conv_bn_relu_kernel(pool),
        out_shape=jax.ShapeDtypeStruct((N, Ho * Wo, Cout), jnp.bfloat16),
        grid=(N // Nb, H // Rb),
        in_specs=[
            pl.BlockSpec((Nb, H, W, Cin), lambda n, r: (n, 0, 0, 0)),   # image resident
            pl.BlockSpec((3, 3 * Cin, Cout), lambda n, r: (0, 0, 0)),   # weights resident
            pl.BlockSpec((1, Cout), lambda n, r: (0, 0)),
            pl.BlockSpec((1, Cout), lambda n, r: (0, 0)),
        ],
        out_specs=pl.BlockSpec((Nb, Rbo * Wo, Cout), lambda n, r: (n, r, 0)),
        scratch_shapes=[pltpu.VMEM((Nb, Rb + 2, W + 2, Cin), jnp.bfloat16)],
        compiler_params=pltpu.CompilerParams(
            dimension_semantics=("parallel", "parallel")),
    )(x, w3, scale, shift)
    return out.reshape(N, Ho, Wo, Cout)


# ---------------------------------------------------------------------------
# Classifier kernels
# ---------------------------------------------------------------------------

def _linear_relu_kernel(x_ref, w_ref, b_ref, o_ref, acc_ref):
    """K-tiled Linear + bias + ReLU.  grid = (N_blocks, K_blocks); axis 0 parallel over
    output columns, axis 1 (last) is the K reduction with a VMEM accumulator."""
    @pl.when(pl.program_id(1) == 0)
    def _():
        acc_ref[...] = jnp.zeros_like(acc_ref)

    acc_ref[...] += jnp.dot(x_ref[...], w_ref[...], preferred_element_type=jnp.float32)

    @pl.when(pl.program_id(1) == pl.num_programs(1) - 1)
    def _():
        o_ref[...] = jnp.maximum(acc_ref[...] + b_ref[...], 0.0).astype(o_ref.dtype)


def _mlp_tail_kernel(x_ref, w2_ref, b2_ref, w3_ref, b3_ref, o_ref):
    """Fused fc2 + ReLU + fc3 + ReLU (both weights fit comfortably in VMEM)."""
    h = jnp.maximum(jnp.dot(x_ref[...], w2_ref[...],
                            preferred_element_type=jnp.float32) + b2_ref[...], 0.0)
    y = jnp.dot(h.astype(w3_ref.dtype), w3_ref[...],
                preferred_element_type=jnp.float32) + b3_ref[...]
    # The reference classifier ends with nn.ReLU(True) after the last Linear.
    o_ref[...] = jnp.maximum(y, 0.0).astype(o_ref.dtype)


def _pick_tile(dim, cap):
    """Largest divisor of `dim` that is <= cap, preferring multiples of 128."""
    if dim <= cap:
        return dim
    for t in range((cap // 128) * 128, 0, -128):
        if dim % t == 0:
            return t
    for t in range(min(cap, dim), 0, -1):
        if dim % t == 0:
            return t
    return dim


def linear_relu(x, w, b, out_dtype=jnp.float32, tk_cap=3584, tn_cap=256):
    """relu(x @ w + b).  K tiled (reduction, last grid axis, up to 3584-deep tiles to cut
    per-step overhead in the HBM-bound fc1); N tiled on a parallel axis for megacore."""
    B, K = x.shape
    N = w.shape[1]
    tk = _pick_tile(K, tk_cap)
    tn = _pick_tile(N, tn_cap)
    b2 = b.reshape(1, N).astype(jnp.float32)
    return pl.pallas_call(
        _linear_relu_kernel,
        out_shape=jax.ShapeDtypeStruct((B, N), out_dtype),
        grid=(N // tn, K // tk),
        in_specs=[
            pl.BlockSpec((B, tk), lambda j, k: (0, k)),
            pl.BlockSpec((tk, tn), lambda j, k: (k, j)),
            pl.BlockSpec((1, tn), lambda j, k: (0, j)),
        ],
        out_specs=pl.BlockSpec((B, tn), lambda j, k: (0, j)),
        scratch_shapes=[pltpu.VMEM((B, tn), jnp.float32)],
        compiler_params=pltpu.CompilerParams(
            dimension_semantics=("parallel", "arbitrary")),
    )(x, w, b2)


def mlp_tail(x, w2, b2, w3, b3):
    """relu(relu(x @ w2 + b2) @ w3 + b3) in one kernel (fc2 + fc3 of the classifier)."""
    B, K = x.shape
    Nh = w2.shape[1]
    No = w3.shape[1]
    return pl.pallas_call(
        _mlp_tail_kernel,
        out_shape=jax.ShapeDtypeStruct((B, No), jnp.float32),
        grid=(1,),
        in_specs=[
            pl.BlockSpec((B, K), lambda i: (0, 0)),
            pl.BlockSpec((K, Nh), lambda i: (0, 0)),
            pl.BlockSpec((1, Nh), lambda i: (0, 0)),
            pl.BlockSpec((Nh, No), lambda i: (0, 0)),
            pl.BlockSpec((1, No), lambda i: (0, 0)),
        ],
        out_specs=pl.BlockSpec((B, No), lambda i: (0, 0)),
        compiler_params=pltpu.CompilerParams(dimension_semantics=("arbitrary",)),
    )(x, w2, b2.reshape(1, Nh), w3, b3.reshape(1, No))


# ---------------------------------------------------------------------------
# Parameters & forward
# ---------------------------------------------------------------------------

def _adaptive_pool_matrix(in_size, out_size):
    rows = []
    for i in range(out_size):
        start = (i * in_size) // out_size
        end = -((-((i + 1) * in_size)) // out_size)            # ceil((i+1)*in/out)
        rows.append(jnp.zeros((in_size,), jnp.float32).at[start:end].set(1.0 / (end - start)))
    return jnp.stack(rows)                                     # (out_size, in_size)


def init_vgg11_params(key, num_channels=3, num_classes=200, classifier_size=512,
                      input_size=64):
    cfg = [64, "M", 128, "M", 256, 256, "M", 512, 512, "M", 512, 512, "M"]
    eps = 1e-5
    feats = []
    in_c = num_channels
    feat_hw = input_size
    for v in cfg:
        if v == "M":
            feats[-1]["pool"] = True        # MaxPool2d(2,2) fused into the preceding conv
            feat_hw //= 2
            continue
        key, kw = jax.random.split(key)
        fan_out = v * 9                     # kaiming_normal_, mode='fan_out', relu
        w = jax.random.normal(kw, (3, 3, in_c, v), jnp.float32) * math.sqrt(2.0 / fan_out)
        w3 = w.reshape(3, 3 * in_c, v).astype(jnp.bfloat16)    # kh-major, (kw,cin) merged
        conv_b = jnp.zeros((v,), jnp.float32)
        gamma = jnp.ones((v,), jnp.float32)
        beta = jnp.zeros((v,), jnp.float32)
        run_mean = jnp.zeros((v,), jnp.float32)
        run_var = jnp.ones((v,), jnp.float32)
        # TODO(synk): BatchNorm2d is folded in eval mode (running stats); training-mode
        # batch statistics are not implemented.
        scale = gamma / jnp.sqrt(run_var + eps)
        shift = beta + (conv_b - run_mean) * scale
        feats.append(dict(w3=w3, scale=scale.reshape(1, v), shift=shift.reshape(1, v),
                          pool=False))
        in_c = v

    # Classifier.  AdaptiveAvgPool2d((7,7)) + flatten are linear, so fold them into fc1:
    # W1_eff[(h*Wf + w)*512 + c, k] = sum_{i,j} Mh[i,h] * Mw[j,w] * W1[c*49 + i*7 + j, k]
    fh = fw = feat_hw
    key, k1 = jax.random.split(key)
    w1 = jax.random.normal(k1, (512 * 49, classifier_size), jnp.float32) * 0.01
    mh = _adaptive_pool_matrix(fh, 7)
    mw = _adaptive_pool_matrix(fw, 7)
    w1_eff = jnp.einsum('ih,jw,cijk->hwck', mh, mw,
                        w1.reshape(512, 7, 7, classifier_size))
    w1_eff = w1_eff.reshape(fh * fw * 512, classifier_size).astype(jnp.bfloat16)

    classifier = [dict(w=w1_eff, b=jnp.zeros((classifier_size,), jnp.float32))]
    in_d = classifier_size
    for d in (classifier_size, num_classes):
        key, kw2 = jax.random.split(key)
        w = (jax.random.normal(kw2, (in_d, d), jnp.float32) * 0.01).astype(jnp.bfloat16)
        classifier.append(dict(w=w, b=jnp.zeros((d,), jnp.float32)))
        in_d = d
    return {"features": feats, "classifier": classifier}


def vgg11_forward(x_nchw, params):
    # NCHW (PyTorch) -> NHWC (kernel layout); stream activations as bf16.
    x = jnp.transpose(x_nchw, (0, 2, 3, 1)).astype(jnp.bfloat16)
    for layer in params["features"]:
        x = conv3x3_bn_relu(x, layer["w3"], layer["scale"], layer["shift"], layer["pool"])

    # avgpool(7,7) + flatten are folded into fc1's weights -> feed the conv output directly.
    N, Hf, Wf, C = x.shape
    feat = x.reshape(N, Hf * Wf * C)

    # TODO(synk): nn.Dropout layers are identity (eval-mode semantics).
    c0, c1, c2 = params["classifier"]
    h = linear_relu(feat, c0["w"], c0["b"], out_dtype=jnp.bfloat16)   # fc1 + ReLU
    out = mlp_tail(h, c1["w"], c1["b"], c2["w"], c2["b"])             # fc2+ReLU, fc3+ReLU
    return out


if __name__ == "__main__":
    params = init_vgg11_params(jax.random.PRNGKey(0), num_channels=3, num_classes=200,
                               classifier_size=512, input_size=64)
    x = jax.random.normal(jax.random.PRNGKey(0), (2, 3, 64, 64), jnp.float32)  # NCHW
    out = vgg11_forward(x, params)
    out = jax.block_until_ready(out)
    assert out.shape == (2, 200) and out.dtype == jnp.float32
    assert bool(jnp.all(jnp.isfinite(out)))
    print("KERNEL_OK")
</pallas_src>

<mosaic_0001>
module attributes {stable_mosaic.version = 11 : i64} {
  func.func @kernel(%arg0: i32, %arg1: i32, %arg2: memref<1x64x64x3xbf16, #tpu.memory_space<vmem>>, %arg3: memref<3x9x64xbf16, #tpu.memory_space<vmem>>, %arg4: memref<1x64xf32, #tpu.memory_space<vmem>>, %arg5: memref<1x64xf32, #tpu.memory_space<vmem>>, %arg6: memref<1x128x64xbf16, #tpu.memory_space<vmem>>, %arg7: memref<1x10x66x3xbf16, #tpu.memory_space<vmem>>) attributes {dimension_semantics = [#tpu.dimension_semantics<parallel>, #tpu.dimension_semantics<parallel>], iteration_bounds = array<i64: 2, 8>, scalar_prefetch = 0 : i64, scratch_operands = 1 : i64, tpu.core_type = #tpu.core_type<tc>, window_params = [{transform_indices = @transform_0, window_bounds = array<i64: 1, 64, 64, 3>}, {pipeline_mode = #tpu.pipeline_mode<synchronous>, transform_indices = @transform_1, window_bounds = array<i64: 3, 9, 64>}, {pipeline_mode = #tpu.pipeline_mode<synchronous>, transform_indices = @transform_2, window_bounds = array<i64: 1, 64>}, {pipeline_mode = #tpu.pipeline_mode<synchronous>, transform_indices = @transform_3, window_bounds = array<i64: 1, 64>}, {transform_indices = @transform_4, window_bounds = array<i64: 1, 128, 64>}]} {
    %c8_i32 = arith.constant 8 : i32
    %0 = arith.muli %arg1, %c8_i32 : i32
    %1 = tpu.assume_multiple %0, 8 : i32
    %cst = arith.constant 0.000000e+00 : bf16
    %2 = vector.broadcast %cst : bf16 to vector<1x10x1x3xbf16>
    %c0 = arith.constant 0 : index
    %c0_0 = arith.constant 0 : index
    %c0_1 = arith.constant 0 : index
    %c0_2 = arith.constant 0 : index
    %3 = vector.load %arg7[%c0, %c0_0, %c0_1, %c0_2] : memref<1x10x66x3xbf16, #tpu.memory_space<vmem>>, vector<1x10x1x3xbf16>
    tpu.vector_store %arg7[%c0, %c0_0, %c0_1, %c0_2], %2 {strides = array<i32>} : memref<1x10x66x3xbf16, #tpu.memory_space<vmem>>, vector<1x10x1x3xbf16>,
    %c0_3 = arith.constant 0 : index
    %c0_4 = arith.constant 0 : index
    %c65 = arith.constant 65 : index
    %c0_5 = arith.constant 0 : index
    %4 = vector.load %arg7[%c0_3, %c0_4, %c65, %c0_5] : memref<1x10x66x3xbf16, #tpu.memory_space<vmem>>, vector<1x10x1x3xbf16>
    tpu.vector_store %arg7[%c0_3, %c0_4, %c65, %c0_5], %2 {strides = array<i32>} : memref<1x10x66x3xbf16, #tpu.memory_space<vmem>>, vector<1x10x1x3xbf16>,
    %c0_6 = arith.constant 0 : index
    %5 = arith.index_cast %1 : i32 to index
    %c0_7 = arith.constant 0 : index
    %c0_8 = arith.constant 0 : index
    %6 = vector.load %arg2[%c0_6, %5, %c0_7, %c0_8] : memref<1x64x64x3xbf16, #tpu.memory_space<vmem>>, vector<1x8x64x3xbf16>
    %c0_9 = arith.constant 0 : index
    %c1 = arith.constant 1 : index
    %c1_10 = arith.constant 1 : index
    %c0_11 = arith.constant 0 : index
    %7 = vector.load %arg7[%c0_9, %c1, %c1_10, %c0_11] : memref<1x10x66x3xbf16, #tpu.memory_space<vmem>>, vector<1x8x64x3xbf16>
    tpu.vector_store %arg7[%c0_9, %c1, %c1_10, %c0_11], %6 {strides = array<i32>} : memref<1x10x66x3xbf16, #tpu.memory_space<vmem>>, vector<1x8x64x3xbf16>,
    %cst_12 = arith.constant 0.000000e+00 : bf16
    %8 = vector.broadcast %cst_12 : bf16 to vector<1x1x64x3xbf16>
    %c0_i32 = arith.constant 0 : i32
    %9 = arith.cmpi eq, %arg1, %c0_i32 : i32
    %10 = arith.extui %9 : i1 to i32
    %c0_i32_13 = arith.constant 0 : i32
    %11 = arith.cmpi ne, %10, %c0_i32_13 : i32
    scf.if %11 {
      %c0_77 = arith.constant 0 : index
      %c0_78 = arith.constant 0 : index
      %c1_79 = arith.constant 1 : index
      %c0_80 = arith.constant 0 : index
      %63 = vector.load %arg7[%c0_77, %c0_78, %c1_79, %c0_80] : memref<1x10x66x3xbf16, #tpu.memory_space<vmem>>, vector<1x1x64x3xbf16>
      tpu.vector_store %arg7[%c0_77, %c0_78, %c1_79, %c0_80], %8 {strides = array<i32>} : memref<1x10x66x3xbf16, #tpu.memory_space<vmem>>, vector<1x1x64x3xbf16>,
    } else {
    }
    %c0_i32_14 = arith.constant 0 : i32
    %12 = arith.cmpi sgt, %arg1, %c0_i32_14 : i32
    %13 = arith.extui %12 : i1 to i32
    %c0_i32_15 = arith.constant 0 : i32
    %14 = arith.cmpi ne, %13, %c0_i32_15 : i32
    scf.if %14 {
      %c1_i32 = arith.constant 1 : i32
      %63 = arith.subi %1, %c1_i32 : i32
      %c0_77 = arith.constant 0 : index
      %64 = arith.index_cast %63 : i32 to index
      %c0_78 = arith.constant 0 : index
      %c0_79 = arith.constant 0 : index
      %65 = vector.load %arg2[%c0_77, %64, %c0_78, %c0_79] : memref<1x64x64x3xbf16, #tpu.memory_space<vmem>>, vector<1x1x64x3xbf16>
      %c0_80 = arith.constant 0 : index
      %c0_81 = arith.constant 0 : index
      %c1_82 = arith.constant 1 : index
      %c0_83 = arith.constant 0 : index
      %66 = vector.load %arg7[%c0_80, %c0_81, %c1_82, %c0_83] : memref<1x10x66x3xbf16, #tpu.memory_space<vmem>>, vector<1x1x64x3xbf16>
      tpu.vector_store %arg7[%c0_80, %c0_81, %c1_82, %c0_83], %65 {strides = array<i32>} : memref<1x10x66x3xbf16, #tpu.memory_space<vmem>>, vector<1x1x64x3xbf16>,
    } else {
    }
    %c7_i32 = arith.constant 7 : i32
    %15 = arith.cmpi eq, %arg1, %c7_i32 : i32
    %16 = arith.extui %15 : i1 to i32
    %c0_i32_16 = arith.constant 0 : i32
    %17 = arith.cmpi ne, %16, %c0_i32_16 : i32
    scf.if %17 {
      %c0_77 = arith.constant 0 : index
      %c9 = arith.constant 9 : index
      %c1_78 = arith.constant 1 : index
      %c0_79 = arith.constant 0 : index
      %63 = vector.load %arg7[%c0_77, %c9, %c1_78, %c0_79] : memref<1x10x66x3xbf16, #tpu.memory_space<vmem>>, vector<1x1x64x3xbf16>
      tpu.vector_store %arg7[%c0_77, %c9, %c1_78, %c0_79], %8 {strides = array<i32>} : memref<1x10x66x3xbf16, #tpu.memory_space<vmem>>, vector<1x1x64x3xbf16>,
    } else {
    }
    %c7_i32_17 = arith.constant 7 : i32
    %18 = arith.cmpi slt, %arg1, %c7_i32_17 : i32
    %19 = arith.extui %18 : i1 to i32
    %c0_i32_18 = arith.constant 0 : i32
    %20 = arith.cmpi ne, %19, %c0_i32_18 : i32
    scf.if %20 {
      %c8_i32_77 = arith.constant 8 : i32
      %63 = arith.addi %1, %c8_i32_77 : i32
      %c0_78 = arith.constant 0 : index
      %64 = arith.index_cast %63 : i32 to index
      %c0_79 = arith.constant 0 : index
      %c0_80 = arith.constant 0 : index
      %65 = vector.load %arg2[%c0_78, %64, %c0_79, %c0_80] : memref<1x64x64x3xbf16, #tpu.memory_space<vmem>>, vector<1x1x64x3xbf16>
      %c0_81 = arith.constant 0 : index
      %c9 = arith.constant 9 : index
      %c1_82 = arith.constant 1 : index
      %c0_83 = arith.constant 0 : index
      %66 = vector.load %arg7[%c0_81, %c9, %c1_82, %c0_83] : memref<1x10x66x3xbf16, #tpu.memory_space<vmem>>, vector<1x1x64x3xbf16>
      tpu.vector_store %arg7[%c0_81, %c9, %c1_82, %c0_83], %65 {strides = array<i32>} : memref<1x10x66x3xbf16, #tpu.memory_space<vmem>>, vector<1x1x64x3xbf16>,
    } else {
    }
    %cst_19 = arith.constant 0.000000e+00 : f32
    %21 = vector.broadcast %cst_19 : f32 to vector<512x64xf32>
    %c0_20 = arith.constant 0 : index
    %c0_21 = arith.constant 0 : index
    %c0_22 = arith.constant 0 : index
    %c0_23 = arith.constant 0 : index
    %22 = vector.load %arg7[%c0_20, %c0_21, %c0_22, %c0_23] : memref<1x10x66x3xbf16, #tpu.memory_space<vmem>>, vector<1x8x64x3xbf16>
    %c0_24 = arith.constant 0 : index
    %c0_25 = arith.constant 0 : index
    %c1_26 = arith.constant 1 : index
    %c0_27 = arith.constant 0 : index
    %23 = vector.load %arg7[%c0_24, %c0_25, %c1_26, %c0_27] : memref<1x10x66x3xbf16, #tpu.memory_space<vmem>>, vector<1x8x64x3xbf16>
    %c0_28 = arith.constant 0 : index
    %c0_29 = arith.constant 0 : index
    %c2 = arith.constant 2 : index
    %c0_30 = arith.constant 0 : index
    %24 = vector.load %arg7[%c0_28, %c0_29, %c2, %c0_30] : memref<1x10x66x3xbf16, #tpu.memory_space<vmem>>, vector<1x8x64x3xbf16>
    %25 = tpu.concatenate %22, %23, %24 in 3 : vector<1x8x64x3xbf16>, vector<1x8x64x3xbf16>, vector<1x8x64x3xbf16> -> vector<1x8x64x9xbf16>
    %26 = vector.shape_cast %25 : vector<1x8x64x9xbf16> to vector<512x9xbf16>
    %c0_31 = arith.constant 0 : index
    %c0_32 = arith.constant 0 : index
    %c0_33 = arith.constant 0 : index
    %27 = vector.load %arg3[%c0_31, %c0_32, %c0_33] : memref<3x9x64xbf16, #tpu.memory_space<vmem>>, vector<1x9x64xbf16>
    %28 = vector.shape_cast %27 : vector<1x9x64xbf16> to vector<9x64xbf16>
    %cst_34 = arith.constant dense<0.000000e+00> : vector<512x64xf32>
    %29 = tpu.matmul %26, %28, %cst_34 {dimension_numbers = #tpu.dot_dimension_numbers<[1], [0], [0], [1], [0, 0, 1, 1], [], []>} : vector<512x9xbf16>, vector<9x64xbf16>, vector<512x64xf32> -> vector<512x64xf32>
    %30 = arith.addf %21, %29 : vector<512x64xf32>
    %c0_35 = arith.constant 0 : index
    %c1_36 = arith.constant 1 : index
    %c0_37 = arith.constant 0 : index
    %c0_38 = arith.constant 0 : index
    %31 = vector.load %arg7[%c0_35, %c1_36, %c0_37, %c0_38] : memref<1x10x66x3xbf16, #tpu.memory_space<vmem>>, vector<1x8x64x3xbf16>
    %c0_39 = arith.constant 0 : index
    %c1_40 = arith.constant 1 : index
    %c1_41 = arith.constant 1 : index
    %c0_42 = arith.constant 0 : index
    %32 = vector.load %arg7[%c0_39, %c1_40, %c1_41, %c0_42] : memref<1x10x66x3xbf16, #tpu.memory_space<vmem>>, vector<1x8x64x3xbf16>
    %c0_43 = arith.constant 0 : index
    %c1_44 = arith.constant 1 : index
    %c2_45 = arith.constant 2 : index
    %c0_46 = arith.constant 0 : index
    %33 = vector.load %arg7[%c0_43, %c1_44, %c2_45, %c0_46] : memref<1x10x66x3xbf16, #tpu.memory_space<vmem>>, vector<1x8x64x3xbf16>
    %34 = tpu.concatenate %31, %32, %33 in 3 : vector<1x8x64x3xbf16>, vector<1x8x64x3xbf16>, vector<1x8x64x3xbf16> -> vector<1x8x64x9xbf16>
    %35 = vector.shape_cast %34 : vector<1x8x64x9xbf16> to vector<512x9xbf16>
    %c1_47 = arith.constant 1 : index
    %c0_48 = arith.constant 0 : index
    %c0_49 = arith.constant 0 : index
    %36 = vector.load %arg3[%c1_47, %c0_48, %c0_49] : memref<3x9x64xbf16, #tpu.memory_space<vmem>>, vector<1x9x64xbf16>
    %37 = vector.shape_cast %36 : vector<1x9x64xbf16> to vector<9x64xbf16>
    %cst_50 = arith.constant dense<0.000000e+00> : vector<512x64xf32>
    %38 = tpu.matmul %35, %37, %cst_50 {dimension_numbers = #tpu.dot_dimension_numbers<[1], [0], [0], [1], [0, 0, 1, 1], [], []>} : vector<512x9xbf16>, vector<9x64xbf16>, vector<512x64xf32> -> vector<512x64xf32>
    %39 = arith.addf %30, %38 : vector<512x64xf32>
    %c0_51 = arith.constant 0 : index
    %c2_52 = arith.constant 2 : index
    %c0_53 = arith.constant 0 : index
    %c0_54 = arith.constant 0 : index
    %40 = vector.load %arg7[%c0_51, %c2_52, %c0_53, %c0_54] : memref<1x10x66x3xbf16, #tpu.memory_space<vmem>>, vector<1x8x64x3xbf16>
    %c0_55 = arith.constant 0 : index
    %c2_56 = arith.constant 2 : index
    %c1_57 = arith.constant 1 : index
    %c0_58 = arith.constant 0 : index
    %41 = vector.load %arg7[%c0_55, %c2_56, %c1_57, %c0_58] : memref<1x10x66x3xbf16, #tpu.memory_space<vmem>>, vector<1x8x64x3xbf16>
    %c0_59 = arith.constant 0 : index
    %c2_60 = arith.constant 2 : index
    %c2_61 = arith.constant 2 : index
    %c0_62 = arith.constant 0 : index
    %42 = vector.load %arg7[%c0_59, %c2_60, %c2_61, %c0_62] : memref<1x10x66x3xbf16, #tpu.memory_space<vmem>>, vector<1x8x64x3xbf16>
    %43 = tpu.concatenate %40, %41, %42 in 3 : vector<1x8x64x3xbf16>, vector<1x8x64x3xbf16>, vector<1x8x64x3xbf16> -> vector<1x8x64x9xbf16>
    %44 = vector.shape_cast %43 : vector<1x8x64x9xbf16> to vector<512x9xbf16>
    %c2_63 = arith.constant 2 : index
    %c0_64 = arith.constant 0 : index
    %c0_65 = arith.constant 0 : index
    %45 = vector.load %arg3[%c2_63, %c0_64, %c0_65] : memref<3x9x64xbf16, #tpu.memory_space<vmem>>, vector<1x9x64xbf16>
    %46 = vector.shape_cast %45 : vector<1x9x64xbf16> to vector<9x64xbf16>
    %cst_66 = arith.constant dense<0.000000e+00> : vector<512x64xf32>
    %47 = tpu.matmul %44, %46, %cst_66 {dimension_numbers = #tpu.dot_dimension_numbers<[1], [0], [0], [1], [0, 0, 1, 1], [], []>} : vector<512x9xbf16>, vector<9x64xbf16>, vector<512x64xf32> -> vector<512x64xf32>
    %48 = arith.addf %39, %47 : vector<512x64xf32>
    %c0_67 = arith.constant 0 : index
    %c0_68 = arith.constant 0 : index
    %49 = vector.load %arg4[%c0_67, %c0_68] : memref<1x64xf32, #tpu.memory_space<vmem>>, vector<1x64xf32>
    %50 = vector.broadcast %49 : vector<1x64xf32> to vector<512x64xf32>
    %51 = arith.mulf %48, %50 : vector<512x64xf32>
    %c0_69 = arith.constant 0 : index
    %c0_70 = arith.constant 0 : index
    %52 = vector.load %arg5[%c0_69, %c0_70] : memref<1x64xf32, #tpu.memory_space<vmem>>, vector<1x64xf32>
    %53 = vector.broadcast %52 : vector<1x64xf32> to vector<512x64xf32>
    %54 = arith.addf %51, %53 : vector<512x64xf32>
    %cst_71 = arith.constant 0.000000e+00 : f32
    %55 = vector.broadcast %cst_71 : f32 to vector<512x64xf32>
    %56 = arith.maximumf %54, %55 : vector<512x64xf32>
    %57 = vector.shape_cast %56 : vector<512x64xf32> to vector<1x4x2x32x2x64xf32>
    %cst_72 = arith.constant dense<0xFF800000> : vector<1x4x2x32x64xf32>
    %58 = vector.multi_reduction <maximumf>, %57, %cst_72 [4] : vector<1x4x2x32x2x64xf32> to vector<1x4x2x32x64xf32>
    %cst_73 = arith.constant dense<0xFF800000> : vector<1x4x32x64xf32>
    %59 = vector.multi_reduction <maximumf>, %58, %cst_73 [2] : vector<1x4x2x32x64xf32> to vector<1x4x32x64xf32>
    %60 = vector.shape_cast %59 : vector<1x4x32x64xf32> to vector<1x128x64xf32>
    %61 = arith.truncf %60 : vector<1x128x64xf32> to vector<1x128x64xbf16>
    %c0_74 = arith.constant 0 : index
    %c0_75 = arith.constant 0 : index
    %c0_76 = arith.constant 0 : index
    %62 = vector.load %arg6[%c0_74, %c0_75, %c0_76] : memref<1x128x64xbf16, #tpu.memory_space<vmem>>, vector<1x128x64xbf16>
    tpu.vector_store %arg6[%c0_74, %c0_75, %c0_76], %61 {strides = array<i32>} : memref<1x128x64xbf16, #tpu.memory_space<vmem>>, vector<1x128x64xbf16>,
    return
  }
  func.func @transform_0(%arg0: i32, %arg1: i32) -> (i32, i32, i32, i32) {
    %c0_i32 = arith.constant 0 : i32
    %c0_i32_0 = arith.constant 0 : i32
    %c0_i32_1 = arith.constant 0 : i32
    %c0_i32_2 = arith.constant 0 : i32
    return %arg0, %c0_i32, %c0_i32_0, %c0_i32_1 : i32, i32, i32, i32
  }
  func.func @transform_1(%arg0: i32, %arg1: i32) -> (i32, i32, i32) {
    %c0_i32 = arith.constant 0 : i32
    %c0_i32_0 = arith.constant 0 : i32
    %c0_i32_1 = arith.constant 0 : i32
    %c0_i32_2 = arith.constant 0 : i32
    return %c0_i32, %c0_i32_0, %c0_i32_1 : i32, i32, i32
  }
  func.func @transform_2(%arg0: i32, %arg1: i32) -> (i32, i32) {
    %c0_i32 = arith.constant 0 : i32
    %c0_i32_0 = arith.constant 0 : i32
    %c0_i32_1 = arith.constant 0 : i32
    return %c0_i32, %c0_i32_0 : i32, i32
  }
  func.func @transform_3(%arg0: i32, %arg1: i32) -> (i32, i32) {
    %c0_i32 = arith.constant 0 : i32
    %c0_i32_0 = arith.constant 0 : i32
    %c0_i32_1 = arith.constant 0 : i32
    return %c0_i32, %c0_i32_0 : i32, i32
  }
  func.func @transform_4(%arg0: i32, %arg1: i32) -> (i32, i32, i32) {
    %c0_i32 = arith.constant 0 : i32
    %c0_i32_0 = arith.constant 0 : i32
    return %arg0, %arg1, %c0_i32 : i32, i32, i32
  }
}

</mosaic_0001>

<bundles_post_ra>
// kernel: tpu_custom_call.1
= control target key start
LH: loop header
LB: loop body
LE: loop exit
PB: predicated region body
PF: predicated region fallthrough
CT: control target
= control target key end

     0   :  { %s9181_s15 = smov 0   ;;  %s9183_s16 = smov 0   ;;  %s13158_s0 = inlined_call_operand.vmem [shape: bf16[2,64,64,3], index: 0, kind: input, shape index: {}]   ;;  %s13159_s1 = inlined_call_operand.vmem [shape: bf16[3,9,64], index: 1, kind: input, shape index: {}]   ;;  %s13160_s2 = inlined_call_operand.vmem [shape: f32[1,64], index: 2, kind: input, shape index: {}]   ;;  %s13161_s3 = inlined_call_operand.vmem [shape: f32[1,64], index: 3, kind: input, shape index: {}]   ;;  %s13162_s4 = inlined_call_operand.vmem [shape: bf16[2,1024,64], index: 4, kind: output, shape index: {}]  }
   0x1   :  { %s9185_s17 = smov 0   ;;  %s9187_s18 = smov 0  }
   0x2   :  { %s9189_s19 = smov 0  }
   0x3 LB: > { %s23_s20 = sadd.s32 1, %s9141_s17  ;;  %s26_s21 = sadd.s32 1, %s9145_s18  ;;  %s9149_s19 = sphi %s9189_s19, %s14_s19   ;;  %s9145_s18 = sphi %s9187_s18, %s13395_s18   ;;  %s9141_s17 = sphi %s9185_s17, %s13394_s17   ;;  %s9137_s16 = sphi %s9183_s16, %s13393_s16   ;;  %s9133_s15 = sphi %s9181_s15, %s13392_s15  }
   0x4   : > { %p24_p0 = scmp.ge.s32.totalorder %s23_s20, 8  ;;  %p8350_p1 = scmp.ge.s32.totalorder %s9149_s19, 1 }
   0x5   : > { %p176_p2 = scmp.lt.s32.totalorder %s9149_s19, 17 }
   0x6   : > { %s13397_s20 = smov (%p24_p0, %s23_s20), 0  ;;  %s13399_s21 = smov (!%p24_p0, %s26_s21), %s9145_s18 }
   0x7   : > { %p177_p3 = pnand %p8350_p1, %p176_p2  ;;  %p28_p4 = scmp.ge.s32.totalorder %s13399_s21, 2 }
   0x9   : > { %s13401_s21 = smov (%p28_p4, %s13399_s21), 0  ;;  %180 = sbr.rel (%p177_p3) target bundleno = 1398 (0x576), region = 36 }
   0xe   : > { %vm223_vm0 = vcmask 16384   ;;  %vm224_vm1 = vsmask.f32 256  ;;  %v229_v0 = vld [vmem:[#allocation2 + $0x24] sm:$0x1]  ;;  %s8356_s22 = sshll.u32 %s9133_s15, 3 }
   0xf   : > { %vm9218_vm2 = vmand %vm223_vm0, %vm224_vm1  ;;  %v232_v2 = vld [vmem:[#allocation2 + $0x48] sm:$0x1]  ;;  %v235_v3 = vld [vmem:[#allocation2 + $0x6c] sm:$0x1]  ;;  %p206_p5 = scmp.lt.s32.totalorder %s9137_s16, 1  ;;  %s8353_s23 = sshll.u32 %s9133_s15, 4 }
  0x10   : > { %v230_v4 = vsel %vm9218_vm2, 0, %v229_v0  ;;  %v233_v5 = vsel %vm9218_vm2, 0, %v232_v2  ;;  %v236_v6 = vsel %vm9218_vm2, 0, %v235_v3  ;;  %v238_v7 = vld [vmem:[#allocation2 + $0x90] sm:$0x1]  ;;  %p9239_p6 = scmp.lt.s32.totalorder %s8353_s23, 127 }
  0x11   : > { %231 = vst [vmem:[#allocation2 + $0x24] sm:$0x1] %v230_v4  ;;  %v239_v8 = vsel %vm9218_vm2, 0, %v238_v7  ;;  %v241_v9 = vld [vmem:[#allocation2 + $0xb4] sm:$0x1]  ;;  %s13403_s16 = smov (!%p206_p5, %s9137_s16), 1 }
  0x12   : > { %234 = vst [vmem:[#allocation2 + $0x48] sm:$0x1] %v233_v5  ;;  %v242_v10 = vsel %vm9218_vm2, 0, %v241_v9  ;;  %v244_v11 = vld [vmem:[#allocation2 + $0xd8] sm:$0x1]  ;;  %s8778_s25 = sshll.u32 %s13403_s16, 11 }
  0x13   : > { %237 = vst [vmem:[#allocation2 + $0x6c] sm:$0x1] %v236_v6  ;;  %v245_v12 = vsel %vm9218_vm2, 0, %v244_v11  ;;  %v247_v13 = vld [vmem:[#allocation2 + $0xfc] sm:$0x1]  ;;  %s8354_s26 = sshll.u32 %s13403_s16, 7  ;;  %s9273_s5 = scalar_lea.vmem %s13158_s0, %s8778_s25 }
  0x14   : > { %240 = vst [vmem:[#allocation2 + $0x90] sm:$0x1] %v239_v8  ;;  %v248_v14 = vsel %vm9218_vm2, 0, %v247_v13  ;;  %v250_v15 = vld [vmem:[#allocation2 + $0x120] sm:$0x1]  ;;  %s13405_s23 = smov (!%p9239_p6, %s8353_s23), 127 }
  0x15   : > { %243 = vst [vmem:[#allocation2 + $0xb4] sm:$0x1] %v242_v10  ;;  %v251_v16 = vsel %vm9218_vm2, 0, %v250_v15  ;;  %vm256_vm3 = vsmask.f32 7938  ;;  %s217_s27 = sadd.s32 %s8354_s26, %s13405_s23  ;;  %s8780_s28 = sshll.u32 %s9133_s15, 8 }
  0x16   : > { %246 = vst [vmem:[#allocation2 + $0xd8] sm:$0x1] %v245_v12  ;;  %vm9251_vm4 = vmand %vm223_vm0, %vm256_vm3  ;;  %v261_v18 = vld [vmem:[#allocation2 + $0x44] sm:$0x1]  ;;  %v264_v19 = vld [vmem:[#allocation2 + $0x68] sm:$0x1]  ;;  %s9287_s10 = scalar_lea.vmem %s9273_s5, %s8780_s28 }
  0x17   : > { %249 = vst [vmem:[#allocation2 + $0xfc] sm:$0x1] %v248_v14  ;;  %v262_v20 = vsel %vm9251_vm4, 0, %v261_v18  ;;  %v265_v21 = vsel %vm9251_vm4, 0, %v264_v19  ;;  %v267_v22 = vld [vmem:[#allocation2 + $0x8c] sm:$0x1] }
  0x18   : > { %252 = vst [vmem:[#allocation2 + $0x120] sm:$0x1] %v251_v16  ;;  %v268_v23 = vsel %vm9251_vm4, 0, %v267_v22  ;;  %v270_v24 = vld [vmem:[#allocation2 + $0xb0] sm:$0x1]  ;;  %s8355_s6 = sshll.u32 %s217_s27, 2 }
  0x19   : > { %263 = vst [vmem:[#allocation2 + $0x44] sm:$0x1] %v262_v20  ;;  %v271_v25 = vsel %vm9251_vm4, 0, %v270_v24  ;;  %v273_v26 = vld [vmem:[#allocation2 + $0xd4] sm:$0x1]  ;;  %s9280_s9 = scalar_lea.vmem %s13162_s4, %s8355_s6  ;;  %vm998_vm6 = vcmask 19456  }
  0x1a   : > { %266 = vst [vmem:[#allocation2 + $0x68] sm:$0x1] %v265_v21  ;;  %v274_v27 = vsel %vm9251_vm4, 0, %v273_v26  ;;  %v276_v28 = vld [vmem:[#allocation2 + $0xf8] sm:$0x1]  ;;  %vm9300_vm7 = vmand %vm998_vm6, %vm256_vm3  ;;  %p8359_p7 = scmp.ne.s32.totalorder %s9133_s15, 0 }
  0x1b   : > { %269 = vst [vmem:[#allocation2 + $0x8c] sm:$0x1] %v268_v23  ;;  %v277_v29 = vsel %vm9251_vm4, 0, %v276_v28  ;;  %v279_v30 = vld [vmem:[#allocation2 + $0x11c] sm:$0x1] }
  0x1c   : > { %vm355_vm5 = vsmask.f32 4368  ;;  %272 = vst [vmem:[#allocation2 + $0xb0] sm:$0x1] %v271_v25  ;;  %v280_v31 = vsel %vm9251_vm4, 0, %v279_v30 }
  0x1d   : > { %v282_v32 = vld [vmem:[#allocation2 + $0x140] sm:$0x1]  ;;  %275 = vst [vmem:[#allocation2 + $0xd4] sm:$0x1] %v274_v27  ;;  %v253_v36 = vld [vmem:[#allocation2 + $0x144] sm:$0x1]  ;;  %vm9309_vm8 = vmor %vm224_vm1, %vm355_vm5 }
  0x1e   : > { %v283_v33 = vsel %vm9251_vm4, 0, %v282_v32  ;;  %v226_v34 = vld [vmem:[#allocation2] sm:$0x1]  ;;  %278 = vst [vmem:[#allocation2 + $0xf8] sm:$0x1] %v277_v29  ;;  %v254_v37 = vsel %vm9218_vm2, 0, %v253_v36 }
  0x1f   : > { %v227_v35 = vsel %vm9218_vm2, 0, %v226_v34  ;;  %281 = vst [vmem:[#allocation2 + $0x11c] sm:$0x1] %v280_v31  ;;  %v258_v38 = vld [vmem:[#allocation2 + $0x20] sm:$0x1] }
  0x20   : > { %284 = vst [vmem:[#allocation2 + $0x140] sm:$0x1] %v283_v33  ;;  %v259_v39 = vsel %vm9251_vm4, 0, %v258_v38  ;;  %v285_v40 = vld [vmem:[#allocation2 + $0x164] sm:$0x1] }
  0x21   : > { %228 = vst [vmem:[#allocation2] sm:$0x1] %v227_v35  ;;  %v286_v41 = vsel %vm9251_vm4, 0, %v285_v40  ;;  %v291_v42 = vld [vmem:[%s9287_s10] sm:$0xf] }
  0x22   : > { %255 = vst [vmem:[#allocation2 + $0x144] sm:$0x1] %v254_v37  ;;  %v358_v43 = vshrl.u32 %v291_v42, 16  ;;  %v361_v44 = vshll.u32 %v291_v42, 16  ;;  %v1000_v45 = vld [vmem:[#allocation2 + $0x24] sm:$0xf] }
  0x23   : > { %260 = vst [vmem:[#allocation2 + $0x20] sm:$0x1] %v259_v39  ;;  %v292_v46 = vld [vmem:[%s9287_s10 + $0x4] sm:$0xf]  ;;  %v293_v47 = vld [vmem:[%s9287_s10 + $0x8] sm:$0xf] }
  0x24   : > { %287 = vst [vmem:[#allocation2 + $0x164] sm:$0x1] %v286_v41  ;;  %v360_v48 = vrot.slane %v358_v43, 7  ;;  %v366_v49 = vshrl.u32 %v292_v46, 16  ;;  %v369_v50 = vshll.u32 %v292_v46, 16  ;;  %v375_v51 = vshrl.u32 %v293_v47, 16 }
  0x25   : > { %v378_v53 = vshll.u32 %v293_v47, 16  ;;  %v294_v54 = vld [vmem:[%s9287_s10 + $0xc] sm:$0xf]  ;;  %v295_v55 = vld [vmem:[%s9287_s10 + $0x10] sm:$0xf] }
  0x26   : > { %v363_v56 = vor.u32 %v361_v44, %v360_v48  ;;  %v364_v57 = vrot.slane %v360_v48, 4  ;;  %v368_v58 = vrot.slane %v366_v49, 7  ;;  %v377_v59 = vrot.slane %v375_v51, 7  ;;  %v296_v60 = vld [vmem:[%s9287_s10 + $0x14] sm:$0xf] }
  0x27   : > { %v384_v62 = vshrl.u32 %v294_v54, 16  ;;  %v387_v63 = vshll.u32 %v294_v54, 16  ;;  %v393_v0 = vshrl.u32 %v295_v55, 16  ;;  %v396_v2 = vshll.u32 %v295_v55, 16  ;;  %v297_v3 = vld [vmem:[%s9287_s10 + $0x18] sm:$0xf] }
  0x28   : > { %v1001_v4 = vsel %vm9300_vm7, %v363_v56, %v1000_v45  ;;  %v371_v5 = vor.u32 %v369_v50, %v368_v58  ;;  %v373_v6 = vrot.slane %v368_v58, 4  ;;  %v380_v7 = vor.u32 %v378_v53, %v377_v59  ;;  %v298_v8 = vld [vmem:[%s9287_s10 + $0x1c] sm:$0xf]  ;;  %v299_v17 = vld [vmem:[%s9287_s10 + $0x20] sm:$0xf] }
  0x29   : > { %1002 = vst [vmem:[#allocation2 + $0x24] sm:$0xf] %v1001_v4  ;;  %v382_v9 = vrot.slane %v377_v59, 4  ;;  %v386_v10 = vrot.slane %v384_v62, 7  ;;  %v395_v11 = vrot.slane %v393_v0, 7  ;;  %v402_v12 = vshrl.u32 %v296_v60, 16 }
  0x2a   : > { %v372_v13 = vsel %vm9309_vm8, %v364_v57, %v371_v5  ;;  %v381_v14 = vsel %vm9309_vm8, %v373_v6, %v380_v7  ;;  %v405_v15 = vshll.u32 %v296_v60, 16  ;;  %v411_v16 = vshrl.u32 %v297_v3, 16  ;;  %v300_v22 = vld [vmem:[%s9287_s10 + $0x24] sm:$0xf]  ;;  %v301_v31 = vld [vmem:[%s9287_s10 + $0x28] sm:$0xf] }
  0x2b   : > { %1004 = vst.msk [vmem:[#allocation2 + $0x28] sm:$0xf] %vm998_vm6, %v372_v13  ;;  %v389_v18 = vor.u32 %v387_v63, %v386_v10  ;;  %v391_v19 = vrot.slane %v386_v10, 4  ;;  %v398_v20 = vor.u32 %v396_v2, %v395_v11  ;;  %v400_v21 = vrot.slane %v395_v11, 4  ;;  %v1011_v36 = vld [vmem:[#allocation2 + $0x44] sm:$0x1] }
  0x2c   : > { %1005 = vst.msk [vmem:[#allocation2 + $0x2c] sm:$0xf] %vm998_vm6, %v381_v14  ;;  %v404_v23 = vrot.slane %v402_v12, 7  ;;  %v413_v24 = vrot.slane %v411_v16, 7  ;;  %v414_v25 = vshll.u32 %v297_v3, 16  ;;  %v420_v26 = vshrl.u32 %v298_v8, 16 }
  0x2d   : > { %v390_v27 = vsel %vm9309_vm8, %v382_v9, %v389_v18  ;;  %v399_v28 = vsel %vm9309_vm8, %v391_v19, %v398_v20  ;;  %v423_v29 = vshll.u32 %v298_v8, 16  ;;  %v429_v30 = vshrl.u32 %v299_v17, 16  ;;  %v302_v37 = vld [vmem:[%s9287_s10 + $0x2c] sm:$0xf]  ;;  %v1014_v44 = vld [vmem:[#allocation2 + $0x48] sm:$0xf] }
  0x2e   : > { %1006 = vst.msk [vmem:[#allocation2 + $0x30] sm:$0xf] %vm998_vm6, %v390_v27  ;;  %v407_v32 = vor.u32 %v405_v15, %v404_v23  ;;  %v409_v33 = vrot.slane %v404_v23, 4  ;;  %v416_v34 = vor.u32 %v414_v25, %v413_v24  ;;  %v418_v35 = vrot.slane %v413_v24, 4  ;;  %v303_v47 = vld [vmem:[%s9287_s10 + $0x30] sm:$0xf] }
  0x2f   : > { %1007 = vst.msk [vmem:[#allocation2 + $0x34] sm:$0xf] %vm998_vm6, %v399_v28  ;;  %v422_v38 = vrot.slane %v420_v26, 7  ;;  %v431_v39 = vrot.slane %v429_v30, 7  ;;  %v432_v40 = vshll.u32 %v299_v17, 16  ;;  %v437_v41 = vshrl.u32 %v300_v22, 16 }
  0x30   : > { %v408_v42 = vsel %vm9309_vm8, %v400_v21, %v407_v32  ;;  %v417_v43 = vsel %vm9309_vm8, %v409_v33, %v416_v34  ;;  %v440_v45 = vshll.u32 %v300_v22, 16  ;;  %v446_v46 = vshrl.u32 %v301_v31, 16  ;;  %v304_v53 = vld [vmem:[%s9287_s10 + $0x34] sm:$0xf]  ;;  %v305_v63 = vld [vmem:[%s9287_s10 + $0x38] sm:$0xf] }
  0x31   : > { %1008 = vst.msk [vmem:[#allocation2 + $0x38] sm:$0xf] %vm998_vm6, %v408_v42  ;;  %v425_v48 = vor.u32 %v423_v29, %v422_v38  ;;  %v427_v49 = vrot.slane %v422_v38, 4  ;;  %v434_v50 = vor.u32 %v432_v40, %v431_v39  ;;  %v435_v51 = vrot.slane %v431_v39, 4  ;;  %v306_v5 = vld [vmem:[%s9287_s10 + $0x3c] sm:$0xf] }
  0x32   : > { %1009 = vst.msk [vmem:[#allocation2 + $0x3c] sm:$0xf] %vm998_vm6, %v417_v43  ;;  %v439_v54 = vrot.slane %v437_v41, 7  ;;  %v448_v55 = vrot.slane %v446_v46, 7  ;;  %v449_v56 = vshll.u32 %v301_v31, 16  ;;  %v455_v57 = vshrl.u32 %v302_v37, 16 }
  0x33   : > { %v426_v58 = vsel %vm9309_vm8, %v418_v35, %v425_v48  ;;  %v1012_v59 = vsel %vm9218_vm2, %v427_v49, %v1011_v36  ;;  %v1015_v60 = vsel %vm9300_vm7, %v434_v50, %v1014_v44  ;;  %v458_v62 = vshll.u32 %v302_v37, 16  ;;  %v307_v14 = vld [vmem:[%s9287_s10 + $0x40] sm:$0xf]  ;;  %v308_v27 = vld [vmem:[%s9287_s10 + $0x44] sm:$0xf] }
  0x34   : > { %1010 = vst.msk [vmem:[#allocation2 + $0x40] sm:$0xf] %vm998_vm6, %v426_v58  ;;  %v442_v0 = vor.u32 %v440_v45, %v439_v54  ;;  %v444_v2 = vrot.slane %v439_v54, 4  ;;  %v451_v3 = vor.u32 %v449_v56, %v448_v55  ;;  %v453_v4 = vrot.slane %v448_v55, 4  ;;  %v309_v28 = vld [vmem:[%s9287_s10 + $0x48] sm:$0xf] }
  0x35   : > { %1013 = vst [vmem:[#allocation2 + $0x44] sm:$0x1] %v1012_v59  ;;  %v457_v6 = vrot.slane %v455_v57, 7  ;;  %v464_v7 = vshrl.u32 %v303_v47, 16  ;;  %v467_v8 = vshll.u32 %v303_v47, 16  ;;  %v473_v9 = vshrl.u32 %v304_v53, 16 }
  0x36   : > { %1016 = vst [vmem:[#allocation2 + $0x48] sm:$0xf] %v1015_v60  ;;  %v443_v10 = vsel %vm9309_vm8, %v435_v51, %v442_v0  ;;  %v452_v11 = vsel %vm9309_vm8, %v444_v2, %v451_v3  ;;  %v476_v12 = vshll.u32 %v304_v53, 16  ;;  %v482_v13 = vshrl.u32 %v305_v63, 16  ;;  %v1024_v35 = vld [vmem:[#allocation2 + $0x68] sm:$0x1] }
  0x37   : > { %1017 = vst.msk [vmem:[#allocation2 + $0x4c] sm:$0xf] %vm998_vm6, %v443_v10  ;;  %v460_v15 = vor.u32 %v458_v62, %v457_v6  ;;  %v462_v16 = vrot.slane %v457_v6, 4  ;;  %v466_v17 = vrot.slane %v464_v7, 7  ;;  %v475_v18 = vrot.slane %v473_v9, 7 }
  0x38   : > { %1018 = vst.msk [vmem:[#allocation2 + $0x50] sm:$0xf] %vm998_vm6, %v452_v11  ;;  %v484_v19 = vrot.slane %v482_v13, 7  ;;  %v485_v20 = vshll.u32 %v305_v63, 16  ;;  %v491_v21 = vshrl.u32 %v306_v5, 16  ;;  %v494_v22 = vshll.u32 %v306_v5, 16 }
  0x39   : > { %v461_v23 = vsel %vm9309_vm8, %v453_v4, %v460_v15  ;;  %v469_v24 = vor.u32 %v467_v8, %v466_v17  ;;  %v471_v25 = vrot.slane %v466_v17, 4  ;;  %v478_v26 = vor.u32 %v476_v12, %v475_v18  ;;  %v310_v38 = vld [vmem:[%s9287_s10 + $0x4c] sm:$0xf]  ;;  %v311_v44 = vld [vmem:[%s9287_s10 + $0x50] sm:$0xf] }
  0x3a   : > { %1019 = vst.msk [vmem:[#allocation2 + $0x54] sm:$0xf] %vm998_vm6, %v461_v23  ;;  %v480_v29 = vrot.slane %v475_v18, 4  ;;  %v487_v30 = vor.u32 %v485_v20, %v484_v19  ;;  %v489_v31 = vrot.slane %v484_v19, 4  ;;  %v493_v32 = vrot.slane %v491_v21, 7 }
  0x3b   : > { %v470_v33 = vsel %vm9309_vm8, %v462_v16, %v469_v24  ;;  %v479_v34 = vsel %vm9309_vm8, %v471_v25, %v478_v26  ;;  %v500_v36 = vshrl.u32 %v307_v14, 16  ;;  %v503_v37 = vshll.u32 %v307_v14, 16  ;;  %v1027_v42 = vld [vmem:[#allocation2 + $0x6c] sm:$0xf]  ;;  %v312_v54 = vld [vmem:[%s9287_s10 + $0x54] sm:$0xf] }
  0x3c   : > { %1020 = vst.msk [vmem:[#allocation2 + $0x58] sm:$0xf] %vm998_vm6, %v470_v33  ;;  %v488_v39 = vsel %vm9309_vm8, %v480_v29, %v487_v30  ;;  %v496_v40 = vor.u32 %v494_v22, %v493_v32  ;;  %v498_v41 = vrot.slane %v493_v32, 4  ;;  %v508_v43 = vshrl.u32 %v308_v27, 16  ;;  %v313_v55 = vld [vmem:[%s9287_s10 + $0x58] sm:$0xf] }
  0x3d   : > { %1021 = vst.msk [vmem:[#allocation2 + $0x5c] sm:$0xf] %vm998_vm6, %v479_v34  ;;  %v502_v45 = vrot.slane %v500_v36, 7  ;;  %v511_v46 = vshll.u32 %v308_v27, 16  ;;  %v517_v47 = vshrl.u32 %v309_v28, 16  ;;  %v520_v48 = vshll.u32 %v309_v28, 16 }
  0x3e   : > { %1022 = vst.msk [vmem:[#allocation2 + $0x60] sm:$0xf] %vm998_vm6, %v488_v39  ;;  %v497_v49 = vsel %vm9309_vm8, %v489_v31, %v496_v40  ;;  %v1025_v50 = vsel %vm9218_vm2, %v498_v41, %v1024_v35  ;;  %v510_v51 = vrot.slane %v508_v43, 7  ;;  %v526_v53 = vshrl.u32 %v310_v38, 16  ;;  %v314_v6 = vld [vmem:[%s9287_s10 + $0x5c] sm:$0xf] }
  0x3f   : > { %1023 = vst.msk [vmem:[#allocation2 + $0x64] sm:$0xf] %vm998_vm6, %v497_v49  ;;  %v505_v56 = vor.u32 %v503_v37, %v502_v45  ;;  %v506_v57 = vrot.slane %v502_v45, 4  ;;  %v519_v58 = vrot.slane %v517_v47, 7  ;;  %v529_v59 = vshll.u32 %v310_v38, 16 }
  0x40   : > { %1026 = vst [vmem:[#allocation2 + $0x68] sm:$0x1] %v1025_v50  ;;  %v513_v60 = vor.u32 %v511_v46, %v510_v51  ;;  %v515_v62 = vrot.slane %v510_v51, 4  ;;  %v528_v63 = vrot.slane %v526_v53, 7  ;;  %v535_v0 = vshrl.u32 %v311_v44, 16 }
  0x41   : > { %v1028_v2 = vsel %vm9300_vm7, %v505_v56, %v1027_v42  ;;  %v522_v3 = vor.u32 %v520_v48, %v519_v58  ;;  %v524_v4 = vrot.slane %v519_v58, 4  ;;  %v538_v5 = vshll.u32 %v311_v44, 16  ;;  %v315_v11 = vld [vmem:[%s9287_s10 + $0x60] sm:$0xf]  ;;  %v316_v20 = vld [vmem:[%s9287_s10 + $0x64] sm:$0xf] }
  0x42   : > { %1029 = vst [vmem:[#allocation2 + $0x6c] sm:$0xf] %v1028_v2  ;;  %v514_v7 = vsel %vm9309_vm8, %v506_v57, %v513_v60  ;;  %v531_v8 = vor.u32 %v529_v59, %v528_v63  ;;  %v533_v9 = vrot.slane %v528_v63, 4  ;;  %v537_v10 = vrot.slane %v535_v0, 7  ;;  %v317_v29 = vld [vmem:[%s9287_s10 + $0x68] sm:$0xf] }
  0x43   : > { %1030 = vst.msk [vmem:[#allocation2 + $0x70] sm:$0xf] %vm998_vm6, %v514_v7  ;;  %v523_v12 = vsel %vm9309_vm8, %v515_v62, %v522_v3  ;;  %v544_v13 = vshrl.u32 %v312_v54, 16  ;;  %v547_v14 = vshll.u32 %v312_v54, 16  ;;  %v553_v15 = vshrl.u32 %v313_v55, 16 }
  0x44   : > { %1031 = vst.msk [vmem:[#allocation2 + $0x74] sm:$0xf] %vm998_vm6, %v523_v12  ;;  %v532_v16 = vsel %vm9309_vm8, %v524_v4, %v531_v8  ;;  %v540_v17 = vor.u32 %v538_v5, %v537_v10  ;;  %v542_v18 = vrot.slane %v537_v10, 4  ;;  %v556_v19 = vshll.u32 %v313_v55, 16  ;;  %v1037_v34 = vld [vmem:[#allocation2 + $0x8c] sm:$0x1] }
  0x45   : > { %1032 = vst.msk [vmem:[#allocation2 + $0x78] sm:$0xf] %vm998_vm6, %v532_v16  ;;  %v546_v21 = vrot.slane %v544_v13, 7  ;;  %v555_v22 = vrot.slane %v553_v15, 7  ;;  %v562_v23 = vshrl.u32 %v314_v6, 16  ;;  %v565_v24 = vshll.u32 %v314_v6, 16 }
  0x46   : > { %v541_v25 = vsel %vm9309_vm8, %v533_v9, %v540_v17  ;;  %v571_v26 = vshrl.u32 %v315_v11, 16  ;;  %v574_v27 = vshll.u32 %v315_v11, 16  ;;  %v579_v28 = vshrl.u32 %v316_v20, 16  ;;  %v318_v39 = vld [vmem:[%s9287_s10 + $0x6c] sm:$0xf] }
  0x47   : > { %1033 = vst.msk [vmem:[#allocation2 + $0x7c] sm:$0xf] %vm998_vm6, %v541_v25  ;;  %v549_v30 = vor.u32 %v547_v14, %v546_v21  ;;  %v551_v31 = vrot.slane %v546_v21, 4  ;;  %v558_v32 = vor.u32 %v556_v19, %v555_v22  ;;  %v560_v33 = vrot.slane %v555_v22, 4  ;;  %v1040_v42 = vld [vmem:[#allocation2 + $0x90] sm:$0xf] }
  0x48   : > { %v564_v35 = vrot.slane %v562_v23, 7  ;;  %v573_v36 = vrot.slane %v571_v26, 7  ;;  %v581_v37 = vrot.slane %v579_v28, 7  ;;  %v582_v38 = vshll.u32 %v316_v20, 16  ;;  %v319_v45 = vld [vmem:[%s9287_s10 + $0x70] sm:$0xf] }
  0x49   : > { %v550_v40 = vsel %vm9309_vm8, %v542_v18, %v549_v30  ;;  %v559_v41 = vsel %vm9309_vm8, %v551_v31, %v558_v32  ;;  %v588_v43 = vshrl.u32 %v317_v29, 16  ;;  %v591_v44 = vshll.u32 %v317_v29, 16  ;;  %v320_v50 = vld [vmem:[%s9287_s10 + $0x74] sm:$0xf]  ;;  %v321_v60 = vld [vmem:[%s9287_s10 + $0x78] sm:$0xf] }
  0x4a   : > { %1034 = vst.msk [vmem:[#allocation2 + $0x80] sm:$0xf] %vm998_vm6, %v550_v40  ;;  %v567_v46 = vor.u32 %v565_v24, %v564_v35  ;;  %v569_v47 = vrot.slane %v564_v35, 4  ;;  %v576_v48 = vor.u32 %v574_v27, %v573_v36  ;;  %v577_v49 = vrot.slane %v573_v36, 4  ;;  %v322_v62 = vld [vmem:[%s9287_s10 + $0x7c] sm:$0xf] }
  0x4b   : > { %1035 = vst.msk [vmem:[#allocation2 + $0x84] sm:$0xf] %vm998_vm6, %v559_v41  ;;  %v584_v51 = vor.u32 %v582_v38, %v581_v37  ;;  %v586_v53 = vrot.slane %v581_v37, 4  ;;  %v590_v54 = vrot.slane %v588_v43, 7  ;;  %v597_v55 = vshrl.u32 %v318_v39, 16 }
  0x4c   : > { %v568_v56 = vsel %vm9309_vm8, %v560_v33, %v567_v46  ;;  %v1038_v57 = vsel %vm9218_vm2, %v569_v47, %v1037_v34  ;;  %v1041_v58 = vsel %vm9300_vm7, %v576_v48, %v1040_v42  ;;  %v600_v59 = vshll.u32 %v318_v39, 16  ;;  %v323_v4 = vld [vmem:[%s9287_s10 + $0x80] sm:$0xf]  ;;  %v324_v13 = vld [vmem:[%s9287_s10 + $0x84] sm:$0xf] }
  0x4d   : > { %1036 = vst.msk [vmem:[#allocation2 + $0x88] sm:$0xf] %vm998_vm6, %v568_v56  ;;  %v585_v63 = vsel %vm9309_vm8, %v577_v49, %v584_v51  ;;  %v593_v0 = vor.u32 %v591_v44, %v590_v54  ;;  %v595_v2 = vrot.slane %v590_v54, 4  ;;  %v599_v3 = vrot.slane %v597_v55, 7  ;;  %v1050_v26 = vld [vmem:[#allocation2 + $0xb0] sm:$0x1] }
  0x4e   : > { %1039 = vst [vmem:[#allocation2 + $0x8c] sm:$0x1] %v1038_v57  ;;  %v606_v5 = vshrl.u32 %v319_v45, 16  ;;  %v609_v6 = vshll.u32 %v319_v45, 16  ;;  %v615_v7 = vshrl.u32 %v320_v50, 16  ;;  %v618_v8 = vshll.u32 %v320_v50, 16 }
  0x4f   : > { %1042 = vst [vmem:[#allocation2 + $0x90] sm:$0xf] %v1041_v58  ;;  %v594_v9 = vsel %vm9309_vm8, %v586_v53, %v593_v0  ;;  %v602_v10 = vor.u32 %v600_v59, %v599_v3  ;;  %v604_v11 = vrot.slane %v599_v3, 4  ;;  %v624_v12 = vshrl.u32 %v321_v60, 16  ;;  %v325_v31 = vld [vmem:[%s9287_s10 + $0x88] sm:$0xf] }
  0x50   : > { %1043 = vst.msk [vmem:[#allocation2 + $0x94] sm:$0xf] %vm998_vm6, %v585_v63  ;;  %v608_v14 = vrot.slane %v606_v5, 7  ;;  %v617_v15 = vrot.slane %v615_v7, 7  ;;  %v627_v16 = vshll.u32 %v321_v60, 16  ;;  %v633_v17 = vshrl.u32 %v322_v62, 16 }
  0x51   : > { %1044 = vst.msk [vmem:[#allocation2 + $0x98] sm:$0xf] %vm998_vm6, %v594_v9  ;;  %v603_v18 = vsel %vm9309_vm8, %v595_v2, %v602_v10  ;;  %v626_v19 = vrot.slane %v624_v12, 7  ;;  %v636_v20 = vshll.u32 %v322_v62, 16  ;;  %v642_v21 = vshrl.u32 %v323_v4, 16 }
  0x52   : > { %1045 = vst.msk [vmem:[#allocation2 + $0x9c] sm:$0xf] %vm998_vm6, %v603_v18  ;;  %v611_v22 = vor.u32 %v609_v6, %v608_v14  ;;  %v613_v23 = vrot.slane %v608_v14, 4  ;;  %v620_v24 = vor.u32 %v618_v8, %v617_v15  ;;  %v622_v25 = vrot.slane %v617_v15, 4  ;;  %v1053_v35 = vld [vmem:[#allocation2 + $0xb4] sm:$0xf] }
  0x53   : > { %v629_v27 = vor.u32 %v627_v16, %v626_v19  ;;  %v631_v28 = vrot.slane %v626_v19, 4  ;;  %v635_v29 = vrot.slane %v633_v17, 7  ;;  %v644_v30 = vrot.slane %v642_v21, 7  ;;  %v326_v37 = vld [vmem:[%s9287_s10 + $0x8c] sm:$0xf] }
  0x54   : > { %v612_v32 = vsel %vm9309_vm8, %v604_v11, %v611_v22  ;;  %v621_v33 = vsel %vm9309_vm8, %v613_v23, %v620_v24  ;;  %v645_v34 = vshll.u32 %v323_v4, 16  ;;  %v650_v36 = vshrl.u32 %v324_v13, 16  ;;  %v327_v42 = vld [vmem:[%s9287_s10 + $0x90] sm:$0xf]  ;;  %v328_v51 = vld [vmem:[%s9287_s10 + $0x94] sm:$0xf] }
  0x55   : > { %1046 = vst.msk [vmem:[#allocation2 + $0xa0] sm:$0xf] %vm998_vm6, %v612_v32  ;;  %v630_v38 = vsel %vm9309_vm8, %v622_v25, %v629_v27  ;;  %v638_v39 = vor.u32 %v636_v20, %v635_v29  ;;  %v640_v40 = vrot.slane %v635_v29, 4  ;;  %v648_v41 = vrot.slane %v644_v30, 4  ;;  %v329_v57 = vld [vmem:[%s9287_s10 + $0x98] sm:$0xf] }
  0x56   : > { %1047 = vst.msk [vmem:[#allocation2 + $0xa4] sm:$0xf] %vm998_vm6, %v621_v33  ;;  %v647_v43 = vor.u32 %v645_v34, %v644_v30  ;;  %v652_v44 = vrot.slane %v650_v36, 7  ;;  %v653_v45 = vshll.u32 %v324_v13, 16  ;;  %v659_v46 = vshrl.u32 %v325_v31, 16 }
  0x57   : > { %1048 = vst.msk [vmem:[#allocation2 + $0xa8] sm:$0xf] %vm998_vm6, %v630_v38  ;;  %v639_v47 = vsel %vm9309_vm8, %v631_v28, %v638_v39  ;;  %v1051_v48 = vsel %vm9218_vm2, %v640_v40, %v1050_v26  ;;  %v662_v49 = vshll.u32 %v325_v31, 16  ;;  %v668_v50 = vshrl.u32 %v326_v37, 16  ;;  %v330_v4 = vld [vmem:[%s9287_s10 + $0x9c] sm:$0xf] }
  0x58   : > { %1049 = vst.msk [vmem:[#allocation2 + $0xac] sm:$0xf] %vm998_vm6, %v639_v47  ;;  %v1054_v53 = vsel %vm9300_vm7, %v647_v43, %v1053_v35  ;;  %v655_v54 = vor.u32 %v653_v45, %v652_v44  ;;  %v657_v55 = vrot.slane %v652_v44, 4  ;;  %v661_v56 = vrot.slane %v659_v46, 7  ;;  %v331_v13 = vld [vmem:[%s9287_s10 + $0xa0] sm:$0xf] }
  0x59   : > { %1052 = vst [vmem:[#allocation2 + $0xb0] sm:$0x1] %v1051_v48  ;;  %v670_v58 = vrot.slane %v668_v50, 7  ;;  %v671_v59 = vshll.u32 %v326_v37, 16  ;;  %v677_v60 = vshrl.u32 %v327_v42, 16  ;;  %v680_v62 = vshll.u32 %v327_v42, 16 }
  0x5a   : > { %1055 = vst [vmem:[#allocation2 + $0xb4] sm:$0xf] %v1054_v53  ;;  %v656_v63 = vsel %vm9309_vm8, %v648_v41, %v655_v54  ;;  %v664_v0 = vor.u32 %v662_v49, %v661_v56  ;;  %v666_v2 = vrot.slane %v661_v56, 4  ;;  %v686_v3 = vshrl.u32 %v328_v51, 16  ;;  %v332_v18 = vld [vmem:[%s9287_s10 + $0xa4] sm:$0xf] }
  0x5b   : > { %1056 = vst.msk [vmem:[#allocation2 + $0xb8] sm:$0xf] %vm998_vm6, %v656_v63  ;;  %v673_v5 = vor.u32 %v671_v59, %v670_v58  ;;  %v675_v6 = vrot.slane %v670_v58, 4  ;;  %v679_v7 = vrot.slane %v677_v60, 7  ;;  %v689_v8 = vshll.u32 %v328_v51, 16 }
  0x5c   : > { %v665_v9 = vsel %vm9309_vm8, %v657_v55, %v664_v0  ;;  %v688_v10 = vrot.slane %v686_v3, 7  ;;  %v695_v11 = vshrl.u32 %v329_v57, 16  ;;  %v698_v12 = vshll.u32 %v329_v57, 16  ;;  %v1063_v23 = vld [vmem:[#allocation2 + $0xd4] sm:$0x1] }
  0x5d   : > { %1057 = vst.msk [vmem:[#allocation2 + $0xbc] sm:$0xf] %vm998_vm6, %v665_v9  ;;  %v674_v14 = vsel %vm9309_vm8, %v666_v2, %v673_v5  ;;  %v682_v15 = vor.u32 %v680_v62, %v679_v7  ;;  %v684_v16 = vrot.slane %v679_v7, 4  ;;  %v704_v17 = vshrl.u32 %v330_v4, 16  ;;  %v333_v28 = vld [vmem:[%s9287_s10 + $0xa8] sm:$0xf] }
  0x5e   : > { %1058 = vst.msk [vmem:[#allocation2 + $0xc0] sm:$0xf] %vm998_vm6, %v674_v14  ;;  %v691_v19 = vor.u32 %v689_v8, %v688_v10  ;;  %v693_v20 = vrot.slane %v688_v10, 4  ;;  %v697_v21 = vrot.slane %v695_v11, 7  ;;  %v707_v22 = vshll.u32 %v330_v4, 16 }
  0x5f   : > { %v683_v24 = vsel %vm9309_vm8, %v675_v6, %v682_v15  ;;  %v706_v25 = vrot.slane %v704_v17, 7  ;;  %v713_v26 = vshrl.u32 %v331_v13, 16  ;;  %v716_v27 = vshll.u32 %v331_v13, 16  ;;  %v1066_v32 = vld [vmem:[#allocation2 + $0xd8] sm:$0xf] }
  0x60   : > { %1059 = vst.msk [vmem:[#allocation2 + $0xc4] sm:$0xf] %vm998_vm6, %v683_v24  ;;  %v692_v29 = vsel %vm9309_vm8, %v684_v16, %v691_v19  ;;  %v700_v30 = vor.u32 %v698_v12, %v697_v21  ;;  %v702_v31 = vrot.slane %v697_v21, 4  ;;  %v721_v33 = vshrl.u32 %v332_v18, 16  ;;  %v334_v34 = vld [vmem:[%s9287_s10 + $0xac] sm:$0xf] }
  0x61   : > { %1060 = vst.msk [vmem:[#allocation2 + $0xc8] sm:$0xf] %vm998_vm6, %v692_v29  ;;  %v709_v35 = vor.u32 %v707_v22, %v706_v25  ;;  %v711_v36 = vrot.slane %v706_v25, 4  ;;  %v715_v37 = vrot.slane %v713_v26, 7  ;;  %v724_v38 = vshll.u32 %v332_v18, 16 }
  0x62   : > { %v701_v39 = vsel %vm9309_vm8, %v693_v20, %v700_v30  ;;  %v723_v40 = vrot.slane %v721_v33, 7  ;;  %v730_v41 = vshrl.u32 %v333_v28, 16  ;;  %v733_v42 = vshll.u32 %v333_v28, 16  ;;  %v335_v43 = vld [vmem:[%s9287_s10 + $0xb0] sm:$0xf] }
  0x63   : > { %1061 = vst.msk [vmem:[#allocation2 + $0xcc] sm:$0xf] %vm998_vm6, %v701_v39  ;;  %v710_v44 = vsel %vm9309_vm8, %v702_v31, %v709_v35  ;;  %v1064_v45 = vsel %vm9218_vm2, %v711_v36, %v1063_v23  ;;  %v718_v46 = vor.u32 %v716_v27, %v715_v37  ;;  %v719_v47 = vrot.slane %v715_v37, 4  ;;  %v336_v48 = vld [vmem:[%s9287_s10 + $0xb4] sm:$0xf] }
  0x64   : > { %1062 = vst.msk [vmem:[#allocation2 + $0xd0] sm:$0xf] %vm998_vm6, %v710_v44  ;;  %v726_v49 = vor.u32 %v724_v38, %v723_v40  ;;  %v728_v50 = vrot.slane %v723_v40, 4  ;;  %v732_v51 = vrot.slane %v730_v41, 7  ;;  %v739_v53 = vshrl.u32 %v334_v34, 16 }
  0x65   : > { %1065 = vst [vmem:[#allocation2 + $0xd4] sm:$0x1] %v1064_v45  ;;  %v1067_v54 = vsel %vm9300_vm7, %v718_v46, %v1066_v32  ;;  %v742_v55 = vshll.u32 %v334_v34, 16  ;;  %v748_v56 = vshrl.u32 %v335_v43, 16  ;;  %v751_v57 = vshll.u32 %v335_v43, 16 }
  0x66   : > { %1068 = vst [vmem:[#allocation2 + $0xd8] sm:$0xf] %v1067_v54  ;;  %v727_v58 = vsel %vm9309_vm8, %v719_v47, %v726_v49  ;;  %v735_v59 = vor.u32 %v733_v42, %v732_v51  ;;  %v737_v60 = vrot.slane %v732_v51, 4  ;;  %v741_v62 = vrot.slane %v739_v53, 7  ;;  %v337_v63 = vld [vmem:[%s9287_s10 + $0xb8] sm:$0xf] }
  0x67   : > { %1069 = vst.msk [vmem:[#allocation2 + $0xdc] sm:$0xf] %vm998_vm6, %v727_v58  ;;  %v750_v0 = vrot.slane %v748_v56, 7  ;;  %v757_v2 = vshrl.u32 %v336_v48, 16  ;;  %v760_v3 = vshll.u32 %v336_v48, 16  ;;  %v766_v4 = vshrl.u32 %v337_v63, 16 }
  0x68   : > { %v736_v5 = vsel %vm9309_vm8, %v728_v50, %v735_v59  ;;  %v744_v6 = vor.u32 %v742_v55, %v741_v62  ;;  %v746_v7 = vrot.slane %v741_v62, 4  ;;  %v769_v8 = vshll.u32 %v337_v63, 16  ;;  %v338_v9 = vld [vmem:[%s9287_s10 + $0xbc] sm:$0xf]  ;;  %v339_v17 = vld [vmem:[%s9287_s10 + $0xc0] sm:$0xf] }
  0x69   : > { %1070 = vst.msk [vmem:[#allocation2 + $0xe0] sm:$0xf] %vm998_vm6, %v736_v5  ;;  %v753_v10 = vor.u32 %v751_v57, %v750_v0  ;;  %v755_v11 = vrot.slane %v750_v0, 4  ;;  %v759_v12 = vrot.slane %v757_v2, 7  ;;  %v768_v13 = vrot.slane %v766_v4, 7 }
  0x6a   : > { %v745_v14 = vsel %vm9309_vm8, %v737_v60, %v744_v6  ;;  %v775_v15 = vshrl.u32 %v338_v9, 16  ;;  %v778_v16 = vshll.u32 %v338_v9, 16  ;;  %v1076_v22 = vld [vmem:[#allocation2 + $0xf8] sm:$0x1]  ;;  %v340_v23 = vld [vmem:[%s9287_s10 + $0xc4] sm:$0xf] }
  0x6b   : > { %1071 = vst.msk [vmem:[#allocation2 + $0xe4] sm:$0xf] %vm998_vm6, %v745_v14  ;;  %v754_v18 = vsel %vm9309_vm8, %v746_v7, %v753_v10  ;;  %v762_v19 = vor.u32 %v760_v3, %v759_v12  ;;  %v764_v20 = vrot.slane %v759_v12, 4  ;;  %v771_v21 = vor.u32 %v769_v8, %v768_v13  ;;  %v1079_v30 = vld [vmem:[#allocation2 + $0xfc] sm:$0xf] }
  0x6c   : > { %1072 = vst.msk [vmem:[#allocation2 + $0xe8] sm:$0xf] %vm998_vm6, %v754_v18  ;;  %v773_v24 = vrot.slane %v768_v13, 4  ;;  %v777_v25 = vrot.slane %v775_v15, 7  ;;  %v784_v26 = vshrl.u32 %v339_v17, 16  ;;  %v787_v27 = vshll.u32 %v339_v17, 16 }
  0x6d   : > { %v763_v28 = vsel %vm9309_vm8, %v755_v11, %v762_v19  ;;  %v772_v29 = vsel %vm9309_vm8, %v764_v20, %v771_v21  ;;  %v792_v31 = vshrl.u32 %v340_v23, 16  ;;  %v795_v32 = vshll.u32 %v340_v23, 16  ;;  %v341_v33 = vld [vmem:[%s9287_s10 + $0xc8] sm:$0xf]  ;;  %v342_v34 = vld [vmem:[%s9287_s10 + $0xcc] sm:$0xf] }
  0x6e   : > { %1073 = vst.msk [vmem:[#allocation2 + $0xec] sm:$0xf] %vm998_vm6, %v763_v28  ;;  %v780_v35 = vor.u32 %v778_v16, %v777_v25  ;;  %v782_v36 = vrot.slane %v777_v25, 4  ;;  %v786_v37 = vrot.slane %v784_v26, 7  ;;  %v801_v38 = vshrl.u32 %v341_v33, 16 }
  0x6f   : > { %1074 = vst.msk [vmem:[#allocation2 + $0xf0] sm:$0xf] %vm998_vm6, %v772_v29  ;;  %v794_v39 = vrot.slane %v792_v31, 7  ;;  %v804_v40 = vshll.u32 %v341_v33, 16  ;;  %v810_v41 = vshrl.u32 %v342_v34, 16  ;;  %v813_v42 = vshll.u32 %v342_v34, 16 }
  0x70   : > { %v781_v43 = vsel %vm9309_vm8, %v773_v24, %v780_v35  ;;  %v1077_v44 = vsel %vm9218_vm2, %v782_v36, %v1076_v22  ;;  %v789_v45 = vor.u32 %v787_v27, %v786_v37  ;;  %v790_v46 = vrot.slane %v786_v37, 4  ;;  %v343_v47 = vld [vmem:[%s9287_s10 + $0xd0] sm:$0xf]  ;;  %v344_v48 = vld [vmem:[%s9287_s10 + $0xd4] sm:$0xf] }
  0x71   : > { %1075 = vst.msk [vmem:[#allocation2 + $0xf4] sm:$0xf] %vm998_vm6, %v781_v43  ;;  %v797_v49 = vor.u32 %v795_v32, %v794_v39  ;;  %v799_v50 = vrot.slane %v794_v39, 4  ;;  %v803_v51 = vrot.slane %v801_v38, 7  ;;  %v812_v53 = vrot.slane %v810_v41, 7 }
  0x72   : > { %1078 = vst [vmem:[#allocation2 + $0xf8] sm:$0x1] %v1077_v44  ;;  %v1080_v54 = vsel %vm9300_vm7, %v789_v45, %v1079_v30  ;;  %v819_v55 = vshrl.u32 %v343_v47, 16  ;;  %v822_v56 = vshll.u32 %v343_v47, 16  ;;  %v828_v57 = vshrl.u32 %v344_v48, 16 }
  0x73   : > { %1081 = vst [vmem:[#allocation2 + $0xfc] sm:$0xf] %v1080_v54  ;;  %v798_v58 = vsel %vm9309_vm8, %v790_v46, %v797_v49  ;;  %v806_v59 = vor.u32 %v804_v40, %v803_v51  ;;  %v808_v60 = vrot.slane %v803_v51, 4  ;;  %v815_v62 = vor.u32 %v813_v42, %v812_v53  ;;  %v345_v63 = vld [vmem:[%s9287_s10 + $0xd8] sm:$0xf] }
  0x74   : > { %1082 = vst.msk [vmem:[#allocation2 + $0x100] sm:$0xf] %vm998_vm6, %v798_v58  ;;  %v817_v0 = vrot.slane %v812_v53, 4  ;;  %v821_v2 = vrot.slane %v819_v55, 7  ;;  %v830_v3 = vrot.slane %v828_v57, 7  ;;  %v831_v4 = vshll.u32 %v344_v48, 16 }
  0x75   : > { %v807_v5 = vsel %vm9309_vm8, %v799_v50, %v806_v59  ;;  %v816_v6 = vsel %vm9309_vm8, %v808_v60, %v815_v62  ;;  %v837_v7 = vshrl.u32 %v345_v63, 16  ;;  %v840_v8 = vshll.u32 %v345_v63, 16  ;;  %v346_v9 = vld [vmem:[%s9287_s10 + $0xdc] sm:$0xf]  ;;  %v347_v14 = vld [vmem:[%s9287_s10 + $0xe0] sm:$0xf] }
  0x76   : > { %1083 = vst.msk [vmem:[#allocation2 + $0x104] sm:$0xf] %vm998_vm6, %v807_v5  ;;  %v824_v10 = vor.u32 %v822_v56, %v821_v2  ;;  %v826_v11 = vrot.slane %v821_v2, 4  ;;  %v833_v12 = vor.u32 %v831_v4, %v830_v3  ;;  %v835_v13 = vrot.slane %v830_v3, 4  ;;  %v1089_v21 = vld [vmem:[#allocation2 + $0x11c] sm:$0x1] }
  0x77   : > { %1084 = vst.msk [vmem:[#allocation2 + $0x108] sm:$0xf] %vm998_vm6, %v816_v6  ;;  %v839_v15 = vrot.slane %v837_v7, 7  ;;  %v846_v16 = vshrl.u32 %v346_v9, 16  ;;  %v849_v17 = vshll.u32 %v346_v9, 16  ;;  %v855_v18 = vshrl.u32 %v347_v14, 16 }
  0x78   : > { %v825_v19 = vsel %vm9309_vm8, %v817_v0, %v824_v10  ;;  %v834_v20 = vsel %vm9309_vm8, %v826_v11, %v833_v12  ;;  %v858_v22 = vshll.u32 %v347_v14, 16  ;;  %v1092_v23 = vld [vmem:[#allocation2 + $0x120] sm:$0xf]  ;;  %v348_v24 = vld [vmem:[%s9287_s10 + $0xe4] sm:$0xf] }
  0x79   : > { %1085 = vst.msk [vmem:[#allocation2 + $0x10c] sm:$0xf] %vm998_vm6, %v825_v19  ;;  %v842_v25 = vor.u32 %v840_v8, %v839_v15  ;;  %v844_v26 = vrot.slane %v839_v15, 4  ;;  %v848_v27 = vrot.slane %v846_v16, 7  ;;  %v857_v28 = vrot.slane %v855_v18, 7 }
  0x7a   : > { %1086 = vst.msk [vmem:[#allocation2 + $0x110] sm:$0xf] %vm998_vm6, %v834_v20  ;;  %v863_v29 = vshrl.u32 %v348_v24, 16  ;;  %v866_v30 = vshll.u32 %v348_v24, 16  ;;  %v349_v31 = vld [vmem:[%s9287_s10 + $0xe8] sm:$0xf] }
  0x7b   : > { %v843_v32 = vsel %vm9309_vm8, %v835_v13, %v842_v25  ;;  %v851_v33 = vor.u32 %v849_v17, %v848_v27  ;;  %v853_v34 = vrot.slane %v848_v27, 4  ;;  %v860_v35 = vor.u32 %v858_v22, %v857_v28  ;;  %v350_v36 = vld [vmem:[%s9287_s10 + $0xec] sm:$0xf]  ;;  %v351_v37 = vld [vmem:[%s9287_s10 + $0xf0] sm:$0xf] }
  0x7c   : > { %1087 = vst.msk [vmem:[#allocation2 + $0x114] sm:$0xf] %vm998_vm6, %v843_v32  ;;  %v861_v38 = vrot.slane %v857_v28, 4  ;;  %v865_v39 = vrot.slane %v863_v29, 7  ;;  %v872_v40 = vshrl.u32 %v349_v31, 16  ;;  %v875_v41 = vshll.u32 %v349_v31, 16 }
  0x7d   : > { %v852_v42 = vsel %vm9309_vm8, %v844_v26, %v851_v33  ;;  %v1090_v43 = vsel %vm9218_vm2, %v853_v34, %v1089_v21  ;;  %v1093_v44 = vsel %vm9300_vm7, %v860_v35, %v1092_v23  ;;  %v881_v45 = vshrl.u32 %v350_v36, 16  ;;  %v352_v46 = vld [vmem:[%s9287_s10 + $0xf4] sm:$0xf]  ;;  %v353_v47 = vld [vmem:[%s9287_s10 + $0xf8] sm:$0xf] }
  0x7e   : > { %1088 = vst.msk [vmem:[#allocation2 + $0x118] sm:$0xf] %vm998_vm6, %v852_v42  ;;  %v868_v48 = vor.u32 %v866_v30, %v865_v39  ;;  %v870_v49 = vrot.slane %v865_v39, 4  ;;  %v874_v50 = vrot.slane %v872_v40, 7  ;;  %v884_v51 = vshll.u32 %v350_v36, 16 }
  0x7f   : > { %1091 = vst [vmem:[#allocation2 + $0x11c] sm:$0x1] %v1090_v43  ;;  %v883_v53 = vrot.slane %v881_v45, 7  ;;  %v890_v54 = vshrl.u32 %v351_v37, 16  ;;  %v893_v55 = vshll.u32 %v351_v37, 16  ;;  %v899_v56 = vshrl.u32 %v352_v46, 16 }
  0x80   : > { %1094 = vst [vmem:[#allocation2 + $0x120] sm:$0xf] %v1093_v44  ;;  %v869_v57 = vsel %vm9309_vm8, %v861_v38, %v868_v48  ;;  %v877_v58 = vor.u32 %v875_v41, %v874_v50  ;;  %v879_v59 = vrot.slane %v874_v50, 4  ;;  %v902_v60 = vshll.u32 %v352_v46, 16  ;;  %v354_v62 = vld [vmem:[%s9287_s10 + $0xfc] sm:$0xf] }
  0x81   : > { %1095 = vst.msk [vmem:[#allocation2 + $0x124] sm:$0xf] %vm998_vm6, %v869_v57  ;;  %v886_v63 = vor.u32 %v884_v51, %v883_v53  ;;  %v888_v0 = vrot.slane %v883_v53, 4  ;;  %v892_v2 = vrot.slane %v890_v54, 7  ;;  %v901_v3 = vrot.slane %v899_v56, 7 }
  0x82   : > { %v878_v4 = vsel %vm9309_vm8, %v870_v49, %v877_v58  ;;  %v908_v5 = vshrl.u32 %v353_v47, 16  ;;  %v911_v6 = vshll.u32 %v353_v47, 16  ;;  %v917_v7 = vshrl.u32 %v354_v62, 16  ;;  %v1102_v18 = vld [vmem:[#allocation2 + $0x140] sm:$0x1] }
  0x83   : > { %1096 = vst.msk [vmem:[#allocation2 + $0x128] sm:$0xf] %vm998_vm6, %v878_v4  ;;  %v887_v8 = vsel %vm9309_vm8, %v879_v59, %v886_v63  ;;  %v895_v9 = vor.u32 %v893_v55, %v892_v2  ;;  %v897_v10 = vrot.slane %v892_v2, 4  ;;  %v904_v11 = vor.u32 %v902_v60, %v901_v3 }
  0x84   : > { %1097 = vst.msk [vmem:[#allocation2 + $0x12c] sm:$0xf] %vm998_vm6, %v887_v8  ;;  %v906_v12 = vrot.slane %v901_v3, 4  ;;  %v910_v13 = vrot.slane %v908_v5, 7  ;;  %v919_v14 = vrot.slane %v917_v7, 7  ;;  %v920_v15 = vshll.u32 %v354_v62, 16 }
  0x85   : > { %v896_v16 = vsel %vm9309_vm8, %v888_v0, %v895_v9  ;;  %v905_v17 = vsel %vm9309_vm8, %v897_v10, %v904_v11 }
  0x86   : > { %1098 = vst.msk [vmem:[#allocation2 + $0x130] sm:$0xf] %vm998_vm6, %v896_v16  ;;  %v913_v19 = vor.u32 %v911_v6, %v910_v13  ;;  %v915_v20 = vrot.slane %v910_v13, 4  ;;  %v922_v21 = vor.u32 %v920_v15, %v919_v14  ;;  %v924_v22 = vrot.slane %v919_v14, 4 }
  0x87   : > { %1099 = vst.msk [vmem:[#allocation2 + $0x134] sm:$0xf] %vm998_vm6, %v905_v17  ;;  %1108 = sbr.rel (%p8359_p7) target bundleno = 150 (0x96), region = 40 }
  0x88   : > { %v914_v23 = vsel %vm9309_vm8, %v906_v12, %v913_v19  ;;  %v923_v24 = vsel %vm9309_vm8, %v915_v20, %v922_v21  ;;  %v1103_v25 = vsel %vm9218_vm2, %v924_v22, %v1102_v18 }
  0x89   : > { %1100 = vst.msk [vmem:[#allocation2 + $0x138] sm:$0xf] %vm998_vm6, %v914_v23 }
  0x8a   : > { %1101 = vst.msk [vmem:[#allocation2 + $0x13c] sm:$0xf] %vm998_vm6, %v923_v24 }
  0x8b   : > { %1104 = vst [vmem:[#allocation2 + $0x140] sm:$0x1] %v1103_v25 }
  0x8c   : > { %v1109_v26 = vld [vmem:[#allocation2] sm:$0xf]  ;;  %v9151_v28 = vmov 0  }
  0x8d   : > { %v1110_v27 = vsel %vm9300_vm7, 0, %v1109_v26  ;;  %1112 = vst.msk [vmem:[#allocation2 + $0x4] sm:$0xf] %vm998_vm6, %v9151_v28  ;;  %v1119_v29 = vld [vmem:[#allocation2 + $0x20] sm:$0x1] }
  0x8e   : > { %1111 = vst [vmem:[#allocation2] sm:$0xf] %v1110_v27  ;;  %v1120_v30 = vsel %vm9218_vm2, 0, %v1119_v29 }
  0x8f   : > { %1113 = vst.msk [vmem:[#allocation2 + $0x8] sm:$0xf] %vm998_vm6, %v9151_v28 }
  0x90   : > { %1114 = vst.msk [vmem:[#allocation2 + $0xc] sm:$0xf] %vm998_vm6, %v9151_v28 }
  0x91   : > { %1115 = vst.msk [vmem:[#allocation2 + $0x10] sm:$0xf] %vm998_vm6, %v9151_v28 }
  0x92   : > { %1116 = vst.msk [vmem:[#allocation2 + $0x14] sm:$0xf] %vm998_vm6, %v9151_v28 }
  0x93   : > { %1117 = vst.msk [vmem:[#allocation2 + $0x18] sm:$0xf] %vm998_vm6, %v9151_v28 }
  0x94   : > { %1118 = vst.msk [vmem:[#allocation2 + $0x1c] sm:$0xf] %vm998_vm6, %v9151_v28 }
  0x95   : > { %1121 = vst [vmem:[#allocation2 + $0x20] sm:$0x1] %v1120_v30 }
  0x96 PF: > { %p8360_p8 = scmp.le.s32.totalorder %s9133_s15, 0 }
  0x97   : > { %s8361_s11 = sadd.s32 (!%p8360_p8), 4294967295, %s8356_s22 }
  0x98   : > { %1125 = sbr.rel (%p8360_p8) target bundleno = 176 (0xb0), region = 44  ;;  %s8781_s12 = sshll.u32 (!%p8360_p8), %s8361_s11, 5 }
  0x99   : > { %s9587_s13 = scalar_lea.vmem (!%p8360_p8), %s9273_s5, %s8781_s12 }
  0x9d   : > { %v1130_v31 = vld [vmem:[%s9587_s13] sm:$0xf]  ;;  %v1131_v32 = vld [vmem:[%s9587_s13 + $0x4] sm:$0xf]  ;;  %v1132_v33 = vld [vmem:[%s9587_s13 + $0x8] sm:$0xf] }
  0x9e   : > { %v1139_v34 = vshrl.u32 %v1130_v31, 16  ;;  %v1142_v35 = vshll.u32 %v1130_v31, 16  ;;  %v1147_v36 = vshrl.u32 %v1131_v32, 16  ;;  %v1150_v37 = vshll.u32 %v1131_v32, 16  ;;  %v1133_v38 = vld [vmem:[%s9587_s13 + $0xc] sm:$0xf] }
  0x9f   : > { %v1156_v39 = vshrl.u32 %v1132_v33, 16  ;;  %v1159_v40 = vshll.u32 %v1132_v33, 16  ;;  %v1165_v41 = vshrl.u32 %v1133_v38, 16  ;;  %v1168_v42 = vshll.u32 %v1133_v38, 16  ;;  %v1134_v43 = vld [vmem:[%s9587_s13 + $0x10] sm:$0xf] }
  0xa0   : > { %v1141_v44 = vrot.slane %v1139_v34, 7  ;;  %v1149_v45 = vrot.slane %v1147_v36, 7  ;;  %v1174_v46 = vshrl.u32 %v1134_v43, 16  ;;  %v1177_v47 = vshll.u32 %v1134_v43, 16  ;;  %v1135_v48 = vld [vmem:[%s9587_s13 + $0x14] sm:$0xf] }
  0xa1   : > { %v1218_v49 = vld [vmem:[#allocation2] sm:$0xf]  ;;  %v1158_v50 = vrot.slane %v1156_v39, 7  ;;  %v1167_v51 = vrot.slane %v1165_v41, 7  ;;  %v1183_v53 = vshrl.u32 %v1135_v48, 16  ;;  %v1186_v54 = vshll.u32 %v1135_v48, 16 }
  0xa2   : > { %v1144_v55 = vor.u32 %v1142_v35, %v1141_v44  ;;  %v1145_v56 = vrot.slane %v1141_v44, 4  ;;  %v1152_v57 = vor.u32 %v1150_v37, %v1149_v45  ;;  %v1154_v58 = vrot.slane %v1149_v45, 4  ;;  %v1136_v59 = vld [vmem:[%s9587_s13 + $0x18] sm:$0xf]  ;;  %v1137_v6 = vld [vmem:[%s9587_s13 + $0x1c] sm:$0xf] }
  0xa3   : > { %v1161_v60 = vor.u32 %v1159_v40, %v1158_v50  ;;  %v1163_v62 = vrot.slane %v1158_v50, 4  ;;  %v1170_v63 = vor.u32 %v1168_v42, %v1167_v51  ;;  %v1172_v0 = vrot.slane %v1167_v51, 4  ;;  %v1228_v23 = vld [vmem:[#allocation2 + $0x20] sm:$0x1] }
  0xa4   : > { %v1219_v2 = vsel %vm9300_vm7, %v1144_v55, %v1218_v49  ;;  %v1153_v3 = vsel %vm9309_vm8, %v1145_v56, %v1152_v57  ;;  %v1176_v4 = vrot.slane %v1174_v46, 7  ;;  %v1185_v5 = vrot.slane %v1183_v53, 7 }
  0xa5   : > { %1220 = vst [vmem:[#allocation2] sm:$0xf] %v1219_v2  ;;  %v1162_v7 = vsel %vm9309_vm8, %v1154_v58, %v1161_v60  ;;  %v1171_v8 = vsel %vm9309_vm8, %v1163_v62, %v1170_v63  ;;  %v1192_v9 = vshrl.u32 %v1136_v59, 16  ;;  %v1195_v10 = vshll.u32 %v1136_v59, 16 }
  0xa6   : > { %1221 = vst.msk [vmem:[#allocation2 + $0x4] sm:$0xf] %vm998_vm6, %v1153_v3  ;;  %v1179_v11 = vor.u32 %v1177_v47, %v1176_v4  ;;  %v1181_v12 = vrot.slane %v1176_v4, 4  ;;  %v1188_v13 = vor.u32 %v1186_v54, %v1185_v5  ;;  %v1190_v14 = vrot.slane %v1185_v5, 4 }
  0xa7   : > { %1222 = vst.msk [vmem:[#allocation2 + $0x8] sm:$0xf] %vm998_vm6, %v1162_v7  ;;  %v1194_v15 = vrot.slane %v1192_v9, 7  ;;  %v1201_v16 = vshrl.u32 %v1137_v6, 16  ;;  %v1204_v17 = vshll.u32 %v1137_v6, 16 }
  0xa8   : > { %1223 = vst.msk [vmem:[#allocation2 + $0xc] sm:$0xf] %vm998_vm6, %v1171_v8  ;;  %v1180_v18 = vsel %vm9309_vm8, %v1172_v0, %v1179_v11  ;;  %v1189_v19 = vsel %vm9309_vm8, %v1181_v12, %v1188_v13 }
  0xa9   : > { %1224 = vst.msk [vmem:[#allocation2 + $0x10] sm:$0xf] %vm998_vm6, %v1180_v18  ;;  %v1197_v20 = vor.u32 %v1195_v10, %v1194_v15  ;;  %v1199_v21 = vrot.slane %v1194_v15, 4  ;;  %v1203_v22 = vrot.slane %v1201_v16, 7 }
  0xaa   : > { %1225 = vst.msk [vmem:[#allocation2 + $0x14] sm:$0xf] %vm998_vm6, %v1189_v19 }
  0xab   : > { %v1198_v24 = vsel %vm9309_vm8, %v1190_v14, %v1197_v20  ;;  %v1206_v25 = vor.u32 %v1204_v17, %v1203_v22  ;;  %v1208_v26 = vrot.slane %v1203_v22, 4 }
  0xac   : > { %1226 = vst.msk [vmem:[#allocation2 + $0x18] sm:$0xf] %vm998_vm6, %v1198_v24 }
  0xad   : > { %v1207_v27 = vsel %vm9309_vm8, %v1199_v21, %v1206_v25  ;;  %v1229_v28 = vsel %vm9218_vm2, %v1208_v26, %v1228_v23 }
  0xae   : > { %1227 = vst.msk [vmem:[#allocation2 + $0x1c] sm:$0xf] %vm998_vm6, %v1207_v27 }
  0xaf   : > { %1230 = vst [vmem:[#allocation2 + $0x20] sm:$0x1] %v1229_v28 }
  0xb0 PF: > { %p8364_p9 = scmp.ne.s32.totalorder %s9133_s15, 7 }
  0xb2   : > { %1234 = sbr.rel (%p8364_p9) target bundleno = 193 (0xc1), region = 48 }
  0xb7   : > { %v1236_v29 = vld [vmem:[#allocation2 + $0x144] sm:$0xf]  ;;  %v9152_v31 = vmov 0  }
  0xb8   : > { %v1237_v30 = vsel %vm9300_vm7, 0, %v1236_v29  ;;  %1239 = vst.msk [vmem:[#allocation2 + $0x148] sm:$0xf] %vm998_vm6, %v9152_v31  ;;  %v1246_v32 = vld [vmem:[#allocation2 + $0x164] sm:$0x1] }
  0xb9   : > { %1238 = vst [vmem:[#allocation2 + $0x144] sm:$0xf] %v1237_v30  ;;  %v1247_v33 = vsel %vm9218_vm2, 0, %v1246_v32 }
  0xba   : > { %1240 = vst.msk [vmem:[#allocation2 + $0x14c] sm:$0xf] %vm998_vm6, %v9152_v31 }
  0xbb   : > { %1241 = vst.msk [vmem:[#allocation2 + $0x150] sm:$0xf] %vm998_vm6, %v9152_v31 }
  0xbc   : > { %1242 = vst.msk [vmem:[#allocation2 + $0x154] sm:$0xf] %vm998_vm6, %v9152_v31 }
  0xbd   : > { %1243 = vst.msk [vmem:[#allocation2 + $0x158] sm:$0xf] %vm998_vm6, %v9152_v31 }
  0xbe   : > { %1244 = vst.msk [vmem:[#allocation2 + $0x15c] sm:$0xf] %vm998_vm6, %v9152_v31 }
  0xbf   : > { %1245 = vst.msk [vmem:[#allocation2 + $0x160] sm:$0xf] %vm998_vm6, %v9152_v31 }
  0xc0   : > { %1248 = vst [vmem:[#allocation2 + $0x164] sm:$0x1] %v1247_v33 }
  0xc1 PF: > { %p8365_p10 = scmp.ge.s32.totalorder %s9133_s15, 7 }
  0xc3   : > { %1252 = sbr.rel (%p8365_p10) target bundleno = 219 (0xdb), region = 52 }
  0xc8   : > { %v8368_v34 = vld [vmem:[%s9287_s10 + $0x100] sm:$0xf]  ;;  %v8369_v35 = vld [vmem:[%s9287_s10 + $0x104] sm:$0xf]  ;;  %v8370_v40 = vld [vmem:[%s9287_s10 + $0x108] sm:$0xf] }
  0xc9   : > { %v1266_v36 = vshrl.u32 %v8368_v34, 16  ;;  %v1269_v37 = vshll.u32 %v8368_v34, 16  ;;  %v1274_v38 = vshrl.u32 %v8369_v35, 16  ;;  %v1277_v39 = vshll.u32 %v8369_v35, 16  ;;  %v8371_v43 = vld [vmem:[%s9287_s10 + $0x10c] sm:$0xf] }
  0xca   : > { %v1283_v41 = vshrl.u32 %v8370_v40, 16  ;;  %v1286_v42 = vshll.u32 %v8370_v40, 16  ;;  %v8372_v44 = vld [vmem:[%s9287_s10 + $0x110] sm:$0xf]  ;;  %v1292_v47 = vshrl.u32 %v8371_v43, 16  ;;  %v1295_v48 = vshll.u32 %v8371_v43, 16 }
  0xcb   : > { %v1268_v45 = vrot.slane %v1266_v36, 7  ;;  %v1276_v46 = vrot.slane %v1274_v38, 7  ;;  %v8373_v49 = vld [vmem:[%s9287_s10 + $0x114] sm:$0xf]  ;;  %v1346_v50 = vld [vmem:[#allocation2 + $0x144] sm:$0xf] }
  0xcc   : > { %v1285_v51 = vrot.slane %v1283_v41, 7  ;;  %v1301_v53 = vshrl.u32 %v8372_v44, 16  ;;  %v1304_v54 = vshll.u32 %v8372_v44, 16  ;;  %v1310_v55 = vshrl.u32 %v8373_v49, 16  ;;  %v8374_v2 = vld [vmem:[%s9287_s10 + $0x118] sm:$0xf] }
  0xcd   : > { %v1271_v56 = vor.u32 %v1269_v37, %v1268_v45  ;;  %v1272_v57 = vrot.slane %v1268_v45, 4  ;;  %v1279_v58 = vor.u32 %v1277_v39, %v1276_v46  ;;  %v1281_v59 = vrot.slane %v1276_v46, 4  ;;  %v8375_v7 = vld [vmem:[%s9287_s10 + $0x11c] sm:$0xf]  ;;  %v1356_v25 = vld [vmem:[#allocation2 + $0x164] sm:$0x1] }
  0xce   : > { %v1288_v60 = vor.u32 %v1286_v42, %v1285_v51  ;;  %v1290_v62 = vrot.slane %v1285_v51, 4  ;;  %v1294_v63 = vrot.slane %v1292_v47, 7  ;;  %v1303_v0 = vrot.slane %v1301_v53, 7 }
  0xcf   : > { %v1347_v3 = vsel %vm9300_vm7, %v1271_v56, %v1346_v50  ;;  %v1280_v4 = vsel %vm9309_vm8, %v1272_v57, %v1279_v58  ;;  %v1312_v5 = vrot.slane %v1310_v55, 7  ;;  %v1313_v6 = vshll.u32 %v8373_v49, 16 }
  0xd0   : > { %1348 = vst [vmem:[#allocation2 + $0x144] sm:$0xf] %v1347_v3  ;;  %v1289_v8 = vsel %vm9309_vm8, %v1281_v59, %v1288_v60  ;;  %v1297_v9 = vor.u32 %v1295_v48, %v1294_v63  ;;  %v1299_v10 = vrot.slane %v1294_v63, 4  ;;  %v1306_v11 = vor.u32 %v1304_v54, %v1303_v0 }
  0xd1   : > { %1349 = vst.msk [vmem:[#allocation2 + $0x148] sm:$0xf] %vm998_vm6, %v1280_v4  ;;  %v1308_v12 = vrot.slane %v1303_v0, 4  ;;  %v1315_v13 = vor.u32 %v1313_v6, %v1312_v5  ;;  %v1319_v14 = vshrl.u32 %v8374_v2, 16  ;;  %v1322_v16 = vshll.u32 %v8374_v2, 16 }
  0xd2   : > { %1350 = vst.msk [vmem:[#allocation2 + $0x14c] sm:$0xf] %vm998_vm6, %v1289_v8  ;;  %v1298_v52 = vsel %vm9309_vm8, %v1290_v62, %v1297_v9  ;;  %v1307_v15 = vsel %vm9309_vm8, %v1299_v10, %v1306_v11  ;;  %v1328_v17 = vshrl.u32 %v8375_v7, 16  ;;  %v1317_v19 = vrot.slane %v1312_v5, 4 }
  0xd3   : > { %1351 = vst.msk [vmem:[#allocation2 + $0x150] sm:$0xf] %vm998_vm6, %v1298_v52  ;;  %v1316_v18 = vsel %vm9309_vm8, %v1308_v12, %v1315_v13  ;;  %v1321_v20 = vrot.slane %v1319_v14, 7  ;;  %v1331_v21 = vshll.u32 %v8375_v7, 16 }
  0xd4   : > { %1352 = vst.msk [vmem:[#allocation2 + $0x154] sm:$0xf] %vm998_vm6, %v1307_v15  ;;  %v1330_v22 = vrot.slane %v1328_v17, 7 }
  0xd5   : > { %1353 = vst.msk [vmem:[#allocation2 + $0x158] sm:$0xf] %vm998_vm6, %v1316_v18  ;;  %v1324_v23 = vor.u32 %v1322_v16, %v1321_v20  ;;  %v1326_v24 = vrot.slane %v1321_v20, 4 }
  0xd6   : > { %v1333_v26 = vor.u32 %v1331_v21, %v1330_v22  ;;  %v1335_v27 = vrot.slane %v1330_v22, 4 }
  0xd7   : > { %v1325_v28 = vsel %vm9309_vm8, %v1317_v19, %v1324_v23 }
  0xd8   : > { %1354 = vst.msk [vmem:[#allocation2 + $0x15c] sm:$0xf] %vm998_vm6, %v1325_v28  ;;  %v1334_v29 = vsel %vm9309_vm8, %v1326_v24, %v1333_v26  ;;  %v1357_v30 = vsel %vm9218_vm2, %v1335_v27, %v1356_v25 }
  0xd9   : > { %1355 = vst.msk [vmem:[#allocation2 + $0x160] sm:$0xf] %vm998_vm6, %v1334_v29 }
  0xda   : > { %1358 = vst [vmem:[#allocation2 + $0x164] sm:$0x1] %v1357_v30 }
  0xdb PF: > { %v8940_v31 = vld [vmem:[#allocation2 + $0x48] sm:$0xf0]  ;;  %v9668_v32 = vld [vmem:[#allocation2 + $0x50] sm:$0xff]  ;;  %vm2000_vm9 = vcmask 1046528   ;;  %v8941_v33 = vld [vmem:[#allocation2 + $0x48] sm:$0xe] }
  0xdc   : > { %v9670_v34 = vld [vmem:[#allocation2 + $0x48] sm:$0xff]   ;;  %v9672_v35 = vld [vmem:[#allocation2 + $0xfc] sm:$0xff]   ;;  %v8942_v37 = vor.u32 %v8941_v33, %v8940_v31  ;;  %v4305_v61 = vrot.slane %v9668_v32, 1  ;;  %v3936_v41 = vshll.u32 %v9668_v32, 16  ;;  %vm1623_vm10 = vsmask.f32 7424 }
  0xdd   : > { %v9075_v36 = vld [vmem:[#allocation2 + $0xfc] sm:$0xf0]  ;;  %v3929_v1 = vshrl.u32 %v9670_v34, 16  ;;  %v3931_v38 = vshll.u32 %v9670_v34, 16  ;;  %v9677_v39 = vld [vmem:[#allocation2 + $0x104] sm:$0xff]  ;;  %s9153_s14 = smov 6  }
  0xde   : > { %v9076_v40 = vld [vmem:[#allocation2 + $0xfc] sm:$0xe]  ;;  %v4304_v42 = vrot.slane %v8942_v37, 1  ;;  %v3938_v44 = vrot.slane %v3936_v41, 1  ;;  %v9680_v46 = vld [vmem:[#allocation2 + $0x24] sm:$0xff]   ;;  %v2757_v51 = vshll.u32 %v9677_v39, 16 }
  0xdf   : > { %v3933_v43 = vrot.slane %v3931_v38, 1  ;;  %v9077_v45 = vor.u32 %v9076_v40, %v9075_v36  ;;  %v9078_v47 = vld [vmem:[#allocation2 + $0x24] sm:$0xf0]  ;;  %v9079_v48 = vld [vmem:[#allocation2 + $0x24] sm:$0xe]  ;;  %v2964_v53 = vrot.slane %v9677_v39, 1 }
  0xe0   : > { %v4306_v49 = vsel %vm2000_vm9, %v4304_v42, %v4305_v61  ;;  %v2750_v54 = vshrl.u32 %v9672_v35, 16  ;;  %v2752_v55 = vshll.u32 %v9672_v35, 16  ;;  %v9694_v58 = vld [vmem:[#allocation2] sm:$0xff]   ;;  %s9154_s15 = smov 3   ;;  %v2759_v60 = vrot.slane %v2757_v51, 1  ;;  %v9697_v0 = vld [vmem:[#allocation2 + $0x8] sm:$0xff] }
  0xe1   : > { %v9685_v50 = vor.u32 %v3933_v43, %v3929_v1  ;;  %4376 = vrot.lane.b32.xlu1 %v4306_v49, %s9153_s14  ;;  %v2963_v57 = vrot.slane %v9077_v45, 1  ;;  %v8909_v62 = vld [vmem:[#allocation2] sm:$0xf0]  ;;  %v8910_v2 = vld [vmem:[#allocation2] sm:$0xe]  ;;  %v1625_v3 = vshrl.u32 %v9694_v58, 16  ;;  %v9080_v7 = vor.u32 %v9079_v48, %v9078_v47 }
  0xe2   : > { %v2754_v59 = vrot.slane %v2752_v55, 1  ;;  %v1627_v4 = vshll.u32 %v9694_v58, 16  ;;  %v9702_v6 = vld [vmem:[#allocation2 + $0x2c] sm:$0xff]  ;;  %v1632_v9 = vshll.u32 %v9697_v0, 16  ;;  %v8911_v11 = vor.u32 %v8910_v2, %v8909_v62  ;;  %v9714_v21 = vld [vmem:[#allocation2 + $0x58] sm:$0xff] }
  0xe3   : > { %v3939_v56 = vsel %vm1623_vm10, %v9685_v50, %v3938_v44  ;;  %v2965_v5 = vsel %vm2000_vm9, %v2963_v57, %v2964_v53  ;;  %v2909_v14 = vrot.slane %v9080_v7, 1  ;;  %v2910_v52 = vrot.slane %v9702_v6, 1  ;;  %v9718_v24 = vld [vmem:[#allocation2 + $0x10c] sm:$0xff]  ;;  %v9727_v36 = vld [vmem:[#allocation2 + $0x34] sm:$0xff] }
  0xe4   : > { %4216 = vrot.lane.b32.xlu0 %v3939_v56, %s9154_s15  ;;  %v2755_v63 = vor.u32 %v2754_v59, %v2750_v54  ;;  %v1629_v8 = vrot.slane %v1627_v4, 1  ;;  %v1634_v13 = vrot.slane %v1632_v9, 1  ;;  %v2534_v15 = vshrl.u32 %v9680_v46, 16  ;;  %v9731_v40 = vld [vmem:[#allocation2 + $0x10] sm:$0xff]  ;;  %v9759_v9 = vld [vmem:[#allocation2 + $0x60] sm:$0xff] }
  0xe5   : > { %v2536_v16 = vshll.u32 %v9680_v46, 16  ;;  %v2541_v18 = vshll.u32 %v9702_v6, 16  ;;  %v2001_v19 = vrot.slane %v8911_v11, 1  ;;  %v2002_v20 = vrot.slane %v9697_v0, 1  ;;  %v9742_v56 = vld [vmem:[#allocation2 + $0x114] sm:$0xff] }
  0xe6   : > { %v2760_v10 = vsel %vm1623_vm10, %v2755_v63, %v2759_v60  ;;  %v1630_v12 = vor.u32 %v1629_v8, %v1625_v3  ;;  %v2911_v23 = vsel %vm2000_vm9, %v2909_v14, %v2910_v52  ;;  %v3940_v28 = vshrl.u32 %v9668_v32, 16  ;;  %v3728_v14 = vld [vmem:[#allocation2 + $0x68] sm:$0x1] }
  0xe7   : > { %v2538_v22 = vrot.slane %v2536_v16, 1  ;;  %v2543_v26 = vrot.slane %v2541_v18, 1  ;;  %v2003_v27 = vsel %vm2000_vm9, %v2001_v19, %v2002_v20  ;;  %v3944_v29 = vshll.u32 %v9714_v21, 16 }
  0xe8   : > { %v1635_v17 = vsel %vm1623_vm10, %v1630_v12, %v1634_v13  ;;  %v2761_v31 = vshrl.u32 %v9677_v39, 16  ;;  %v2966_v33 = vrot.slane %v9718_v24, 1  ;;  %v2765_v37 = vshll.u32 %v9718_v24, 16 }
  0xe9   : > { %3029 = vrot.lane.b32.xlu1 %v2965_v5, %s9153_s14  ;;  %1912 = vrot.lane.b32.xlu2 %v1635_v17, %s9154_s15  ;;  %v2539_v25 = vor.u32 %v2538_v22, %v2534_v15  ;;  %v3942_v1 = vor.u32 %v3940_v28, %v3938_v44  ;;  %v3946_v38 = vrot.slane %v3944_v29, 1  ;;  %v2545_v43 = vshrl.u32 %v9702_v6, 16  ;;  %v9772_v17 = vld [vmem:[#allocation2 + $0x3c] sm:$0xff] }
  0xea   : > { %v2763_v41 = vor.u32 %v2761_v31, %v2759_v60  ;;  %v2967_v42 = vsel %vm2000_vm9, %v2964_v53, %v2966_v33  ;;  %v2549_v45 = vshll.u32 %v9727_v36, 16  ;;  %v2767_v47 = vrot.slane %v2765_v37, 1 }
  0xeb   : > { %v2544_v30 = vsel %vm1623_vm10, %v2539_v25, %v2543_v26  ;;  %v3947_v48 = vsel %vm1623_vm10, %v3942_v1, %v3946_v38  ;;  %v1636_v49 = vshrl.u32 %v9697_v0, 16  ;;  %v1640_v51 = vshll.u32 %v9731_v40, 16  ;;  %v1423_v1 = vld [vmem:[#allocation2 + $0x20] sm:$0x1] }
  0xec   : > { %2869 = vrot.lane.b32.xlu0 %v2760_v10, %s9154_s15  ;;  %v2768_v44 = vsel %vm1623_vm10, %v2763_v41, %v2767_v47  ;;  %v2547_v54 = vor.u32 %v2545_v43, %v2543_v26  ;;  %v2551_v55 = vrot.slane %v2549_v45, 1  ;;  %v2769_v60 = vshrl.u32 %v9718_v24, 16 }
  0xed   : > { %v1638_v53 = vor.u32 %v1636_v49, %v1634_v13  ;;  %v1642_v57 = vrot.slane %v1640_v51, 1  ;;  %v2773_v62 = vshll.u32 %v9742_v56, 16  ;;  %v4307_v63 = vrot.slane %v9714_v21, 1 }
  0xee   : > { %v2552_v59 = vsel %vm1623_vm10, %v2547_v54, %v2551_v55  ;;  %v2771_v4 = vor.u32 %v2769_v60, %v2767_v47  ;;  %v2912_v7 = vrot.slane %v9727_v36, 1  ;;  %v2004_v10 = vrot.slane %v9731_v40, 1 }
  0xef   : > { %v1643_v2 = vsel %vm1623_vm10, %v1638_v53, %v1642_v57  ;;  %v4308_v3 = vsel %vm2000_vm9, %v4305_v61, %v4307_v63  ;;  %v2775_v5 = vrot.slane %v2773_v62, 1  ;;  %v3948_v12 = vshrl.u32 %v9714_v21, 16 }
  0xf0   : > { %v2913_v11 = vsel %vm2000_vm9, %v2910_v52, %v2912_v7  ;;  %v2005_v61 = vsel %vm2000_vm9, %v2002_v20, %v2004_v10  ;;  %v4309_v13 = vrot.slane %v9759_v9, 1  ;;  %v3952_v15 = vshll.u32 %v9759_v9, 16  ;;  %v2339_v52 = vld [vmem:[#allocation2 + $0x11c] sm:$0x1] }
  0xf1   : > { %2981 = vrot.lane.b32.xlu1 %v2911_v23, %s9153_s14  ;;  %2821 = vrot.lane.b32.xlu2 %v2544_v30, %s9154_s15  ;;  %v2776_v8 = vsel %vm1623_vm10, %v2771_v4, %v2775_v5  ;;  %v2968_v16 = vrot.slane %v9742_v56, 1  ;;  %v3950_v18 = vor.u32 %v3948_v12, %v3946_v38  ;;  %v9778_v20 = vld [vmem:[#allocation2 + $0x18] sm:$0xff]  ;;  %v3912_v22 = vunpack.c.l.b16 %v3728_v14  ;;  %v9808_v12 = vld [vmem:[#allocation2 + $0x6c] sm:$0xf0] }
  0xf2   : > { %v4310_v19 = vsel %vm2000_vm9, %v4307_v63, %v4309_v13  ;;  %v3954_v23 = vrot.slane %v3952_v15, 1  ;;  %v2553_v26 = vshrl.u32 %v9727_v36, 16  ;;  %v2523_v28 = vunpack.c.l.b16 %v2339_v52 }
  0xf3   : > { %v2969_v25 = vsel %vm2000_vm9, %v2966_v33, %v2968_v16  ;;  %v1644_v30 = vshrl.u32 %v9731_v40, 16  ;;  %v2006_v31 = vrot.slane %v9778_v20, 1  ;;  %v3920_v37 = vpack.c.b16 %v3912_v22, %v3912_v22 }
  0xf4   : > { %2073 = vrot.lane.b32.xlu0 %v2003_v27, %s9153_s14  ;;  %v2557_v27 = vshll.u32 %v9772_v17, 16  ;;  %v3955_v29 = vsel %vm1623_vm10, %v3950_v18, %v3954_v23  ;;  %v1648_v38 = vshll.u32 %v9778_v20, 16  ;;  %v2555_v33 = vor.u32 %v2553_v26, %v2551_v55 }
  0xf5   : > { %v1646_v43 = vor.u32 %v1644_v30, %v1642_v57  ;;  %v2007_v45 = vsel %vm2000_vm9, %v2004_v10, %v2006_v31  ;;  %v3956_v47 = vshrl.u32 %v9759_v9, 16  ;;  %v1607_v49 = vunpack.c.l.b16 %v1423_v1  ;;  %v9829_v1 = vld [vmem:[#allocation2 + $0x120] sm:$0xff]  }
  0xf6   : > { %v2559_v41 = vrot.slane %v2557_v27, 1  ;;  %v1650_v51 = vrot.slane %v1648_v38, 1  ;;  %v2777_v54 = vshrl.u32 %v9742_v56, 16  ;;  %v2914_v10 = vrot.slane %v9772_v17, 1  ;;  %v8935_v38 = vld [vmem:[#allocation2 + $0x120] sm:$0xe] }
  0xf7   : > { %v1615_v60 = vpack.c.b16 %v1607_v49, %v1607_v49  ;;  %v4311_v18 = vrot.slane %v3920_v37, 1  ;;  %v2561_v26 = vshrl.u32 %v9772_v17, 16  ;;  %vm3246_vm11 = vcmask 1043456  }
  0xf8   : > { %v1651_v55 = vsel %vm1623_vm10, %v1646_v43, %v1650_v51  ;;  %v2779_v62 = vor.u32 %v2777_v54, %v2775_v5  ;;  %v2915_v5 = vsel %vm2000_vm9, %v2912_v7, %v2914_v10  ;;  %vm3247_vm12 = vcmask 1044480  }
  0xf9   : > { %3031 = vrot.lane.b32.xlu1 %v2967_v42, %s9153_s14  ;;  %2871 = vrot.lane.b32.xlu2 %v2768_v44, %s9154_s15  ;;  %v2531_v42 = vpack.c.b16 %v2523_v28, %v2523_v28  ;;  %v2560_v44 = vsel %vm1623_vm10, %v2555_v33, %v2559_v41  ;;  %v1656_v4 = vshll.u32 %v1615_v60, 16  ;;  %v9825_v28 = vld [vmem:[#allocation2 + $0x24] sm:$0xff]   ;;  %v9832_v33 = vld [vmem:[#allocation2 + $0x74] sm:$0xff]  ;;  %v2563_v43 = vor.u32 %v2561_v26, %v2559_v41  ;;  %v8742_v41 = vld [vmem:[%s13159_s1 + $0x10] sm:$0xf] }
  0xfa   : > { %vm2137_vm13 = vcmask 23552   ;;  %vm2202_vm14 = vcmask 48128   ;;  %vm3181_vm15 = vcmask 72704   ;;  %vm5524_vm0 = vcmask 517120  }
  0xfb   : > { %v2781_v53 = vshll.u32 %v2531_v42, 16  ;;  %v1658_v15 = vrot.slane %v1656_v4, 1  ;;  %v9082_v4 = vld [vmem:[#allocation2 + $0x6c] sm:$0xe]  ;;  %vm7317_vm1 = vcmask 523264   ;;  %vm8086_vm2 = vcmask 1041409  }
  0xfc   : > { %4218 = vrot.lane.b32.xlu0 %v3947_v48, %s9154_s15  ;;  %v3960_v48 = vshll.u32 %v3920_v37, 16  ;;  %v2008_v37 = vrot.slane %v1615_v60, 1  ;;  %v9155_v60 = vmov 65535   ;;  %vm8088_vm3 = vcmask 1042434  }
  0xfd   : > { %v2783_v63 = vrot.slane %v2781_v53, 1  ;;  %v3972_v53 = vshll.u32 %v9832_v33, 16  ;;  %vm8090_vm4 = vcmask 1043459   ;;  %vm8092_vm5 = vcmask 1044484  }
  0xfe   : > { %v3962_v57 = vrot.slane %v3960_v48, 1  ;;  %v9838_v48 = vld [vmem:[#allocation2 + $0x128] sm:$0xff]  ;;  %vm8094_vm6 = vcmask 1045509   ;;  %vm8096_vm7 = vcmask 1046534   ;;  %vm8098_vm8 = vcmask 1047559  }
 0x101   : > { %2823 = vrot.lane.b32.xlu1 %v2552_v59, %s9154_s15  ;;  %4378 = vrot.lane.b32.xlu2 %v4308_v3, %s9153_s14  ;;  %v3958_v59 = vor.u32 %v3956_v47, %v3954_v23  ;;  %v1652_v3 = vshrl.u32 %v9778_v20, 16 }
 0x103   : > { %v1654_v14 = vor.u32 %v1652_v3, %v1650_v51  ;;  %v2009_v51 = vsel %vm2000_vm9, %v2006_v31, %v2008_v37  ;;  %v3248_v31 = vsel %vm3246_vm11, 4294967295, %v9155_v60  ;;  %v9855_v3 = vld [vmem:[#allocation2 + $0x50] sm:$0xff]  ;;  %v8572_v37 = vld [vmem:[%s13159_s1 + $0x8] sm:$0xf]  ;;  %v8608_v60 = vld [vmem:[%s13159_s1] sm:$0xf] }
 0x104   : > { %1914 = vrot.lane.b32.xlu0 %v1643_v2, %s9154_s15  ;;  %v3963_v2 = vsel %vm1623_vm10, %v3958_v59, %v3962_v57  ;;  %v2786_v59 = vshrl.u32 %v9829_v1, 16  ;;  %vm8237_vm11 = vcmask 519168  }
 0x105   : > { %v1659_v22 = vsel %vm1623_vm10, %v1654_v14, %v1658_v15  ;;  %v9859_v14 = vrot.slane %v3972_v53, 1  ;;  %v9861_v15 = vld [vmem:[#allocation2 + $0x2c] sm:$0xff]  ;;  %v8926_v53 = vld [vmem:[#allocation2 + $0x48] sm:$0xe] }
 0x109   : > { %2873 = vrot.lane.b32.xlu1 %v2776_v8, %s9154_s15  ;;  %2075 = vrot.lane.b32.xlu2 %v2005_v61, %s9153_s14  ;;  %v2333_v8 = vld [vmem:[#allocation2 + $0x44] sm:$0x1]  ;;  %v9806_v61 = vld [vmem:[#allocation2 + $0x6c] sm:$0xff]  }
 0x10a   : > { %v2517_v52 = vunpack.c.l.b16 %v2333_v8  ;;  %v3249_v8 = vsel %vm3247_vm12, %v3248_v31, 0  ;;  %v8807_v31 = vld [vmem:[%s13159_s1] sm:$0x10] }
 0x10c   : > { %2983 = vrot.lane.b32.xlu0 %v2913_v11, %s9153_s14  ;;  %v2784_v11 = vsel %vm1623_vm10, %v2779_v62, %v2783_v63  ;;  %v2525_v23 = vpack.c.b16 %v2517_v52, %v2517_v52  ;;  %v8857_v62 = vld [vmem:[%s13159_s1 + $0x10] sm:$0x10]  ;;  %v1663_v52 = vshll.u32 %v9825_v28, 16 }
 0x10e   : > { %v2565_v27 = vshll.u32 %v2525_v23, 16  ;;  %v2916_v30 = vrot.slane %v2525_v23, 1  ;;  %v2577_v23 = vshll.u32 %v9855_v3, 16 }
 0x110   : > { %v2917_v47 = vsel %vm2000_vm9, %v2914_v10, %v2916_v30  ;;  %v8743_v10 = vor.u32 %v8857_v62, %v8742_v41  ;;  %v1668_v30 = vshll.u32 %v9861_v15, 16  ;;  %v2797_v41 = vshrl.u32 %v9838_v48, 16 }
 0x111   : > { %4380 = vrot.lane.b32.xlu1 %v4310_v19, %s9153_s14  ;;  %4220 = vrot.lane.b32.xlu2 %v3955_v29, %s9154_s15  ;;  %v2970_v19 = vrot.slane %v2531_v42, 1  ;;  %v9827_v29 = vld [vmem:[#allocation2 + $0x24] sm:$0xf0]  ;;  %v3967_v42 = vshll.u32 %v9806_v61, 16 }
 0x113   : > { %v2971_v7 = vsel %vm2000_vm9, %v2968_v16, %v2970_v19  ;;  %v2567_v16 = vrot.slane %v2565_v27, 1  ;;  %v3969_v54 = vrot.slane %v3967_v42, 1  ;;  %v9083_v42 = vor.u32 %v9082_v4, %v9808_v12 }
 0x114   : > { %3033 = vrot.lane.b32.xlu0 %v2969_v25, %s9153_s14  ;;  %v4312_v25 = vsel %vm2000_vm9, %v4309_v13, %v4311_v18  ;;  %v8934_v13 = vld [vmem:[#allocation2 + $0x120] sm:$0xf0]  ;;  %v9865_v18 = vand.u32 %v8743_v10, %v3249_v8  ;;  %v8609_v4 = vor.u32 %v8807_v31, %v8608_v60 }
 0x115   : > { %v8936_v49 = vor.u32 %v8935_v38, %v8934_v13  ;;  %v8832_v13 = vld [vmem:[%s13159_s1 + $0x8] sm:$0x10] }
 0x116   : > { %4650 = vmatpush.bf16.msra.mxu2 %v9865_v18 }
 0x117   : > { %v2972_v63 = vrot.slane %v8936_v49, 1 }
 0x119   : > { %2077 = vrot.lane.b32.xlu1 %v2007_v45, %s9153_s14  ;;  %1916 = vrot.lane.b32.xlu2 %v1651_v55, %s9154_s15  ;;  %v2788_v45 = vshll.u32 %v9829_v1, 16  ;;  %v2568_v55 = vsel %vm1623_vm10, %v2563_v43, %v2567_v16  ;;  %v8573_v43 = vor.u32 %v8832_v13, %v8572_v37  ;;  %v9885_v16 = vrot.slane %v2577_v23, 1 }
 0x11b   : > { %v2790_v57 = vrot.slane %v2788_v45, 1  ;;  %v9887_v45 = vld [vmem:[#allocation2 + $0x130] sm:$0xff]  ;;  %v3251_v49 = vand.u32 %v8573_v43, %v3249_v8  ;;  %v2580_v12 = vsel %vm1623_vm10, %v9685_v50, %v9885_v16 }
 0x11c   : > { %2825 = vrot.lane.b32.xlu0 %v2560_v44, %s9154_s15  ;;  %v3965_v44 = vshrl.u32 %v9806_v61, 16 }
 0x11d   : > { %v2791_v19 = vor.u32 %v2790_v57, %v2786_v59  ;;  %8952 = vmatpush.bf16.msra.mxu3 %v3251_v49  ;;  %3260 = vmatpush.bf16.msra.mxu0 %v3251_v49  ;;  %v2801_v59 = vshll.u32 %v9887_v45, 16  ;;  %v4314_v57 = vrot.slane %v9832_v33, 1  ;;  %v9939_v49 = vld [vmem:[#allocation2 + $0x34] sm:$0xff] }
 0x121   : > { %4222 = vrot.lane.b32.xlu1 %v3963_v2, %s9154_s15  ;;  %2985 = vrot.lane.b32.xlu2 %v2915_v5, %s9153_s14  ;;  %v2973_v2 = vrot.slane %v9838_v48, 1  ;;  %v3970_v5 = vor.u32 %v3969_v54, %v3965_v44  ;;  %v9890_v44 = vrot.slane %v1668_v30, 1  ;;  %v8925_v54 = vld [vmem:[#allocation2 + $0x48] sm:$0xf0]  ;;  %v3976_v30 = vshrl.u32 %v9832_v33, 16 }
 0x123   : > { %v3975_v27 = vsel %vm1623_vm10, %v3970_v5, %v9859_v14  ;;  %v9910_v5 = vrot.slane %v2801_v59, 1  ;;  %v3978_v43 = vor.u32 %v3976_v30, %v9859_v14  ;;  %v2013_v59 = vrot.slane %v9939_v49, 1 }
 0x124   : > { %2875 = vrot.lane.b32.xlu0 %v2784_v11, %s9154_s15  ;;  %v2793_v11 = vshll.u32 %v9838_v48, 16 }
 0x126   : > { %v2795_v26 = vrot.slane %v2793_v11, 1 }
 0x128   : > { %v2796_v38 = vsel %vm1623_vm10, %v2791_v19, %v2795_v26  ;;  %v2799_v11 = vor.u32 %v2797_v41, %v2795_v26  ;;  %v2011_v26 = vrot.slane %v9861_v15, 1  ;;  %v1672_v41 = vshrl.u32 %v9861_v15, 16 }
 0x129   : > { %1918 = vrot.lane.b32.xlu1 %v1659_v22, %s9154_s15  ;;  %3035 = vrot.lane.b32.xlu2 %v2971_v7, %s9153_s14  ;;  %v2974_v22 = vsel %vm2000_vm9, %v2972_v63, %v2973_v2  ;;  %v1665_v7 = vrot.slane %v1663_v52, 1  ;;  %v8927_v63 = vor.u32 %v8926_v53, %v8925_v54  ;;  %v3492_v52 = vand.u32 %v8609_v4, %v3249_v8 }
 0x12b   : > { %v2918_v19 = vrot.slane %v8927_v63, 1  ;;  %3501 = vmatpush.bf16.msra.mxu1 %v3492_v52  ;;  %8953 = vmatpush.bf16.msrb.mxu3 %v3492_v52  ;;  %v9959_v63 = vld [vmem:[#allocation2 + $0x138] sm:$0xff] }
 0x12c   : > { %4382 = vrot.lane.b32.xlu0 %v4312_v25, %s9153_s14  ;;  %v1661_v25 = vshrl.u32 %v9825_v28, 16 }
 0x131   : > { %2987 = vrot.lane.b32.xlu1 %v2917_v47, %s9153_s14  ;;  %2827 = vrot.lane.b32.xlu2 %v2568_v55, %s9154_s15  ;;  %v9085_v47 = vld [vmem:[#allocation2 + $0x24] sm:$0xe]  ;;  %v4313_v55 = vrot.slane %v9083_v42, 1  ;;  %v9932_v42 = vld [vmem:[#allocation2 + $0x58] sm:$0xff] }
 0x132   : > { %v9086_v10 = vor.u32 %v9085_v47, %v9827_v29 }
 0x133   : > { %v4315_v50 = vsel %vm2000_vm9, %v4313_v55, %v4314_v57  ;;  %v2581_v55 = vshrl.u32 %v9855_v3, 16 }
 0x134   : > { %2079 = vrot.lane.b32.xlu0 %v2009_v51, %s9153_s14  ;;  %v1666_v51 = vor.u32 %v1665_v7, %v1661_v25  ;;  %v2010_v23 = vrot.slane %v9086_v10, 1  ;;  %v2804_v25 = vsel %vm1623_vm10, %v2799_v11, %v9910_v5  ;;  %v2014_v11 = vsel %vm2000_vm9, %v2011_v26, %v2013_v59 }
 0x135   : > { %v2583_v31 = vor.u32 %v2581_v55, %v9885_v16 }
 0x136   : > { %v1671_v62 = vsel %vm1623_vm10, %v1666_v51, %v9890_v44  ;;  %v2012_v7 = vsel %vm2000_vm9, %v2010_v23, %v2011_v26 }
 0x139   : > { %3037 = vrot.lane.b32.xlu1 %v2974_v22, %s9153_s14  ;;  %2877 = vrot.lane.b32.xlu2 %v2796_v38, %s9154_s15  ;;  %v2919_v22 = vrot.slane %v9855_v3, 1  ;;  %v2975_v38 = vrot.slane %v9887_v45, 1 }
 0x13b   : > { %v2920_v8 = vsel %vm2000_vm9, %v2918_v19, %v2919_v22  ;;  %v2976_v53 = vsel %vm2000_vm9, %v2973_v2, %v2975_v38  ;;  %v1676_v2 = vshll.u32 %v9939_v49, 16 }
 0x13c   : > { %4224 = vrot.lane.b32.xlu0 %v3975_v27, %s9154_s15  ;;  %v9917_v27 = vld [vmem:[#allocation2 + $0x7c] sm:$0xff] }
 0x13d   : > { %v4316_v37 = vrot.slane %v9917_v27, 1  ;;  %v3980_v13 = vshll.u32 %v9917_v27, 16  ;;  %v3984_v52 = vshrl.u32 %v9917_v27, 16 }
 0x13f   : > { %v4317_v47 = vsel %vm2000_vm9, %v4314_v57, %v4316_v37  ;;  %v3982_v54 = vrot.slane %v3980_v13, 1  ;;  %v9952_v57 = vld [vmem:[#allocation2 + $0x84] sm:$0xff]  ;;  %v9982_v13 = vld [vmem:[#allocation2 + $0x3c] sm:$0xff] }
 0x140   : > { %v3988_v16 = vshll.u32 %v9952_v57, 16 }
 0x141   : > { %2829 = vrot.lane.b32.xlu1 %v2580_v12, %s9154_s15  ;;  %4384 = vrot.lane.b32.xlu2 %v4315_v50, %s9153_s14  ;;  %v2585_v12 = vshll.u32 %v9932_v42, 16  ;;  %v3983_v14 = vsel %vm1623_vm10, %v3978_v43, %v3982_v54  ;;  %v1674_v50 = vor.u32 %v1672_v41, %v9890_v44  ;;  %v1684_v41 = vshll.u32 %v9982_v13, 16 }
 0x142   : > { %v9980_v30 = vrot.slane %v3988_v16, 1  ;;  %v4318_v16 = vrot.slane %v9952_v57, 1 }
 0x143   : > { %v9919_v29 = vpop.permute.xlu2 %1912 }
 0x144   : > { %1920 = vrot.lane.b32.xlu0 %v1671_v62, %s9154_s15  ;;  %v9957_v62 = vrot.slane %v2585_v12, 1 }
 0x146   : > { %v2588_v44 = vsel %vm1623_vm10, %v2583_v31, %v9957_v62 }
 0x149   : > { %2879 = vrot.lane.b32.xlu1 %v2804_v25, %s9154_s15  ;;  %2081 = vrot.lane.b32.xlu2 %v2012_v7, %s9153_s14  ;;  %v1678_v25 = vrot.slane %v1676_v2, 1  ;;  %v3986_v7 = vor.u32 %v3984_v52, %v3982_v54 }
 0x14b   : > { %v2822_v51 = vpop.permute.xlu2 %2821  ;;  %v1679_v26 = vsel %vm1623_vm10, %v1674_v50, %v1678_v25  ;;  %v3991_v54 = vsel %vm1623_vm10, %v3986_v7, %v9980_v30  ;;  %v10005_v50 = vrot.slane %v1684_v41, 1  ;;  %v2589_v7 = vshrl.u32 %v9932_v42, 16 }
 0x14c   : > { %2989 = vrot.lane.b32.xlu0 %v2920_v8, %s9153_s14  ;;  %v2809_v8 = vshll.u32 %v9959_v63, 16 }
 0x151   : > { %4386 = vrot.lane.b32.xlu1 %v4317_v47, %s9153_s14  ;;  %4226 = vrot.lane.b32.xlu2 %v3983_v14, %s9154_s15  ;;  %v1680_v14 = vshrl.u32 %v9939_v49, 16 }
 0x153   : > { %v4377_v60 = vpop.permute.xlu1 %4376  ;;  %v9970_v19 = vpop.permute.xlu2 %2871 }
 0x154   : > { %3039 = vrot.lane.b32.xlu0 %v2976_v53, %s9153_s14  ;;  %v9986_v53 = vrot.slane %v2809_v8, 1  ;;  %v2977_v8 = vrot.slane %v9959_v63, 1 }
 0x156   : > { %v4217_v4 = vpop.permute.xlu0 %4216 }
 0x157   : > { %v4441_v10 = vsel %vm2137_vm13, %v9670_v34, %v4217_v4  ;;  %v2805_v34 = vshrl.u32 %v9887_v45, 16  ;;  %v1682_v4 = vor.u32 %v1680_v14, %v1678_v25 }
 0x158   : > { %v4505_v23 = vsel %vm2202_vm14, %v4441_v10, %v4377_v60  ;;  %v3046_v10 = vsel %vm2137_vm13, %v9680_v46, %v2822_v51  ;;  %v10020_v51 = vld [vmem:[#allocation2 + $0x60] sm:$0xff] }
 0x159   : > { %8744 = vmatmul.msk.bf16.vlgmr.msra.gmra.mxu2 %vm3181_vm15, %v4505_v23  ;;  %2083 = vrot.lane.b32.xlu1 %v2014_v11, %s9153_s14  ;;  %v2807_v47 = vor.u32 %v2805_v34, %v9910_v5  ;;  %v2921_v5 = vrot.slane %v9932_v42, 1  ;;  %v3729_v23 = vld [vmem:[#allocation2 + $0x8c] sm:$0x1]  ;;  %v1687_v46 = vsel %vm1623_vm10, %v1682_v4, %v10005_v50  ;;  %v2340_v34 = vld [vmem:[#allocation2 + $0x140] sm:$0x1] }
 0x15a   : > { %1922 = vrot.lane.b32.xlu2 %v1679_v26, %s9154_s15  ;;  %v2978_v26 = vsel %vm2000_vm9, %v2975_v38, %v2977_v8  ;;  %v1424_v38 = vld [vmem:[#allocation2 + $0x44] sm:$0x1] }
 0x15b   : > { %v3030_v43 = vpop.permute.xlu1 %3029  ;;  %v4379_v60 = vpop.permute.xlu2 %4378  ;;  %v2812_v31 = vsel %vm1623_vm10, %v2807_v47, %v9986_v53  ;;  %v2524_v47 = vunpack.c.l.b16 %v2340_v34 }
 0x15c   : > { %2831 = vrot.lane.b32.xlu0 %v2588_v44, %s9154_s15 }
 0x15e   : > { %v2870_v55 = vpop.permute.xlu0 %2869 }
 0x15f   : > { %v3094_v12 = vsel %vm2137_vm13, %v9672_v35, %v2870_v55  ;;  %v2922_v35 = vsel %vm2000_vm9, %v2919_v22, %v2921_v5  ;;  %v2139_v22 = vsel %vm2137_vm13, %v9694_v58, %v9919_v29  ;;  %v4319_v58 = vsel %vm2000_vm9, %v4316_v37, %v4318_v16  ;;  %v2334_v55 = vld [vmem:[#allocation2 + $0x68] sm:$0x1] }
 0x160   : > { %v3158_v2 = vsel %vm2202_vm14, %v3094_v12, %v3030_v43  ;;  %v3913_v29 = vunpack.c.l.b16 %v3729_v23  ;;  %v2923_v43 = vrot.slane %v10020_v51, 1  ;;  %v2015_v37 = vrot.slane %v9982_v13, 1 }
 0x161   : > { %8598 = vmatmul.msk.bf16.vlgmr.msra.gmra.mxu3 %vm3181_vm15, %v3158_v2  ;;  %4228 = vrot.lane.b32.xlu1 %v3991_v54, %s9154_s15  ;;  %v2593_v54 = vshll.u32 %v10020_v51, 16  ;;  %v2518_v2 = vunpack.c.l.b16 %v2334_v55 }
 0x162   : > { %8954 = vmatpush.bf16.msra.mxu3 %v9865_v18  ;;  %2991 = vrot.lane.b32.xlu2 %v2922_v35, %s9153_s14  ;;  %v10038_v14 = vpack.c.b16 %v3913_v29, %v3913_v29  ;;  %v3096_v35 = vsel %vm2137_vm13, %v9677_v39, %v9970_v19  ;;  %v3992_v39 = vshrl.u32 %v9952_v57, 16  ;;  %v1608_v19 = vunpack.c.l.b16 %v1424_v38  ;;  %v8908_v38 = vld [vmem:[#allocation2 + $0xd8] sm:$0xff]   ;;  %v8944_v57 = vld [vmem:[#allocation2 + $0x90] sm:$0xe] }
 0x163   : > { %v2982_v11 = vpop.permute.xlu1 %2981  ;;  %v2076_v44 = vpop.permute.xlu2 %2075  ;;  %v2595_v23 = vrot.slane %v2593_v54, 1 }
 0x164   : > { %2881 = vrot.lane.b32.xlu0 %v2812_v31, %s9154_s15  ;;  %v3110_v52 = vsel %vm2202_vm14, %v3046_v10, %v2982_v11  ;;  %v2591_v31 = vor.u32 %v2589_v7, %v9957_v62  ;;  %v2924_v10 = vsel %vm2000_vm9, %v2921_v5, %v2923_v43  ;;  %v2532_v11 = vpack.c.b16 %v2524_v47, %v2524_v47 }
 0x165   : > { %8574 = vmatmul.msk.bf16.vlgmr.msra.gmra.mxu0 %vm3181_vm15, %v3110_v52  ;;  %v3996_v62 = vshll.u32 %v10038_v14, 16  ;;  %v10064_v5 = vpack.c.b16 %v2518_v2, %v2518_v2  ;;  %v2597_v47 = vshrl.u32 %v10020_v51, 16 }
 0x166   : > { %v2074_v18 = vpop.permute.xlu0 %2073  ;;  %v2979_v34 = vrot.slane %v2532_v11, 1 }
 0x167   : > { %v2204_v25 = vsel %vm2202_vm14, %v2139_v22, %v2074_v18  ;;  %v3998_v29 = vrot.slane %v3996_v62, 1  ;;  %v2601_v55 = vshll.u32 %v10064_v5, 16  ;;  %v4320_v62 = vrot.slane %v10038_v14, 1  ;;  %v10107_v14 = vld [vmem:[#allocation2 + $0x6c] sm:$0xf0] }
 0x168   : > { %8610 = vmatmul.msk.bf16.vlgmr.msra.gmra.mxu1 %vm3181_vm15, %v2204_v25  ;;  %v2813_v25 = vshrl.u32 %v9959_v63, 16 }
 0x169   : > { %1924 = vrot.lane.b32.xlu1 %v1687_v46, %s9154_s15  ;;  %v2817_v46 = vshll.u32 %v2532_v11, 16  ;;  %v1843_v11 = vshll.u32 %v8908_v38, 16 }
 0x16a   : > { %3041 = vrot.lane.b32.xlu2 %v2978_v26, %s9153_s14  ;;  %v10070_v26 = vpack.c.b16 %v1608_v19, %v1608_v19 }
 0x16b   : > { %v3032_v12 = vpop.permute.xlu1 %3031  ;;  %v10050_v52 = vpop.permute.xlu2 %4220  ;;  %v2819_v63 = vrot.slane %v2817_v46, 1 }
 0x16c   : > { %4388 = vrot.lane.b32.xlu0 %v4319_v58, %s9153_s14  ;;  %v3160_v22 = vsel %vm2202_vm14, %v3096_v35, %v3032_v12  ;;  %v2815_v12 = vor.u32 %v2813_v25, %v9986_v53  ;;  %v1688_v35 = vshrl.u32 %v9982_v13, 16  ;;  %v2599_v53 = vor.u32 %v2597_v47, %v2595_v23 }
 0x16d   : > { %v1845_v25 = vrot.slane %v1843_v11, 1  ;;  %v4445_v47 = vsel %vm2137_vm13, %v9714_v21, %v10050_v52  ;;  %v2017_v21 = vrot.slane %v10070_v26, 1 }
 0x16e   : > { %v4219_v41 = vpop.permute.xlu0 %4218 }
 0x16f   : > { %v4443_v4 = vsel %vm2137_vm13, %v9668_v32, %v4219_v41  ;;  %v2016_v32 = vsel %vm2000_vm9, %v2013_v59, %v2015_v37  ;;  %v3994_v59 = vor.u32 %v3992_v39, %v9980_v30  ;;  %v2980_v41 = vsel %vm2000_vm9, %v2977_v8, %v2979_v34  ;;  %v10088_v8 = vld [vmem:[#allocation2 + $0xe0] sm:$0xff] }
 0x170   : > { %v4507_v18 = vsel %vm2202_vm14, %v4443_v4, %v4379_v60  ;;  %v2596_v60 = vsel %vm1623_vm10, %v2591_v31, %v2595_v23  ;;  %v1692_v4 = vshll.u32 %v10070_v26, 16  ;;  %v1848_v46 = vshll.u32 %v10088_v8, 16 }
 0x171   : > { %8599 = vmatmul.msk.bf16.gmra.mxu3 %vm3181_vm15, %v3160_v22  ;;  %8745 = vmatmul.msk.bf16.gmra.mxu2 %vm3181_vm15, %v4507_v18  ;;  %v3999_v31 = vsel %vm1623_vm10, %v3994_v59, %v3998_v29  ;;  %v2018_v26 = vsel %vm2000_vm9, %v2015_v37, %v2017_v21  ;;  %v10178_v21 = vld [vmem:[#allocation2 + $0xa0] sm:$0xff] }
 0x172   : > { %2993 = vrot.lane.b32.xlu1 %v2924_v10, %s9153_s14  ;;  %2833 = vrot.lane.b32.xlu2 %v2596_v60, %s9154_s15  ;;  %v2603_v10 = vrot.slane %v2601_v55, 1  ;;  %v1694_v18 = vrot.slane %v1692_v4, 1  ;;  %v1841_v60 = vshrl.u32 %v8908_v38, 16  ;;  %v10109_v29 = vrot.slane %v1848_v46, 1  ;;  %v8919_v38 = vld [vmem:[#allocation2 + $0xd8] sm:$0xe] }
 0x173   : > { %v2824_v58 = vpop.permute.xlu1 %2823  ;;  %v10079_v2 = vpop.permute.xlu2 %1916 }
 0x174   : > { %2085 = vrot.lane.b32.xlu0 %v2016_v32, %s9153_s14  ;;  %v3048_v32 = vsel %vm2137_vm13, %v9702_v6, %v2824_v58  ;;  %v2604_v23 = vsel %vm1623_vm10, %v2599_v53, %v2603_v10  ;;  %v4321_v6 = vsel %vm2000_vm9, %v4318_v16, %v4320_v62  ;;  %v10105_v58 = vld [vmem:[#allocation2 + $0x6c] sm:$0xff]   ;;  %v1846_v59 = vor.u32 %v1845_v25, %v1841_v60 }
 0x175   : > { %v2143_v51 = vsel %vm2137_vm13, %v9731_v40, %v10079_v2  ;;  %v2056_v62 = vrot.slane %v10088_v8, 1  ;;  %v2608_v60 = vshll.u32 %v10105_v58, 16 }
 0x176   : > { %v1915_v7 = vpop.permute.xlu0 %1914 }
 0x177   : > { %v2141_v54 = vsel %vm2137_vm13, %v9697_v0, %v1915_v7  ;;  %v2820_v0 = vsel %vm1623_vm10, %v2815_v12, %v2819_v63  ;;  %v10111_v7 = vld [vmem:[#allocation2 + $0x90] sm:$0xff]   ;;  %v2925_v63 = vrot.slane %v10064_v5, 1  ;;  %v10128_v5 = vld [vmem:[#allocation2 + $0x98] sm:$0xff] }
 0x178   : > { %v2206_v30 = vsel %vm2202_vm14, %v2141_v54, %v2076_v44  ;;  %v1690_v44 = vor.u32 %v1688_v35, %v10005_v50  ;;  %v8943_v12 = vld [vmem:[#allocation2 + $0x90] sm:$0xf0]  ;;  %v4003_v52 = vshll.u32 %v10111_v7, 16  ;;  %v1851_v35 = vsel %vm1623_vm10, %v1846_v59, %v10109_v29 }
 0x179   : > { %8611 = vmatmul.msk.bf16.gmra.mxu1 %vm3181_vm15, %v2206_v30  ;;  %v8918_v30 = vld [vmem:[#allocation2 + $0xd8] sm:$0xf0]  ;;  %v8945_v4 = vor.u32 %v8944_v57, %v8943_v12  ;;  %v4008_v13 = vshll.u32 %v10128_v5, 16 }
 0x17a   : > { %3043 = vrot.lane.b32.xlu1 %v2980_v41, %s9153_s14  ;;  %2883 = vrot.lane.b32.xlu2 %v2820_v0, %s9154_s15  ;;  %v1695_v50 = vsel %vm1623_vm10, %v1690_v44, %v1694_v18  ;;  %v8920_v10 = vor.u32 %v8919_v38, %v8918_v30  ;;  %v4001_v0 = vshrl.u32 %v10111_v7, 16  ;;  %v4005_v11 = vrot.slane %v4003_v52, 1  ;;  %v10140_v18 = vld [vmem:[#allocation2 + $0x48] sm:$0xff]  }
 0x17b   : > { %v2874_v22 = vpop.permute.xlu1 %2873  ;;  %v2986_v34 = vpop.permute.xlu2 %2985  ;;  %v4323_v44 = vrot.slane %v10128_v5, 1  ;;  %v1699_v2 = vshll.u32 %v10140_v18, 16  ;;  %v4010_v12 = vrot.slane %v4008_v13, 1  ;;  %v9088_v52 = vld [vmem:[#allocation2 + $0x6c] sm:$0xe] }
 0x17c   : > { %4230 = vrot.lane.b32.xlu0 %v3999_v31, %s9154_s15  ;;  %v3098_v54 = vsel %vm2137_vm13, %v9718_v24, %v2874_v22  ;;  %v2926_v24 = vsel %vm2000_vm9, %v2923_v43, %v2925_v63  ;;  %v4322_v22 = vrot.slane %v8945_v4, 1  ;;  %v10154_v40 = vor.u32 %v4005_v11, %v4001_v0 }
 0x17e   : > { %v2984_v39 = vpop.permute.xlu0 %2983 }
 0x17f   : > { %v3112_v19 = vsel %vm2202_vm14, %v3048_v32, %v2984_v39  ;;  %v8912_v32 = vld [vmem:[#allocation2 + $0x48] sm:$0xf0]  ;;  %v8913_v39 = vld [vmem:[#allocation2 + $0x48] sm:$0xe] }
 0x180   : > { %8575 = vmatmul.msk.bf16.gmra.mxu0 %vm3181_vm15, %v3112_v19  ;;  %v10149_v19 = vld [vmem:[#allocation2 + $0x74] sm:$0xff]  ;;  %v8914_v59 = vor.u32 %v8913_v39, %v8912_v32 }
 0x181   : > { %v2613_v63 = vshll.u32 %v10149_v19, 16 }
 0x182   : > { %2835 = vrot.lane.b32.xlu1 %v2604_v23, %s9154_s15  ;;  %4390 = vrot.lane.b32.xlu2 %v4321_v6, %s9153_s14  ;;  %v2055_v23 = vrot.slane %v8920_v10, 1  ;;  %v10162_v6 = vld [vmem:[#allocation2 + $0x50] sm:$0xff]  ;;  %v2019_v30 = vrot.slane %v8914_v59, 1  ;;  %v10184_v10 = vld [vmem:[#allocation2 + $0xe8] sm:$0xff] }
 0x183   : > { %v4381_v55 = vpop.permute.xlu1 %4380  ;;  %v3036_v53 = vpop.permute.xlu2 %3035  ;;  %v2020_v38 = vrot.slane %v10162_v6, 1 }
 0x184   : > { %1926 = vrot.lane.b32.xlu0 %v1695_v50, %s9154_s15  ;;  %v4509_v16 = vsel %vm2202_vm14, %v4445_v47, %v4381_v55  ;;  %v4324_v50 = vsel %vm2000_vm9, %v4322_v22, %v4323_v44  ;;  %v2057_v57 = vsel %vm2000_vm9, %v2055_v23, %v2056_v62  ;;  %v1852_v23 = vshrl.u32 %v10088_v8, 16 }
 0x185   : > { %8746 = vmatmul.msk.bf16.gmra.mxu2 %vm3181_vm15, %v4509_v16  ;;  %v2610_v16 = vrot.slane %v2608_v60, 1  ;;  %v2021_v22 = vsel %vm2000_vm9, %v2019_v30, %v2020_v38 }
 0x186   : > { %v3034_v41 = vpop.permute.xlu0 %3033  ;;  %v1854_v59 = vor.u32 %v1852_v23, %v10109_v29  ;;  %v2928_v29 = vrot.slane %v10149_v19, 1 }
 0x187   : > { %v3162_v31 = vsel %vm2202_vm14, %v3098_v54, %v3034_v41  ;;  %v4011_v54 = vsel %vm1623_vm10, %v10154_v40, %v4010_v12  ;;  %v1697_v41 = vshrl.u32 %v10140_v18, 16 }
 0x188   : > { %8600 = vmatmul.msk.bf16.gmra.mxu3 %vm3181_vm15, %v3162_v31 }
 0x18a   : > { %1960 = vrot.lane.b32.xlu1 %v1851_v35, %s9154_s15  ;;  %2087 = vrot.lane.b32.xlu2 %v2018_v26, %s9153_s14  ;;  %v1704_v35 = vshll.u32 %v10162_v6, 16 }
 0x18b   : > { %v2078_v43 = vpop.permute.xlu1 %2077  ;;  %v10164_v47 = vpop.permute.xlu2 %2827 }
 0x18c   : > { %2995 = vrot.lane.b32.xlu0 %v2926_v24, %s9153_s14  ;;  %v2208_v37 = vsel %vm2202_vm14, %v2143_v51, %v2078_v43  ;;  %v10182_v24 = vrot.slane %v2613_v63, 1  ;;  %v4012_v51 = vshrl.u32 %v10128_v5, 16  ;;  %v4016_v43 = vshll.u32 %v10178_v21, 16 }
 0x18d   : > { %8612 = vmatmul.msk.bf16.gmra.mxu1 %vm3181_vm15, %v2208_v37  ;;  %v1706_v13 = vrot.slane %v1704_v35, 1  ;;  %v1708_v63 = vshrl.u32 %v10162_v6, 16  ;;  %v1429_v6 = vld [vmem:[#allocation2 + $0xf8] sm:$0x1] }
 0x18e   : > { %v2826_v25 = vpop.permute.xlu0 %2825 }
 0x18f   : > { %v3050_v46 = vsel %vm2137_vm13, %v9727_v36, %v2826_v25  ;;  %v2606_v36 = vshrl.u32 %v10105_v58, 16  ;;  %v9089_v25 = vor.u32 %v9088_v52, %v10107_v14  ;;  %v1710_v30 = vor.u32 %v1708_v63, %v1706_v13 }
 0x190   : > { %v3114_v55 = vsel %vm2202_vm14, %v3050_v46, %v2986_v34  ;;  %v1701_v34 = vrot.slane %v1699_v2, 1  ;;  %v4014_v2 = vor.u32 %v4012_v51, %v4010_v12  ;;  %v10203_v46 = vrot.slane %v4016_v43, 1 }
 0x191   : > { %8576 = vmatmul.msk.bf16.gmra.mxu0 %vm3181_vm15, %v3114_v55  ;;  %v2611_v4 = vor.u32 %v2610_v16, %v2606_v36  ;;  %v2927_v16 = vrot.slane %v9089_v25, 1  ;;  %v2058_v43 = vrot.slane %v10184_v10, 1  ;;  %v10261_v25 = vld [vmem:[#allocation2 + $0xa8] sm:$0xff] }
 0x192   : > { %4392 = vrot.lane.b32.xlu1 %v4324_v50, %s9153_s14  ;;  %4232 = vrot.lane.b32.xlu2 %v4011_v54, %s9154_s15  ;;  %v1702_v0 = vor.u32 %v1701_v34, %v1697_v41  ;;  %v4019_v12 = vsel %vm1623_vm10, %v4014_v2, %v10203_v46 }
 0x193   : > { %v4223_v31 = vpop.permute.xlu1 %4222  ;;  %v2878_v32 = vpop.permute.xlu2 %2877  ;;  %v2616_v37 = vsel %vm1623_vm10, %v2611_v4, %v10182_v24 }
 0x194   : > { %2121 = vrot.lane.b32.xlu0 %v2057_v57, %s9153_s14  ;;  %v1707_v60 = vsel %vm1623_vm10, %v1702_v0, %v1706_v13  ;;  %v4447_v57 = vsel %vm2137_vm13, %v9759_v9, %v4223_v31  ;;  %v2929_v9 = vsel %vm2000_vm9, %v2927_v16, %v2928_v29  ;;  %v3052_v31 = vsel %vm2137_vm13, %v9772_v17, %v10164_v47  ;;  %v10240_v47 = vld [vmem:[#allocation2 + $0x7c] sm:$0xff] }
 0x195   : > { %v2617_v13 = vshrl.u32 %v10149_v19, 16  ;;  %v3102_v23 = vsel %vm2137_vm13, %v9829_v1, %v2878_v32  ;;  %v2621_v5 = vshll.u32 %v10240_v47, 16 }
 0x196   : > { %v2876_v26 = vpop.permute.xlu0 %2875 }
 0x197   : > { %v3100_v11 = vsel %vm2137_vm13, %v9742_v56, %v2876_v26  ;;  %v1856_v56 = vshll.u32 %v10184_v10, 16  ;;  %v4325_v26 = vrot.slane %v10178_v21, 1  ;;  %v2619_v1 = vor.u32 %v2617_v13, %v10182_v24 }
 0x198   : > { %v3164_v39 = vsel %vm2202_vm14, %v3100_v11, %v3036_v53  ;;  %v10205_v53 = vld [vmem:[#allocation2 + $0x58] sm:$0xff]  ;;  %v4020_v24 = vshrl.u32 %v10178_v21, 16 }
 0x199   : > { %8601 = vmatmul.msk.bf16.gmra.mxu3 %vm3181_vm15, %v3164_v39  ;;  %v10209_v55 = vrot.slane %v1856_v56, 1  ;;  %v1712_v54 = vshll.u32 %v10205_v53, 16  ;;  %v2059_v39 = vsel %vm2000_vm9, %v2056_v62, %v2058_v43  ;;  %v10265_v62 = vld [vmem:[#allocation2 + $0xf0] sm:$0xff] }
 0x19a   : > { %2089 = vrot.lane.b32.xlu1 %v2021_v22, %s9153_s14  ;;  %1928 = vrot.lane.b32.xlu2 %v1707_v60, %s9154_s15  ;;  %v2022_v60 = vrot.slane %v10205_v53, 1 }
 0x19b   : > { %v1919_v50 = vpop.permute.xlu1 %1918  ;;  %v4385_v41 = vpop.permute.xlu2 %4384  ;;  %v1859_v34 = vsel %vm1623_vm10, %v1854_v59, %v10209_v55  ;;  %v10225_v52 = vrot.slane %v1712_v54, 1  ;;  %v2623_v59 = vrot.slane %v2621_v5, 1  ;;  %v4022_v54 = vor.u32 %v4020_v24, %v10203_v46 }
 0x19c   : > { %2837 = vrot.lane.b32.xlu0 %v2616_v37, %s9154_s15  ;;  %v2145_v0 = vsel %vm2137_vm13, %v9778_v20, %v1919_v50  ;;  %v4326_v20 = vsel %vm2000_vm9, %v4323_v44, %v4325_v26  ;;  %v2930_v37 = vrot.slane %v10240_v47, 1 }
 0x19d   : > { %v1715_v17 = vsel %vm1623_vm10, %v1710_v30, %v10225_v52  ;;  %v2624_v16 = vsel %vm1623_vm10, %v2619_v1, %v2623_v59 }
 0x19e   : > { %v4383_v36 = vpop.permute.xlu0 %4382  ;;  %v2931_v32 = vsel %vm2000_vm9, %v2928_v29, %v2930_v37  ;;  %v10293_v29 = vld [vmem:[#allocation2 + $0x60] sm:$0xff] }
 0x19f   : > { %v4511_v14 = vsel %vm2202_vm14, %v4447_v57, %v4383_v36  ;;  %v2023_v57 = vsel %vm2000_vm9, %v2020_v38, %v2022_v60  ;;  %v2060_v36 = vrot.slane %v10265_v62, 1  ;;  %v1864_v38 = vshll.u32 %v10265_v62, 16 }
 0x1a0   : > { %8747 = vmatmul.msk.bf16.gmra.mxu2 %vm3181_vm15, %v4511_v14  ;;  %v1860_v14 = vshrl.u32 %v10184_v10, 16 }
 0x1a1   : > { %v2061_v10 = vsel %vm2000_vm9, %v2058_v43, %v2060_v36 }
 0x1a2   : > { %4234 = vrot.lane.b32.xlu1 %v4019_v12, %s9154_s15  ;;  %2997 = vrot.lane.b32.xlu2 %v2929_v9, %s9153_s14  ;;  %v10286_v12 = vld [vmem:[#allocation2 + $0x84] sm:$0xff]  ;;  %v1862_v9 = vor.u32 %v1860_v14, %v10209_v55  ;;  %v1716_v55 = vshrl.u32 %v10205_v53, 16 }
 0x1a3   : > { %v2988_v35 = vpop.permute.xlu1 %2987  ;;  %v2082_v51 = vpop.permute.xlu2 %2081  ;;  %v2629_v46 = vshll.u32 %v10286_v12, 16 }
 0x1a4   : > { %1962 = vrot.lane.b32.xlu0 %v1859_v34, %s9154_s15  ;;  %v3116_v4 = vsel %vm2202_vm14, %v3052_v31, %v2988_v35  ;;  %v2625_v31 = vshrl.u32 %v10240_v47, 16  ;;  %v1718_v13 = vor.u32 %v1716_v55, %v10225_v52  ;;  %v3730_v52 = vld [vmem:[#allocation2 + $0xb0] sm:$0x1] }
 0x1a5   : > { %8577 = vmatmul.msk.bf16.gmra.mxu0 %vm3181_vm15, %v3116_v4  ;;  %v1613_v4 = vunpack.c.l.b16 %v1429_v6  ;;  %v3914_v14 = vunpack.c.l.b16 %v3730_v52 }
 0x1a6   : > { %v2080_v11 = vpop.permute.xlu0 %2079  ;;  %v2627_v43 = vor.u32 %v2625_v31, %v2623_v59  ;;  %v4327_v59 = vrot.slane %v10261_v25, 1  ;;  %v2024_v31 = vrot.slane %v10293_v29, 1 }
 0x1a7   : > { %v2210_v22 = vsel %vm2202_vm14, %v2145_v0, %v2080_v11  ;;  %v1866_v11 = vrot.slane %v1864_v38, 1 }
 0x1a8   : > { %8613 = vmatmul.msk.bf16.gmra.mxu1 %vm3181_vm15, %v2210_v22  ;;  %v4328_v24 = vsel %vm2000_vm9, %v4325_v26, %v4327_v59  ;;  %v2335_v26 = vld [vmem:[#allocation2 + $0x8c] sm:$0x1] }
 0x1aa   : > { %1930 = vrot.lane.b32.xlu1 %v1715_v17, %s9154_s15  ;;  %2123 = vrot.lane.b32.xlu2 %v2059_v39, %s9153_s14  ;;  %v1720_v17 = vshll.u32 %v10293_v29, 16  ;;  %v10316_v39 = vpack.c.b16 %v1613_v4, %v1613_v4  ;;  %v10352_v4 = vld [vmem:[#allocation2 + $0xb4] sm:$0xf0] }
 0x1ab   : > { %v3038_v56 = vpop.permute.xlu1 %3037  ;;  %v4227_v2 = vpop.permute.xlu2 %4226 }
 0x1ac   : > { %4394 = vrot.lane.b32.xlu0 %v4326_v20, %s9153_s14  ;;  %v3166_v44 = vsel %vm2202_vm14, %v3102_v23, %v3038_v56  ;;  %v10314_v20 = vrot.slane %v2629_v46, 1  ;;  %v10320_v23 = vrot.slane %v1720_v17, 1  ;;  %v9002_v56 = vld [vmem:[#allocation2 + $0x48] sm:$0xff]   ;;  %v10350_v46 = vld [vmem:[#allocation2 + $0xb4] sm:$0xff]   ;;  %v2025_v17 = vsel %vm2000_vm9, %v2022_v60, %v2024_v31 }
 0x1ad   : > { %8602 = vmatmul.msk.bf16.gmra.mxu3 %vm3181_vm15, %v3166_v44 }
 0x1ae   : > { %v4225_v8 = vpop.permute.xlu0 %4224  ;;  %v2632_v1 = vsel %vm1623_vm10, %v2627_v43, %v10314_v20 }
 0x1af   : > { %v4449_v19 = vsel %vm2137_vm13, %v9806_v61, %v4225_v8  ;;  %v4024_v61 = vshll.u32 %v10261_v25, 16 }
 0x1b0   : > { %v4513_v50 = vsel %vm2202_vm14, %v4449_v19, %v4385_v41  ;;  %v1868_v19 = vshrl.u32 %v10265_v62, 16  ;;  %v4039_v62 = vshll.u32 %v10350_v46, 16 }
 0x1b1   : > { %8748 = vmatmul.msk.bf16.gmra.mxu2 %vm3181_vm15, %v4513_v50  ;;  %v10291_v41 = vrot.slane %v4024_v61, 1 }
 0x1b2   : > { %2999 = vrot.lane.b32.xlu1 %v2931_v32, %s9153_s14  ;;  %2839 = vrot.lane.b32.xlu2 %v2624_v16, %s9154_s15  ;;  %v1872_v32 = vshll.u32 %v10316_v39, 16  ;;  %v1870_v61 = vor.u32 %v1868_v19, %v1866_v11 }
 0x1b3   : > { %v2830_v63 = vpop.permute.xlu1 %2829  ;;  %v4027_v22 = vsel %vm1623_vm10, %v4022_v54, %v10291_v41  ;;  %v2932_v54 = vrot.slane %v10286_v12, 1 }
 0x1b4   : > { %2091 = vrot.lane.b32.xlu0 %v2023_v57, %s9153_s14  ;;  %v10304_v35 = vpop.permute.xlu2 %1922  ;;  %v3054_v5 = vsel %vm2137_vm13, %v9002_v56, %v2830_v63  ;;  %v1723_v57 = vsel %vm1623_vm10, %v1718_v13, %v10320_v23  ;;  %v1874_v16 = vrot.slane %v1872_v32, 1  ;;  %v4451_v63 = vsel %vm2137_vm13, %v9832_v33, %v4227_v2 }
 0x1b5   : > { %v3922_v2 = vpack.c.b16 %v3914_v14, %v3914_v14  ;;  %v2149_v47 = vsel %vm2137_vm13, %v9861_v15, %v10304_v35  ;;  %v2062_v13 = vrot.slane %v10316_v39, 1  ;;  %v10381_v15 = vld [vmem:[#allocation2 + $0x6c] sm:$0xf0] }
 0x1b6   : > { %v1921_v34 = vpop.permute.xlu0 %1920  ;;  %v1875_v33 = vsel %vm1623_vm10, %v1870_v61, %v1874_v16  ;;  %v10398_v61 = vld [vmem:[#allocation2 + $0xbc] sm:$0xff] }
 0x1b7   : > { %v2147_v30 = vsel %vm2137_vm13, %v9825_v28, %v1921_v34  ;;  %v1867_v28 = vsel %vm1623_vm10, %v1862_v9, %v1866_v11  ;;  %v10359_v11 = vld [vmem:[#allocation2 + $0xfc] sm:$0xff]   ;;  %v4032_v43 = vshll.u32 %v3922_v2, 16  ;;  %v2063_v32 = vsel %vm2000_vm9, %v2060_v36, %v2062_v13 }
 0x1b8   : > { %v2212_v0 = vsel %vm2202_vm14, %v2147_v30, %v2082_v51  ;;  %v1425_v30 = vld [vmem:[#allocation2 + $0x68] sm:$0x1]  ;;  %13191 = vst [vmem:[#allocation3_spill] sm:$0xff] %v10359_v11  ;;  %v1879_v36 = vshll.u32 %v10359_v11, 16 }
 0x1b9   : > { %8614 = vmatmul.msk.bf16.gmra.mxu1 %vm3181_vm15, %v2212_v0  ;;  %v2519_v0 = vunpack.c.l.b16 %v2335_v26  ;;  %v1609_v55 = vunpack.c.l.b16 %v1425_v30  ;;  %v4037_v26 = vshrl.u32 %v10350_v46, 16  ;;  %v1877_v30 = vshrl.u32 %v10359_v11, 16 }
 0x1ba   : > { %2125 = vrot.lane.b32.xlu1 %v2061_v10, %s9153_s14  ;;  %1964 = vrot.lane.b32.xlu2 %v1867_v28, %s9154_s15  ;;  %v4028_v28 = vshrl.u32 %v10261_v25, 16 }
 0x1bb   : > { %v2880_v51 = vpop.permute.xlu1 %2879  ;;  %v1617_v60 = vpack.c.b16 %v1609_v55, %v1609_v55  ;;  %v9091_v55 = vld [vmem:[#allocation2 + $0xb4] sm:$0xe] }
 0x1bc   : > { %4236 = vrot.lane.b32.xlu0 %v4027_v22, %s9154_s15  ;;  %v2992_v50 = vpop.permute.xlu2 %2991  ;;  %v3104_v21 = vsel %vm2137_vm13, %v9838_v48, %v2880_v51  ;;  %v2933_v48 = vsel %vm2000_vm9, %v2930_v37, %v2932_v54  ;;  %v10361_v22 = vld [vmem:[#allocation2 + $0xfc] sm:$0xf0]  ;;  %v4329_v51 = vrot.slane %v3922_v2, 1  ;;  %v4030_v25 = vor.u32 %v4028_v28, %v10291_v41 }
 0x1bd   : > { %v2633_v41 = vshrl.u32 %v10286_v12, 16 }
 0x1be   : > { %v2990_v44 = vpop.permute.xlu0 %2989  ;;  %v4330_v39 = vsel %vm2000_vm9, %v4327_v59, %v4329_v51  ;;  %v1724_v59 = vshrl.u32 %v10293_v29, 16 }
 0x1bf   : > { %v3118_v8 = vsel %vm2202_vm14, %v3054_v5, %v2990_v44  ;;  %v10374_v5 = vpack.c.b16 %v2519_v0, %v2519_v0  ;;  %v4034_v44 = vrot.slane %v4032_v43, 1  ;;  %v2635_v16 = vor.u32 %v2633_v41, %v10314_v20  ;;  %v10420_v0 = vld [vmem:[#allocation2 + $0x74] sm:$0xff] }
 0x1c0   : > { %8578 = vmatmul.msk.bf16.gmra.mxu0 %vm3181_vm15, %v3118_v8  ;;  %v10379_v8 = vld [vmem:[#allocation2 + $0x6c] sm:$0xff]  }
 0x1c1   : > { %13192 = vst [vmem:[#allocation4_spill] sm:$0xff] %v10379_v8  ;;  %v2637_v52 = vshll.u32 %v10374_v5, 16 }
 0x1c2   : > { %2841 = vrot.lane.b32.xlu1 %v2632_v1, %s9154_s15  ;;  %4396 = vrot.lane.b32.xlu2 %v4328_v24, %s9153_s14  ;;  %v1728_v24 = vshll.u32 %v1617_v60, 16 }
 0x1c3   : > { %v4387_v6 = vpop.permute.xlu1 %4386  ;;  %v2639_v14 = vrot.slane %v2637_v52, 1  ;;  %v9092_v52 = vor.u32 %v9091_v55, %v10352_v4 }
 0x1c4   : > { %1932 = vrot.lane.b32.xlu0 %v1723_v57, %s9154_s15  ;;  %v4515_v38 = vsel %vm2202_vm14, %v4451_v63, %v4387_v6  ;;  %v3042_v9 = vpop.permute.xlu2 %3041  ;;  %v2026_v57 = vrot.slane %v1617_v60, 1  ;;  %v10404_v63 = vld [vmem:[#allocation2 + $0x104] sm:$0xff]  ;;  %v1740_v60 = vshll.u32 %v10420_v0, 16 }
 0x1c5   : > { %8749 = vmatmul.msk.bf16.gmra.mxu2 %vm3181_vm15, %v4515_v38  ;;  %v1726_v38 = vor.u32 %v1724_v59, %v10320_v23  ;;  %v2640_v23 = vsel %vm1623_vm10, %v2635_v16, %v2639_v14  ;;  %v4331_v16 = vrot.slane %v9092_v52, 1  ;;  %v4332_v14 = vrot.slane %v10398_v61, 1 }
 0x1c6   : > { %v3040_v34 = vpop.permute.xlu0 %3039  ;;  %v2027_v29 = vsel %vm2000_vm9, %v2024_v31, %v2026_v57  ;;  %v1884_v31 = vshll.u32 %v10404_v63, 16  ;;  %v10443_v59 = vrot.slane %v1740_v60, 1 }
 0x1c7   : > { %v3168_v10 = vsel %vm2202_vm14, %v3104_v21, %v3040_v34  ;;  %v1730_v21 = vrot.slane %v1728_v24, 1  ;;  %v4333_v55 = vsel %vm2000_vm9, %v4331_v16, %v4332_v14 }
 0x1c8   : > { %8603 = vmatmul.msk.bf16.gmra.mxu3 %vm3181_vm15, %v3168_v10  ;;  %v4041_v10 = vrot.slane %v4039_v62, 1  ;;  %v10428_v13 = vrot.slane %v1884_v31, 1  ;;  %v2029_v31 = vrot.slane %v10420_v0, 1 }
 0x1ca   : > { %1966 = vrot.lane.b32.xlu1 %v1875_v33, %s9154_s15  ;;  %2093 = vrot.lane.b32.xlu2 %v2025_v17, %s9153_s14  ;;  %v4044_v33 = vshll.u32 %v10398_v61, 16  ;;  %v1731_v17 = vsel %vm1623_vm10, %v1726_v38, %v1730_v21  ;;  %v4042_v28 = vor.u32 %v4041_v10, %v4037_v26  ;;  %v10463_v38 = vld [vmem:[#allocation2 + $0xc4] sm:$0xff] }
 0x1cb   : > { %v2084_v37 = vpop.permute.xlu1 %2083 }
 0x1cc   : > { %3001 = vrot.lane.b32.xlu0 %v2933_v48, %s9153_s14  ;;  %v2214_v56 = vsel %vm2202_vm14, %v2149_v47, %v2084_v37  ;;  %v10386_v1 = vpop.permute.xlu2 %2833  ;;  %v1881_v48 = vrot.slane %v1879_v36, 1  ;;  %v9097_v47 = vld [vmem:[#allocation2 + $0x6c] sm:$0xe]  ;;  %v9094_v37 = vld [vmem:[#allocation2 + $0xfc] sm:$0xe] }
 0x1cd   : > { %8615 = vmatmul.msk.bf16.gmra.mxu1 %vm3181_vm15, %v2214_v56  ;;  %v1733_v56 = vshrl.u32 %v10379_v8, 16  ;;  %v9095_v62 = vor.u32 %v9094_v37, %v10361_v22  ;;  %v10452_v36 = vld [vmem:[#allocation2 + $0x98] sm:$0xff]  ;;  %v9098_v4 = vor.u32 %v9097_v47, %v10381_v15  ;;  %v10465_v15 = vld [vmem:[#allocation2 + $0xa0] sm:$0xff] }
 0x1ce   : > { %v2832_v53 = vpop.permute.xlu0 %2831  ;;  %v1882_v51 = vor.u32 %v1881_v48, %v1877_v30  ;;  %v2649_v21 = vshll.u32 %v10452_v36, 16  ;;  %v2937_v48 = vrot.slane %v10452_v36, 1  ;;  %v2653_v37 = vshrl.u32 %v10452_v36, 16 }
 0x1cf   : > { %v3056_v35 = vsel %vm2137_vm13, %v9855_v3, %v2832_v53  ;;  %v4035_v3 = vsel %vm1623_vm10, %v4030_v25, %v4034_v44 }
 0x1d0   : > { %v3120_v19 = vsel %vm2202_vm14, %v3056_v35, %v2992_v50  ;;  %v8928_v35 = vld [vmem:[#allocation2 + $0x90] sm:$0xf0]  ;;  %v1887_v57 = vsel %vm1623_vm10, %v1882_v51, %v10428_v13  ;;  %v4052_v51 = vshll.u32 %v10463_v38, 16  ;;  %v2651_v47 = vrot.slane %v2649_v21, 1 }
 0x1d1   : > { %8579 = vmatmul.msk.bf16.gmra.mxu0 %vm3181_vm15, %v3120_v19  ;;  %v2934_v19 = vrot.slane %v10374_v5, 1  ;;  %v10526_v21 = vld [vmem:[#allocation2 + $0x114] sm:$0xff] }
 0x1d2   : > { %4398 = vrot.lane.b32.xlu1 %v4330_v39, %s9153_s14  ;;  %4238 = vrot.lane.b32.xlu2 %v4035_v3, %s9154_s15  ;;  %v8929_v39 = vld [vmem:[#allocation2 + $0x90] sm:$0xe] }
 0x1d3   : > { %v4229_v50 = vpop.permute.xlu1 %4228  ;;  %v8930_v24 = vor.u32 %v8929_v39, %v8928_v35  ;;  %v2935_v5 = vsel %vm2000_vm9, %v2932_v54, %v2934_v19 }
 0x1d4   : > { %2127 = vrot.lane.b32.xlu0 %v2063_v32, %s9153_s14  ;;  %v10413_v20 = vpop.permute.xlu2 %2883  ;;  %v4453_v25 = vsel %vm2137_vm13, %v9917_v27, %v4229_v50 }
 0x1d5   : > { %v2936_v22 = vrot.slane %v8930_v24, 1 }
 0x1d6   : > { %v2882_v6 = vpop.permute.xlu0 %2881 }
 0x1d7   : > { %v3106_v34 = vsel %vm2137_vm13, %v9887_v45, %v2882_v6  ;;  %v1735_v45 = vshll.u32 %v10379_v8, 16  ;;  %v3058_v6 = vsel %vm2137_vm13, %v9932_v42, %v10386_v1  ;;  %v10473_v42 = vld [vmem:[%s13160_s2] ss:$0 sm:$0xff] }
 0x1d8   : > { %v3170_v2 = vsel %vm2202_vm14, %v3106_v34, %v3042_v9  ;;  %v10425_v9 = vrot.slane %v4044_v33, 1 }
 0x1d9   : > { %8604 = vmatmul.msk.bf16.gmra.mxu3 %vm3181_vm15, %v3170_v2  ;;  %v1737_v53 = vrot.slane %v1735_v45, 1  ;;  %v2064_v2 = vrot.slane %v9095_v62, 1  ;;  %v10483_v45 = vld [vmem:[%s13161_s3] ss:$0 sm:$0xff] }
 0x1da   : > { %2095 = vrot.lane.b32.xlu1 %v2027_v29, %s9153_s14  ;;  %1934 = vrot.lane.b32.xlu2 %v1731_v17, %s9154_s15  ;;  %v4047_v41 = vsel %vm1623_vm10, %v4042_v28, %v10425_v9  ;;  %v10489_v17 = vld [vmem:[#allocation2 + $0x10c] sm:$0xff]  ;;  %v2065_v28 = vrot.slane %v10404_v63, 1 }
 0x1db   : > { %v1925_v43 = vpop.permute.xlu1 %1924  ;;  %v1738_v3 = vor.u32 %v1737_v53, %v1733_v56  ;;  %v2657_v56 = vshll.u32 %v10465_v15, 16  ;;  %v1892_v19 = vshll.u32 %v10489_v17, 16 }
 0x1dc   : > { %2843 = vrot.lane.b32.xlu0 %v2640_v23, %s9154_s15  ;;  %v10445_v27 = vpop.permute.xlu2 %4390  ;;  %v4652_v34 = vpop.f32.mrf.mxu2  ;;  %v2151_v26 = vsel %vm2137_vm13, %v9939_v49, %v1925_v43  ;;  %v2028_v23 = vrot.slane %v9098_v4, 1  ;;  %v4048_v43 = vshrl.u32 %v10398_v61, 16  ;;  %v2066_v60 = vsel %vm2000_vm9, %v2064_v2, %v2065_v28 }
 0x1dd   : > { %v1743_v54 = vsel %vm1623_vm10, %v1738_v3, %v10443_v59  ;;  %v2067_v3 = vrot.slane %v10489_v17, 1  ;;  %v2655_v4 = vor.u32 %v2653_v37, %v2651_v47  ;;  %v10521_v16 = vrot.slane %v2657_v56, 1 }
 0x1de   : > { %v4389_v44 = vpop.permute.xlu0 %4388  ;;  %v2030_v35 = vsel %vm2000_vm9, %v2028_v23, %v2029_v31  ;;  %v4050_v24 = vor.u32 %v4048_v43, %v10425_v9  ;;  %v9004_v9 = vld [vmem:[#allocation2 + $0x84] sm:$0xff]  ;;  %v1896_v37 = vshrl.u32 %v10489_v17, 16 }
 0x1df   : > { %v4517_v32 = vsel %vm2202_vm14, %v4453_v25, %v4389_v44  ;;  %v10501_v25 = vld [vmem:[#allocation2 + $0x7c] sm:$0xff]  ;;  %v2938_v44 = vsel %vm2000_vm9, %v2936_v22, %v2937_v48 }
 0x1e0   : > { %8750 = vmatmul.msk.bf16.gmra.mxu2 %vm3181_vm15, %v4517_v32  ;;  %v1748_v22 = vshll.u32 %v10501_v25, 16 }
 0x1e2   : > { %4240 = vrot.lane.b32.xlu1 %v4047_v41, %s9154_s15  ;;  %v3262_v50 = vpop.f32.mrf.mxu0  ;;  %3003 = vrot.lane.b32.xlu2 %v2935_v5, %s9153_s14  ;;  %v9003_v41 = vld [vmem:[#allocation2 + $0x138] sm:$0xff] }
 0x1e3   : > { %v3108_v52 = vsel %vm2137_vm13, %v9003_v41, %v10413_v20 }
 0x1e4   : > { %1968 = vrot.lane.b32.xlu0 %v1887_v57, %s9154_s15  ;;  %v2994_v29 = vpop.permute.xlu1 %2993  ;;  %v10509_v39 = vpop.permute.xlu2 %2087 }
 0x1e5   : > { %v3503_v12 = vpop.f32.mrf.mxu1  ;;  %v3122_v33 = vsel %vm2202_vm14, %v3058_v6, %v2994_v29  ;;  %v1744_v6 = vshrl.u32 %v10420_v0, 16 }
 0x1e6   : > { %v3504_v10 = vadd.f32 %v3503_v12, %v3262_v50  ;;  %v2086_v1 = vpop.permute.xlu0 %2085  ;;  %8580 = vmatmul.msk.bf16.gmra.mxu0 %vm3181_vm15, %v3122_v33  ;;  %v10518_v50 = vrot.slane %v4052_v51, 1  ;;  %v4654_v33 = vpop.f32.mrf.mxu2 }
 0x1e7   : > { %v2216_v30 = vsel %vm2202_vm14, %v2151_v26, %v2086_v1  ;;  %v2652_v26 = vsel %vm1623_vm10, %v10154_v40, %v2651_v47  ;;  %v1888_v1 = vshrl.u32 %v10404_v63, 16 }
 0x1e8   : > { %v4812_v49 = vadd.f32 %v4652_v34, %v3504_v10  ;;  %8616 = vmatmul.msk.bf16.gmra.mxu1 %vm3181_vm15, %v2216_v30  ;;  %v1894_v10 = vrot.slane %v1892_v19, 1 }
 0x1ea   : > { %v4880_v53 = vmul.f32 %v10473_v42, %v4812_v49  ;;  %1936 = vrot.lane.b32.xlu1 %v1743_v54, %s9154_s15  ;;  %v3264_v57 = vpop.f32.mrf.mxu0  ;;  %2129 = vrot.lane.b32.xlu2 %v2066_v60, %s9153_s14 }
 0x1ec   : > { %v4948_v32 = vadd.f32 %v10483_v45, %v4880_v53  ;;  %4400 = vrot.lane.b32.xlu0 %v4333_v55, %s9153_s14  ;;  %v3044_v5 = vpop.permute.xlu1 %3043  ;;  %v1900_v53 = vshll.u32 %v10526_v21, 16 }
 0x1ed   : > { %v3505_v62 = vpop.f32.mrf.mxu1  ;;  %v3172_v54 = vsel %vm2202_vm14, %v3108_v52, %v3044_v5  ;;  %v1746_v52 = vor.u32 %v1744_v6, %v10443_v59  ;;  %v1890_v5 = vor.u32 %v1888_v1, %v10428_v13  ;;  %v2068_v59 = vsel %vm2000_vm9, %v2065_v28, %v2067_v3 }
 0x1ee   : > { %v5012_v29 = vmax.f32 %v4948_v32, 0.0  ;;  %v3506_v20 = vadd.f32 %v3505_v62, %v3264_v57  ;;  %v4231_v12 = vpop.permute.xlu0 %4230  ;;  %8605 = vmatmul.msk.bf16.gmra.mxu3 %vm3181_vm15, %v3172_v54  ;;  %v10546_v57 = vrot.slane %v1748_v22, 1  ;;  %v4233_v54 = vpop.permute.xlu2 %4232  ;;  %v4055_v13 = vsel %vm1623_vm10, %v4050_v24, %v10518_v50 }
 0x1ef   : > { %v4455_v34 = vsel %vm2137_vm13, %v9004_v9, %v4231_v12 }
 0x1f0   : > { %v5140_v2 = vrot.slane %v5012_v29, 2  ;;  %v5141_v30 = vrot.slane %v5012_v29, 4  ;;  %v5142_v23 = vrot.slane %v5012_v29, 6  ;;  %v5525_v49 = vsel %vm5524_vm0, %v5012_v29, -inf }
 0x1f1   : > { %v5526_v55 = vrot.slane %v5525_v49, 4  ;;  %v4813_v43 = vadd.f32 %v4654_v33, %v3506_v20  ;;  %v4519_v51 = vsel %vm2202_vm14, %v4455_v34, %v10445_v27  ;;  %v10558_v33 = vrot.slane %v1900_v53, 1 }
 0x1f2   : > { %v5532_v56 = vsel %vm5524_vm0, %v5140_v2, -inf  ;;  %v5539_v40 = vsel %vm5524_vm0, %v5141_v30, -inf  ;;  %v5546_v47 = vsel %vm5524_vm0, %v5142_v23, -inf  ;;  %8751 = vmatmul.msk.bf16.gmra.mxu2 %vm3181_vm15, %v4519_v51  ;;  %3005 = vrot.lane.b32.xlu1 %v2938_v44, %s9153_s14  ;;  %v2660_v30 = vsel %vm1623_vm10, %v2655_v4, %v10521_v16 }
 0x1f3   : > { %v5527_v60 = vmax.f32 %v5525_v49, %v5526_v55  ;;  %v5533_v19 = vrot.slane %v5532_v56, 4  ;;  %v5540_v32 = vrot.slane %v5539_v40, 4  ;;  %v5547_v41 = vrot.slane %v5546_v47, 4  ;;  %2845 = vrot.lane.b32.xlu2 %v2652_v26, %s9154_s15 }
 0x1f4   : > { %v4881_v27 = vmul.f32 %v10473_v42, %v4813_v43  ;;  %2097 = vrot.lane.b32.xlu0 %v2030_v35, %s9153_s14  ;;  %v2836_v12 = vpop.permute.xlu1 %2835  ;;  %v1898_v35 = vor.u32 %v1896_v37, %v1894_v10  ;;  %v10562_v26 = vsel %vm2137_vm13, %v10111_v7, %v4233_v54  ;;  %v10568_v63 = vsel %vm1623_vm10, %v1746_v52, %v10546_v57  ;;  %v9006_v52 = vld [vmem:[#allocation2 + $0x60] sm:$0xff] }
 0x1f5   : > { %v5528_v62 = vrot.slane %v5527_v60, 2  ;;  %v5534_v29 = vmax.f32 %v5532_v56, %v5533_v19  ;;  %v5541_v20 = vmax.f32 %v5539_v40, %v5540_v32  ;;  %v5548_v44 = vmax.f32 %v5546_v47, %v5547_v41  ;;  %v9005_v40 = vld [vmem:[#allocation2 + $0x3c] sm:$0xff] }
 0x1f6   : > { %v4949_v9 = vadd.f32 %v10483_v45, %v4881_v27  ;;  %v1927_v34 = vpop.permute.xlu0 %1926  ;;  %v13163_v23 = vrot.slane %v10465_v15, 1  ;;  %v1895_v49 = vsel %vm1623_vm10, %v1890_v5, %v1894_v10  ;;  %v3508_v37 = vpop.f32.mrf.mxu1  ;;  %v10577_v53 = vsel %vm1623_vm10, %v1898_v35, %v10558_v33 }
 0x1f7   : > { %v5535_v6 = vrot.slane %v5534_v29, 2  ;;  %v5542_v22 = vrot.slane %v5541_v20, 2  ;;  %v5549_v1 = vrot.slane %v5548_v44, 2  ;;  %v5529_v28 = vmax.f32 %v5527_v60, %v5528_v62 }
 0x1f8   : > { %v5013_v2 = vmax.f32 %v4949_v9, 0.0  ;;  %v2153_v47 = vsel %vm2137_vm13, %v9005_v40, %v1927_v34  ;;  %v3060_v5 = vsel %vm2137_vm13, %v9006_v52, %v2836_v12 }
 0x1f9   : > { %v5536_v24 = vmax.f32 %v5534_v29, %v5535_v6  ;;  %v5543_v4 = vmax.f32 %v5541_v20, %v5542_v22  ;;  %v5550_v56 = vmax.f32 %v5548_v44, %v5549_v1  ;;  %v5530_v41 = vrot.slane %v5529_v28, 1 }
 0x1fa   : > { %v5143_v55 = vrot.slane %v5013_v2, 2  ;;  %v5144_v43 = vrot.slane %v5013_v2, 4  ;;  %v5145_v51 = vrot.slane %v5013_v2, 6  ;;  %v5553_v7 = vsel %vm5524_vm0, %v5013_v2, -inf  ;;  %2131 = vrot.lane.b32.xlu1 %v2068_v59, %s9153_s14  ;;  %v4657_v59 = vpop.f32.mrf.mxu2 }
 0x1fb   : > { %v5554_v60 = vrot.slane %v5553_v7, 4  ;;  %v5537_v27 = vrot.slane %v5536_v24, 1  ;;  %v10589_v20 = vsel %vm2000_vm9, %v2937_v48, %v13163_v23  ;;  %1970 = vrot.lane.b32.xlu2 %v1895_v49, %s9154_s15  ;;  %v5544_v35 = vrot.slane %v5543_v4, 1  ;;  %v1929_v49 = vpop.permute.xlu2 %1928 }
 0x1fc   : > { %v5560_v10 = vsel %vm5524_vm0, %v5143_v55, -inf  ;;  %v5567_v19 = vsel %vm5524_vm0, %v5144_v43, -inf  ;;  %v5574_v32 = vsel %vm5524_vm0, %v5145_v51, -inf  ;;  %4242 = vrot.lane.b32.xlu0 %v4055_v13, %s9154_s15  ;;  %v1961_v62 = vpop.permute.xlu1 %1960  ;;  %v5551_v6 = vrot.slane %v5550_v56, 1  ;;  %v10596_v55 = vld [vmem:[#allocation2 + $0xcc] sm:$0xff] }
 0x1fd   : > { %v3267_v29 = vpop.f32.mrf.mxu0  ;;  %v5555_v44 = vmax.f32 %v5553_v7, %v5554_v60  ;;  %v5561_v54 = vrot.slane %v5560_v10, 4  ;;  %v5568_v9 = vrot.slane %v5567_v19, 4  ;;  %v5575_v34 = vrot.slane %v5574_v32, 4 }
 0x1fe   : > { %v2996_v13 = vpop.permute.xlu0 %2995  ;;  %v2218_v12 = vsel %vm2202_vm14, %v2153_v47, %v10509_v39  ;;  %v4334_v22 = vrot.slane %v10463_v38, 1  ;;  %v5531_v43 = vmax.f32 %v5529_v28, %v5530_v41  ;;  %v5538_v51 = vmax.f32 %v5536_v24, %v5537_v27  ;;  %v9007_v27 = vld [vmem:[#allocation2 + $0xd8] sm:$0xff]  }
 0x1ff   : > { %v5556_v1 = vrot.slane %v5555_v44, 2  ;;  %v5562_v36 = vmax.f32 %v5560_v10, %v5561_v54  ;;  %v5569_v2 = vmax.f32 %v5567_v19, %v5568_v9  ;;  %v5576_v48 = vmax.f32 %v5574_v32, %v5575_v34  ;;  %8617 = vmatmul.msk.bf16.gmra.mxu1 %vm3181_vm15, %v2218_v12  ;;  %v3510_v32 = vpop.f32.mrf.mxu1 }
 0x200   : > { %v3509_v7 = vadd.f32 %v3508_v37, %v3267_v29  ;;  %v3124_v40 = vsel %vm2202_vm14, %v3060_v5, %v2996_v13  ;;  %v5545_v47 = vmax.f32 %v5543_v4, %v5544_v35  ;;  %v10603_v19 = vsel %vm2137_vm13, %v10140_v18, %v1929_v49 }
 0x201   : > { %v5557_v60 = vmax.f32 %v5555_v44, %v5556_v1  ;;  %v5563_v52 = vrot.slane %v5562_v36, 2  ;;  %v5570_v23 = vrot.slane %v5569_v2, 2  ;;  %v5577_v39 = vrot.slane %v5576_v48, 2  ;;  %8581 = vmatmul.msk.bf16.gmra.mxu0 %vm3181_vm15, %v3124_v40 }
 0x202   : > { %2847 = vrot.lane.b32.xlu1 %v2660_v30, %s9154_s15  ;;  %v4814_v10 = vadd.f32 %v4657_v59, %v3509_v7  ;;  %v4335_v28 = vsel %vm2000_vm9, %v4332_v14, %v4334_v22  ;;  %v5552_v24 = vmax.f32 %v5550_v56, %v5551_v6  ;;  %v13166_v41 = vrot.slane %v10596_v55, 1  ;;  %v4659_v1 = vpop.f32.mrf.mxu2 }
 0x203   : > { %v5564_v37 = vmax.f32 %v5562_v36, %v5563_v52  ;;  %v13164_v30 = vrot.slane %v10526_v21, 1  ;;  %v10613_v4 = vsel %vm7317_vm1, %v5531_v43, -inf  ;;  %v10616_v18 = vsel %vm7317_vm1, %v5538_v51, -inf  ;;  %4402 = vrot.lane.b32.xlu2 %v4335_v28, %s9153_s14  ;;  %v10643_v36 = vld [vmem:[#allocation2 + $0xa8] sm:$0xff]  ;;  %v2998_v28 = vpop.permute.xlu2 %2997 }
 0x204   : > { %1938 = vrot.lane.b32.xlu0 %v10568_v63, %s9154_s15  ;;  %v2187_v61 = vsel %vm2137_vm13, %v9007_v27, %v1961_v62  ;;  %v4882_v14 = vmul.f32 %v10473_v42, %v4814_v10  ;;  %v4393_v56 = vpop.permute.xlu1 %4392  ;;  %v10621_v63 = vld [vmem:[#allocation2 + $0x84] sm:$0xff]  ;;  %v5558_v29 = vrot.slane %v5557_v60, 1  ;;  %v5571_v54 = vmax.f32 %v5569_v2, %v5570_v23 }
 0x205   : > { %v3269_v5 = vpop.f32.mrf.mxu0  ;;  %v5565_v44 = vrot.slane %v5564_v37, 1  ;;  %v5578_v9 = vmax.f32 %v5576_v48, %v5577_v39  ;;  %v4521_v62 = vsel %vm2202_vm14, %v10562_v26, %v4393_v56  ;;  %v10628_v6 = vsel %vm7317_vm1, %v5545_v47, -inf }
 0x206   : > { %v2122_v34 = vpop.permute.xlu0 %2121  ;;  %v4950_v59 = vadd.f32 %v10483_v45, %v4882_v14  ;;  %v3511_v13 = vadd.f32 %v3510_v32, %v3269_v5  ;;  %v10631_v12 = vsel %vm7317_vm1, %v5552_v24, -inf  ;;  %8752 = vmatmul.msk.bf16.gmra.mxu2 %vm3181_vm15, %v4521_v62  ;;  %v4337_v23 = vsel %vm2000_vm9, %v4334_v22, %v13166_v41 }
 0x207   : > { %v2252_v35 = vsel %vm2202_vm14, %v2187_v61, %v2122_v34  ;;  %v2070_v26 = vsel %vm2000_vm9, %v2067_v3, %v13164_v30  ;;  %v2031_v49 = vrot.slane %v10501_v25, 1  ;;  %v13165_v43 = vrot.slane %v10621_v63, 1 }
 0x208   : > { %8634 = vmatmul.msk.bf16.vlgmr.msrb.gmra.mxu3 %vm3181_vm15, %v2252_v35  ;;  %v5014_v2 = vmax.f32 %v4950_v59, 0.0  ;;  %v4815_v48 = vadd.f32 %v4659_v1, %v3511_v13  ;;  %v5559_v51 = vmax.f32 %v5557_v60, %v5558_v29  ;;  %v10647_v7 = vmax.f32 %v5564_v37, %v5565_v44 }
 0x209   : > { %v5572_v40 = vrot.slane %v5571_v54, 1  ;;  %v5579_v52 = vrot.slane %v5578_v9, 1  ;;  %v2661_v60 = vshrl.u32 %v10465_v15, 16  ;;  %v2665_v24 = vshll.u32 %v10643_v36, 16 }
 0x20a   : > { %1972 = vrot.lane.b32.xlu1 %v10577_v53, %s9154_s15  ;;  %v5146_v22 = vrot.slane %v5014_v2, 2  ;;  %v5147_v17 = vrot.slane %v5014_v2, 4  ;;  %v5148_v39 = vrot.slane %v5014_v2, 6  ;;  %v5581_v3 = vsel %vm5524_vm0, %v5014_v2, -inf  ;;  %v3513_v27 = vpop.f32.mrf.mxu1 }
 0x20b   : > { %v5582_v47 = vrot.slane %v5581_v3, 4  ;;  %v4883_v10 = vmul.f32 %v10473_v42, %v4815_v48  ;;  %v2032_v14 = vsel %vm2000_vm9, %v2029_v31, %v2031_v49  ;;  %v4662_v48 = vpop.f32.mrf.mxu2 }
 0x20c   : > { %3007 = vrot.lane.b32.xlu0 %v10589_v20, %s9153_s14  ;;  %v5588_v37 = vsel %vm5524_vm0, %v5146_v22, -inf  ;;  %v5595_v53 = vsel %vm5524_vm0, %v5147_v17, -inf  ;;  %v5602_v32 = vsel %vm5524_vm0, %v5148_v39, -inf  ;;  %v2090_v61 = vpop.permute.xlu1 %2089  ;;  %2099 = vrot.lane.b32.xlu2 %v2032_v14, %s9153_s14  ;;  %v5573_v22 = vmax.f32 %v5571_v54, %v5572_v40 }
 0x20d   : > { %v5583_v20 = vmax.f32 %v5581_v3, %v5582_v47  ;;  %v5589_v56 = vrot.slane %v5588_v37, 4  ;;  %v5596_v5 = vrot.slane %v5595_v53, 4  ;;  %v5603_v29 = vrot.slane %v5602_v32, 4 }
 0x20e   : > { %v2838_v44 = vpop.permute.xlu0 %2837  ;;  %v3272_v34 = vpop.f32.mrf.mxu0  ;;  %v4951_v59 = vadd.f32 %v10483_v45, %v4883_v10  ;;  %v2220_v62 = vsel %vm2202_vm14, %v10603_v19, %v2090_v61  ;;  %v5580_v47 = vmax.f32 %v5578_v9, %v5579_v52  ;;  %v2663_v54 = vor.u32 %v2661_v60, %v10521_v16 }
 0x20f   : > { %v3062_v13 = vsel %vm2137_vm13, %v10105_v58, %v2838_v44  ;;  %v3514_v35 = vadd.f32 %v3513_v27, %v3272_v34  ;;  %v5584_v0 = vrot.slane %v5583_v20, 2  ;;  %v5590_v1 = vmax.f32 %v5588_v37, %v5589_v56  ;;  %8618 = vmatmul.msk.bf16.gmra.mxu1 %vm3181_vm15, %v2220_v62 }
 0x210   : > { %v5597_v31 = vmax.f32 %v5595_v53, %v5596_v5  ;;  %v5604_v2 = vmax.f32 %v5602_v32, %v5603_v29  ;;  %v5015_v17 = vmax.f32 %v4951_v59, 0.0  ;;  %v3126_v3 = vsel %vm2202_vm14, %v3062_v13, %v2998_v28 }
 0x211   : > { %v4816_v39 = vadd.f32 %v4662_v48, %v3514_v35  ;;  %v5591_v10 = vrot.slane %v5590_v1, 2  ;;  %8582 = vmatmul.msk.bf16.gmra.mxu0 %vm3181_vm15, %v3126_v3  ;;  %v5585_v27 = vmax.f32 %v5583_v20, %v5584_v0  ;;  %v10678_v40 = vrot.slane %v2665_v24, 1 }
 0x212   : > { %v5598_v14 = vrot.slane %v5597_v31, 2  ;;  %v5605_v58 = vrot.slane %v5604_v2, 2  ;;  %4404 = vrot.lane.b32.xlu1 %v4337_v23, %s9153_s14  ;;  %v5149_v19 = vrot.slane %v5015_v17, 2  ;;  %v5150_v37 = vrot.slane %v5015_v17, 4 }
 0x213   : > { %v5151_v53 = vrot.slane %v5015_v17, 6  ;;  %v5609_v32 = vsel %vm5524_vm0, %v5015_v17, -inf  ;;  %v5592_v61 = vmax.f32 %v5590_v1, %v5591_v10  ;;  %v10684_v56 = vsel %vm7317_vm1, %v5559_v51, -inf }
 0x214   : > { %2133 = vrot.lane.b32.xlu0 %v2070_v26, %s9153_s14  ;;  %v5610_v9 = vrot.slane %v5609_v32, 4  ;;  %v5616_v52 = vsel %vm5524_vm0, %v5149_v19, -inf  ;;  %v5623_v28 = vsel %vm5524_vm0, %v5150_v37, -inf  ;;  %v5599_v5 = vmax.f32 %v5597_v31, %v5598_v14  ;;  %v3515_v19 = vpop.f32.mrf.mxu1  ;;  %v4235_v37 = vpop.permute.xlu1 %4234 }
 0x215   : > { %v5630_v23 = vsel %vm5524_vm0, %v5151_v53, -inf  ;;  %v5606_v29 = vmax.f32 %v5604_v2, %v5605_v58  ;;  %v2034_v16 = vsel %vm2000_vm9, %v2031_v49, %v13165_v43  ;;  %v5617_v60 = vrot.slane %v5616_v52, 4 }
 0x216   : > { %v5611_v26 = vmax.f32 %v5609_v32, %v5610_v9  ;;  %v5624_v24 = vrot.slane %v5623_v28, 4  ;;  %v5631_v20 = vrot.slane %v5630_v23, 4  ;;  %v10693_v44 = vsel %vm7317_vm1, %v10647_v7, -inf  ;;  %v1963_v51 = vpop.permute.xlu0 %1962  ;;  %v3274_v31 = vpop.f32.mrf.mxu0 }
 0x217   : > { %v5586_v34 = vrot.slane %v5585_v27, 1  ;;  %v5593_v59 = vrot.slane %v5592_v61, 1  ;;  %v2668_v13 = vsel %vm1623_vm10, %v2663_v54, %v10678_v40  ;;  %v5618_v62 = vmax.f32 %v5616_v52, %v5617_v60  ;;  %v2124_v7 = vpop.permute.xlu2 %2123 }
 0x218   : > { %v5612_v35 = vrot.slane %v5611_v26, 2  ;;  %v5625_v0 = vmax.f32 %v5623_v28, %v5624_v24  ;;  %v5632_v1 = vmax.f32 %v5630_v23, %v5631_v20  ;;  %v10698_v49 = vsel %vm7317_vm1, %v5573_v22, -inf  ;;  %v9008_v22 = vld [vmem:[#allocation2 + $0xe0] sm:$0xff]  ;;  %v4664_v24 = vpop.f32.mrf.mxu2 }
 0x219   : > { %v5600_v2 = vrot.slane %v5599_v5, 1  ;;  %v5607_v48 = vrot.slane %v5606_v29, 1  ;;  %v4884_v17 = vmul.f32 %v10473_v42, %v4816_v39  ;;  %v5619_v10 = vrot.slane %v5618_v62, 2 }
 0x21a   : > { %2101 = vrot.lane.b32.xlu1 %v2034_v16, %s9153_s14  ;;  %v5613_v3 = vmax.f32 %v5611_v26, %v5612_v35  ;;  %v5626_v14 = vrot.slane %v5625_v0, 2  ;;  %v5633_v58 = vrot.slane %v5632_v1, 2  ;;  %v10703_v53 = vsel %vm7317_vm1, %v5580_v47, -inf }
 0x21b   : > { %v4952_v32 = vadd.f32 %v10483_v45, %v4884_v17  ;;  %v2189_v54 = vsel %vm2137_vm13, %v9008_v22, %v1963_v51  ;;  %v3516_v9 = vadd.f32 %v3515_v19, %v3274_v31  ;;  %v5587_v39 = vmax.f32 %v5585_v27, %v5586_v34  ;;  %v9009_v34 = vld [vmem:[#allocation2 + $0x98] sm:$0xff] }
 0x21c   : > { %2849 = vrot.lane.b32.xlu0 %v2668_v13, %s9154_s15  ;;  %v5594_v52 = vmax.f32 %v5592_v61, %v5593_v59  ;;  %v5620_v28 = vmax.f32 %v5618_v62, %v5619_v10  ;;  %v5627_v23 = vmax.f32 %v5625_v0, %v5626_v14  ;;  %v5601_v16 = vmax.f32 %v5599_v5, %v5600_v2 }
 0x21d   : > { %v5608_v26 = vmax.f32 %v5606_v29, %v5607_v48  ;;  %v5016_v60 = vmax.f32 %v4952_v32, 0.0  ;;  %v2254_v20 = vsel %vm2202_vm14, %v2189_v54, %v2124_v7  ;;  %v5614_v47 = vrot.slane %v5613_v3, 1  ;;  %v3731_v48 = vld [vmem:[#allocation2 + $0xd4] sm:$0x1] }
 0x21e   : > { %v5621_v35 = vrot.slane %v5620_v28, 1  ;;  %v5634_v30 = vmax.f32 %v5632_v1, %v5633_v58  ;;  %v4817_v17 = vadd.f32 %v4664_v24, %v3516_v9  ;;  %8635 = vmatmul.msk.bf16.gmra.mxu3 %vm3181_vm15, %v2254_v20  ;;  %v10712_v61 = vsel %vm7317_vm1, %v5587_v39, -inf  ;;  %v4395_v2 = vpop.permute.xlu0 %4394 }
 0x21f   : > { %v5152_v51 = vrot.slane %v5016_v60, 2  ;;  %v5153_v31 = vrot.slane %v5016_v60, 4  ;;  %v5154_v19 = vrot.slane %v5016_v60, 6  ;;  %v5637_v27 = vsel %vm5524_vm0, %v5016_v60, -inf  ;;  %13193 = vst [vmem:[#allocation5_spill] sm:$0xff] %v10712_v61 }
 0x220   : > { %v10715_v5 = vsel %vm7317_vm1, %v5594_v52, -inf  ;;  %v5628_v29 = vrot.slane %v5627_v23, 1  ;;  %v4459_v59 = vsel %vm2137_vm13, %v9009_v34, %v4235_v37  ;;  %v5638_v13 = vrot.slane %v5637_v27, 4  ;;  %v1931_v52 = vpop.permute.xlu1 %1930 }
 0x221   : > { %13194 = vst [vmem:[#allocation6_spill] sm:$0xff] %v10715_v5  ;;  %v5644_v62 = vsel %vm5524_vm0, %v5152_v51, -inf  ;;  %v5651_v0 = vsel %vm5524_vm0, %v5153_v31, -inf  ;;  %v5658_v1 = vsel %vm5524_vm0, %v5154_v19, -inf  ;;  %v5615_v7 = vmax.f32 %v5613_v3, %v5614_v47 }
 0x222   : > { %v5622_v10 = vmax.f32 %v5620_v28, %v5621_v35  ;;  %v5635_v14 = vrot.slane %v5634_v30, 1  ;;  %v5645_v58 = vrot.slane %v5644_v62, 4  ;;  %v5639_v32 = vmax.f32 %v5637_v27, %v5638_v13 }
 0x223   : > { %v5652_v22 = vrot.slane %v5651_v0, 4  ;;  %v5659_v54 = vrot.slane %v5658_v1, 4  ;;  %v4885_v9 = vmul.f32 %v10473_v42, %v4817_v17  ;;  %v5629_v39 = vmax.f32 %v5627_v23, %v5628_v29  ;;  %v9010_v23 = vld [vmem:[#allocation2 + $0x50] sm:$0xff]  ;;  %v2840_v17 = vpop.permute.xlu2 %2839 }
 0x224   : > { %v5646_v37 = vmax.f32 %v5644_v62, %v5645_v58  ;;  %v4523_v60 = vsel %vm2202_vm14, %v4459_v59, %v4395_v2  ;;  %v3915_v24 = vunpack.c.l.b16 %v3731_v48  ;;  %v5640_v20 = vrot.slane %v5639_v32, 2 }
 0x225   : > { %v5653_v51 = vmax.f32 %v5651_v0, %v5652_v22  ;;  %v5660_v31 = vmax.f32 %v5658_v1, %v5659_v54  ;;  %v4953_v19 = vadd.f32 %v10483_v45, %v4885_v9  ;;  %8753 = vmatmul.msk.bf16.gmra.mxu2 %vm3181_vm15, %v4523_v60  ;;  %v10726_v3 = vsel %vm7317_vm1, %v5601_v16, -inf }
 0x226   : > { %13195 = vst [vmem:[#allocation7_spill] sm:$0xff] %v10726_v3  ;;  %v10729_v28 = vsel %vm7317_vm1, %v5608_v26, -inf  ;;  %v5647_v47 = vrot.slane %v5646_v37, 2  ;;  %v10732_v35 = vsel %vm2137_vm13, %v9010_v23, %v1931_v52  ;;  %v4060_v59 = vshll.u32 %v10596_v55, 16  ;;  %v3277_v3 = vpop.f32.mrf.mxu0 }
 0x227   : > { %13196 = vst [vmem:[#allocation8_spill] sm:$0xff] %v10729_v28  ;;  %v5654_v27 = vrot.slane %v5653_v51, 2  ;;  %v5661_v29 = vrot.slane %v5660_v31, 2  ;;  %v5017_v34 = vmax.f32 %v4953_v19, 0.0  ;;  %v5636_v13 = vmax.f32 %v5634_v30, %v5635_v14  ;;  %v1430_v14 = vld [vmem:[#allocation2 + $0x11c] sm:$0x1] }
 0x228   : > { %v10736_v62 = vsel %vm7317_vm1, %v5615_v7, -inf  ;;  %v10739_v16 = vsel %vm7317_vm1, %v5622_v10, -inf  ;;  %v10741_v26 = vpack.c.b16 %v3915_v24, %v3915_v24  ;;  %v10744_v0 = vsel %vm7317_vm1, %v5629_v39, -inf }
 0x229   : > { %13197 = vst [vmem:[#allocation9_spill] sm:$0xff] %v10736_v62  ;;  %v5641_v1 = vmax.f32 %v5639_v32, %v5640_v20  ;;  %v5155_v2 = vrot.slane %v5017_v34, 2  ;;  %v4064_v48 = vshrl.u32 %v10596_v55, 16  ;;  %v5648_v58 = vmax.f32 %v5646_v37, %v5647_v47  ;;  %v9011_v37 = vld [vmem:[#allocation2 + $0x74] sm:$0xff] }
 0x22a   : > { %13198 = vst [vmem:[#allocation10_spill] sm:$0xff] %v10739_v16  ;;  %v5156_v22 = vrot.slane %v5017_v34, 4  ;;  %v5157_v54 = vrot.slane %v5017_v34, 6  ;;  %v5665_v30 = vsel %vm5524_vm0, %v5017_v34, -inf  ;;  %v5655_v7 = vmax.f32 %v5653_v51, %v5654_v27  ;;  %v3000_v27 = vpop.permute.xlu1 %2999 }
 0x22b   : > { %13199 = vst [vmem:[#allocation11_spill] sm:$0xff] %v10744_v0  ;;  %v5662_v9 = vmax.f32 %v5660_v31, %v5661_v29  ;;  %v5666_v52 = vrot.slane %v5665_v30, 4  ;;  %v4062_v10 = vrot.slane %v4060_v59, 1  ;;  %v5672_v60 = vsel %vm5524_vm0, %v5155_v2, -inf  ;;  %v2092_v0 = vpop.permute.xlu0 %2091 }
 0x22c   : > { %v5679_v24 = vsel %vm5524_vm0, %v5156_v22, -inf  ;;  %v5686_v39 = vsel %vm5524_vm0, %v5157_v54, -inf  ;;  %v4068_v32 = vshll.u32 %v10741_v26, 16  ;;  %v5642_v20 = vrot.slane %v5641_v1, 1  ;;  %v3518_v22 = vpop.f32.mrf.mxu1 }
 0x22d   : > { %v5667_v19 = vmax.f32 %v5665_v30, %v5666_v52  ;;  %v3064_v47 = vsel %vm2137_vm13, %v9011_v37, %v2840_v17  ;;  %v1614_v23 = vunpack.c.l.b16 %v1430_v14  ;;  %v5649_v34 = vrot.slane %v5648_v58, 1  ;;  %v1965_v30 = vpop.permute.xlu2 %1964 }
 0x22e   : > { %v5673_v43 = vrot.slane %v5672_v60, 4  ;;  %v5680_v51 = vrot.slane %v5679_v24, 4  ;;  %v5687_v31 = vrot.slane %v5686_v39, 4  ;;  %v5656_v29 = vrot.slane %v5655_v7, 1 }
 0x22f   : > { %v5663_v59 = vrot.slane %v5662_v9, 1  ;;  %v5668_v2 = vrot.slane %v5667_v19, 2  ;;  %v4066_v41 = vor.u32 %v4064_v48, %v4062_v10  ;;  %v4070_v28 = vrot.slane %v4068_v32, 1 }
 0x230   : > { %v5674_v54 = vmax.f32 %v5672_v60, %v5673_v43  ;;  %v5681_v16 = vmax.f32 %v5679_v24, %v5680_v51  ;;  %v5688_v62 = vmax.f32 %v5686_v39, %v5687_v31  ;;  %v5643_v52 = vmax.f32 %v5641_v1, %v5642_v20  ;;  %v4667_v20 = vpop.f32.mrf.mxu2 }
 0x231   : > { %v10753_v17 = vpack.c.b16 %v1614_v23, %v1614_v23  ;;  %v1904_v14 = vshrl.u32 %v10526_v21, 16  ;;  %v4056_v37 = vshrl.u32 %v10463_v38, 16  ;;  %v5650_v5 = vmax.f32 %v5648_v58, %v5649_v34 }
 0x232   : > { %v5675_v61 = vrot.slane %v5674_v54, 2  ;;  %v5682_v8 = vrot.slane %v5681_v16, 2  ;;  %v4071_v48 = vsel %vm1623_vm10, %v4066_v41, %v4070_v28  ;;  %v5657_v11 = vmax.f32 %v5655_v7, %v5656_v29  ;;  %v2126_v34 = vpop.permute.xlu1 %2125 }
 0x233   : > { %4246 = vrot.lane.b32.xlu1 %v4071_v48, %s9154_s15  ;;  %v1906_v43 = vor.u32 %v1904_v14, %v10558_v33  ;;  %v1908_v60 = vshll.u32 %v10753_v17, 16  ;;  %v4058_v1 = vor.u32 %v4056_v37, %v10518_v50  ;;  %v5664_v24 = vmax.f32 %v5662_v9, %v5663_v59  ;;  %v3279_v37 = vpop.f32.mrf.mxu0 }
 0x234   : > { %v10762_v39 = vmax.f32 %v5667_v19, %v5668_v2  ;;  %v5689_v32 = vrot.slane %v5688_v62, 2  ;;  %v3519_v38 = vadd.f32 %v3518_v22, %v3277_v3  ;;  %v10765_v58 = vsel %vm7317_vm1, %v5636_v13, -inf  ;;  %v1426_v3 = vld [vmem:[#allocation2 + $0x8c] sm:$0x1] }
 0x235   : > { %v1910_v23 = vrot.slane %v1908_v60, 1  ;;  %v4063_v41 = vsel %vm1623_vm10, %v4058_v1, %v4062_v10  ;;  %v3128_v28 = vsel %vm2202_vm14, %v3064_v47, %v3000_v27  ;;  %v10770_v33 = vsel %vm7317_vm1, %v5643_v52, -inf  ;;  %v4237_v27 = vpop.permute.xlu0 %4236  ;;  %v9012_v2 = vld [vmem:[#allocation2 + $0xe8] sm:$0xff] }
 0x236   : > { %v10772_v7 = vmax.f32 %v5674_v54, %v5675_v61  ;;  %v10774_v50 = vmax.f32 %v5681_v16, %v5682_v8  ;;  %4244 = vrot.lane.b32.xlu2 %v4063_v41, %s9154_s15  ;;  %v4818_v9 = vadd.f32 %v4667_v20, %v3519_v38  ;;  %8583 = vmatmul.msk.bf16.gmra.mxu0 %vm3181_vm15, %v3128_v28  ;;  %v10779_v13 = vsel %vm7317_vm1, %v5650_v5, -inf  ;;  %v4397_v54 = vpop.permute.xlu2 %4396 }
 0x237   : > { %v10782_v10 = vsel %vm7317_vm1, %v5657_v11, -inf  ;;  %v1911_v19 = vsel %vm1623_vm10, %v1906_v43, %v1910_v23  ;;  %v2222_v61 = vsel %vm2202_vm14, %v10732_v35, %v2092_v0  ;;  %v10788_v8 = vsel %vm7317_vm1, %v5664_v24, -inf  ;;  %v3520_v0 = vpop.f32.mrf.mxu1  ;;  %v9013_v24 = vld [vmem:[#allocation2 + $0xa0] sm:$0xff] }
 0x238   : > { %v5670_v16 = vrot.slane %v10762_v39, 1  ;;  %v10791_v47 = vmax.f32 %v5688_v62, %v5689_v32  ;;  %1974 = vrot.lane.b32.xlu0 %v1911_v19, %s9154_s15  ;;  %v4886_v5 = vmul.f32 %v10473_v42, %v4818_v9  ;;  %8619 = vmatmul.msk.bf16.gmra.mxu1 %vm3181_vm15, %v2222_v61  ;;  %v1610_v11 = vunpack.c.l.b16 %v1426_v3  ;;  %v4669_v19 = vpop.f32.mrf.mxu2 }
 0x239   : > { %v1756_v51 = vshll.u32 %v10621_v63, 16  ;;  %v1760_v31 = vshrl.u32 %v10621_v63, 16  ;;  %v4338_v35 = vrot.slane %v10741_v26, 1  ;;  %v5677_v29 = vrot.slane %v10772_v7, 1 }
 0x23a   : > { %v5684_v62 = vrot.slane %v10774_v50, 1  ;;  %v4954_v59 = vadd.f32 %v10483_v45, %v4886_v5  ;;  %v2191_v22 = vsel %vm2137_vm13, %v9012_v2, %v1965_v30  ;;  %v1618_v52 = vpack.c.b16 %v1610_v11, %v1610_v11 }
 0x23b   : > { %v1758_v14 = vrot.slane %v1756_v51, 1  ;;  %v13200_v48 = vrot.slane %v10596_v55, 1  ;;  %v1752_v26 = vshrl.u32 %v10501_v25, 16  ;;  %v3521_v1 = vadd.f32 %v3520_v0, %v3279_v37  ;;  %v2336_v55 = vld [vmem:[#allocation2 + $0xb0] sm:$0x1] }
 0x23c   : > { %v5018_v60 = vmax.f32 %v4954_v59, 0.0  ;;  %v4461_v32 = vsel %vm2137_vm13, %v9013_v24, %v4237_v27  ;;  %v2256_v20 = vsel %vm2202_vm14, %v2191_v22, %v2126_v34  ;;  %v1764_v23 = vshll.u32 %v1618_v52, 16 }
 0x23d   : > { %v4339_v43 = vsel %vm2000_vm9, %v13200_v48, %v4338_v35  ;;  %v1762_v38 = vor.u32 %v1760_v31, %v1758_v14  ;;  %v1754_v30 = vor.u32 %v1752_v26, %v10546_v57  ;;  %8636 = vmatmul.msk.bf16.gmra.mxu3 %vm3181_vm15, %v2256_v20  ;;  %v4525_v41 = vsel %vm2202_vm14, %v4461_v32, %v4397_v54 }
 0x23e   : > { %v5158_v28 = vrot.slane %v5018_v60, 2  ;;  %v5159_v9 = vrot.slane %v5018_v60, 4  ;;  %v5160_v3 = vrot.slane %v5018_v60, 6  ;;  %v5693_v25 = vsel %vm5524_vm0, %v5018_v60, -inf  ;;  %8754 = vmatmul.msk.bf16.gmra.mxu2 %vm3181_vm15, %v4525_v41 }
 0x23f   : > { %v5694_v61 = vrot.slane %v5693_v25, 4  ;;  %v1766_v5 = vrot.slane %v1764_v23, 1  ;;  %v1759_v34 = vsel %vm1623_vm10, %v1754_v30, %v1758_v14  ;;  %v4819_v11 = vadd.f32 %v4669_v19, %v3521_v1 }
 0x240   : > { %v5700_v57 = vsel %vm5524_vm0, %v5158_v28, -inf  ;;  %v5707_v51 = vsel %vm5524_vm0, %v5159_v9, -inf  ;;  %v5714_v31 = vsel %vm5524_vm0, %v5160_v3, -inf  ;;  %4406 = vrot.lane.b32.xlu0 %v4339_v43, %s9153_s14  ;;  %1940 = vrot.lane.b32.xlu2 %v1759_v34, %s9154_s15  ;;  %v2520_v35 = vunpack.c.l.b16 %v2336_v55 }
 0x241   : > { %v5695_v0 = vmax.f32 %v5693_v25, %v5694_v61  ;;  %v5701_v27 = vrot.slane %v5700_v57, 4  ;;  %v5708_v59 = vrot.slane %v5707_v51, 4  ;;  %v5715_v2 = vrot.slane %v5714_v31, 4 }
 0x242   : > { %v1767_v22 = vsel %vm1623_vm10, %v1762_v38, %v1766_v5  ;;  %v4887_v54 = vmul.f32 %v10473_v42, %v4819_v11  ;;  %v10822_v14 = vpack.c.b16 %v2520_v35, %v2520_v35  ;;  %v2941_v37 = vrot.slane %v10643_v36, 1 }
 0x243   : > { %v5696_v48 = vrot.slane %v5695_v0, 2  ;;  %v5702_v26 = vmax.f32 %v5700_v57, %v5701_v27  ;;  %v5709_v60 = vmax.f32 %v5707_v51, %v5708_v59  ;;  %v5716_v1 = vmax.f32 %v5714_v31, %v5715_v2  ;;  %1942 = vrot.lane.b32.xlu1 %v1767_v22, %s9154_s15  ;;  %v1933_v51 = vpop.permute.xlu0 %1932  ;;  %v8946_v59 = vld [vmem:[#allocation2 + $0xd8] sm:$0xf0]  ;;  %v10862_v2 = vld [vmem:[#allocation2 + $0xe0] sm:$0xff] }
 0x244   : > { %v5671_v43 = vmax.f32 %v10762_v39, %v5670_v16  ;;  %v4955_v24 = vadd.f32 %v10483_v45, %v4887_v54  ;;  %v2943_v32 = vrot.slane %v10822_v14, 1  ;;  %v2035_v20 = vrot.slane %v1618_v52, 1 }
 0x245   : > { %v5697_v42 = vmax.f32 %v5695_v0, %v5696_v48  ;;  %v5703_v38 = vrot.slane %v5702_v26, 2  ;;  %v5710_v23 = vrot.slane %v5709_v60, 2  ;;  %v5717_v30 = vrot.slane %v5716_v1, 2 }
 0x246   : > { %v5691_v41 = vrot.slane %v10791_v47, 1  ;;  %v5019_v55 = vmax.f32 %v4955_v24, 0.0  ;;  %v13201_v28 = vrot.slane %v10621_v63, 1  ;;  %v13202_v3 = vrot.slane %v10465_v15, 1 }
 0x247   : > { %v5678_v45 = vmax.f32 %v10772_v7, %v5677_v29  ;;  %v5685_v16 = vmax.f32 %v10774_v50, %v5684_v62  ;;  %v5704_v52 = vmax.f32 %v5702_v26, %v5703_v38  ;;  %v2944_v25 = vsel %vm2000_vm9, %v2941_v37, %v2943_v32  ;;  %v2842_v26 = vpop.permute.xlu1 %2841  ;;  %v9014_v32 = vld [vmem:[#allocation2 + $0x58] sm:$0xff]  ;;  %v10865_v38 = vld [vmem:[#allocation2 + $0x128] sm:$0xff] }
 0x248   : > { %v2036_v9 = vsel %vm2000_vm9, %v13201_v28, %v2035_v20  ;;  %v2942_v39 = vsel %vm2000_vm9, %v13202_v3, %v2941_v37  ;;  %v5161_v19 = vrot.slane %v5019_v55, 2  ;;  %v5162_v61 = vrot.slane %v5019_v55, 4  ;;  %v8939_v28 = vld [vmem:[#allocation2 + $0x120] sm:$0xff]  }
 0x249   : > { %v5163_v63 = vrot.slane %v5019_v55, 6  ;;  %v5721_v5 = vsel %vm5524_vm0, %v5019_v55, -inf  ;;  %2103 = vrot.lane.b32.xlu0 %v2036_v9, %s9153_s14  ;;  %3009 = vrot.lane.b32.xlu2 %v2942_v39, %s9153_s14  ;;  %v10849_v15 = vsel %vm7317_vm1, %v5671_v43, -inf  ;;  %v5698_v7 = vrot.slane %v5697_v42, 1 }
 0x24a   : > { %v5711_v29 = vmax.f32 %v5709_v60, %v5710_v23  ;;  %v5718_v34 = vmax.f32 %v5716_v1, %v5717_v30  ;;  %v5722_v11 = vrot.slane %v5721_v5, 4  ;;  %v5728_v50 = vsel %vm5524_vm0, %v5161_v19, -inf  ;;  %v2094_v60 = vpop.permute.xlu2 %2093  ;;  %v8947_v1 = vld [vmem:[#allocation2 + $0xd8] sm:$0xe] }
 0x24b   : > { %v5735_v62 = vsel %vm5524_vm0, %v5162_v61, -inf  ;;  %v5742_v57 = vsel %vm5524_vm0, %v5163_v63, -inf  ;;  %v5692_v31 = vmax.f32 %v10791_v47, %v5691_v41  ;;  %v10856_v35 = vsel %vm7317_vm1, %v5678_v45, -inf  ;;  %3011 = vrot.lane.b32.xlu1 %v2944_v25, %s9153_s14  ;;  %v3523_v63 = vpop.f32.mrf.mxu1 }
 0x24c   : > { %v10859_v0 = vsel %vm7317_vm1, %v5685_v16, -inf  ;;  %v5705_v27 = vrot.slane %v5704_v52, 1  ;;  %v5723_v22 = vmax.f32 %v5721_v5, %v5722_v11  ;;  %v5729_v54 = vrot.slane %v5728_v50, 4  ;;  %v3282_v16 = vpop.f32.mrf.mxu0 }
 0x24d   : > { %v5736_v37 = vrot.slane %v5735_v62, 4  ;;  %v5743_v48 = vrot.slane %v5742_v57, 4  ;;  %v5699_v47 = vmax.f32 %v5697_v42, %v5698_v7  ;;  %v5712_v43 = vrot.slane %v5711_v29, 1 }
 0x24e   : > { %v5719_v24 = vrot.slane %v5718_v34, 1  ;;  %v2159_v20 = vsel %vm2137_vm13, %v9014_v32, %v1933_v51  ;;  %v5724_v23 = vrot.slane %v5723_v22, 2  ;;  %v5730_v30 = vmax.f32 %v5728_v50, %v5729_v54 }
 0x24f   : > { %v5737_v41 = vmax.f32 %v5735_v62, %v5736_v37  ;;  %v5744_v55 = vmax.f32 %v5742_v57, %v5743_v48  ;;  %v5706_v9 = vmax.f32 %v5704_v52, %v5705_v27  ;;  %v2224_v3 = vsel %vm2202_vm14, %v2159_v20, %v2094_v60  ;;  %v4672_v27 = vpop.f32.mrf.mxu2 }
 0x250   : > { %v8948_v39 = vor.u32 %v8947_v1, %v8946_v59  ;;  %v13169_v45 = vrot.slane %v10862_v2, 1  ;;  %v5725_v42 = vmax.f32 %v5723_v22, %v5724_v23  ;;  %v5731_v25 = vrot.slane %v5730_v30, 2  ;;  %8620 = vmatmul.msk.bf16.gmra.mxu1 %vm3181_vm15, %v2224_v3  ;;  %v10897_v3 = vld [vmem:[#allocation2 + $0xb4] sm:$0xf0] }
 0x251   : > { %v5738_v19 = vrot.slane %v5737_v41, 2  ;;  %v5745_v61 = vrot.slane %v5744_v55, 2  ;;  %v4145_v7 = vshrl.u32 %v8939_v28, 16  ;;  %v4147_v11 = vshll.u32 %v8939_v28, 16  ;;  %v3002_v28 = vpop.permute.xlu0 %3001 }
 0x252   : > { %v4340_v5 = vrot.slane %v8948_v39, 1  ;;  %v4152_v50 = vshll.u32 %v10865_v38, 16  ;;  %v5713_v62 = vmax.f32 %v5711_v29, %v5712_v43  ;;  %v5720_v52 = vmax.f32 %v5718_v34, %v5719_v24  ;;  %v10899_v39 = vld [vmem:[#allocation2 + $0xbc] sm:$0xff] }
 0x253   : > { %v5732_v57 = vmax.f32 %v5730_v30, %v5731_v25  ;;  %v5739_v51 = vmax.f32 %v5737_v41, %v5738_v19  ;;  %v4149_v22 = vrot.slane %v4147_v11, 1  ;;  %v2071_v37 = vrot.slane %v10753_v17, 1  ;;  %v9015_v41 = vld [vmem:[#allocation2 + $0x7c] sm:$0xff] }
 0x254   : > { %v4342_v59 = vsel %vm2000_vm9, %v4340_v5, %v13169_v45  ;;  %v10874_v54 = vrot.slane %v4152_v50, 1  ;;  %v5726_v48 = vrot.slane %v5725_v42, 1  ;;  %v5746_v32 = vmax.f32 %v5744_v55, %v5745_v61  ;;  %v8907_v61 = vld [vmem:[#allocation2 + $0x90] sm:$0xff]   ;;  %v10915_v50 = vld [vmem:[%s13160_s2] ss:$0 sm:$0xff] }
 0x255   : > { %v5733_v60 = vrot.slane %v5732_v57, 1  ;;  %v5740_v1 = vrot.slane %v5739_v51, 1  ;;  %4408 = vrot.lane.b32.xlu1 %v4342_v59, %s9153_s14  ;;  %v10879_v29 = vsel %vm7317_vm1, %v5692_v31, -inf  ;;  %v4150_v34 = vor.u32 %v4149_v22, %v4145_v7  ;;  %v1967_v31 = vpop.permute.xlu1 %1966  ;;  %v3284_v59 = vpop.f32.mrf.mxu0  ;;  %v10925_v22 = vld [vmem:[%s13161_s3] ss:$0 sm:$0xff] }
 0x256   : > { %v13203_v43 = vrot.slane %v10526_v21, 1  ;;  %v3524_v20 = vadd.f32 %v3523_v63, %v3282_v16  ;;  %v10885_v23 = vsel %vm7317_vm1, %v5699_v47, -inf  ;;  %v10888_v17 = vsel %vm7317_vm1, %v5706_v9, -inf  ;;  %v10895_v21 = vld [vmem:[#allocation2 + $0xb4] sm:$0xff]  }
 0x257   : > { %v10891_v30 = vsel %vm7317_vm1, %v5713_v62, -inf  ;;  %v3066_v55 = vsel %vm2137_vm13, %v9015_v41, %v2842_v26  ;;  %13204 = vst [vmem:[#allocation12_spill] sm:$0xff] %v10895_v21  ;;  %v10901_v47 = vld [vmem:[#allocation2 + $0x98] sm:$0xff]  ;;  %v10904_v9 = vsel %vm7317_vm1, %v5720_v52, -inf  ;;  %v9016_v16 = vld [vmem:[#allocation2 + $0xf0] sm:$0xff]  ;;  %v4155_v26 = vsel %vm1623_vm10, %v4150_v34, %v10874_v54  ;;  %v4674_v41 = vpop.f32.mrf.mxu2 }
 0x258   : > { %v2072_v24 = vsel %vm2000_vm9, %v13203_v43, %v2071_v37  ;;  %13205 = vst [vmem:[#allocation13_spill] sm:$0xff] %v10904_v9  ;;  %v10907_v25 = vsel %vm2137_vm13, %v9016_v16, %v1967_v31  ;;  %v4820_v19 = vadd.f32 %v4672_v27, %v3524_v20  ;;  %v5727_v63 = vmax.f32 %v5725_v42, %v5726_v48  ;;  %v3525_v48 = vpop.f32.mrf.mxu1  ;;  %v4239_v31 = vpop.permute.xlu2 %4238 }
 0x259   : > { %2135 = vrot.lane.b32.xlu2 %v2072_v24, %s9153_s14  ;;  %v5734_v5 = vmax.f32 %v5732_v57, %v5733_v60  ;;  %v5741_v7 = vmax.f32 %v5739_v51, %v5740_v1  ;;  %v5747_v11 = vrot.slane %v5746_v32, 1  ;;  %4264 = vrot.lane.b32.xlu0 %v4155_v26, %s9154_s15  ;;  %v3130_v52 = vsel %vm2202_vm14, %v3066_v55, %v3002_v28 }
 0x25a   : > { %v4888_v62 = vmul.f32 %v10915_v50, %v4820_v19  ;;  %8584 = vmatmul.msk.bf16.gmra.mxu0 %vm3181_vm15, %v3130_v52  ;;  %v2685_v27 = vshll.u32 %v10899_v39, 16  ;;  %v1769_v42 = vshrl.u32 %v8907_v61, 16  ;;  %v1771_v57 = vshll.u32 %v8907_v61, 16 }
 0x25b   : > { %v1776_v51 = vshll.u32 %v10901_v47, 16  ;;  %v2669_v60 = vshrl.u32 %v10643_v36, 16  ;;  %v2673_v1 = vshll.u32 %v10822_v14, 16  ;;  %v10930_v34 = vmax.f32 %v5746_v32, %v5747_v11 }
 0x25c   : > { %v4956_v37 = vadd.f32 %v10925_v22, %v4888_v62  ;;  %v1773_v43 = vrot.slane %v1771_v57, 1  ;;  %v3526_v20 = vadd.f32 %v3525_v48, %v3284_v59  ;;  %v2680_v28 = vshll.u32 %v10895_v21, 16 }
 0x25d   : > { %v10932_v24 = vrot.slane %v1776_v51, 1  ;;  %v10935_v16 = vrot.slane %v2685_v27, 1  ;;  %v2671_v26 = vor.u32 %v2669_v60, %v10678_v40  ;;  %v2678_v19 = vshrl.u32 %v10895_v21, 16 }
 0x25e   : > { %v5020_v55 = vmax.f32 %v4956_v37, 0.0  ;;  %v1774_v36 = vor.u32 %v1773_v43, %v1769_v42  ;;  %v2675_v61 = vrot.slane %v2673_v1, 1  ;;  %v4821_v14 = vadd.f32 %v4674_v41, %v3526_v20 }
 0x25f   : > { %v2682_v57 = vrot.slane %v2680_v28, 1  ;;  %v10950_v41 = vsel %vm7317_vm1, %v5727_v63, -inf }
 0x260   : > { %v5164_v32 = vrot.slane %v5020_v55, 2  ;;  %v5165_v11 = vrot.slane %v5020_v55, 4  ;;  %v5166_v62 = vrot.slane %v5020_v55, 6  ;;  %v5749_v52 = vsel %vm5524_vm0, %v5020_v55, -inf  ;;  %13206 = vst [vmem:[#allocation14_spill] sm:$0xff] %v10950_v41 }
 0x261   : > { %v5750_v59 = vrot.slane %v5749_v52, 4  ;;  %v1779_v51 = vsel %vm1623_vm10, %v1774_v36, %v10932_v24  ;;  %v2676_v27 = vsel %vm1623_vm10, %v2671_v26, %v2675_v61  ;;  %v4889_v48 = vmul.f32 %v10915_v50, %v4821_v14  ;;  %v9019_v14 = vld [vmem:[#allocation2 + $0xa8] sm:$0xff] }
 0x262   : > { %v5756_v37 = vsel %vm5524_vm0, %v5164_v32, -inf  ;;  %v5763_v40 = vsel %vm5524_vm0, %v5165_v11, -inf  ;;  %v5770_v42 = vsel %vm5524_vm0, %v5166_v62, -inf  ;;  %1944 = vrot.lane.b32.xlu0 %v1779_v51, %s9154_s15  ;;  %2851 = vrot.lane.b32.xlu2 %v2676_v27, %s9154_s15  ;;  %v10953_v55 = vsel %vm7317_vm1, %v5734_v5, -inf  ;;  %v10965_v27 = vpop.permute.xlu1 %4398 }
 0x263   : > { %v5751_v60 = vmax.f32 %v5749_v52, %v5750_v59  ;;  %v5757_v1 = vrot.slane %v5756_v37, 4  ;;  %v5764_v43 = vrot.slane %v5763_v40, 4  ;;  %v5771_v20 = vrot.slane %v5770_v42, 4  ;;  %13207 = vst [vmem:[#allocation15_spill] sm:$0xff] %v10953_v55 }
 0x264   : > { %v2683_v28 = vor.u32 %v2682_v57, %v2678_v19  ;;  %v4957_v26 = vadd.f32 %v10925_v22, %v4889_v48  ;;  %v10957_v62 = vsel %vm7317_vm1, %v5741_v7, -inf  ;;  %v10960_v52 = vsel %vm2137_vm13, %v9019_v14, %v4239_v31  ;;  %v10969_v7 = vpop.f32.mrf.mxu3 }
 0x265   : > { %v5752_v36 = vrot.slane %v5751_v60, 2  ;;  %v5758_v61 = vmax.f32 %v5756_v37, %v5757_v1  ;;  %v5765_v32 = vmax.f32 %v5763_v40, %v5764_v43  ;;  %v5772_v11 = vmax.f32 %v5770_v42, %v5771_v20  ;;  %13208 = vst [vmem:[#allocation16_spill] sm:$0xff] %v10957_v62  ;;  %v10967_v37 = vpop.permute.xlu0 %2127  ;;  %v10972_v1 = vpop.permute.xlu2 %1934 }
 0x266   : > { %v2688_v63 = vsel %vm1623_vm10, %v2683_v28, %v10935_v16  ;;  %v5021_v59 = vmax.f32 %v4957_v26, 0.0  ;;  %13209 = vst [vmem:[#allocation17_spill] sm:$0xff] %v10969_v7 }
 0x267   : > { %v5753_v5 = vmax.f32 %v5751_v60, %v5752_v36  ;;  %v5759_v51 = vrot.slane %v5758_v61, 2  ;;  %v5766_v19 = vrot.slane %v5765_v32, 2  ;;  %v5773_v57 = vrot.slane %v5772_v11, 2  ;;  %2853 = vrot.lane.b32.xlu1 %v2688_v63, %s9154_s15 }
 0x268   : > { %v5167_v40 = vrot.slane %v5021_v59, 2  ;;  %v5168_v42 = vrot.slane %v5021_v59, 4  ;;  %v5169_v31 = vrot.slane %v5021_v59, 6  ;;  %v5777_v48 = vsel %vm5524_vm0, %v5021_v59, -inf }
 0x269   : > { %v5754_v43 = vrot.slane %v5753_v5, 1  ;;  %v5760_v60 = vmax.f32 %v5758_v61, %v5759_v51  ;;  %v5767_v20 = vmax.f32 %v5765_v32, %v5766_v19  ;;  %v5774_v28 = vmax.f32 %v5772_v11, %v5773_v57 }
 0x26a   : > { %v5778_v26 = vrot.slane %v5777_v48, 4  ;;  %v5784_v36 = vsel %vm5524_vm0, %v5167_v40, -inf  ;;  %v5791_v14 = vsel %vm5524_vm0, %v5168_v42, -inf  ;;  %v5798_v63 = vsel %vm5524_vm0, %v5169_v31, -inf }
 0x26b   : > { %v5755_v45 = vmax.f32 %v5753_v5, %v5754_v43  ;;  %v5761_v21 = vrot.slane %v5760_v60, 1  ;;  %v5768_v7 = vrot.slane %v5767_v20, 1  ;;  %v5775_v62 = vrot.slane %v5774_v28, 1 }
 0x26c   : > { %v5779_v59 = vmax.f32 %v5777_v48, %v5778_v26  ;;  %v5785_v55 = vrot.slane %v5784_v36, 4  ;;  %v5792_v41 = vrot.slane %v5791_v14, 4  ;;  %v5799_v9 = vrot.slane %v5798_v63, 4 }
 0x26d   : > { %v5762_v61 = vmax.f32 %v5760_v60, %v5761_v21  ;;  %v5769_v32 = vmax.f32 %v5767_v20, %v5768_v7  ;;  %v5776_v11 = vmax.f32 %v5774_v28, %v5775_v62  ;;  %v7319_v51 = vsel %vm7317_vm1, %v5755_v45, -inf  ;;  %v10989_v28 = vpop.f32.mrf.mxu3 }
 0x26e   : > { %v7320_v19 = vmax.f32 %v10613_v4, %v7319_v51  ;;  %v5780_v57 = vrot.slane %v5779_v59, 2  ;;  %v5786_v40 = vmax.f32 %v5784_v36, %v5785_v55  ;;  %v5793_v5 = vmax.f32 %v5791_v14, %v5792_v41  ;;  %v10985_v55 = vpop.permute.xlu1 %2095  ;;  %v10987_v41 = vpop.permute.xlu0 %2843 }
 0x26f   : > { %v7322_v42 = vsel %vm7317_vm1, %v5762_v61, -inf  ;;  %v7325_v31 = vsel %vm7317_vm1, %v5769_v32, -inf  ;;  %v7328_v48 = vsel %vm7317_vm1, %v5776_v11, -inf  ;;  %v5800_v43 = vmax.f32 %v5798_v63, %v5799_v9 }
 0x270   : > { %v7323_v26 = vmax.f32 %v10616_v18, %v7322_v42  ;;  %v7326_v21 = vmax.f32 %v10628_v6, %v7325_v31  ;;  %v7329_v62 = vmax.f32 %v10631_v12, %v7328_v48  ;;  %v7702_v45 = vpack.c.bf16 %v7320_v19, %v7320_v19  ;;  %v10991_v18 = vpop.permute.xlu2 %3003 }
 0x271   : > { %v5781_v7 = vmax.f32 %v5779_v59, %v5780_v57  ;;  %v5787_v60 = vrot.slane %v5786_v40, 2  ;;  %v5794_v4 = vrot.slane %v5793_v5, 2  ;;  %v5801_v20 = vrot.slane %v5800_v43, 2 }
 0x272   : > { %v7703_v36 = vpack.c.bf16 %v7323_v26, %v7323_v26  ;;  %v7704_v14 = vpack.c.bf16 %v7326_v21, %v7326_v21  ;;  %v7705_v9 = vpack.c.bf16 %v7329_v62, %v7329_v62  ;;  %v7958_v63 = vunpack.c.l.b16 %v7702_v45 }
 0x273   : > { %v5782_v6 = vrot.slane %v5781_v7, 1  ;;  %v5788_v61 = vmax.f32 %v5786_v40, %v5787_v60  ;;  %v5795_v12 = vmax.f32 %v5793_v5, %v5794_v4  ;;  %v5802_v32 = vmax.f32 %v5800_v43, %v5801_v20  ;;  %v9020_v40 = vld [vmem:[#allocation2 + $0x60] sm:$0xff]  ;;  %v3287_v60 = vpop.f32.mrf.mxu0 }
 0x274   : > { %v7959_v59 = vunpack.c.l.b16 %v7703_v36  ;;  %v7960_v11 = vunpack.c.l.b16 %v7704_v14  ;;  %v7961_v51 = vunpack.c.l.b16 %v7705_v9  ;;  %v4527_v19 = vsel %vm2202_vm14, %v10960_v52, %v10965_v27 }
 0x275   : > { %v5783_v57 = vmax.f32 %v5781_v7, %v5782_v6  ;;  %v5789_v42 = vrot.slane %v5788_v61, 1  ;;  %v5796_v31 = vrot.slane %v5795_v12, 1  ;;  %v5803_v48 = vrot.slane %v5802_v32, 1  ;;  %8755 = vmatmul.msk.bf16.gmra.mxu2 %vm3181_vm15, %v4527_v19  ;;  %v11006_v7 = vld [vmem:[#allocation2 + $0xe8] sm:$0xff]  ;;  %v3528_v6 = vpop.f32.mrf.mxu1 }
 0x276   : > { %v8087_v26 = vsel %vm8086_vm2, %v7959_v59, %v7958_v63  ;;  %v2161_v5 = vsel %vm2137_vm13, %v9020_v40, %v10972_v1  ;;  %v2258_v43 = vsel %vm2202_vm14, %v10907_v25, %v10967_v37  ;;  %v4080_v52 = vshll.u32 %v10862_v2, 16  ;;  %v9100_v37 = vld [vmem:[#allocation2 + $0xb4] sm:$0xe]  ;;  %v4677_v59 = vpop.f32.mrf.mxu2 }
 0x277   : > { %v8089_v27 = vsel %vm8088_vm3, %v7960_v11, %v8087_v26  ;;  %v5790_v21 = vmax.f32 %v5788_v61, %v5789_v42  ;;  %v5797_v62 = vmax.f32 %v5795_v12, %v5796_v31  ;;  %v5804_v45 = vmax.f32 %v5802_v32, %v5803_v48  ;;  %8637 = vmatmul.msk.bf16.gmra.mxu3 %vm3181_vm15, %v2258_v43  ;;  %v4241_v42 = vpop.permute.xlu1 %4240  ;;  %v1969_v31 = vpop.permute.xlu0 %1968 }
 0x278   : > { %v8091_v4 = vsel %vm8090_vm4, %v7961_v51, %v8089_v27  ;;  %v7331_v1 = vsel %vm7317_vm1, %v5783_v57, -inf  ;;  %v4082_v20 = vrot.slane %v4080_v52, 1  ;;  %v4084_v25 = vshrl.u32 %v10862_v2, 16  ;;  %v8938_v51 = vld [vmem:[#allocation2 + $0xd8] sm:$0xff]   ;;  %v11020_v48 = vpop.f32.mrf.mxu3 }
 0x279   : > { %v7332_v36 = vmax.f32 %v10684_v56, %v7331_v1  ;;  %v7334_v14 = vsel %vm7317_vm1, %v5790_v21, -inf  ;;  %v7337_v9 = vsel %vm7317_vm1, %v5797_v62, -inf  ;;  %v7340_v63 = vsel %vm7317_vm1, %v5804_v45, -inf  ;;  %13210 = vst [vmem:[#allocation18_spill] sm:$0xff] %v11020_v48 }
 0x27a   : > { %v7335_v61 = vmax.f32 %v10693_v44, %v7334_v14  ;;  %v7338_v12 = vmax.f32 %v10698_v49, %v7337_v9  ;;  %v7341_v32 = vmax.f32 %v10703_v53, %v7340_v63  ;;  %v4086_v11 = vor.u32 %v4084_v25, %v4082_v20  ;;  %v2130_v49 = vpop.permute.xlu2 %2129  ;;  %v9021_v25 = vld [vmem:[#allocation2 + $0x84] sm:$0xff]  ;;  %v11027_v14 = vld [vmem:[#allocation2 + $0x130] sm:$0xff] }
 0x27b   : > { %v7706_v19 = vpack.c.bf16 %v7332_v36, %v7332_v36  ;;  %v4088_v56 = vshll.u32 %v11006_v7, 16  ;;  %v13172_v57 = vrot.slane %v10899_v39, 1  ;;  %v4073_v43 = vshrl.u32 %v8938_v51, 16 }
 0x27c   : > { %v7707_v26 = vpack.c.bf16 %v7335_v61, %v7335_v61  ;;  %v7708_v40 = vpack.c.bf16 %v7338_v12, %v7338_v12  ;;  %v7709_v44 = vpack.c.bf16 %v7341_v32, %v7341_v32  ;;  %v9101_v27 = vor.u32 %v9100_v37, %v10897_v3 }
 0x27d   : > { %v7962_v52 = vunpack.c.l.b16 %v7706_v19  ;;  %v11022_v53 = vrot.slane %v4088_v56, 1  ;;  %v4075_v21 = vshll.u32 %v8938_v51, 16  ;;  %v3068_v36 = vsel %vm2137_vm13, %v9021_v25, %v10987_v41  ;;  %v8949_v51 = vld [vmem:[#allocation2 + $0x120] sm:$0xf0]  ;;  %v8950_v19 = vld [vmem:[#allocation2 + $0x120] sm:$0xe] }
 0x27e   : > { %v7963_v62 = vunpack.c.l.b16 %v7707_v26  ;;  %v7964_v45 = vunpack.c.l.b16 %v7708_v40  ;;  %v7965_v1 = vunpack.c.l.b16 %v7709_v44  ;;  %v2945_v61 = vrot.slane %v9101_v27, 1  ;;  %v11050_v40 = vld [vmem:[#allocation2 + $0xa0] sm:$0xff] }
 0x27f   : > { %v8093_v9 = vsel %vm8092_vm5, %v7962_v52, %v8091_v4  ;;  %v4091_v63 = vsel %vm1623_vm10, %v4086_v11, %v11022_v53  ;;  %v4077_v12 = vrot.slane %v4075_v21, 1  ;;  %v3529_v3 = vadd.f32 %v3528_v6, %v3287_v60  ;;  %v3289_v6 = vpop.f32.mrf.mxu0  ;;  %v3530_v52 = vpop.f32.mrf.mxu1 }
 0x280   : > { %v8095_v32 = vsel %vm8094_vm6, %v7963_v62, %v8093_v9  ;;  %4250 = vrot.lane.b32.xlu1 %v4091_v63, %s9154_s15  ;;  %v2226_v37 = vsel %vm2202_vm14, %v2161_v5, %v10985_v55  ;;  %v3132_v41 = vsel %vm2202_vm14, %v3068_v36, %v10991_v18  ;;  %v2947_v11 = vsel %vm2000_vm9, %v2945_v61, %v13172_v57  ;;  %v11054_v62 = vld [vmem:[#allocation2 + $0xc4] sm:$0xff]  ;;  %v8916_v36 = vld [vmem:[#allocation2 + $0x90] sm:$0xe] }
 0x281   : > { %v8097_v4 = vsel %vm8096_vm7, %v7964_v45, %v8095_v32  ;;  %v4078_v56 = vor.u32 %v4077_v12, %v4073_v43  ;;  %8621 = vmatmul.msk.bf16.gmra.mxu1 %vm3181_vm15, %v2226_v37  ;;  %8585 = vmatmul.msk.bf16.gmra.mxu0 %vm3181_vm15, %v3132_v41  ;;  %v4359_v60 = vrot.slane %v10865_v38, 1  ;;  %v4822_v18 = vadd.f32 %v4677_v59, %v3529_v3  ;;  %v4679_v45 = vpop.f32.mrf.mxu2  ;;  %v1937_v3 = vpop.permute.xlu1 %1936 }
 0x282   : > { %v8099_v55 = vsel %vm8098_vm8, %v7965_v1, %v8097_v4  ;;  %3013 = vrot.lane.b32.xlu0 %v2947_v11, %s9153_s14  ;;  %v13174_v5 = vrot.slane %v11027_v14, 1  ;;  %v4465_v26 = vsel %vm2137_vm13, %v10350_v46, %v4241_v42  ;;  %v13171_v27 = vrot.slane %v11006_v7, 1  ;;  %v13211_v42 = vld [vmem:[#allocation3_spill] sm:$0xff]  ;;  %v4401_v37 = vpop.permute.xlu0 %4400  ;;  %v11072_v41 = vpop.f32.mrf.mxu3  ;;  %v13214_v4 = vld [vmem:[#allocation4_spill] sm:$0xff] }
 0x283   : > { %v8205_v44 = vpack.c.b16 %v8099_v55, %v8099_v55  ;;  %v4083_v43 = vsel %vm1623_vm10, %v4078_v56, %v4082_v20  ;;  %v8951_v21 = vor.u32 %v8950_v19, %v8949_v51  ;;  %v4890_v59 = vmul.f32 %v10915_v50, %v4822_v18  ;;  %v8915_v20 = vld [vmem:[#allocation2 + $0x90] sm:$0xf0]  ;;  %13213 = vst [vmem:[#allocation3_spill] sm:$0xff] %v11072_v41 }
 0x284   : > { %4248 = vrot.lane.b32.xlu2 %v4083_v43, %s9154_s15  ;;  %v4362_v46 = vsel %vm2000_vm9, %v4359_v60, %v13174_v5  ;;  %v2195_v1 = vsel %vm2137_vm13, %v13211_v42, %v1969_v31  ;;  %v3531_v25 = vadd.f32 %v3530_v52, %v3289_v6  ;;  %v13212_v9 = vrot.slane %v10862_v2, 1  ;;  %v2846_v2 = vpop.permute.xlu2 %2845 }
 0x285   : > { %8238 = vst.msk [vmem:[%s9280_s9] sm:$0xf] %vm8237_vm11, %v8205_v44  ;;  %v4358_v61 = vrot.slane %v8951_v21, 1  ;;  %v2260_v12 = vsel %vm2202_vm14, %v2195_v1, %v2130_v49  ;;  %v2038_v32 = vrot.slane %v10901_v47, 1  ;;  %v4958_v31 = vadd.f32 %v10925_v22, %v4890_v59 }
 0x286   : > { %v4344_v63 = vsel %vm2000_vm9, %v13212_v9, %v13171_v27  ;;  %v4823_v51 = vadd.f32 %v4679_v45, %v3531_v25  ;;  %v13173_v19 = vrot.slane %v11050_v40, 1  ;;  %v11078_v11 = vsel %vm2137_vm13, %v13214_v4, %v1937_v3  ;;  %v9022_v45 = vld [vmem:[#allocation2 + $0x90] sm:$0xff]  }
 0x287   : > { %v4360_v56 = vsel %vm2000_vm9, %v4358_v61, %v4359_v60  ;;  %8638 = vmatmul.msk.bf16.gmra.mxu3 %vm3181_vm15, %v2260_v12  ;;  %v2689_v49 = vshrl.u32 %v10899_v39, 16  ;;  %v2693_v6 = vshll.u32 %v11054_v62, 16  ;;  %v8917_v55 = vor.u32 %v8916_v36, %v8915_v20  ;;  %v11099_v36 = vld [vmem:[#allocation2 + $0x138] sm:$0xff] }
 0x288   : > { %v5022_v18 = vmax.f32 %v4958_v31, 0.0  ;;  %4426 = vrot.lane.b32.xlu1 %v4362_v46, %s9153_s14  ;;  %v4891_v44 = vmul.f32 %v10915_v50, %v4823_v51  ;;  %v2041_v43 = vsel %vm2000_vm9, %v2038_v32, %v13173_v19  ;;  %v4529_v52 = vsel %vm2202_vm14, %v4465_v26, %v4401_v37 }
 0x289   : > { %v2691_v60 = vor.u32 %v2689_v49, %v10935_v16  ;;  %v11091_v21 = vrot.slane %v2693_v6, 1  ;;  %v2037_v59 = vrot.slane %v8917_v55, 1  ;;  %v11094_v42 = vsel %vm2137_vm13, %v9022_v45, %v2846_v2  ;;  %8756 = vmatmul.msk.bf16.gmra.mxu2 %vm3181_vm15, %v4529_v52 }
 0x28a   : > { %v5170_v46 = vrot.slane %v5022_v18, 2  ;;  %v5171_v1 = vrot.slane %v5022_v18, 4  ;;  %v5172_v25 = vrot.slane %v5022_v18, 6  ;;  %v5805_v20 = vsel %vm5524_vm0, %v5022_v18, -inf  ;;  %4410 = vrot.lane.b32.xlu0 %v4344_v63, %s9153_s14  ;;  %v11110_v49 = vpop.f32.mrf.mxu3 }
 0x28b   : > { %v5806_v26 = vrot.slane %v5805_v20, 4  ;;  %v4959_v16 = vadd.f32 %v10925_v22, %v4891_v44  ;;  %v2696_v9 = vsel %vm1623_vm10, %v2691_v60, %v11091_v21  ;;  %v2039_v61 = vsel %vm2000_vm9, %v2037_v59, %v2038_v32  ;;  %13215 = vst [vmem:[#allocation4_spill] sm:$0xff] %v11110_v49 }
 0x28c   : > { %v5812_v12 = vsel %vm5524_vm0, %v5170_v46, -inf  ;;  %v5819_v3 = vsel %vm5524_vm0, %v5171_v1, -inf  ;;  %v5826_v37 = vsel %vm5524_vm0, %v5172_v25, -inf  ;;  %4424 = vrot.lane.b32.xlu2 %v4360_v56, %s9153_s14  ;;  %v4160_v63 = vshll.u32 %v11027_v14, 16 }
 0x28d   : > { %v5807_v31 = vmax.f32 %v5805_v20, %v5806_v26  ;;  %v5813_v51 = vrot.slane %v5812_v12, 4  ;;  %v5820_v4 = vrot.slane %v5819_v3, 4  ;;  %v5827_v2 = vrot.slane %v5826_v37, 4 }
 0x28e   : > { %v5023_v6 = vmax.f32 %v4959_v16, 0.0  ;;  %v11112_v55 = vrot.slane %v4160_v63, 1 }
 0x28f   : > { %v5808_v44 = vrot.slane %v5807_v31, 2  ;;  %v5814_v52 = vmax.f32 %v5812_v12, %v5813_v51  ;;  %v5821_v60 = vmax.f32 %v5819_v3, %v5820_v4  ;;  %v5828_v59 = vmax.f32 %v5826_v37, %v5827_v2 }
 0x290   : > { %v5173_v56 = vrot.slane %v5023_v6, 2  ;;  %v5174_v45 = vrot.slane %v5023_v6, 4  ;;  %v5175_v46 = vrot.slane %v5023_v6, 6  ;;  %v5833_v1 = vsel %vm5524_vm0, %v5023_v6, -inf  ;;  %2107 = vrot.lane.b32.xlu1 %v2041_v43, %s9153_s14 }
 0x291   : > { %v5809_v25 = vmax.f32 %v5807_v31, %v5808_v44  ;;  %v5815_v20 = vrot.slane %v5814_v52, 2  ;;  %v5822_v26 = vrot.slane %v5821_v60, 2  ;;  %v5829_v16 = vrot.slane %v5828_v59, 2 }
 0x292   : > { %v5834_v63 = vrot.slane %v5833_v1, 4  ;;  %v5840_v27 = vsel %vm5524_vm0, %v5173_v56, -inf  ;;  %v5847_v57 = vsel %vm5524_vm0, %v5174_v45, -inf  ;;  %v5854_v12 = vsel %vm5524_vm0, %v5175_v46, -inf  ;;  %2855 = vrot.lane.b32.xlu0 %v2696_v9, %s9154_s15 }
 0x293   : > { %v5810_v3 = vrot.slane %v5809_v25, 1  ;;  %v5816_v37 = vmax.f32 %v5814_v52, %v5815_v20  ;;  %v5823_v51 = vmax.f32 %v5821_v60, %v5822_v26  ;;  %v5830_v4 = vmax.f32 %v5828_v59, %v5829_v16  ;;  %v11124_v60 = vpop.f32.mrf.mxu3  ;;  %v13217_v59 = vld [vmem:[#allocation5_spill] sm:$0xff] }
 0x294   : > { %v5835_v2 = vmax.f32 %v5833_v1, %v5834_v63  ;;  %v5841_v6 = vrot.slane %v5840_v27, 4  ;;  %v5848_v43 = vrot.slane %v5847_v57, 4  ;;  %v5855_v31 = vrot.slane %v5854_v12, 4  ;;  %2105 = vrot.lane.b32.xlu2 %v2039_v61, %s9153_s14  ;;  %13216 = vst [vmem:[#allocation19_spill] sm:$0xff] %v11124_v60  ;;  %v3006_v63 = vpop.permute.xlu1 %3005 }
 0x295   : > { %v5811_v44 = vmax.f32 %v5809_v25, %v5810_v3  ;;  %v5817_v19 = vrot.slane %v5816_v37, 1  ;;  %v5824_v5 = vrot.slane %v5823_v51, 1  ;;  %v5831_v56 = vrot.slane %v5830_v4, 1 }
 0x296   : > { %v5836_v18 = vrot.slane %v5835_v2, 2  ;;  %v5842_v45 = vmax.f32 %v5840_v27, %v5841_v6  ;;  %v5849_v32 = vmax.f32 %v5847_v57, %v5848_v43  ;;  %v5856_v46 = vmax.f32 %v5854_v12, %v5855_v31  ;;  %v13219_v12 = vld [vmem:[#allocation7_spill] sm:$0xff] }
 0x297   : > { %v5818_v49 = vmax.f32 %v5816_v37, %v5817_v19  ;;  %v5825_v9 = vmax.f32 %v5823_v51, %v5824_v5  ;;  %v5832_v41 = vmax.f32 %v5830_v4, %v5831_v56  ;;  %v7343_v52 = vsel %vm7317_vm1, %v5811_v44, -inf  ;;  %v13218_v19 = vld [vmem:[#allocation6_spill] sm:$0xff]  ;;  %v13220_v37 = vld [vmem:[#allocation8_spill] sm:$0xff] }
 0x298   : > { %v7344_v1 = vmax.f32 %v13217_v59, %v7343_v52  ;;  %v5837_v20 = vmax.f32 %v5835_v2, %v5836_v18  ;;  %v5843_v26 = vrot.slane %v5842_v45, 2  ;;  %v5850_v61 = vrot.slane %v5849_v32, 2 }
 0x299   : > { %v7346_v25 = vsel %vm7317_vm1, %v5818_v49, -inf  ;;  %v7349_v16 = vsel %vm7317_vm1, %v5825_v9, -inf  ;;  %v7352_v27 = vsel %vm7317_vm1, %v5832_v41, -inf  ;;  %v5857_v57 = vrot.slane %v5856_v46, 2  ;;  %v2098_v9 = vpop.permute.xlu0 %2097 }
 0x29a   : > { %v7347_v5 = vmax.f32 %v13218_v19, %v7346_v25  ;;  %v7350_v3 = vmax.f32 %v13219_v12, %v7349_v16  ;;  %v7353_v51 = vmax.f32 %v13220_v37, %v7352_v27  ;;  %v7710_v4 = vpack.c.bf16 %v7344_v1, %v7344_v1  ;;  %v1971_v27 = vpop.permute.xlu2 %1970 }
 0x29b   : > { %v5838_v6 = vrot.slane %v5837_v20, 1  ;;  %v5844_v43 = vmax.f32 %v5842_v45, %v5843_v26  ;;  %v5851_v18 = vmax.f32 %v5849_v32, %v5850_v61  ;;  %v5858_v2 = vmax.f32 %v5856_v46, %v5857_v57  ;;  %v11137_v61 = vld [vmem:[#allocation2 + $0xf0] sm:$0xff]  ;;  %v3533_v57 = vpop.f32.mrf.mxu1 }
 0x29c   : > { %v7711_v31 = vpack.c.bf16 %v7347_v5, %v7347_v5  ;;  %v7712_v44 = vpack.c.bf16 %v7350_v3, %v7350_v3  ;;  %v7713_v49 = vpack.c.bf16 %v7353_v51, %v7353_v51  ;;  %v7966_v56 = vunpack.c.l.b16 %v7710_v4  ;;  %v13222_v5 = vld [vmem:[#allocation9_spill] sm:$0xff] }
 0x29d   : > { %v5839_v52 = vmax.f32 %v5837_v20, %v5838_v6  ;;  %v5845_v41 = vrot.slane %v5844_v43, 1  ;;  %v5852_v59 = vrot.slane %v5851_v18, 1  ;;  %v5859_v60 = vrot.slane %v5858_v2, 1 }
 0x29e   : > { %v7967_v48 = vunpack.c.l.b16 %v7711_v31  ;;  %v7968_v25 = vunpack.c.l.b16 %v7712_v44  ;;  %v7969_v19 = vunpack.c.l.b16 %v7713_v49  ;;  %v13221_v16 = vshrl.u32 %v11027_v14, 16  ;;  %v13225_v31 = vld [vmem:[#allocation10_spill] sm:$0xff]  ;;  %v13226_v49 = vld [vmem:[#allocation11_spill] sm:$0xff] }
 0x29f   : > { %v5846_v45 = vmax.f32 %v5844_v43, %v5845_v41  ;;  %v5853_v32 = vmax.f32 %v5851_v18, %v5852_v59  ;;  %v5860_v46 = vmax.f32 %v5858_v2, %v5859_v60  ;;  %v7355_v26 = vsel %vm7317_vm1, %v5839_v52, -inf  ;;  %v3292_v18 = vpop.f32.mrf.mxu0  ;;  %v4682_v41 = vpop.f32.mrf.mxu2 }
 0x2a0   : > { %v4166_v1 = vor.u32 %v13221_v16, %v11112_v55  ;;  %v8100_v20 = vsel %vm8086_vm2, %v7967_v48, %v7966_v56  ;;  %v7356_v12 = vmax.f32 %v13222_v5, %v7355_v26  ;;  %v13223_v3 = vshll.u32 %v11099_v36, 16  ;;  %v11152_v48 = vpop.f32.mrf.mxu3  ;;  %v2132_v16 = vpop.permute.xlu1 %2131 }
 0x2a1   : > { %v3134_v51 = vsel %vm2202_vm14, %v11094_v42, %v3006_v63  ;;  %v8101_v4 = vsel %vm8088_vm3, %v7968_v25, %v8100_v20  ;;  %v7358_v60 = vsel %vm7317_vm1, %v5846_v45, -inf  ;;  %v7361_v6 = vsel %vm7317_vm1, %v5853_v32, -inf  ;;  %13224 = vst [vmem:[#allocation5_spill] sm:$0xff] %v11152_v48 }
 0x2a2   : > { %v11143_v37 = vrot.slane %v13223_v3, 1  ;;  %v7364_v43 = vsel %vm7317_vm1, %v5860_v46, -inf  ;;  %8586 = vmatmul.msk.bf16.gmra.mxu0 %vm3181_vm15, %v3134_v51  ;;  %v8102_v2 = vsel %vm8090_vm4, %v7969_v19, %v8101_v4  ;;  %v7359_v44 = vmax.f32 %v13225_v31, %v7358_v60  ;;  %v4243_v60 = vpop.permute.xlu0 %4242 }
 0x2a3   : > { %v7362_v56 = vmax.f32 %v13226_v49, %v7361_v6  ;;  %v7365_v42 = vmax.f32 %v10765_v58, %v7364_v43  ;;  %v7714_v63 = vpack.c.bf16 %v7356_v12, %v7356_v12  ;;  %v4092_v59 = vshrl.u32 %v11006_v7, 16 }
 0x2a4   : > { %v4171_v52 = vsel %vm1623_vm10, %v4166_v1, %v11143_v37  ;;  %v4096_v25 = vshll.u32 %v11137_v61, 16  ;;  %v7715_v45 = vpack.c.bf16 %v7359_v44, %v7359_v44  ;;  %v4156_v19 = vshrl.u32 %v10865_v38, 16  ;;  %v11167_v1 = vld [vmem:[#allocation2 + $0xa8] sm:$0xff]  ;;  %v4403_v44 = vpop.permute.xlu2 %4402 }
 0x2a5   : > { %v7716_v32 = vpack.c.bf16 %v7362_v56, %v7362_v56  ;;  %v7717_v46 = vpack.c.bf16 %v7365_v42, %v7365_v42  ;;  %4268 = vrot.lane.b32.xlu1 %v4171_v52, %s9154_s15  ;;  %v7970_v26 = vunpack.c.l.b16 %v7714_v63  ;;  %v4094_v58 = vor.u32 %v4092_v59, %v11022_v53  ;;  %v3535_v42 = vpop.f32.mrf.mxu1 }
 0x2a6   : > { %v11165_v20 = vrot.slane %v4096_v25, 1  ;;  %v3534_v5 = vadd.f32 %v3533_v57, %v3292_v18  ;;  %v7971_v12 = vunpack.c.l.b16 %v7715_v45  ;;  %v4158_v4 = vor.u32 %v4156_v19, %v10874_v54  ;;  %v9023_v18 = vld [vmem:[#allocation2 + $0x104] sm:$0xff] }
 0x2a7   : > { %v7972_v3 = vunpack.c.l.b16 %v7716_v32  ;;  %v7973_v51 = vunpack.c.l.b16 %v7717_v46  ;;  %v8103_v6 = vsel %vm8092_vm5, %v7970_v26, %v8102_v2  ;;  %v2228_v53 = vsel %vm2202_vm14, %v11078_v11, %v2098_v9  ;;  %v3294_v32 = vpop.f32.mrf.mxu0 }
 0x2a8   : > { %v4099_v43 = vsel %vm1623_vm10, %v4094_v58, %v11165_v20  ;;  %v4824_v38 = vadd.f32 %v4682_v41, %v3534_v5  ;;  %v8104_v31 = vsel %vm8094_vm6, %v7971_v12, %v8103_v6  ;;  %v4163_v57 = vsel %vm1623_vm10, %v4158_v4, %v11112_v55  ;;  %8622 = vmatmul.msk.bf16.gmra.mxu1 %vm3181_vm15, %v2228_v53  ;;  %v11190_v41 = vld [vmem:[#allocation2 + $0xcc] sm:$0xff]  ;;  %v11197_v19 = vpop.f32.mrf.mxu3  ;;  %v9024_v12 = vld [vmem:[#allocation2 + $0xbc] sm:$0xff]  ;;  %v4684_v4 = vpop.f32.mrf.mxu2 }
 0x2a9   : > { %4252 = vrot.lane.b32.xlu0 %v4099_v43, %s9154_s15  ;;  %v2197_v54 = vsel %vm2137_vm13, %v9023_v18, %v1971_v27  ;;  %v1784_v2 = vshll.u32 %v11050_v40, 16  ;;  %v8105_v49 = vsel %vm8096_vm7, %v7972_v3, %v8104_v31  ;;  %4266 = vrot.lane.b32.xlu2 %v4163_v57, %s9154_s15  ;;  %v1788_v9 = vshrl.u32 %v11050_v40, 16  ;;  %13227 = vst [vmem:[#allocation6_spill] sm:$0xff] %v11197_v19 }
 0x2aa   : > { %v4892_v11 = vmul.f32 %v10915_v50, %v4824_v38  ;;  %v1792_v56 = vshll.u32 %v11167_v1, 16  ;;  %v8106_v55 = vsel %vm8098_vm8, %v7973_v51, %v8105_v49  ;;  %v2262_v27 = vsel %vm2202_vm14, %v2197_v54, %v2132_v16  ;;  %v2848_v38 = vpop.permute.xlu1 %2847 }
 0x2ab   : > { %v1786_v63 = vrot.slane %v1784_v2, 1  ;;  %v4363_v52 = vrot.slane %v11099_v36, 1  ;;  %v8206_v59 = vpack.c.b16 %v8106_v55, %v8106_v55  ;;  %v1780_v46 = vshrl.u32 %v10901_v47, 16  ;;  %8639 = vmatmul.msk.bf16.gmra.mxu3 %vm3181_vm15, %v2262_v27 }
 0x2ac   : > { %v4960_v25 = vadd.f32 %v10925_v22, %v4892_v11  ;;  %v11193_v45 = vrot.slane %v1792_v56, 1  ;;  %v13228_v16 = vrot.slane %v11027_v14, 1  ;;  %v3536_v5 = vadd.f32 %v3535_v42, %v3294_v32  ;;  %v1939_v56 = vpop.permute.xlu0 %1938 }
 0x2ad   : > { %v1790_v26 = vor.u32 %v1788_v9, %v1786_v63  ;;  %v4467_v3 = vsel %vm2137_vm13, %v9024_v12, %v4243_v60  ;;  %8239 = vst.msk [vmem:[%s9280_s9 + $0x4] sm:$0xf] %vm8237_vm11, %v8206_v59  ;;  %v1782_v47 = vor.u32 %v1780_v46, %v10932_v24  ;;  %v2948_v43 = vrot.slane %v11054_v62, 1  ;;  %v9025_v60 = vld [vmem:[#allocation2 + $0x98] sm:$0xff] }
 0x2ae   : > { %v4364_v58 = vsel %vm2000_vm9, %v13228_v16, %v4363_v52  ;;  %v5024_v51 = vmax.f32 %v4960_v25, 0.0  ;;  %v4531_v6 = vsel %vm2202_vm14, %v4467_v3, %v4403_v44  ;;  %v4825_v53 = vadd.f32 %v4684_v4, %v3536_v5 }
 0x2af   : > { %v1795_v14 = vsel %vm1623_vm10, %v1790_v26, %v11193_v45  ;;  %8757 = vmatmul.msk.bf16.gmra.mxu2 %vm3181_vm15, %v4531_v6  ;;  %v2950_v31 = vrot.slane %v11190_v41, 1  ;;  %v11215_v57 = vsel %vm2137_vm13, %v9025_v60, %v2848_v38  ;;  %v1787_v49 = vsel %vm1623_vm10, %v1782_v47, %v1786_v63  ;;  %v11230_v26 = vld [vmem:[#allocation2 + $0xf8] sm:$0x1] }
 0x2b0   : > { %v5176_v18 = vrot.slane %v5024_v51, 2  ;;  %v5177_v54 = vrot.slane %v5024_v51, 4  ;;  %v5178_v24 = vrot.slane %v5024_v51, 6  ;;  %v5861_v2 = vsel %vm5524_vm0, %v5024_v51, -inf  ;;  %1948 = vrot.lane.b32.xlu1 %v1795_v14, %s9154_s15  ;;  %v9026_v51 = vld [vmem:[#allocation2 + $0x74] sm:$0xff] }
 0x2b1   : > { %v5862_v44 = vrot.slane %v5861_v2, 4  ;;  %4428 = vrot.lane.b32.xlu0 %v4364_v58, %s9153_s14  ;;  %v4893_v11 = vmul.f32 %v10915_v50, %v4825_v53  ;;  %v2951_v9 = vsel %vm2000_vm9, %v2948_v43, %v2950_v31  ;;  %1946 = vrot.lane.b32.xlu2 %v1787_v49, %s9154_s15  ;;  %v2042_v59 = vrot.slane %v11167_v1, 1  ;;  %v2100_v50 = vpop.permute.xlu2 %2099  ;;  %v11242_v53 = vpop.f32.mrf.mxu3 }
 0x2b2   : > { %v5868_v42 = vsel %vm5524_vm0, %v5176_v18, -inf  ;;  %v5875_v55 = vsel %vm5524_vm0, %v5177_v54, -inf  ;;  %v5882_v27 = vsel %vm5524_vm0, %v5178_v24, -inf  ;;  %v13229_v58 = vrot.slane %v11050_v40, 1  ;;  %13231 = vst [vmem:[#allocation7_spill] sm:$0xff] %v11242_v53 }
 0x2b3   : > { %v5863_v25 = vmax.f32 %v5861_v2, %v5862_v44  ;;  %v5869_v32 = vrot.slane %v5868_v42, 4  ;;  %v5876_v63 = vrot.slane %v5875_v55, 4  ;;  %v5883_v46 = vrot.slane %v5882_v27, 4 }
 0x2b4   : > { %v4961_v16 = vadd.f32 %v10925_v22, %v4893_v11  ;;  %v2043_v5 = vsel %vm2000_vm9, %v13229_v58, %v2042_v59  ;;  %v13230_v12 = vrot.slane %v10899_v39, 1  ;;  %v2165_v4 = vsel %vm2137_vm13, %v9026_v51, %v1939_v56 }
 0x2b5   : > { %v5864_v47 = vrot.slane %v5863_v25, 2  ;;  %v5870_v6 = vmax.f32 %v5868_v42, %v5869_v32  ;;  %v5877_v38 = vmax.f32 %v5875_v55, %v5876_v63  ;;  %v5884_v14 = vmax.f32 %v5882_v27, %v5883_v46 }
 0x2b6   : > { %v2949_v3 = vsel %vm2000_vm9, %v13230_v12, %v2948_v43  ;;  %v5025_v22 = vmax.f32 %v4961_v16, 0.0  ;;  %v2230_v60 = vsel %vm2202_vm14, %v2165_v4, %v2100_v50  ;;  %v3916_v40 = vunpack.c.l.b16 %v11230_v26 }
 0x2b7   : > { %v4345_v18 = vrot.slane %v11137_v61, 1  ;;  %v5865_v54 = vmax.f32 %v5863_v25, %v5864_v47  ;;  %v5871_v39 = vrot.slane %v5870_v6, 2  ;;  %v5878_v24 = vrot.slane %v5877_v38, 2 }
 0x2b8   : > { %v5885_v43 = vrot.slane %v5884_v14, 2  ;;  %v5179_v2 = vrot.slane %v5025_v22, 2  ;;  %v5180_v44 = vrot.slane %v5025_v22, 4  ;;  %v5181_v49 = vrot.slane %v5025_v22, 6  ;;  %3017 = vrot.lane.b32.xlu1 %v2951_v9, %s9153_s14  ;;  %8623 = vmatmul.msk.bf16.gmra.mxu1 %vm3181_vm15, %v2230_v60 }
 0x2b9   : > { %v5889_v11 = vsel %vm5524_vm0, %v5025_v22, -inf  ;;  %v5866_v56 = vrot.slane %v5865_v54, 1  ;;  %v5872_v42 = vmax.f32 %v5870_v6, %v5871_v39  ;;  %v5879_v55 = vmax.f32 %v5877_v38, %v5878_v24  ;;  %2109 = vrot.lane.b32.xlu0 %v2043_v5, %s9153_s14  ;;  %3015 = vrot.lane.b32.xlu2 %v2949_v3, %s9153_s14 }
 0x2ba   : > { %v5886_v27 = vmax.f32 %v5884_v14, %v5885_v43  ;;  %v5890_v32 = vrot.slane %v5889_v11, 4  ;;  %v5896_v25 = vsel %vm5524_vm0, %v5179_v2, -inf  ;;  %v5903_v63 = vsel %vm5524_vm0, %v5180_v44, -inf  ;;  %v11260_v44 = vpop.f32.mrf.mxu3 }
 0x2bb   : > { %v5910_v46 = vsel %vm5524_vm0, %v5181_v49, -inf  ;;  %v5867_v50 = vmax.f32 %v5865_v54, %v5866_v56  ;;  %v5873_v16 = vrot.slane %v5872_v42, 1  ;;  %v5880_v9 = vrot.slane %v5879_v55, 1  ;;  %13232 = vst [vmem:[#allocation8_spill] sm:$0xff] %v11260_v44 }
 0x2bc   : > { %v5887_v58 = vrot.slane %v5886_v27, 1  ;;  %v5891_v12 = vmax.f32 %v5889_v11, %v5890_v32  ;;  %v5897_v51 = vrot.slane %v5896_v25, 4  ;;  %v5904_v4 = vrot.slane %v5903_v63, 4 }
 0x2bd   : > { %v5911_v47 = vrot.slane %v5910_v46, 4  ;;  %v5874_v5 = vmax.f32 %v5872_v42, %v5873_v16  ;;  %v5881_v6 = vmax.f32 %v5879_v55, %v5880_v9  ;;  %v7367_v14 = vsel %vm7317_vm1, %v5867_v50, -inf }
 0x2be   : > { %v5888_v38 = vmax.f32 %v5886_v27, %v5887_v58  ;;  %v7368_v22 = vmax.f32 %v10770_v33, %v7367_v14  ;;  %v5892_v60 = vrot.slane %v5891_v12, 2  ;;  %v5898_v39 = vmax.f32 %v5896_v25, %v5897_v51 }
 0x2bf   : > { %v5905_v24 = vmax.f32 %v5903_v63, %v5904_v4  ;;  %v7370_v3 = vsel %vm7317_vm1, %v5874_v5, -inf  ;;  %v7373_v54 = vsel %vm7317_vm1, %v5881_v6, -inf  ;;  %v5912_v2 = vmax.f32 %v5910_v46, %v5911_v47  ;;  %v1973_v4 = vpop.permute.xlu1 %1972  ;;  %v3734_v47 = vld [vmem:[#allocation2 + $0x140] sm:$0x1] }
 0x2c0   : > { %v7376_v43 = vsel %vm7317_vm1, %v5888_v38, -inf  ;;  %v7371_v49 = vmax.f32 %v10779_v13, %v7370_v3  ;;  %v7374_v11 = vmax.f32 %v10782_v10, %v7373_v54  ;;  %v7718_v42 = vpack.c.bf16 %v7368_v22, %v7368_v22 }
 0x2c1   : > { %v7377_v56 = vmax.f32 %v10788_v8, %v7376_v43  ;;  %v5893_v33 = vmax.f32 %v5891_v12, %v5892_v60  ;;  %v5899_v55 = vrot.slane %v5898_v39, 2  ;;  %v5906_v27 = vrot.slane %v5905_v24, 2 }
 0x2c2   : > { %v5913_v32 = vrot.slane %v5912_v2, 2  ;;  %v7719_v25 = vpack.c.bf16 %v7371_v49, %v7371_v49  ;;  %v7720_v63 = vpack.c.bf16 %v7374_v11, %v7374_v11  ;;  %v7974_v16 = vunpack.c.l.b16 %v7718_v42  ;;  %v11276_v49 = vpop.f32.mrf.mxu3 }
 0x2c3   : > { %v7721_v50 = vpack.c.bf16 %v7377_v56, %v7377_v56  ;;  %v5894_v9 = vrot.slane %v5893_v33, 1  ;;  %v5900_v58 = vmax.f32 %v5898_v39, %v5899_v55  ;;  %v5907_v46 = vmax.f32 %v5905_v24, %v5906_v27  ;;  %v9027_v39 = vld [vmem:[#allocation2 + $0x10c] sm:$0xff]  ;;  %13233 = vst [vmem:[#allocation9_spill] sm:$0xff] %v11276_v49 }
 0x2c4   : > { %v5914_v51 = vmax.f32 %v5912_v2, %v5913_v32  ;;  %v7975_v13 = vunpack.c.l.b16 %v7719_v25  ;;  %v7976_v5 = vunpack.c.l.b16 %v7720_v63  ;;  %v11268_v8 = vpack.c.b16 %v3916_v40, %v3916_v40  ;;  %v3297_v40 = vpop.f32.mrf.mxu0  ;;  %v3538_v63 = vpop.f32.mrf.mxu1 }
 0x2c5   : > { %v7977_v10 = vunpack.c.l.b16 %v7721_v50  ;;  %v5895_v12 = vmax.f32 %v5893_v33, %v5894_v9  ;;  %v5901_v6 = vrot.slane %v5900_v58, 1  ;;  %v5908_v38 = vrot.slane %v5907_v46, 1 }
 0x2c6   : > { %v5915_v14 = vrot.slane %v5914_v51, 1  ;;  %v8107_v22 = vsel %vm8086_vm2, %v7975_v13, %v7974_v16  ;;  %v4347_v60 = vrot.slane %v11268_v8, 1  ;;  %v11273_v24 = vsel %vm2137_vm13, %v9027_v39, %v1973_v4 }
 0x2c7   : > { %v3918_v3 = vunpack.c.l.b16 %v3734_v47  ;;  %v8108_v54 = vsel %vm8088_vm3, %v7976_v5, %v8107_v22  ;;  %v5902_v43 = vmax.f32 %v5900_v58, %v5901_v6  ;;  %v5909_v26 = vmax.f32 %v5907_v46, %v5908_v38  ;;  %v3008_v46 = vpop.permute.xlu0 %3007  ;;  %v4245_v5 = vpop.permute.xlu2 %4244  ;;  %v2337_v6 = vld [vmem:[#allocation2 + $0xd4] sm:$0x1] }
 0x2c8   : > { %v5916_v2 = vmax.f32 %v5914_v51, %v5915_v14  ;;  %v8109_v11 = vsel %vm8090_vm4, %v7977_v10, %v8108_v54  ;;  %v7379_v56 = vsel %vm7317_vm1, %v5895_v12, -inf  ;;  %v4348_v42 = vsel %vm2000_vm9, %v4345_v18, %v4347_v60  ;;  %v9028_v54 = vld [vmem:[#allocation2 + $0xc4] sm:$0xff] }
 0x2c9   : > { %v11283_v33 = vpack.c.b16 %v3918_v3, %v3918_v3  ;;  %v7380_v55 = vmax.f32 %v10849_v15, %v7379_v56  ;;  %v7382_v27 = vsel %vm7317_vm1, %v5902_v43, -inf  ;;  %v7385_v32 = vsel %vm7317_vm1, %v5909_v26, -inf  ;;  %4414 = vrot.lane.b32.xlu1 %v4348_v42, %s9153_s14  ;;  %v1427_v26 = vld [vmem:[#allocation2 + $0xb0] sm:$0x1] }
 0x2ca   : > { %v7388_v25 = vsel %vm7317_vm1, %v5916_v2, -inf  ;;  %v7383_v50 = vmax.f32 %v10856_v35, %v7382_v27  ;;  %v7386_v16 = vmax.f32 %v10859_v0, %v7385_v32  ;;  %v4172_v58 = vshrl.u32 %v11099_v36, 16  ;;  %v4687_v0 = vpop.f32.mrf.mxu2 }
 0x2cb   : > { %v7389_v9 = vmax.f32 %v10879_v29, %v7388_v25  ;;  %v7722_v51 = vpack.c.bf16 %v7380_v55, %v7380_v55  ;;  %v4176_v15 = vshll.u32 %v11283_v33, 16  ;;  %v13234_v4 = vrot.slane %v11006_v7, 1  ;;  %v4405_v7 = vpop.permute.xlu1 %4404  ;;  %v11323_v25 = vld [vmem:[%s13161_s3] ss:$0 sm:$0xff] }
 0x2cc   : > { %v3539_v13 = vadd.f32 %v3538_v63, %v3297_v40  ;;  %v7723_v10 = vpack.c.bf16 %v7383_v50, %v7383_v50  ;;  %v7724_v35 = vpack.c.bf16 %v7386_v16, %v7386_v16  ;;  %v4174_v29 = vor.u32 %v4172_v58, %v11143_v37  ;;  %v11311_v40 = vld [vmem:[%s13160_s2] ss:$0 sm:$0xff]  ;;  %v11329_v58 = vpop.f32.mrf.mxu3 }
 0x2cd   : > { %v4346_v47 = vsel %vm2000_vm9, %v13234_v4, %v4345_v18  ;;  %v7725_v12 = vpack.c.bf16 %v7389_v9, %v7389_v9  ;;  %v7978_v38 = vunpack.c.l.b16 %v7722_v51  ;;  %v4178_v14 = vrot.slane %v4176_v15, 1  ;;  %v3299_v9 = vpop.f32.mrf.mxu0  ;;  %13235 = vst [vmem:[#allocation10_spill] sm:$0xff] %v11329_v58 }
 0x2ce   : > { %4412 = vrot.lane.b32.xlu2 %v4346_v47, %s9153_s14  ;;  %v4826_v22 = vadd.f32 %v4687_v0, %v3539_v13  ;;  %v3136_v60 = vsel %vm2202_vm14, %v11215_v57, %v3008_v46  ;;  %v7979_v39 = vunpack.c.l.b16 %v7723_v10  ;;  %v7980_v18 = vunpack.c.l.b16 %v7724_v35 }
 0x2cf   : > { %v7981_v3 = vunpack.c.l.b16 %v7725_v12  ;;  %v4469_v43 = vsel %vm2137_vm13, %v9028_v54, %v4245_v5  ;;  %8587 = vmatmul.msk.bf16.gmra.mxu0 %vm3181_vm15, %v3136_v60  ;;  %v8110_v37 = vsel %vm8092_vm5, %v7978_v38, %v8109_v11  ;;  %v4179_v2 = vsel %vm1623_vm10, %v4174_v29, %v4178_v14  ;;  %v3540_v5 = vpop.f32.mrf.mxu1  ;;  %v2134_v54 = vpop.permute.xlu0 %2133 }
 0x2d0   : > { %v4894_v57 = vmul.f32 %v11311_v40, %v4826_v22  ;;  %v2521_v56 = vunpack.c.l.b16 %v2337_v6  ;;  %v8111_v42 = vsel %vm8094_vm6, %v7979_v39, %v8110_v37  ;;  %4270 = vrot.lane.b32.xlu0 %v4179_v2, %s9154_s15  ;;  %v2701_v55 = vshll.u32 %v11190_v41, 16 }
 0x2d1   : > { %v2705_v27 = vshrl.u32 %v11190_v41, 16  ;;  %v4533_v11 = vsel %vm2202_vm14, %v4469_v43, %v4405_v7  ;;  %v8112_v32 = vsel %vm8096_vm7, %v7980_v18, %v8111_v42  ;;  %v1611_v16 = vunpack.c.l.b16 %v1427_v26  ;;  %v1941_v42 = vpop.permute.xlu2 %1940 }
 0x2d2   : > { %v4962_v63 = vadd.f32 %v11323_v25, %v4894_v57  ;;  %v11326_v50 = vpack.c.b16 %v2521_v56, %v2521_v56  ;;  %8758 = vmatmul.msk.bf16.gmra.mxu2 %vm3181_vm15, %v4533_v11  ;;  %v8113_v46 = vsel %vm8098_vm8, %v7981_v3, %v8112_v32  ;;  %v2703_v51 = vrot.slane %v2701_v55, 1  ;;  %v4689_v60 = vpop.f32.mrf.mxu2 }
 0x2d3   : > { %v1796_v15 = vshrl.u32 %v11167_v1, 16  ;;  %v2697_v4 = vshrl.u32 %v11054_v62, 16  ;;  %v8207_v47 = vpack.c.b16 %v8113_v46, %v8113_v46  ;;  %v11335_v35 = vpack.c.b16 %v1611_v16, %v1611_v16 }
 0x2d4   : > { %v5026_v13 = vmax.f32 %v4962_v63, 0.0  ;;  %v2709_v10 = vshll.u32 %v11326_v50, 16  ;;  %v2707_v12 = vor.u32 %v2705_v27, %v2703_v51  ;;  %v3541_v6 = vadd.f32 %v3540_v5, %v3299_v9  ;;  %v11352_v63 = vld [vmem:[#allocation2 + $0x104] sm:$0xff]  ;;  %v9031_v5 = vld [vmem:[#allocation2 + $0x7c] sm:$0xff] }
 0x2d5   : > { %v1798_v0 = vor.u32 %v1796_v15, %v11193_v45  ;;  %v2699_v29 = vor.u32 %v2697_v4, %v11091_v21  ;;  %8240 = vst.msk [vmem:[%s9280_s9 + $0x8] sm:$0xf] %vm8237_vm11, %v8207_v47  ;;  %v1800_v18 = vshll.u32 %v11335_v35, 16  ;;  %v2264_v32 = vsel %vm2202_vm14, %v11273_v24, %v2134_v54  ;;  %v11356_v15 = vld [vmem:[#allocation2 + $0xfc] sm:$0xff]  }
 0x2d6   : > { %v5182_v38 = vrot.slane %v5026_v13, 2  ;;  %v5183_v14 = vrot.slane %v5026_v13, 4  ;;  %v5184_v22 = vrot.slane %v5026_v13, 6  ;;  %v5917_v62 = vsel %vm5524_vm0, %v5026_v13, -inf  ;;  %8640 = vmatmul.msk.bf16.gmra.mxu3 %vm3181_vm15, %v2264_v32  ;;  %13236 = vst [vmem:[#allocation11_spill] sm:$0xff] %v11356_v15 }
 0x2d7   : > { %v5918_v7 = vrot.slane %v5917_v62, 4  ;;  %v2711_v39 = vrot.slane %v2709_v10, 1  ;;  %v2704_v3 = vsel %vm1623_vm10, %v2699_v29, %v2703_v51  ;;  %v4827_v26 = vadd.f32 %v4689_v60, %v3541_v6  ;;  %v11358_v4 = vld [vmem:[#allocation2 + $0xfc] sm:$0xf0] }
 0x2d8   : > { %v5924_v45 = vsel %vm5524_vm0, %v5182_v38, -inf  ;;  %v5931_v21 = vsel %vm5524_vm0, %v5183_v14, -inf  ;;  %v5938_v43 = vsel %vm5524_vm0, %v5184_v22, -inf  ;;  %2857 = vrot.lane.b32.xlu2 %v2704_v3, %s9154_s15  ;;  %v1802_v27 = vrot.slane %v1800_v18, 1 }
 0x2d9   : > { %v5919_v37 = vmax.f32 %v5917_v62, %v5918_v7  ;;  %v5925_v2 = vrot.slane %v5924_v45, 4  ;;  %v5932_v57 = vrot.slane %v5931_v21, 4  ;;  %v5939_v56 = vrot.slane %v5938_v43, 4 }
 0x2da   : > { %v2712_v55 = vsel %vm1623_vm10, %v2707_v12, %v2711_v39  ;;  %v4895_v11 = vmul.f32 %v11311_v40, %v4827_v26  ;;  %v11362_v47 = vsel %vm7317_vm1, %v10930_v34, -inf  ;;  %v1803_v24 = vsel %vm1623_vm10, %v1798_v0, %v1802_v27  ;;  %v11369_v12 = vpop.f32.mrf.mxu3 }
 0x2db   : > { %v5920_v16 = vrot.slane %v5919_v37, 2  ;;  %v5926_v9 = vmax.f32 %v5924_v45, %v5925_v2  ;;  %v5933_v46 = vmax.f32 %v5931_v21, %v5932_v57  ;;  %v5940_v51 = vmax.f32 %v5938_v43, %v5939_v56  ;;  %2859 = vrot.lane.b32.xlu1 %v2712_v55, %s9154_s15  ;;  %13237 = vst [vmem:[#allocation20_spill] sm:$0xff] %v11369_v12 }
 0x2dc   : > { %v4963_v13 = vadd.f32 %v11323_v25, %v4895_v11  ;;  %v11367_v10 = vsel %vm2137_vm13, %v9031_v5, %v1941_v42  ;;  %1950 = vrot.lane.b32.xlu0 %v1803_v24, %s9154_s15  ;;  %v4116_v34 = vshll.u32 %v11352_v63, 16  ;;  %v13262_v53 = vrot.slane %v11352_v63, 1 }
 0x2dd   : > { %v5921_v29 = vmax.f32 %v5919_v37, %v5920_v16  ;;  %v5927_v6 = vrot.slane %v5926_v9, 2  ;;  %v5934_v38 = vrot.slane %v5933_v46, 2  ;;  %v5941_v14 = vrot.slane %v5940_v51, 2 }
 0x2de   : > { %v5027_v22 = vmax.f32 %v4963_v13, 0.0 }
 0x2df   : > { %v5922_v62 = vrot.slane %v5921_v29, 1  ;;  %v5928_v60 = vmax.f32 %v5926_v9, %v5927_v6  ;;  %v5935_v0 = vmax.f32 %v5933_v46, %v5934_v38  ;;  %v5942_v7 = vmax.f32 %v5940_v51, %v5941_v14  ;;  %v13238_v38 = vld [vmem:[#allocation13_spill] sm:$0xff] }
 0x2e0   : > { %v5185_v39 = vrot.slane %v5027_v22, 2  ;;  %v5186_v18 = vrot.slane %v5027_v22, 4  ;;  %v5187_v3 = vrot.slane %v5027_v22, 6  ;;  %v5945_v54 = vsel %vm5524_vm0, %v5027_v22, -inf }
 0x2e1   : > { %v5923_v45 = vmax.f32 %v5921_v29, %v5922_v62  ;;  %v5929_v21 = vrot.slane %v5928_v60, 1  ;;  %v5936_v43 = vrot.slane %v5935_v0, 1  ;;  %v5943_v26 = vrot.slane %v5942_v7, 1 }
 0x2e2   : > { %v5946_v37 = vrot.slane %v5945_v54, 4  ;;  %v5952_v2 = vsel %vm5524_vm0, %v5185_v39, -inf  ;;  %v5959_v57 = vsel %vm5524_vm0, %v5186_v18, -inf  ;;  %v5966_v56 = vsel %vm5524_vm0, %v5187_v3, -inf  ;;  %v11385_v62 = vpop.f32.mrf.mxu3  ;;  %v2102_v39 = vpop.permute.xlu1 %2101 }
 0x2e3   : > { %v5930_v42 = vmax.f32 %v5928_v60, %v5929_v21  ;;  %v5937_v55 = vmax.f32 %v5935_v0, %v5936_v43  ;;  %v5944_v27 = vmax.f32 %v5942_v7, %v5943_v26  ;;  %v7391_v11 = vsel %vm7317_vm1, %v5923_v45, -inf  ;;  %13239 = vst [vmem:[#allocation13_spill] sm:$0xff] %v11385_v62 }
 0x2e4   : > { %v7392_v32 = vmax.f32 %v10885_v23, %v7391_v11  ;;  %v5947_v16 = vmax.f32 %v5945_v54, %v5946_v37  ;;  %v5953_v9 = vrot.slane %v5952_v2, 4  ;;  %v5960_v46 = vrot.slane %v5959_v57, 4 }
 0x2e5   : > { %v7394_v51 = vsel %vm7317_vm1, %v5930_v42, -inf  ;;  %v7397_v24 = vsel %vm7317_vm1, %v5937_v55, -inf  ;;  %v7400_v13 = vsel %vm7317_vm1, %v5944_v27, -inf  ;;  %v5967_v5 = vrot.slane %v5966_v56, 4 }
 0x2e6   : > { %v7395_v29 = vmax.f32 %v10888_v17, %v7394_v51  ;;  %v7398_v6 = vmax.f32 %v10891_v30, %v7397_v24  ;;  %v7401_v14 = vmax.f32 %v13238_v38, %v7400_v13  ;;  %v7726_v22 = vpack.c.bf16 %v7392_v32, %v7392_v32 }
 0x2e7   : > { %v5948_v23 = vrot.slane %v5947_v16, 2  ;;  %v5954_v60 = vmax.f32 %v5952_v2, %v5953_v9  ;;  %v5961_v0 = vmax.f32 %v5959_v57, %v5960_v46  ;;  %v5968_v7 = vmax.f32 %v5966_v56, %v5967_v5  ;;  %v2850_v46 = vpop.permute.xlu0 %2849 }
 0x2e8   : > { %v7727_v18 = vpack.c.bf16 %v7395_v29, %v7395_v29  ;;  %v7728_v3 = vpack.c.bf16 %v7398_v6, %v7398_v6  ;;  %v7729_v54 = vpack.c.bf16 %v7401_v14, %v7401_v14  ;;  %v7982_v45 = vunpack.c.l.b16 %v7726_v22  ;;  %v3010_v14 = vpop.permute.xlu2 %3009 }
 0x2e9   : > { %v5949_v21 = vmax.f32 %v5947_v16, %v5948_v23  ;;  %v5955_v43 = vrot.slane %v5954_v60, 2  ;;  %v5962_v26 = vrot.slane %v5961_v0, 2  ;;  %v5969_v17 = vrot.slane %v5968_v7, 2 }
 0x2ea   : > { %v7983_v37 = vunpack.c.l.b16 %v7727_v18  ;;  %v7984_v30 = vunpack.c.l.b16 %v7728_v3  ;;  %v7985_v42 = vunpack.c.l.b16 %v7729_v54  ;;  %v4109_v57 = vshrl.u32 %v11356_v15, 16  ;;  %v11396_v22 = vpop.f32.mrf.mxu3  ;;  %v13241_v3 = vld [vmem:[#allocation14_spill] sm:$0xff] }
 0x2eb   : > { %v5950_v55 = vrot.slane %v5949_v21, 1  ;;  %v5956_v27 = vmax.f32 %v5954_v60, %v5955_v43  ;;  %v5963_v11 = vmax.f32 %v5961_v0, %v5962_v26  ;;  %v5970_v32 = vmax.f32 %v5968_v7, %v5969_v17  ;;  %13240 = vst [vmem:[#allocation21_spill] sm:$0xff] %v11396_v22  ;;  %v3302_v7 = vpop.f32.mrf.mxu0  ;;  %v3543_v43 = vpop.f32.mrf.mxu1 }
 0x2ec   : > { %v8114_v2 = vsel %vm8086_vm2, %v7983_v37, %v7982_v45  ;;  %v4111_v56 = vshll.u32 %v11356_v15, 16  ;;  %v11390_v9 = vrot.slane %v4116_v34, 1  ;;  %v2232_v38 = vsel %vm2202_vm14, %v11367_v10, %v2102_v39  ;;  %v11409_v17 = vpop.permute.xlu1 %4246  ;;  %v13242_v37 = vld [vmem:[#allocation15_spill] sm:$0xff] }
 0x2ed   : > { %v8115_v16 = vsel %vm8088_vm3, %v7984_v30, %v8114_v2  ;;  %v5951_v51 = vmax.f32 %v5949_v21, %v5950_v55  ;;  %v5957_v24 = vrot.slane %v5956_v27, 1  ;;  %v5964_v13 = vrot.slane %v5963_v11, 1  ;;  %8624 = vmatmul.msk.bf16.gmra.mxu1 %vm3181_vm15, %v2232_v38 }
 0x2ee   : > { %v8116_v5 = vsel %vm8090_vm4, %v7985_v42, %v8115_v16  ;;  %v5971_v29 = vrot.slane %v5970_v32, 1  ;;  %v4113_v6 = vrot.slane %v4111_v56, 1  ;;  %v2952_v0 = vrot.slane %v11326_v50, 1  ;;  %v13243_v42 = vld [vmem:[#allocation16_spill] sm:$0xff]  ;;  %v9032_v16 = vld [vmem:[#allocation2 + $0xa0] sm:$0xff] }
 0x2ef   : > { %v5958_v23 = vmax.f32 %v5956_v27, %v5957_v24  ;;  %v5965_v60 = vmax.f32 %v5963_v11, %v5964_v13  ;;  %v7403_v34 = vsel %vm7317_vm1, %v5951_v51, -inf  ;;  %v4100_v21 = vshrl.u32 %v11137_v61, 16  ;;  %v11421_v24 = vld [vmem:[#allocation2 + $0x144] sm:$0xff]  }
 0x2f0   : > { %v5972_v18 = vmax.f32 %v5970_v32, %v5971_v29  ;;  %v7404_v54 = vmax.f32 %v13241_v3, %v7403_v34  ;;  %v4114_v45 = vor.u32 %v4113_v6, %v4109_v57  ;;  %v2953_v26 = vsel %vm2000_vm9, %v2950_v31, %v2952_v0  ;;  %v4692_v32 = vpop.f32.mrf.mxu2  ;;  %v9125_v13 = vld [vmem:[#allocation2 + $0x144] sm:$0xf0]  ;;  %v9126_v29 = vld [vmem:[#allocation2 + $0x144] sm:$0xe]  ;;  %v9103_v3 = vld [vmem:[#allocation2 + $0xfc] sm:$0xe] }
 0x2f1   : > { %v7406_v10 = vsel %vm7317_vm1, %v5958_v23, -inf  ;;  %v7409_v39 = vsel %vm7317_vm1, %v5965_v60, -inf  ;;  %v4104_v50 = vshll.u32 %v11268_v8, 16  ;;  %3019 = vrot.lane.b32.xlu0 %v2953_v26, %s9153_s14  ;;  %v4102_v31 = vor.u32 %v4100_v21, %v11165_v20  ;;  %v11425_v20 = vld [vmem:[#allocation2 + $0x14c] sm:$0xff]  ;;  %v2136_v21 = vpop.permute.xlu2 %2135 }
 0x2f2   : > { %v7407_v30 = vmax.f32 %v13242_v37, %v7406_v10  ;;  %v7410_v55 = vmax.f32 %v13243_v42, %v7409_v39  ;;  %v7412_v27 = vsel %vm7317_vm1, %v5972_v18, -inf  ;;  %v7730_v61 = vpack.c.bf16 %v7404_v54, %v7404_v54  ;;  %v9128_v42 = vld [vmem:[#allocation2 + $0xb4] sm:$0xf0] }
 0x2f3   : > { %v7413_v11 = vmax.f32 %v11362_v47, %v7412_v27  ;;  %v4119_v41 = vsel %vm1623_vm10, %v4114_v45, %v11390_v9  ;;  %v4106_v8 = vrot.slane %v4104_v50, 1  ;;  %v3074_v51 = vsel %vm2137_vm13, %v9032_v16, %v2850_v46  ;;  %v1975_v46 = vpop.permute.xlu0 %1974 }
 0x2f4   : > { %v7731_v2 = vpack.c.bf16 %v7407_v30, %v7407_v30  ;;  %v7732_v57 = vpack.c.bf16 %v7410_v55, %v7410_v55  ;;  %v7986_v56 = vunpack.c.l.b16 %v7730_v61  ;;  %4256 = vrot.lane.b32.xlu1 %v4119_v41, %s9154_s15  ;;  %v3544_v38 = vadd.f32 %v3543_v43, %v3302_v7  ;;  %v11431_v7 = vpop.f32.mrf.mxu3  ;;  %v3304_v43 = vpop.f32.mrf.mxu0  ;;  %v11439_v30 = vld [vmem:[#allocation2 + $0xb4] sm:$0xff]  }
 0x2f5   : > { %v7733_v47 = vpack.c.bf16 %v7413_v11, %v7413_v11  ;;  %v4107_v6 = vsel %vm1623_vm10, %v4102_v31, %v4106_v8  ;;  %v3138_v23 = vsel %vm2202_vm14, %v3074_v51, %v3010_v14  ;;  %13244 = vst [vmem:[#allocation14_spill] sm:$0xff] %v11431_v7  ;;  %v9127_v39 = vor.u32 %v9126_v29, %v9125_v13  ;;  %v3545_v11 = vpop.f32.mrf.mxu1  ;;  %v9129_v31 = vld [vmem:[#allocation2 + $0xb4] sm:$0xe]  ;;  %v11443_v8 = vpop.permute.xlu1 %1942  ;;  %v11456_v29 = vld [vmem:[#allocation2 + $0xbc] sm:$0xff] }
 0x2f6   : > { %v7987_v60 = vunpack.c.l.b16 %v7731_v2  ;;  %v7988_v34 = vunpack.c.l.b16 %v7732_v57  ;;  %v8117_v0 = vsel %vm8092_vm5, %v7986_v56, %v8116_v5  ;;  %4254 = vrot.lane.b32.xlu2 %v4107_v6, %s9154_s15  ;;  %8588 = vmatmul.msk.bf16.gmra.mxu0 %vm3181_vm15, %v3138_v23  ;;  %v4828_v18 = vadd.f32 %v4692_v32, %v3544_v38  ;;  %13245 = vst [vmem:[#allocation15_spill] sm:$0xff] %v11439_v30  ;;  %v9033_v32 = vld [vmem:[#allocation2 + $0x114] sm:$0xff] }
 0x2f7   : > { %v7989_v54 = vunpack.c.l.b16 %v7733_v47  ;;  %v13177_v5 = vrot.slane %v11425_v20, 1  ;;  %v13175_v50 = vrot.slane %v11352_v63, 1  ;;  %v4365_v37 = vrot.slane %v11283_v33, 1 }
 0x2f8   : > { %v8118_v45 = vsel %vm8094_vm6, %v7987_v60, %v8117_v0  ;;  %v4896_v10 = vmul.f32 %v11311_v40, %v4828_v18  ;;  %v4367_v61 = vrot.slane %v9127_v39, 1  ;;  %v2201_v41 = vsel %vm2137_vm13, %v9033_v32, %v1975_v46  ;;  %v4694_v51 = vpop.f32.mrf.mxu2 }
 0x2f9   : > { %v8119_v14 = vsel %vm8096_vm7, %v7988_v34, %v8118_v45  ;;  %v9104_v2 = vor.u32 %v9103_v3, %v11358_v4  ;;  %v4366_v33 = vsel %vm2000_vm9, %v4363_v52, %v4365_v37  ;;  %v3546_v57 = vadd.f32 %v3545_v11, %v3304_v43 }
 0x2fa   : > { %v8120_v26 = vsel %vm8098_vm8, %v7989_v54, %v8119_v14  ;;  %v4964_v27 = vadd.f32 %v11323_v25, %v4896_v10  ;;  %v2266_v56 = vsel %vm2202_vm14, %v2201_v41, %v2136_v21  ;;  %v4369_v13 = vsel %vm2000_vm9, %v4367_v61, %v13177_v5  ;;  %v11472_v10 = vpop.permute.xlu2 %2851  ;;  %v11579_v5 = vld [vmem:[#allocation2 + $0xe8] sm:$0xff] }
 0x2fb   : > { %v8208_v55 = vpack.c.b16 %v8120_v26, %v8120_v26  ;;  %8641 = vmatmul.msk.bf16.gmra.mxu3 %vm3181_vm15, %v2266_v56  ;;  %v4349_v36 = vrot.slane %v9104_v2, 1  ;;  %v4829_v52 = vadd.f32 %v4694_v51, %v3546_v57  ;;  %v11465_v0 = vpop.permute.xlu0 %4406  ;;  %v9130_v54 = vor.u32 %v9129_v31, %v9128_v42  ;;  %v8923_v31 = vld [vmem:[#allocation2 + $0xd8] sm:$0xff]   ;;  %v11482_v56 = vld [vmem:[#allocation2 + $0xe0] sm:$0xff] }
 0x2fc   : > { %v5028_v16 = vmax.f32 %v4964_v27, 0.0  ;;  %4432 = vrot.lane.b32.xlu1 %v4369_v13, %s9153_s14  ;;  %v3623_v46 = vpop.f32.mrf.mxu3  ;;  %v13176_v45 = vrot.slane %v11456_v29, 1  ;;  %v4188_v1 = vshll.u32 %v11425_v20, 16 }
 0x2fd   : > { %8241 = vst.msk [vmem:[%s9280_s9 + $0xc] sm:$0xf] %vm8237_vm11, %v8208_v55  ;;  %v4351_v60 = vsel %vm2000_vm9, %v4349_v36, %v13175_v50  ;;  %v4897_v34 = vmul.f32 %v11311_v40, %v4829_v52  ;;  %v2046_v43 = vrot.slane %v9130_v54, 1  ;;  %v11478_v42 = vpop.permute.xlu1 %3011  ;;  %v2714_v54 = vshrl.u32 %v8923_v31, 16 }
 0x2fe   : > { %4430 = vrot.lane.b32.xlu2 %v4366_v33, %s9153_s14  ;;  %v5188_v4 = vrot.slane %v5028_v16, 2  ;;  %v5189_v47 = vrot.slane %v5028_v16, 4  ;;  %v5190_v6 = vrot.slane %v5028_v16, 6  ;;  %v5973_v38 = vsel %vm5524_vm0, %v5028_v16, -inf  ;;  %4416 = vrot.lane.b32.xlu0 %v4351_v60, %s9153_s14 }
 0x2ff   : > { %v5974_v23 = vrot.slane %v5973_v38, 4  ;;  %v4965_v39 = vadd.f32 %v11323_v25, %v4897_v34  ;;  %v2048_v11 = vsel %vm2000_vm9, %v2046_v43, %v13176_v45 }
 0x300   : > { %v5980_v18 = vsel %vm5524_vm0, %v5188_v4, -inf  ;;  %v5987_v3 = vsel %vm5524_vm0, %v5189_v47, -inf  ;;  %v5994_v14 = vsel %vm5524_vm0, %v5190_v6, -inf  ;;  %v2716_v4 = vshll.u32 %v8923_v31, 16  ;;  %v13246_v6 = vld [vmem:[#allocation17_spill] sm:$0xff] }
 0x301   : > { %v5981_v21 = vrot.slane %v5980_v18, 4  ;;  %v5975_v26 = vmax.f32 %v5973_v38, %v5974_v23  ;;  %v5988_v37 = vrot.slane %v5987_v3, 4  ;;  %v5995_v27 = vrot.slane %v5994_v14, 4 }
 0x302   : > { %v5029_v61 = vmax.f32 %v4965_v39, 0.0  ;;  %v11488_v38 = vadd.f32 %v3623_v46, %v13246_v6  ;;  %v9034_v46 = vld [vmem:[#allocation2 + $0xcc] sm:$0xff] }
 0x303   : > { %v5982_v55 = vmax.f32 %v5980_v18, %v5981_v21  ;;  %v5976_v2 = vrot.slane %v5975_v26, 2  ;;  %v5989_v51 = vmax.f32 %v5987_v3, %v5988_v37  ;;  %v5996_v13 = vmax.f32 %v5994_v14, %v5995_v27  ;;  %v11485_v47 = vpop.permute.xlu0 %2103  ;;  %v11493_v3 = vpop.permute.xlu2 %4248 }
 0x304   : > { %2113 = vrot.lane.b32.xlu1 %v2048_v11, %s9153_s14  ;;  %v5191_v32 = vrot.slane %v5029_v61, 2  ;;  %v6001_v41 = vsel %vm5524_vm0, %v5029_v61, -inf  ;;  %v5192_v33 = vrot.slane %v5029_v61, 4  ;;  %v5193_v57 = vrot.slane %v5029_v61, 6  ;;  %13247 = vst [vmem:[#allocation16_spill] sm:$0xff] %v11488_v38  ;;  %v3625_v23 = vpop.f32.mrf.mxu3 }
 0x305   : > { %v5983_v16 = vrot.slane %v5982_v55, 2  ;;  %v6002_v52 = vrot.slane %v6001_v41, 4  ;;  %v2721_v21 = vshll.u32 %v11482_v56, 16  ;;  %v5977_v14 = vmax.f32 %v5975_v26, %v5976_v2  ;;  %v11500_v6 = vpop.permute.xlu1 %4408 }
 0x306   : > { %v6008_v36 = vsel %vm5524_vm0, %v5191_v32, -inf  ;;  %v6015_v34 = vsel %vm5524_vm0, %v5192_v33, -inf  ;;  %v6022_v18 = vsel %vm5524_vm0, %v5193_v57, -inf  ;;  %v5990_v43 = vrot.slane %v5989_v51, 2 }
 0x307   : > { %v6009_v60 = vrot.slane %v6008_v36, 4  ;;  %v5984_v39 = vmax.f32 %v5982_v55, %v5983_v16  ;;  %v5997_v37 = vrot.slane %v5996_v13, 2  ;;  %v11496_v27 = vadd.f32 %v3625_v23, %v10989_v28  ;;  %v11505_v55 = vld [vmem:[#allocation2 + $0x154] sm:$0xff]  ;;  %v3548_v28 = vpop.f32.mrf.mxu1 }
 0x308   : > { %v4471_v61 = vsel %vm2137_vm13, %v9034_v46, %v11409_v17  ;;  %v6003_v11 = vmax.f32 %v6001_v41, %v6002_v52  ;;  %v2718_v32 = vrot.slane %v2716_v4, 1  ;;  %v6016_v57 = vrot.slane %v6015_v34, 4  ;;  %v3307_v4 = vpop.f32.mrf.mxu0 }
 0x309   : > { %13248 = vst [vmem:[#allocation17_spill] sm:$0xff] %v11496_v27  ;;  %v6010_v33 = vmax.f32 %v6008_v36, %v6009_v60  ;;  %v6023_v31 = vrot.slane %v6022_v18, 4  ;;  %v11502_v45 = vrot.slane %v2721_v21, 1  ;;  %v2044_v26 = vrot.slane %v11335_v35, 1  ;;  %v11518_v60 = vld [vmem:[#allocation2 + $0x10c] sm:$0xff] }
 0x30a   : > { %v2719_v50 = vor.u32 %v2718_v32, %v2714_v54  ;;  %v5978_v2 = vrot.slane %v5977_v14, 1  ;;  %v5985_v16 = vrot.slane %v5984_v39, 1  ;;  %v11507_v23 = vmax.f32 %v5989_v51, %v5990_v43  ;;  %v4697_v43 = vpop.f32.mrf.mxu2 }
 0x30b   : > { %v11509_v17 = vmax.f32 %v5996_v13, %v5997_v37  ;;  %v6004_v41 = vrot.slane %v6003_v11, 2  ;;  %v2045_v52 = vsel %vm2000_vm9, %v2042_v59, %v2044_v26  ;;  %v4535_v35 = vsel %vm2202_vm14, %v4471_v61, %v11465_v0  ;;  %v9035_v13 = vld [vmem:[#allocation2 + $0xa8] sm:$0xff] }
 0x30c   : > { %v2724_v36 = vsel %vm1623_vm10, %v2719_v50, %v11502_v45  ;;  %v6011_v54 = vrot.slane %v6010_v33, 2  ;;  %v6017_v21 = vmax.f32 %v6015_v34, %v6016_v57  ;;  %v6024_v51 = vmax.f32 %v6022_v18, %v6023_v31  ;;  %2111 = vrot.lane.b32.xlu2 %v2045_v52, %s9153_s14  ;;  %8759 = vmatmul.msk.bf16.gmra.mxu2 %vm3181_vm15, %v4535_v35  ;;  %v4265_v18 = vpop.permute.xlu0 %4264 }
 0x30d   : > { %2861 = vrot.lane.b32.xlu0 %v2724_v36, %s9154_s15  ;;  %v3076_v50 = vsel %vm2137_vm13, %v9035_v13, %v11472_v10  ;;  %v4192_v59 = vshrl.u32 %v11425_v20, 16  ;;  %v4196_v0 = vshll.u32 %v11505_v55, 16  ;;  %v11530_v37 = vmax.f32 %v5977_v14, %v5978_v2  ;;  %v9036_v10 = vld [vmem:[#allocation2 + $0x84] sm:$0xff]  ;;  %v4425_v36 = vpop.permute.xlu2 %4424 }
 0x30e   : > { %v3140_v34 = vsel %vm2202_vm14, %v3076_v50, %v11478_v42  ;;  %v2169_v32 = vsel %vm2137_vm13, %v9036_v10, %v11443_v8  ;;  %v4190_v57 = vrot.slane %v4188_v1, 1  ;;  %v4120_v26 = vshrl.u32 %v11352_v63, 16  ;;  %v11545_v13 = vld [vmem:[#allocation2 + $0xc4] sm:$0xff] }
 0x30f   : > { %8589 = vmatmul.msk.bf16.gmra.mxu0 %vm3181_vm15, %v3140_v34  ;;  %v11537_v31 = vrot.slane %v4196_v0, 1  ;;  %v4124_v42 = vshll.u32 %v11518_v60, 16  ;;  %v11541_v14 = vmax.f32 %v5984_v39, %v5985_v16  ;;  %v11543_v2 = vmax.f32 %v6003_v11, %v6004_v41  ;;  %v11556_v11 = vpop.permute.xlu1 %2853 }
 0x310   : > { %v6018_v52 = vrot.slane %v6017_v21, 2  ;;  %v6025_v35 = vrot.slane %v6024_v51, 2  ;;  %v11547_v50 = vmax.f32 %v6010_v33, %v6011_v54  ;;  %v4194_v8 = vor.u32 %v4192_v59, %v4190_v57  ;;  %v3550_v54 = vpop.f32.mrf.mxu1 }
 0x311   : > { %v4122_v1 = vor.u32 %v4120_v26, %v11390_v9  ;;  %v11550_v0 = vrot.slane %v4124_v42, 1  ;;  %v4181_v34 = vshrl.u32 %v11421_v24, 16  ;;  %v4183_v10 = vshll.u32 %v11421_v24, 16  ;;  %v3309_v26 = vpop.f32.mrf.mxu0 }
 0x312   : > { %v3549_v61 = vadd.f32 %v3548_v28, %v3307_v4  ;;  %v2234_v39 = vsel %vm2202_vm14, %v2169_v32, %v11485_v47  ;;  %v4199_v16 = vsel %vm1623_vm10, %v4194_v8, %v11537_v31  ;;  %v1812_v9 = vshll.u32 %v11456_v29, 16 }
 0x313   : > { %v4127_v33 = vsel %vm1623_vm10, %v4122_v1, %v11550_v0  ;;  %8625 = vmatmul.msk.bf16.gmra.mxu1 %vm3181_vm15, %v2234_v39  ;;  %v1816_v41 = vshrl.u32 %v11456_v29, 16  ;;  %v11565_v59 = vmax.f32 %v6017_v21, %v6018_v52  ;;  %4274 = vrot.lane.b32.xlu1 %v4199_v16, %s9154_s15  ;;  %v4185_v47 = vrot.slane %v4183_v10, 1 }
 0x314   : > { %v4830_v28 = vadd.f32 %v4697_v43, %v3549_v61  ;;  %v1820_v4 = vshll.u32 %v11545_v13, 16  ;;  %v1814_v32 = vrot.slane %v1812_v9, 1  ;;  %v1805_v8 = vshrl.u32 %v11439_v30, 16  ;;  %v4699_v43 = vpop.f32.mrf.mxu2  ;;  %v1945_v42 = vpop.permute.xlu0 %1944 }
 0x315   : > { %4258 = vrot.lane.b32.xlu0 %v4127_v33, %s9154_s15  ;;  %v1807_v1 = vshll.u32 %v11439_v30, 16  ;;  %v4186_v39 = vor.u32 %v4185_v47, %v4181_v34  ;;  %v3551_v16 = vadd.f32 %v3550_v54, %v3309_v26  ;;  %v11576_v46 = vmax.f32 %v6024_v51, %v6025_v35  ;;  %v9037_v33 = vld [vmem:[#allocation2 + $0x120] sm:$0xff]  }
 0x316   : > { %v4898_v21 = vmul.f32 %v11311_v40, %v4830_v28  ;;  %v11574_v52 = vrot.slane %v1820_v4, 1  ;;  %v1818_v10 = vor.u32 %v1816_v41, %v1814_v32  ;;  %v4489_v9 = vsel %vm2137_vm13, %v9037_v33, %v4265_v18 }
 0x317   : > { %v1809_v61 = vrot.slane %v1807_v1, 1  ;;  %v4191_v7 = vsel %vm1623_vm10, %v4186_v39, %v4190_v57  ;;  %v4831_v47 = vadd.f32 %v4699_v43, %v3551_v16  ;;  %v4553_v28 = vsel %vm2202_vm14, %v4489_v9, %v4425_v36  ;;  %v2106_v57 = vpop.permute.xlu2 %2105  ;;  %v9038_v1 = vld [vmem:[#allocation2 + $0xd8] sm:$0xff]  }
 0x318   : > { %v4966_v34 = vadd.f32 %v11323_v25, %v4898_v21  ;;  %4272 = vrot.lane.b32.xlu2 %v4191_v7, %s9154_s15  ;;  %v1823_v51 = vsel %vm1623_vm10, %v1818_v10, %v11574_v52  ;;  %v13249_v35 = vrot.slane %v11505_v55, 1  ;;  %v13250_v18 = vrot.slane %v11425_v20, 1  ;;  %8768 = vmatmul.msk.bf16.vlgmr.msra.gmra.mxu3 %vm3181_vm15, %v4553_v28  ;;  %v8931_v21 = vld [vmem:[#allocation2 + $0xd8] sm:$0xf0]  ;;  %v8932_v43 = vld [vmem:[#allocation2 + $0xd8] sm:$0xe] }
 0x319   : > { %v1810_v4 = vor.u32 %v1809_v61, %v1805_v8  ;;  %v6013_v26 = vrot.slane %v11547_v50, 1  ;;  %v4473_v7 = vsel %vm2137_vm13, %v9038_v1, %v11493_v3  ;;  %v4899_v39 = vmul.f32 %v11311_v40, %v4831_v47  ;;  %v11606_v40 = vpop.permute.xlu1 %4250  ;;  %v9039_v28 = vld [vmem:[#allocation2 + $0x90] sm:$0xff]  }
 0x31a   : > { %v4371_v41 = vsel %vm2000_vm9, %v13250_v18, %v13249_v35  ;;  %v5030_v36 = vmax.f32 %v4966_v34, 0.0  ;;  %v4537_v16 = vsel %vm2202_vm14, %v4473_v7, %v11500_v6  ;;  %v2955_v20 = vrot.slane %v11482_v56, 1 }
 0x31b   : > { %1954 = vrot.lane.b32.xlu1 %v1823_v51, %s9154_s15  ;;  %v1815_v6 = vsel %vm1623_vm10, %v1810_v4, %v1814_v32  ;;  %v4967_v47 = vadd.f32 %v11323_v25, %v4899_v39  ;;  %v2171_v35 = vsel %vm2137_vm13, %v9039_v28, %v1945_v42  ;;  %v8933_v1 = vor.u32 %v8932_v43, %v8931_v21 }
 0x31c   : > { %v5194_v61 = vrot.slane %v5030_v36, 2  ;;  %v5195_v33 = vrot.slane %v5030_v36, 4  ;;  %v5196_v9 = vrot.slane %v5030_v36, 6  ;;  %v6029_v34 = vsel %vm5524_vm0, %v5030_v36, -inf  ;;  %8760 = vmatmul.msk.bf16.gmra.mxu2 %vm3181_vm15, %v4537_v16 }
 0x31d   : > { %4434 = vrot.lane.b32.xlu0 %v4371_v41, %s9153_s14  ;;  %v6030_v3 = vrot.slane %v6029_v34, 4  ;;  %v5031_v8 = vmax.f32 %v4967_v47, 0.0  ;;  %v13251_v32 = vrot.slane %v11579_v5, 1  ;;  %v13252_v4 = vrot.slane %v11545_v13, 1 }
 0x31e   : > { %v6036_v18 = vsel %vm5524_vm0, %v5194_v61, -inf  ;;  %v6043_v36 = vsel %vm5524_vm0, %v5195_v33, -inf  ;;  %v6050_v51 = vsel %vm5524_vm0, %v5196_v9, -inf  ;;  %v13253_v42 = vrot.slane %v11456_v29, 1  ;;  %v11625_v9 = vpop.permute.xlu0 %3013 }
 0x31f   : > { %v6031_v41 = vmax.f32 %v6029_v34, %v6030_v3  ;;  %v6037_v7 = vrot.slane %v6036_v18, 4  ;;  %v6044_v54 = vrot.slane %v6043_v36, 4  ;;  %v6051_v10 = vrot.slane %v6050_v51, 4 }
 0x320   : > { %v2958_v25 = vsel %vm2000_vm9, %v2955_v20, %v13251_v32  ;;  %v2050_v39 = vsel %vm2000_vm9, %v13253_v42, %v13252_v4  ;;  %v2236_v16 = vsel %vm2202_vm14, %v2171_v35, %v2106_v57  ;;  %1952 = vrot.lane.b32.xlu2 %v1815_v6, %s9154_s15  ;;  %v6020_v34 = vrot.slane %v11565_v59, 1  ;;  %v11631_v57 = vpop.permute.xlu2 %4266 }
 0x321   : > { %v6032_v61 = vrot.slane %v6031_v41, 2  ;;  %v6038_v33 = vmax.f32 %v6036_v18, %v6037_v7  ;;  %v6045_v21 = vmax.f32 %v6043_v36, %v6044_v54  ;;  %v6052_v43 = vmax.f32 %v6050_v51, %v6051_v10 }
 0x322   : > { %v5197_v3 = vrot.slane %v5031_v8, 2  ;;  %v6057_v47 = vsel %vm5524_vm0, %v5031_v8, -inf  ;;  %v2954_v28 = vrot.slane %v8933_v1, 1  ;;  %v6027_v29 = vrot.slane %v11576_v46, 1 }
 0x323   : > { %v6039_v32 = vrot.slane %v6038_v33, 2  ;;  %v5198_v4 = vrot.slane %v5031_v8, 4  ;;  %v5199_v42 = vrot.slane %v5031_v8, 6  ;;  %8626 = vmatmul.msk.bf16.gmra.mxu1 %vm3181_vm15, %v2236_v16  ;;  %v6033_v54 = vmax.f32 %v6031_v41, %v6032_v61  ;;  %3023 = vrot.lane.b32.xlu1 %v2958_v25, %s9153_s14 }
 0x324   : > { %v6046_v10 = vrot.slane %v6045_v21, 2  ;;  %v6053_v6 = vrot.slane %v6052_v43, 2  ;;  %v6058_v35 = vrot.slane %v6057_v47, 4  ;;  %v13254_v18 = vrot.slane %v11507_v23, 1 }
 0x325   : > { %2115 = vrot.lane.b32.xlu0 %v2050_v39, %s9153_s14  ;;  %v13255_v51 = vrot.slane %v11509_v17, 1  ;;  %v11643_v1 = vsel %vm7317_vm1, %v11530_v37, -inf  ;;  %v13256_v41 = vrot.slane %v11543_v2, 1  ;;  %v6014_v25 = vmax.f32 %v11547_v50, %v6013_v26  ;;  %v3312_v50 = vpop.f32.mrf.mxu0 }
 0x326   : > { %v5993_v36 = vmax.f32 %v11507_v23, %v13254_v18  ;;  %v6040_v16 = vmax.f32 %v6038_v33, %v6039_v32  ;;  %v6064_v39 = vsel %vm5524_vm0, %v5197_v3, -inf  ;;  %v2956_v61 = vsel %vm2000_vm9, %v2954_v28, %v2955_v20  ;;  %v11651_v23 = vpop.permute.xlu1 %4426  ;;  %v11668_v33 = vld [vmem:[#allocation2 + $0x114] sm:$0xff] }
 0x327   : > { %v6000_v8 = vmax.f32 %v11509_v17, %v13255_v51  ;;  %v6007_v7 = vmax.f32 %v11543_v2, %v13256_v41  ;;  %v6021_v18 = vmax.f32 %v11565_v59, %v6020_v34  ;;  %v6028_v17 = vmax.f32 %v11576_v46, %v6027_v29  ;;  %v11670_v34 = vld [vmem:[#allocation2 + $0x15c] sm:$0xff] }
 0x328   : > { %v6071_v37 = vsel %vm5524_vm0, %v5198_v4, -inf  ;;  %v6078_v51 = vsel %vm5524_vm0, %v5199_v42, -inf  ;;  %v6034_v22 = vrot.slane %v6033_v54, 1  ;;  %v6047_v62 = vmax.f32 %v6045_v21, %v6046_v10  ;;  %3021 = vrot.lane.b32.xlu2 %v2956_v61, %s9153_s14  ;;  %v4411_v42 = vpop.permute.xlu0 %4410  ;;  %v11690_v12 = vpop.permute.xlu2 %1946 }
 0x329   : > { %v6054_v2 = vmax.f32 %v6052_v43, %v6053_v6  ;;  %v6059_v41 = vmax.f32 %v6057_v47, %v6058_v35  ;;  %v11659_v26 = vsel %vm7317_vm1, %v11541_v14, -inf  ;;  %v11662_v20 = vsel %vm7317_vm1, %v5993_v36, -inf  ;;  %v3553_v47 = vpop.f32.mrf.mxu1 }
 0x32a   : > { %v11665_v59 = vsel %vm7317_vm1, %v6000_v8, -inf  ;;  %v6065_v46 = vrot.slane %v6064_v39, 4  ;;  %v11673_v21 = vsel %vm7317_vm1, %v6007_v7, -inf  ;;  %v6041_v43 = vrot.slane %v6040_v16, 1  ;;  %v4702_v8 = vpop.f32.mrf.mxu2 }
 0x32b   : > { %13257 = vst [vmem:[#allocation22_spill] sm:$0xff] %v11673_v21  ;;  %v6072_v3 = vrot.slane %v6071_v37, 4  ;;  %v6079_v14 = vrot.slane %v6078_v51, 4  ;;  %v11676_v28 = vsel %vm7317_vm1, %v6014_v25, -inf  ;;  %v11679_v29 = vsel %vm7317_vm1, %v6021_v18, -inf }
 0x32c   : > { %13258 = vst [vmem:[#allocation23_spill] sm:$0xff] %v11676_v28  ;;  %v11682_v32 = vsel %vm7317_vm1, %v6028_v17, -inf  ;;  %v4352_v4 = vrot.slane %v11518_v60, 1  ;;  %v6035_v10 = vmax.f32 %v6033_v54, %v6034_v22  ;;  %v6048_v6 = vrot.slane %v6047_v62, 1  ;;  %v13261_v22 = vld [vmem:[#allocation12_spill] sm:$0xff] }
 0x32d   : > { %13259 = vst [vmem:[#allocation24_spill] sm:$0xff] %v11679_v29  ;;  %v6055_v35 = vrot.slane %v6054_v2, 1  ;;  %v6060_v36 = vrot.slane %v6059_v41, 2  ;;  %v11685_v7 = vmax.f32 %v6064_v39, %v6065_v46  ;;  %v13178_v61 = vrot.slane %v11668_v33, 1 }
 0x32e   : > { %13260 = vst [vmem:[#allocation25_spill] sm:$0xff] %v11682_v32  ;;  %v4200_v25 = vshrl.u32 %v11505_v55, 16  ;;  %v4204_v18 = vshll.u32 %v11670_v34, 16  ;;  %v6042_v17 = vmax.f32 %v6040_v16, %v6041_v43  ;;  %v11692_v58 = vmax.f32 %v6071_v37, %v6072_v3  ;;  %v11708_v37 = vld [vmem:[#allocation2 + $0xf0] sm:$0xff] }
 0x32f   : > { %v11694_v49 = vmax.f32 %v6078_v51, %v6079_v14  ;;  %v3078_v54 = vsel %vm2137_vm13, %v13261_v22, %v11556_v11  ;;  %v4355_v39 = vsel %vm2000_vm9, %v4352_v4, %v13178_v61  ;;  %v4353_v16 = vsel %vm2000_vm9, %v13262_v53, %v4352_v4  ;;  %v2108_v14 = vpop.permute.xlu1 %2107 }
 0x330   : > { %v4202_v46 = vor.u32 %v4200_v25, %v11537_v31  ;;  %v11703_v44 = vrot.slane %v4204_v18, 1  ;;  %v11710_v51 = vmax.f32 %v6047_v62, %v6048_v6  ;;  %v11712_v43 = vmax.f32 %v6054_v2, %v6055_v35  ;;  %4420 = vrot.lane.b32.xlu1 %v4355_v39, %s9153_s14  ;;  %v11720_v31 = vld [vmem:[#allocation2 + $0xcc] sm:$0xff]  ;;  %4418 = vrot.lane.b32.xlu2 %v4353_v16, %s9153_s14 }
 0x331   : > { %v11715_v11 = vsel %vm7317_vm1, %v6035_v10, -inf  ;;  %v11717_v3 = vmax.f32 %v6059_v41, %v6060_v36  ;;  %v6067_v63 = vrot.slane %v11685_v7, 2  ;;  %v3554_v62 = vadd.f32 %v3553_v47, %v3312_v50  ;;  %v9040_v41 = vld [vmem:[#allocation2 + $0xe0] sm:$0xff]  ;;  %v9041_v6 = vld [vmem:[#allocation2 + $0x128] sm:$0xff]  ;;  %v3314_v50 = vpop.f32.mrf.mxu0 }
 0x332   : > { %13263 = vst [vmem:[#allocation12_spill] sm:$0xff] %v11715_v11  ;;  %v4207_v53 = vsel %vm1623_vm10, %v4202_v46, %v11703_v44  ;;  %v3142_v2 = vsel %vm2202_vm14, %v3078_v54, %v11625_v9  ;;  %v6074_v4 = vrot.slane %v11692_v58, 2  ;;  %v4475_v10 = vsel %vm2137_vm13, %v9040_v41, %v11606_v40  ;;  %v3555_v40 = vpop.f32.mrf.mxu1 }
 0x333   : > { %4276 = vrot.lane.b32.xlu0 %v4207_v53, %s9154_s15  ;;  %v4491_v35 = vsel %vm2137_vm13, %v9041_v6, %v11631_v57  ;;  %8590 = vmatmul.msk.bf16.gmra.mxu0 %vm3181_vm15, %v3142_v2  ;;  %v2729_v36 = vshll.u32 %v11579_v5, 16  ;;  %v4832_v47 = vadd.f32 %v4702_v8, %v3554_v62  ;;  %v2733_v9 = vshrl.u32 %v11579_v5, 16  ;;  %v11747_v8 = vld [vmem:[%s13160_s2] ss:$0 sm:$0xff]  ;;  %v11753_v62 = vpop.permute.xlu0 %2855  ;;  %v4704_v2 = vpop.f32.mrf.mxu2 }
 0x334   : > { %v2737_v25 = vshll.u32 %v11708_v37, 16  ;;  %v4555_v18 = vsel %vm2202_vm14, %v4491_v35, %v11651_v23  ;;  %v1824_v54 = vshrl.u32 %v11545_v13, 16  ;;  %v1828_v39 = vshll.u32 %v11720_v31, 16 }
 0x335   : > { %v2731_v22 = vrot.slane %v2729_v36, 1  ;;  %v2725_v57 = vshrl.u32 %v11482_v56, 16  ;;  %8769 = vmatmul.msk.bf16.gmra.mxu3 %vm3181_vm15, %v4555_v18  ;;  %v4900_v46 = vmul.f32 %v11747_v8, %v4832_v47  ;;  %v3556_v23 = vadd.f32 %v3555_v40, %v3314_v50  ;;  %v3733_v36 = vld [vmem:[#allocation2 + $0x11c] sm:$0x1] }
 0x336   : > { %v11750_v16 = vrot.slane %v2737_v25, 1  ;;  %v4539_v53 = vsel %vm2202_vm14, %v4475_v10, %v4411_v42  ;;  %v1826_v56 = vor.u32 %v1824_v54, %v11574_v52  ;;  %v11756_v6 = vrot.slane %v1828_v39, 1  ;;  %v11767_v42 = vld [vmem:[%s13161_s3] ss:$0 sm:$0xff]  ;;  %v9044_v39 = vld [vmem:[#allocation2 + $0x98] sm:$0xff] }
 0x337   : > { %v2735_v41 = vor.u32 %v2733_v9, %v2731_v22  ;;  %v2727_v35 = vor.u32 %v2725_v57, %v11502_v45  ;;  %8761 = vmatmul.msk.bf16.gmra.mxu2 %vm3181_vm15, %v4539_v53  ;;  %v11761_v47 = vsel %vm7317_vm1, %v6042_v17, -inf  ;;  %v6081_v50 = vrot.slane %v11694_v49, 2  ;;  %v11770_v9 = vpop.permute.xlu2 %3015 }
 0x338   : > { %13264 = vst [vmem:[#allocation26_spill] sm:$0xff] %v11761_v47  ;;  %v4968_v10 = vadd.f32 %v11767_v42, %v4900_v46  ;;  %v4833_v52 = vadd.f32 %v4704_v2, %v3556_v23  ;;  %v6062_v45 = vrot.slane %v11717_v3, 1  ;;  %v1831_v17 = vsel %vm1623_vm10, %v1826_v56, %v11756_v6 }
 0x339   : > { %v2740_v25 = vsel %vm1623_vm10, %v2735_v41, %v11750_v16  ;;  %v2732_v18 = vsel %vm1623_vm10, %v2727_v35, %v2731_v22  ;;  %v2173_v57 = vsel %vm2137_vm13, %v9044_v39, %v11690_v12  ;;  %v3917_v46 = vunpack.c.l.b16 %v3733_v36  ;;  %v11790_v41 = vpop.permute.xlu1 %4268  ;;  %v3317_v29 = vpop.f32.mrf.mxu0 }
 0x33a   : > { %v5032_v40 = vmax.f32 %v4968_v10, 0.0  ;;  %2865 = vrot.lane.b32.xlu1 %v2740_v25, %s9154_s15  ;;  %2863 = vrot.lane.b32.xlu2 %v2732_v18, %s9154_s15  ;;  %v4901_v54 = vmul.f32 %v11747_v8, %v4833_v52  ;;  %v6068_v23 = vmax.f32 %v11685_v7, %v6067_v63  ;;  %v11785_v53 = vmax.f32 %v11692_v58, %v6074_v4 }
 0x33b   : > { %1956 = vrot.lane.b32.xlu0 %v1831_v17, %s9154_s15  ;;  %v2238_v22 = vsel %vm2202_vm14, %v2173_v57, %v2108_v14  ;;  %v13179_v2 = vrot.slane %v11708_v37, 1  ;;  %v11795_v12 = vmax.f32 %v11694_v49, %v6081_v50  ;;  %v4132_v63 = vshll.u32 %v11668_v33, 16 }
 0x33c   : > { %v5200_v56 = vrot.slane %v5032_v40, 2  ;;  %v5201_v35 = vrot.slane %v5032_v40, 4  ;;  %v5202_v10 = vrot.slane %v5032_v40, 6  ;;  %v6085_v52 = vsel %vm5524_vm0, %v5032_v40, -inf  ;;  %8627 = vmatmul.msk.bf16.gmra.mxu1 %vm3181_vm15, %v2238_v22 }
 0x33d   : > { %v6086_v58 = vrot.slane %v6085_v52, 4  ;;  %v4969_v7 = vadd.f32 %v11767_v42, %v4901_v54  ;;  %v11802_v25 = vpack.c.b16 %v3917_v46, %v3917_v46  ;;  %v6069_v57 = vrot.slane %v6068_v23, 1 }
 0x33e   : > { %v6092_v14 = vsel %vm5524_vm0, %v5200_v56, -inf  ;;  %v6099_v4 = vsel %vm5524_vm0, %v5201_v35, -inf  ;;  %v6106_v36 = vsel %vm5524_vm0, %v5202_v10, -inf  ;;  %v4136_v50 = vshrl.u32 %v11668_v33, 16  ;;  %v11810_v56 = vpop.permute.xlu0 %4252 }
 0x33f   : > { %v6087_v17 = vmax.f32 %v6085_v52, %v6086_v58  ;;  %v6093_v18 = vrot.slane %v6092_v14, 4  ;;  %v6100_v40 = vrot.slane %v6099_v4, 4  ;;  %v6107_v39 = vrot.slane %v6106_v36, 4 }
 0x340   : > { %v5033_v49 = vmax.f32 %v4969_v7, 0.0  ;;  %v13265_v54 = vrot.slane %v11579_v5, 1  ;;  %v11813_v7 = vpop.permute.xlu2 %4412  ;;  %v4134_v47 = vrot.slane %v4132_v63, 1  ;;  %v4140_v5 = vshll.u32 %v11802_v25, 16 }
 0x341   : > { %v6088_v35 = vrot.slane %v6087_v17, 2  ;;  %v6094_v10 = vmax.f32 %v6092_v14, %v6093_v18  ;;  %v6101_v46 = vmax.f32 %v6099_v4, %v6100_v40  ;;  %v6108_v61 = vmax.f32 %v6106_v36, %v6107_v39  ;;  %v11826_v39 = vpop.permute.xlu1 %1948 }
 0x342   : > { %v2960_v22 = vsel %vm2000_vm9, %v13265_v54, %v13179_v2  ;;  %v5203_v52 = vrot.slane %v5033_v49, 2  ;;  %v5204_v58 = vrot.slane %v5033_v49, 4  ;;  %v5205_v19 = vrot.slane %v5033_v49, 6 }
 0x343   : > { %v6113_v48 = vsel %vm5524_vm0, %v5033_v49, -inf  ;;  %v6095_v27 = vrot.slane %v6094_v10, 2  ;;  %v6102_v38 = vrot.slane %v6101_v46, 2  ;;  %3025 = vrot.lane.b32.xlu0 %v2960_v22, %s9153_s14  ;;  %v6109_v54 = vrot.slane %v6108_v61, 2  ;;  %v11828_v49 = vpop.f32.mrf.mxu3 }
 0x344   : > { %v6114_v2 = vrot.slane %v6113_v48, 4  ;;  %v6120_v14 = vsel %vm5524_vm0, %v5203_v52, -inf  ;;  %v6127_v4 = vsel %vm5524_vm0, %v5204_v58, -inf  ;;  %v11821_v36 = vsel %vm7317_vm1, %v11710_v51, -inf  ;;  %13267 = vst [vmem:[#allocation28_spill] sm:$0xff] %v11828_v49 }
 0x345   : > { %13266 = vst [vmem:[#allocation27_spill] sm:$0xff] %v11821_v36  ;;  %v6063_v18 = vmax.f32 %v11717_v3, %v6062_v45  ;;  %v6076_v40 = vrot.slane %v11785_v53, 1  ;;  %v6134_v63 = vsel %vm5524_vm0, %v5205_v19, -inf  ;;  %v6089_v22 = vmax.f32 %v6087_v17, %v6088_v35  ;;  %v3558_v36 = vpop.f32.mrf.mxu1 }
 0x346   : > { %v6115_v11 = vmax.f32 %v6113_v48, %v6114_v2  ;;  %v6121_v30 = vrot.slane %v6120_v14, 4  ;;  %v6128_v52 = vrot.slane %v6127_v4, 4  ;;  %v6070_v15 = vmax.f32 %v6068_v23, %v6069_v57  ;;  %v9045_v2 = vld [vmem:[#allocation2 + $0xbc] sm:$0xff] }
 0x347   : > { %v6083_v58 = vrot.slane %v11795_v12, 1  ;;  %v4138_v32 = vor.u32 %v4136_v50, %v4134_v47  ;;  %v4142_v51 = vrot.slane %v4140_v5, 1  ;;  %v6096_v3 = vmax.f32 %v6094_v10, %v6095_v27  ;;  %v3735_v27 = vld [vmem:[#allocation2 + $0x164] sm:$0x1] }
 0x348   : > { %v6103_v45 = vmax.f32 %v6101_v46, %v6102_v38  ;;  %v6110_v28 = vmax.f32 %v6108_v61, %v6109_v54  ;;  %v6135_v21 = vrot.slane %v6134_v63, 4  ;;  %v11833_v19 = vsel %vm7317_vm1, %v11712_v43, -inf  ;;  %v11839_v38 = vpop.permute.xlu0 %4428 }
 0x349   : > { %v6077_v17 = vmax.f32 %v11785_v53, %v6076_v40  ;;  %v4128_v48 = vshrl.u32 %v11518_v60, 16  ;;  %v3080_v23 = vsel %vm2137_vm13, %v9045_v2, %v11753_v62  ;;  %v6090_v57 = vrot.slane %v6089_v22, 1  ;;  %v4707_v60 = vpop.f32.mrf.mxu2 }
 0x34a   : > { %v6116_v50 = vrot.slane %v6115_v11, 2  ;;  %v6122_v35 = vmax.f32 %v6120_v14, %v6121_v30  ;;  %v6129_v5 = vmax.f32 %v6127_v4, %v6128_v52  ;;  %v6084_v61 = vmax.f32 %v11795_v12, %v6083_v58  ;;  %v11850_v30 = vpop.permute.xlu2 %2857 }
 0x34b   : > { %v11843_v43 = vsel %vm7317_vm1, %v6063_v18, -inf  ;;  %v11846_v53 = vsel %vm7317_vm1, %v6070_v15, -inf  ;;  %v4143_v10 = vsel %vm1623_vm10, %v4138_v32, %v4142_v51  ;;  %v6097_v46 = vrot.slane %v6096_v3, 1 }
 0x34c   : > { %v6104_v62 = vrot.slane %v6103_v45, 1  ;;  %v6111_v54 = vrot.slane %v6110_v28, 1  ;;  %v6136_v40 = vmax.f32 %v6134_v63, %v6135_v21  ;;  %4262 = vrot.lane.b32.xlu1 %v4143_v10, %s9154_s15  ;;  %v4130_v14 = vor.u32 %v4128_v48, %v11550_v0  ;;  %v11862_v0 = vpop.permute.xlu1 %3017  ;;  %v2338_v10 = vld [vmem:[#allocation2 + $0xf8] sm:$0x1] }
 0x34d   : > { %v3559_v12 = vadd.f32 %v3558_v36, %v3317_v29  ;;  %v3144_v4 = vsel %vm2202_vm14, %v3080_v23, %v11770_v9  ;;  %v3919_v18 = vunpack.c.l.b16 %v3735_v27  ;;  %v6091_v15 = vmax.f32 %v6089_v22, %v6090_v57  ;;  %v11864_v29 = vpop.f32.mrf.mxu3  ;;  %v3319_v27 = vpop.f32.mrf.mxu0 }
 0x34e   : > { %v11855_v52 = vmax.f32 %v6115_v11, %v6116_v50  ;;  %v6123_v58 = vrot.slane %v6122_v35, 2  ;;  %v6130_v32 = vrot.slane %v6129_v5, 2  ;;  %8591 = vmatmul.msk.bf16.gmra.mxu0 %vm3181_vm15, %v3144_v4  ;;  %v4135_v21 = vsel %vm1623_vm10, %v4130_v14, %v4134_v47  ;;  %13268 = vst [vmem:[#allocation29_spill] sm:$0xff] %v11864_v29  ;;  %v3560_v50 = vpop.f32.mrf.mxu1 }
 0x34f   : > { %v4834_v63 = vadd.f32 %v4707_v60, %v3559_v12  ;;  %v11859_v51 = vpack.c.b16 %v3919_v18, %v3919_v18  ;;  %v4372_v2 = vrot.slane %v11670_v34, 1  ;;  %v11867_v9 = vsel %vm7317_vm1, %v6077_v17, -inf  ;;  %4260 = vrot.lane.b32.xlu2 %v4135_v21, %s9154_s15  ;;  %v1428_v17 = vld [vmem:[#allocation2 + $0xd4] sm:$0x1] }
 0x350   : > { %v11870_v11 = vsel %vm7317_vm1, %v6084_v61, -inf  ;;  %v11872_v36 = vmax.f32 %v6096_v3, %v6097_v46  ;;  %v11874_v22 = vmax.f32 %v6103_v45, %v6104_v62  ;;  %v11877_v47 = vmax.f32 %v6110_v28, %v6111_v54  ;;  %v9046_v54 = vld [vmem:[#allocation2 + $0xe8] sm:$0xff]  ;;  %v11900_v18 = vpop.permute.xlu0 %2109 }
 0x351   : > { %13269 = vst [vmem:[#allocation30_spill] sm:$0xff] %v11870_v11  ;;  %v6137_v48 = vrot.slane %v6136_v40, 2  ;;  %v4902_v23 = vmul.f32 %v11747_v8, %v4834_v63  ;;  %v4374_v57 = vrot.slane %v11859_v51, 1  ;;  %v11882_v60 = vsel %vm7317_vm1, %v6091_v15, -inf }
 0x352   : > { %13270 = vst [vmem:[#allocation31_spill] sm:$0xff] %v11882_v60  ;;  %v11885_v61 = vmax.f32 %v6122_v35, %v6123_v58  ;;  %v4356_v45 = vrot.slane %v11802_v25, 1  ;;  %v11888_v28 = vmax.f32 %v6129_v5, %v6130_v32  ;;  %v4477_v14 = vsel %vm2137_vm13, %v9046_v54, %v11810_v56  ;;  %v4709_v32 = vpop.f32.mrf.mxu2 }
 0x353   : > { %v4970_v46 = vadd.f32 %v11767_v42, %v4902_v23  ;;  %v4375_v62 = vsel %vm2000_vm9, %v4372_v2, %v4374_v57  ;;  %v13271_v12 = vrot.slane %v11668_v33, 1  ;;  %v3561_v4 = vadd.f32 %v3560_v50, %v3319_v27 }
 0x354   : > { %4438 = vrot.lane.b32.xlu1 %v4375_v62, %s9153_s14  ;;  %v4541_v25 = vsel %vm2202_vm14, %v4477_v14, %v11813_v7  ;;  %v1612_v5 = vunpack.c.l.b16 %v1428_v17  ;;  %v11902_v15 = vmax.f32 %v6136_v40, %v6137_v48  ;;  %v13272_v56 = vrot.slane %v11505_v55, 1  ;;  %v11913_v40 = vpop.permute.xlu2 %4254  ;;  %v11916_v55 = vpop.permute.xlu1 %4414 }
 0x355   : > { %v4357_v35 = vsel %vm2000_vm9, %v13271_v12, %v4356_v45  ;;  %v5034_v58 = vmax.f32 %v4970_v46, 0.0  ;;  %8762 = vmatmul.msk.bf16.gmra.mxu2 %vm3181_vm15, %v4541_v25  ;;  %v2522_v33 = vunpack.c.l.b16 %v2338_v10  ;;  %v6125_v63 = vrot.slane %v11885_v61, 1 }
 0x356   : > { %4422 = vrot.lane.b32.xlu0 %v4357_v35, %s9153_s14  ;;  %v4373_v21 = vsel %vm2000_vm9, %v13272_v56, %v4372_v2  ;;  %v4835_v23 = vadd.f32 %v4709_v32, %v3561_v4  ;;  %v11910_v7 = vpack.c.b16 %v1612_v5, %v1612_v5  ;;  %v2051_v57 = vrot.slane %v11720_v31, 1  ;;  %v11918_v2 = vpop.f32.mrf.mxu3  ;;  %v11929_v4 = vpop.f32.mrf.mxu0 }
 0x357   : > { %v5206_v48 = vrot.slane %v5034_v58, 2  ;;  %v5207_v50 = vrot.slane %v5034_v58, 4  ;;  %v5208_v27 = vrot.slane %v5034_v58, 6  ;;  %v6141_v17 = vsel %vm5524_vm0, %v5034_v58, -inf  ;;  %13273 = vst [vmem:[#allocation32_spill] sm:$0xff] %v11918_v2  ;;  %4436 = vrot.lane.b32.xlu2 %v4373_v21, %s9153_s14  ;;  %v11931_v25 = vpop.f32.mrf.mxu1 }
 0x358   : > { %v6132_v45 = vrot.slane %v11888_v28, 1  ;;  %v6142_v10 = vrot.slane %v6141_v17, 4  ;;  %v4903_v46 = vmul.f32 %v11747_v8, %v4835_v23  ;;  %v2053_v62 = vrot.slane %v11910_v7, 1  ;;  %v9047_v23 = vld [vmem:[#allocation2 + $0x130] sm:$0xff] }
 0x359   : > { %v6148_v54 = vsel %vm5524_vm0, %v5206_v48, -inf  ;;  %v6155_v14 = vsel %vm5524_vm0, %v5207_v50, -inf  ;;  %v6162_v12 = vsel %vm5524_vm0, %v5208_v27, -inf  ;;  %v11927_v35 = vpack.c.b16 %v2522_v33, %v2522_v33 }
 0x35a   : > { %v6143_v5 = vmax.f32 %v6141_v17, %v6142_v10  ;;  %v6149_v58 = vrot.slane %v6148_v54, 4  ;;  %v6156_v32 = vrot.slane %v6155_v14, 4  ;;  %v6163_v56 = vrot.slane %v6162_v12, 4 }
 0x35b   : > { %v6139_v21 = vrot.slane %v11902_v15, 1  ;;  %v4493_v48 = vsel %vm2137_vm13, %v9047_v23, %v11790_v41  ;;  %v4971_v50 = vadd.f32 %v11767_v42, %v4903_v46  ;;  %v2054_v27 = vsel %vm2000_vm9, %v2051_v57, %v2053_v62 }
 0x35c   : > { %v6144_v33 = vrot.slane %v6143_v5, 2  ;;  %v6150_v3 = vmax.f32 %v6148_v54, %v6149_v58  ;;  %v6157_v2 = vmax.f32 %v6155_v14, %v6156_v32  ;;  %v6164_v29 = vmax.f32 %v6162_v12, %v6163_v56  ;;  %2119 = vrot.lane.b32.xlu1 %v2054_v27, %s9153_s14  ;;  %v11947_v54 = vpop.permute.xlu0 %4270  ;;  %v11959_v56 = vpop.permute.xlu2 %4430 }
 0x35d   : > { %v5035_v17 = vmax.f32 %v4971_v50, 0.0  ;;  %v2741_v10 = vshrl.u32 %v11708_v37, 16  ;;  %v13274_v49 = vrot.slane %v11545_v13, 1  ;;  %v4557_v41 = vsel %vm2202_vm14, %v4493_v48, %v11839_v38 }
 0x35e   : > { %v6145_v23 = vmax.f32 %v6143_v5, %v6144_v33  ;;  %v6151_v46 = vrot.slane %v6150_v3, 2  ;;  %v6158_v11 = vrot.slane %v6157_v2, 2  ;;  %v2745_v62 = vshll.u32 %v11927_v35, 16  ;;  %8770 = vmatmul.msk.bf16.gmra.mxu3 %vm3181_vm15, %v4557_v41  ;;  %v11963_v41 = vpop.permute.xlu1 %2859 }
 0x35f   : > { %v2052_v60 = vsel %vm2000_vm9, %v13274_v49, %v2051_v57  ;;  %v6165_v14 = vrot.slane %v6164_v29, 2  ;;  %v5209_v12 = vrot.slane %v5035_v17, 2  ;;  %v5210_v58 = vrot.slane %v5035_v17, 4 }
 0x360   : > { %v6169_v32 = vsel %vm5524_vm0, %v5035_v17, -inf  ;;  %v11952_v13 = vsel %vm7317_vm1, %v11872_v36, -inf  ;;  %v13276_v49 = vrot.slane %v11855_v52, 1  ;;  %v6126_v57 = vmax.f32 %v11885_v61, %v6125_v63  ;;  %2117 = vrot.lane.b32.xlu2 %v2052_v60, %s9153_s14  ;;  %v11965_v36 = vpop.f32.mrf.mxu3  ;;  %v4712_v60 = vpop.f32.mrf.mxu2 }
 0x361   : > { %13275 = vst [vmem:[#allocation33_spill] sm:$0xff] %v11952_v13  ;;  %v5211_v5 = vrot.slane %v5035_v17, 6  ;;  %v6133_v48 = vmax.f32 %v11888_v28, %v6132_v45  ;;  %v6140_v50 = vmax.f32 %v11902_v15, %v6139_v21  ;;  %v6152_v27 = vmax.f32 %v6150_v3, %v6151_v46  ;;  %v11974_v45 = vpop.f32.mrf.mxu0  ;;  %v3565_v21 = vpop.f32.mrf.mxu1 }
 0x362   : > { %v6119_v38 = vmax.f32 %v11855_v52, %v13276_v49  ;;  %v6170_v33 = vrot.slane %v6169_v32, 4  ;;  %13277 = vst [vmem:[#allocation34_spill] sm:$0xff] %v11965_v36  ;;  %v6176_v13 = vsel %vm5524_vm0, %v5209_v12, -inf  ;;  %v6183_v52 = vsel %vm5524_vm0, %v5210_v58, -inf }
 0x363   : > { %v2743_v61 = vor.u32 %v2741_v10, %v11750_v16  ;;  %v2747_v63 = vrot.slane %v2745_v62, 1  ;;  %v11972_v17 = vsel %vm7317_vm1, %v11874_v22, -inf  ;;  %v6146_v28 = vrot.slane %v6145_v23, 1 }
 0x364   : > { %v6159_v15 = vmax.f32 %v6157_v2, %v6158_v11  ;;  %v6166_v3 = vmax.f32 %v6164_v29, %v6165_v14  ;;  %v11978_v46 = vsel %vm7317_vm1, %v11877_v47, -inf  ;;  %v11981_v12 = vsel %vm7317_vm1, %v6119_v38, -inf  ;;  %v9048_v14 = vld [vmem:[#allocation2 + $0xc4] sm:$0xff] }
 0x365   : > { %v6171_v16 = vmax.f32 %v6169_v32, %v6170_v33  ;;  %v6190_v10 = vsel %vm5524_vm0, %v5211_v5, -inf  ;;  %v11985_v62 = vsel %vm7317_vm1, %v6126_v57, -inf  ;;  %v6153_v22 = vrot.slane %v6152_v27, 1 }
 0x366   : > { %13278 = vst [vmem:[#allocation35_spill] sm:$0xff] %v11985_v62  ;;  %v6177_v58 = vrot.slane %v6176_v13, 4  ;;  %v6184_v11 = vrot.slane %v6183_v52, 4  ;;  %v11988_v29 = vsel %vm7317_vm1, %v6133_v48, -inf  ;;  %v11991_v2 = vsel %vm7317_vm1, %v6140_v50, -inf  ;;  %v9049_v62 = vld [vmem:[#allocation2 + $0xa0] sm:$0xff] }
 0x367   : > { %13279 = vst [vmem:[#allocation36_spill] sm:$0xff] %v11988_v29  ;;  %v2748_v47 = vsel %vm1623_vm10, %v2743_v61, %v2747_v63  ;;  %v3082_v32 = vsel %vm2137_vm13, %v9048_v14, %v11850_v30  ;;  %v6147_v49 = vmax.f32 %v6145_v23, %v6146_v28  ;;  %v6160_v38 = vrot.slane %v6159_v15, 1 }
 0x368   : > { %13280 = vst [vmem:[#allocation37_spill] sm:$0xff] %v11991_v2  ;;  %v6167_v5 = vrot.slane %v6166_v3, 1  ;;  %v6191_v57 = vrot.slane %v6190_v10, 4  ;;  %2867 = vrot.lane.b32.xlu0 %v2748_v47, %s9154_s15  ;;  %v6172_v33 = vrot.slane %v6171_v16, 2  ;;  %v3146_v48 = vsel %vm2202_vm14, %v3082_v32, %v11862_v0  ;;  %v1951_v2 = vpop.permute.xlu0 %1950  ;;  %v12004_v23 = vpop.f32.mrf.mxu3 }
 0x369   : > { %v4208_v36 = vshrl.u32 %v11670_v34, 16  ;;  %v4212_v50 = vshll.u32 %v11859_v51, 16  ;;  %v6154_v61 = vmax.f32 %v6152_v27, %v6153_v22  ;;  %v6178_v63 = vmax.f32 %v6176_v13, %v6177_v58  ;;  %8592 = vmatmul.msk.bf16.gmra.mxu0 %vm3181_vm15, %v3146_v48  ;;  %v2112_v0 = vpop.permute.xlu2 %2111  ;;  %v3568_v14 = vpop.f32.mrf.mxu1 }
 0x36a   : > { %v6185_v29 = vmax.f32 %v6183_v52, %v6184_v11  ;;  %v2175_v30 = vsel %vm2137_vm13, %v9049_v62, %v11826_v39  ;;  %v3564_v34 = vadd.f32 %v11931_v25, %v11929_v4  ;;  %v6161_v13 = vmax.f32 %v6159_v15, %v6160_v38  ;;  %v12017_v62 = vpop.permute.xlu1 %4256  ;;  %v4714_v11 = vpop.f32.mrf.mxu2 }
 0x36b   : > { %v4210_v28 = vor.u32 %v4208_v36, %v11703_v44  ;;  %v4214_v47 = vrot.slane %v4212_v50, 1  ;;  %v2240_v51 = vsel %vm2202_vm14, %v2175_v30, %v11900_v18  ;;  %v6168_v27 = vmax.f32 %v6166_v3, %v6167_v5  ;;  %v3327_v44 = vpop.f32.mrf.mxu0 }
 0x36c   : > { %v12012_v52 = vsel %vm7317_vm1, %v6147_v49, -inf  ;;  %v12014_v39 = vmax.f32 %v6190_v10, %v6191_v57  ;;  %8628 = vmatmul.msk.bf16.gmra.mxu1 %vm3181_vm15, %v2240_v51  ;;  %v12019_v36 = vmax.f32 %v6171_v16, %v6172_v33  ;;  %v4836_v25 = vadd.f32 %v4712_v60, %v3564_v34  ;;  %v9050_v10 = vld [vmem:[#allocation2 + $0xf0] sm:$0xff] }
 0x36d   : > { %v4215_v4 = vsel %vm1623_vm10, %v4210_v28, %v4214_v47  ;;  %v1832_v18 = vshrl.u32 %v11720_v31, 16  ;;  %v12024_v15 = vsel %vm7317_vm1, %v6154_v61, -inf  ;;  %v6179_v3 = vrot.slane %v6178_v63, 2  ;;  %v9052_v47 = vld [vmem:[#allocation2 + $0xa8] sm:$0xff] }
 0x36e   : > { %v6186_v22 = vrot.slane %v6185_v29, 2  ;;  %4278 = vrot.lane.b32.xlu2 %v4215_v4, %s9154_s15  ;;  %v4479_v58 = vsel %vm2137_vm13, %v9050_v10, %v11913_v40  ;;  %v4904_v16 = vmul.f32 %v11747_v8, %v4836_v25  ;;  %v1836_v32 = vshll.u32 %v11910_v7, 16 }
 0x36f   : > { %v4543_v60 = vsel %vm2202_vm14, %v4479_v58, %v11916_v55  ;;  %v1834_v31 = vor.u32 %v1832_v18, %v11756_v6  ;;  %v12035_v49 = vsel %vm7317_vm1, %v6161_v13, -inf  ;;  %v12038_v38 = vsel %vm7317_vm1, %v6168_v27, -inf  ;;  %v9051_v6 = vld [vmem:[#allocation2 + $0x138] sm:$0xff] }
 0x370   : > { %v6193_v5 = vrot.slane %v12014_v39, 2  ;;  %v3566_v40 = vadd.f32 %v3565_v21, %v11974_v45  ;;  %8763 = vmatmul.msk.bf16.gmra.mxu2 %vm3181_vm15, %v4543_v60  ;;  %v6174_v57 = vrot.slane %v12019_v36, 1  ;;  %v4972_v55 = vadd.f32 %v11767_v42, %v4904_v16  ;;  %v3020_v51 = vpop.permute.xlu0 %3019  ;;  %v12064_v27 = vpop.f32.mrf.mxu3 }
 0x371   : > { %v1838_v33 = vrot.slane %v1836_v32, 1  ;;  %v4495_v7 = vsel %vm2137_vm13, %v9051_v6, %v11947_v54  ;;  %v12047_v48 = vmax.f32 %v6178_v63, %v6179_v3  ;;  %v2961_v30 = vrot.slane %v11927_v35, 1  ;;  %v9053_v63 = vld [vmem:[#allocation2 + $0xcc] sm:$0xff] }
 0x372   : > { %v4837_v50 = vadd.f32 %v4714_v11, %v3566_v40  ;;  %v4559_v61 = vsel %vm2202_vm14, %v4495_v7, %v11959_v56  ;;  %v12052_v45 = vmax.f32 %v6185_v29, %v6186_v22  ;;  %v5036_v21 = vmax.f32 %v4972_v55, 0.0  ;;  %v4273_v3 = vpop.permute.xlu2 %4272  ;;  %v4433_v58 = vpop.permute.xlu1 %4432 }
 0x373   : > { %v1839_v28 = vsel %vm1623_vm10, %v1834_v31, %v1838_v33  ;;  %8771 = vmatmul.msk.bf16.gmra.mxu3 %vm3181_vm15, %v4559_v61  ;;  %v2177_v34 = vsel %vm2137_vm13, %v9052_v47, %v1951_v2  ;;  %v3084_v13 = vsel %vm2137_vm13, %v9053_v63, %v11963_v41  ;;  %v13281_v56 = vrot.slane %v11708_v37, 1  ;;  %v3329_v11 = vpop.f32.mrf.mxu0  ;;  %v4717_v6 = vpop.f32.mrf.mxu2 }
 0x374   : > { %v4905_v54 = vmul.f32 %v11747_v8, %v4837_v50  ;;  %v2242_v29 = vsel %vm2202_vm14, %v2177_v34, %v2112_v0  ;;  %v5212_v4 = vrot.slane %v5036_v21, 2  ;;  %v5213_v25 = vrot.slane %v5036_v21, 4  ;;  %v3570_v7 = vpop.f32.mrf.mxu1 }
 0x375   : > { %v2962_v35 = vsel %vm2000_vm9, %v13281_v56, %v2961_v30  ;;  %v5214_v18 = vrot.slane %v5036_v21, 6  ;;  %v6197_v2 = vsel %vm5524_vm0, %v5036_v21, -inf  ;;  %v3569_v41 = vadd.f32 %v3568_v14, %v3327_v44 }
 0x376   : > { %v6198_v22 = vrot.slane %v6197_v2, 4  ;;  %1958 = vrot.lane.b32.xlu2 %v1839_v28, %s9154_s15  ;;  %v4973_v10 = vadd.f32 %v11767_v42, %v4905_v54  ;;  %v3148_v37 = vsel %vm2202_vm14, %v3084_v13, %v3020_v51  ;;  %v6204_v0 = vsel %vm5524_vm0, %v5212_v4, -inf }
 0x377   : > { %v6211_v16 = vsel %vm5524_vm0, %v5213_v25, -inf  ;;  %v6218_v60 = vsel %vm5524_vm0, %v5214_v18, -inf  ;;  %v4497_v31 = vsel %vm2137_vm13, %v11421_v24, %v4273_v3  ;;  %v6205_v40 = vrot.slane %v6204_v0, 4 }
 0x378   : > { %v6199_v32 = vmax.f32 %v6197_v2, %v6198_v22  ;;  %v6212_v55 = vrot.slane %v6211_v16, 4  ;;  %v6219_v33 = vrot.slane %v6218_v60, 4  ;;  %v5037_v44 = vmax.f32 %v4973_v10, 0.0 }
 0x379   : > { %v12075_v14 = vadd.f32 %v4717_v6, %v3569_v41  ;;  %v4561_v50 = vsel %vm2202_vm14, %v4497_v31, %v4433_v58  ;;  %v12078_v61 = vadd.f32 %v3570_v7, %v3329_v11  ;;  %v6206_v21 = vmax.f32 %v6204_v0, %v6205_v40  ;;  %8593 = vmatmul.msk.bf16.gmra.mxu0 %vm3181_vm15, %v3148_v37 }
 0x37a   : > { %v6200_v30 = vrot.slane %v6199_v32, 2  ;;  %v6213_v28 = vmax.f32 %v6211_v16, %v6212_v55  ;;  %v6220_v47 = vmax.f32 %v6218_v60, %v6219_v33  ;;  %v5215_v24 = vrot.slane %v5037_v44, 2  ;;  %v12087_v60 = vpop.f32.mrf.mxu3 }
 0x37b   : > { %v5216_v34 = vrot.slane %v5037_v44, 4  ;;  %v5217_v51 = vrot.slane %v5037_v44, 6  ;;  %v6225_v54 = vsel %vm5524_vm0, %v5037_v44, -inf  ;;  %v6207_v13 = vrot.slane %v6206_v21, 2 }
 0x37c   : > { %v6201_v63 = vmax.f32 %v6199_v32, %v6200_v30  ;;  %v6214_v56 = vrot.slane %v6213_v28, 2  ;;  %v6221_v4 = vrot.slane %v6220_v47, 2  ;;  %8629 = vmatmul.msk.bf16.gmra.mxu1 %vm3181_vm15, %v2242_v29  ;;  %v6226_v25 = vrot.slane %v6225_v54, 4 }
 0x37d   : > { %v6232_v18 = vsel %vm5524_vm0, %v5215_v24, -inf  ;;  %v6239_v2 = vsel %vm5524_vm0, %v5216_v34, -inf  ;;  %v6246_v3 = vsel %vm5524_vm0, %v5217_v51, -inf  ;;  %v6208_v10 = vmax.f32 %v6206_v21, %v6207_v13 }
 0x37e   : > { %v6202_v22 = vrot.slane %v6201_v63, 1  ;;  %v6215_v41 = vmax.f32 %v6213_v28, %v6214_v56  ;;  %v6222_v37 = vmax.f32 %v6220_v47, %v6221_v4  ;;  %3027 = vrot.lane.b32.xlu2 %v2962_v35, %s9153_s14  ;;  %v6227_v58 = vmax.f32 %v6225_v54, %v6226_v25 }
 0x37f   : > { %v6233_v11 = vrot.slane %v6232_v18, 4  ;;  %v6240_v0 = vrot.slane %v6239_v2, 4  ;;  %v6247_v16 = vrot.slane %v6246_v3, 4  ;;  %v6209_v31 = vrot.slane %v6208_v10, 1 }
 0x380   : > { %v6203_v29 = vmax.f32 %v6201_v63, %v6202_v22  ;;  %v6216_v32 = vrot.slane %v6215_v41, 1  ;;  %v6223_v40 = vrot.slane %v6222_v37, 1  ;;  %v6228_v55 = vrot.slane %v6227_v58, 2 }
 0x381   : > { %v6234_v33 = vmax.f32 %v6232_v18, %v6233_v11  ;;  %v6241_v6 = vmax.f32 %v6239_v2, %v6240_v0  ;;  %v6248_v7 = vmax.f32 %v6246_v3, %v6247_v16  ;;  %v6210_v44 = vmax.f32 %v6208_v10, %v6209_v31 }
 0x382   : > { %v6217_v30 = vmax.f32 %v6215_v41, %v6216_v32  ;;  %v6224_v21 = vmax.f32 %v6222_v37, %v6223_v40  ;;  %v7415_v28 = vsel %vm7317_vm1, %v6203_v29, -inf  ;;  %v6229_v47 = vmax.f32 %v6227_v58, %v6228_v55 }
 0x383   : > { %v7416_v35 = vmax.f32 %v11643_v1, %v7415_v28  ;;  %v6235_v24 = vrot.slane %v6234_v33, 2  ;;  %v6242_v34 = vrot.slane %v6241_v6, 2  ;;  %8772 = vmatmul.msk.bf16.gmra.mxu3 %vm3181_vm15, %v4561_v50  ;;  %v7418_v51 = vsel %vm7317_vm1, %v6210_v44, -inf  ;;  %v13282_v44 = vld [vmem:[#allocation22_spill] sm:$0xff] }
 0x384   : > { %v7421_v54 = vsel %vm7317_vm1, %v6217_v30, -inf  ;;  %v7424_v63 = vsel %vm7317_vm1, %v6224_v21, -inf  ;;  %v6249_v13 = vrot.slane %v6248_v7, 2  ;;  %v7419_v56 = vmax.f32 %v11659_v26, %v7418_v51  ;;  %v13283_v51 = vld [vmem:[#allocation23_spill] sm:$0xff] }
 0x385   : > { %v7422_v4 = vmax.f32 %v11662_v20, %v7421_v54  ;;  %v7425_v25 = vmax.f32 %v11665_v59, %v7424_v63  ;;  %v7734_v18 = vpack.c.bf16 %v7416_v35, %v7416_v35  ;;  %v6230_v1 = vrot.slane %v6229_v47, 1  ;;  %v12100_v59 = vpop.f32.mrf.mxu3  ;;  %v4417_v35 = vpop.permute.xlu0 %4416  ;;  %v13284_v63 = vld [vmem:[#allocation24_spill] sm:$0xff] }
 0x386   : > { %v6236_v2 = vmax.f32 %v6234_v33, %v6235_v24  ;;  %v6243_v3 = vmax.f32 %v6241_v6, %v6242_v34  ;;  %v6250_v22 = vmax.f32 %v6248_v7, %v6249_v13  ;;  %v7735_v10 = vpack.c.bf16 %v7419_v56, %v7419_v56  ;;  %v4719_v6 = vpop.f32.mrf.mxu2  ;;  %v13285_v56 = vld [vmem:[#allocation25_spill] sm:$0xff] }
 0x387   : > { %v7736_v50 = vpack.c.bf16 %v7422_v4, %v7422_v4  ;;  %v7737_v41 = vpack.c.bf16 %v7425_v25, %v7425_v25  ;;  %v7990_v37 = vunpack.c.l.b16 %v7734_v18  ;;  %v6231_v58 = vmax.f32 %v6229_v47, %v6230_v1  ;;  %v13286_v25 = vld [vmem:[#allocation11_spill] sm:$0xff] }
 0x388   : > { %v6237_v11 = vrot.slane %v6236_v2, 1  ;;  %v6244_v0 = vrot.slane %v6243_v3, 1  ;;  %v6251_v16 = vrot.slane %v6250_v22, 1  ;;  %v7991_v29 = vunpack.c.l.b16 %v7735_v10 }
 0x389   : > { %v7992_v31 = vunpack.c.l.b16 %v7736_v50  ;;  %v7993_v26 = vunpack.c.l.b16 %v7737_v41  ;;  %v4906_v20 = vmul.f32 %v11747_v8, %v12075_v14  ;;  %v7427_v33 = vsel %vm7317_vm1, %v6231_v58, -inf }
 0x38a   : > { %v6238_v32 = vmax.f32 %v6236_v2, %v6237_v11  ;;  %v6245_v40 = vmax.f32 %v6243_v3, %v6244_v0  ;;  %v6252_v55 = vmax.f32 %v6250_v22, %v6251_v16  ;;  %v8121_v7 = vsel %vm8086_vm2, %v7991_v29, %v7990_v37  ;;  %v1953_v37 = vpop.permute.xlu2 %1952 }
 0x38b   : > { %v7428_v30 = vmax.f32 %v13282_v44, %v7427_v33  ;;  %v4974_v21 = vadd.f32 %v11767_v42, %v4906_v20  ;;  %v4839_v28 = vadd.f32 %v4719_v6, %v12078_v61  ;;  %v8122_v47 = vsel %vm8088_vm3, %v7992_v31, %v8121_v7 }
 0x38c   : > { %v7430_v14 = vsel %vm7317_vm1, %v6238_v32, -inf  ;;  %v7433_v24 = vsel %vm7317_vm1, %v6245_v40, -inf  ;;  %v7436_v34 = vsel %vm7317_vm1, %v6252_v55, -inf  ;;  %v4481_v18 = vsel %vm2137_vm13, %v13286_v25, %v12017_v62 }
 0x38d   : > { %v7431_v54 = vmax.f32 %v13283_v51, %v7430_v14  ;;  %v7434_v13 = vmax.f32 %v13284_v63, %v7433_v24  ;;  %v7437_v4 = vmax.f32 %v13285_v56, %v7436_v34  ;;  %v8123_v61 = vsel %vm8090_vm4, %v7993_v26, %v8122_v47  ;;  %v12123_v32 = vpop.f32.mrf.mxu3  ;;  %v13287_v51 = vld [vmem:[#allocation15_spill] sm:$0xff] }
 0x38e   : > { %v7738_v1 = vpack.c.bf16 %v7428_v30, %v7428_v30  ;;  %v5038_v2 = vmax.f32 %v4974_v21, 0.0  ;;  %v4545_v3 = vsel %vm2202_vm14, %v4481_v18, %v4417_v35  ;;  %v4907_v41 = vmul.f32 %v11747_v8, %v4839_v28  ;;  %v2114_v30 = vpop.permute.xlu1 %2113 }
 0x38f   : > { %v7739_v22 = vpack.c.bf16 %v7431_v54, %v7431_v54  ;;  %v7740_v10 = vpack.c.bf16 %v7434_v13, %v7434_v13  ;;  %v7741_v50 = vpack.c.bf16 %v7437_v4, %v7437_v4  ;;  %8764 = vmatmul.msk.bf16.gmra.mxu2 %vm3181_vm15, %v4545_v3  ;;  %v2179_v54 = vsel %vm2137_vm13, %v13287_v51, %v1953_v37 }
 0x390   : > { %v7994_v58 = vunpack.c.l.b16 %v7738_v1  ;;  %v5218_v11 = vrot.slane %v5038_v2, 2  ;;  %v5219_v0 = vrot.slane %v5038_v2, 4  ;;  %v5220_v16 = vrot.slane %v5038_v2, 6 }
 0x391   : > { %v7995_v29 = vunpack.c.l.b16 %v7739_v22  ;;  %v7996_v62 = vunpack.c.l.b16 %v7740_v10  ;;  %v7997_v31 = vunpack.c.l.b16 %v7741_v50  ;;  %v6253_v26 = vsel %vm5524_vm0, %v5038_v2, -inf  ;;  %v2862_v10 = vpop.permute.xlu0 %2861 }
 0x392   : > { %v8124_v20 = vsel %vm8092_vm5, %v7994_v58, %v8123_v61  ;;  %v6254_v40 = vrot.slane %v6253_v26, 4  ;;  %v6260_v55 = vsel %vm5524_vm0, %v5218_v11, -inf  ;;  %v6267_v8 = vsel %vm5524_vm0, %v5219_v0, -inf }
 0x393   : > { %v8125_v33 = vsel %vm8094_vm6, %v7995_v29, %v8124_v20  ;;  %v6261_v6 = vrot.slane %v6260_v55, 4  ;;  %v6268_v7 = vrot.slane %v6267_v8, 4  ;;  %v6274_v44 = vsel %vm5524_vm0, %v5220_v16, -inf }
 0x394   : > { %v8126_v21 = vsel %vm8096_vm7, %v7996_v62, %v8125_v33  ;;  %v6255_v28 = vmax.f32 %v6253_v26, %v6254_v40  ;;  %v6275_v35 = vrot.slane %v6274_v44, 4  ;;  %v4975_v47 = vadd.f32 %v11767_v42, %v4907_v41 }
 0x395   : > { %v8127_v14 = vsel %vm8098_vm8, %v7997_v31, %v8126_v21  ;;  %v6262_v24 = vmax.f32 %v6260_v55, %v6261_v6  ;;  %v6269_v34 = vmax.f32 %v6267_v8, %v6268_v7  ;;  %v12137_v25 = vmax.f32 %v12014_v39, %v6193_v5  ;;  %v3022_v39 = vpop.permute.xlu2 %3021  ;;  %v12146_v20 = vpop.f32.mrf.mxu3 }
 0x396   : > { %v8209_v63 = vpack.c.b16 %v8127_v14, %v8127_v14  ;;  %v6256_v13 = vrot.slane %v6255_v28, 2  ;;  %v6276_v56 = vmax.f32 %v6274_v44, %v6275_v35  ;;  %v5039_v4 = vmax.f32 %v4975_v47, 0.0  ;;  %v12149_v21 = vpop.permute.xlu1 %4274 }
 0x397   : > { %v6263_v18 = vrot.slane %v6262_v24, 2  ;;  %v6270_v61 = vrot.slane %v6269_v34, 2  ;;  %v2244_v42 = vsel %vm2202_vm14, %v2179_v54, %v2114_v30 }
 0x398   : > { %8242 = vst.msk [vmem:[%s9280_s9 + $0x10] sm:$0xf] %vm8237_vm11, %v8209_v63  ;;  %v6257_v1 = vmax.f32 %v6255_v28, %v6256_v13  ;;  %v6277_v2 = vrot.slane %v6276_v56, 2  ;;  %v5221_v3 = vrot.slane %v5039_v4, 2  ;;  %v5222_v22 = vrot.slane %v5039_v4, 4  ;;  %8630 = vmatmul.msk.bf16.gmra.mxu1 %vm3181_vm15, %v2244_v42 }
 0x399   : > { %v6264_v50 = vmax.f32 %v6262_v24, %v6263_v18  ;;  %v6271_v41 = vmax.f32 %v6269_v34, %v6270_v61  ;;  %v5223_v37 = vrot.slane %v5039_v4, 6  ;;  %v6281_v58 = vsel %vm5524_vm0, %v5039_v4, -inf  ;;  %v3332_v24 = vpop.f32.mrf.mxu0  ;;  %v13288_v34 = vld [vmem:[#allocation12_spill] sm:$0xff]  ;;  %v13289_v4 = vld [vmem:[#allocation26_spill] sm:$0xff]  ;;  %v13290_v61 = vld [vmem:[#allocation27_spill] sm:$0xff] }
 0x39a   : > { %v6258_v5 = vrot.slane %v6257_v1, 1  ;;  %v6278_v11 = vmax.f32 %v6276_v56, %v6277_v2  ;;  %v6282_v0 = vrot.slane %v6281_v58, 4  ;;  %v6288_v16 = vsel %vm5524_vm0, %v5221_v3, -inf  ;;  %v3573_v56 = vpop.f32.mrf.mxu1 }
 0x39b   : > { %v6265_v29 = vrot.slane %v6264_v50, 1  ;;  %v6272_v62 = vrot.slane %v6271_v41, 1  ;;  %v6289_v31 = vrot.slane %v6288_v16, 4  ;;  %v6295_v26 = vsel %vm5524_vm0, %v5222_v22, -inf }
 0x39c   : > { %v6259_v40 = vmax.f32 %v6257_v1, %v6258_v5  ;;  %v6279_v55 = vrot.slane %v6278_v11, 1  ;;  %v6283_v8 = vmax.f32 %v6281_v58, %v6282_v0  ;;  %v6296_v33 = vrot.slane %v6295_v26, 4  ;;  %v4722_v0 = vpop.f32.mrf.mxu2 }
 0x39d   : > { %v6266_v6 = vmax.f32 %v6264_v50, %v6265_v29  ;;  %v6273_v7 = vmax.f32 %v6271_v41, %v6272_v62  ;;  %v6290_v44 = vmax.f32 %v6288_v16, %v6289_v31  ;;  %v6302_v30 = vsel %vm5524_vm0, %v5223_v37, -inf  ;;  %v4259_v16 = vpop.permute.xlu0 %4258 }
 0x39e   : > { %v6280_v28 = vmax.f32 %v6278_v11, %v6279_v55  ;;  %v7439_v35 = vsel %vm7317_vm1, %v6259_v40, -inf  ;;  %v6284_v47 = vrot.slane %v6283_v8, 2  ;;  %v6297_v14 = vmax.f32 %v6295_v26, %v6296_v33  ;;  %v9054_v26 = vld [vmem:[#allocation2 + $0xd8] sm:$0xff]   ;;  %v4419_v55 = vpop.permute.xlu2 %4418 }
 0x39f   : > { %v7440_v51 = vmax.f32 %v13288_v34, %v7439_v35  ;;  %v7442_v54 = vsel %vm7317_vm1, %v6266_v6, -inf  ;;  %v7445_v63 = vsel %vm7317_vm1, %v6273_v7, -inf  ;;  %v6291_v13 = vrot.slane %v6290_v44, 2  ;;  %v12160_v7 = vpop.f32.mrf.mxu3 }
 0x3a0   : > { %v7443_v18 = vmax.f32 %v13289_v4, %v7442_v54  ;;  %v7446_v42 = vmax.f32 %v13290_v61, %v7445_v63  ;;  %v7448_v1 = vsel %vm7317_vm1, %v6280_v28, -inf  ;;  %v6285_v2 = vmax.f32 %v6283_v8, %v6284_v47 }
 0x3a1   : > { %v7449_v3 = vmax.f32 %v11833_v19, %v7448_v1  ;;  %v7742_v22 = vpack.c.bf16 %v7440_v51, %v7440_v51  ;;  %v6292_v50 = vmax.f32 %v6290_v44, %v6291_v13  ;;  %v6298_v41 = vrot.slane %v6297_v14, 2  ;;  %v3334_v61 = vpop.f32.mrf.mxu0 }
 0x3a2   : > { %v7743_v37 = vpack.c.bf16 %v7443_v18, %v7443_v18  ;;  %v7744_v58 = vpack.c.bf16 %v7446_v42, %v7446_v42  ;;  %v6286_v5 = vrot.slane %v6285_v2, 1  ;;  %v6303_v11 = vrot.slane %v6302_v30, 4 }
 0x3a3   : > { %v7998_v29 = vunpack.c.l.b16 %v7742_v22  ;;  %v6293_v62 = vrot.slane %v6292_v50, 1  ;;  %v6299_v31 = vmax.f32 %v6297_v14, %v6298_v41  ;;  %v3086_v40 = vsel %vm2137_vm13, %v9054_v26, %v2862_v10 }
 0x3a4   : > { %v7999_v33 = vunpack.c.l.b16 %v7743_v37  ;;  %v8000_v8 = vunpack.c.l.b16 %v7744_v58  ;;  %v6287_v6 = vmax.f32 %v6285_v2, %v6286_v5  ;;  %v6304_v19 = vmax.f32 %v6302_v30, %v6303_v11  ;;  %v9056_v58 = vld [vmem:[#allocation2 + $0x104] sm:$0xff]  ;;  %v4724_v26 = vpop.f32.mrf.mxu2 }
 0x3a5   : > { %v7745_v44 = vpack.c.bf16 %v7449_v3, %v7449_v3  ;;  %v6294_v28 = vmax.f32 %v6292_v50, %v6293_v62  ;;  %v6300_v35 = vrot.slane %v6299_v31, 1  ;;  %v3574_v47 = vadd.f32 %v3573_v56, %v3332_v24  ;;  %v12173_v24 = vpop.permute.xlu1 %1954  ;;  %v12183_v50 = vld [vmem:[%s13160_s2] ss:$0 sm:$0xff] }
 0x3a6   : > { %v8128_v34 = vsel %vm8086_vm2, %v7999_v33, %v7998_v29  ;;  %v6305_v51 = vrot.slane %v6304_v19, 2  ;;  %v7451_v54 = vsel %vm7317_vm1, %v6287_v6, -inf  ;;  %v3150_v14 = vsel %vm2202_vm14, %v3086_v40, %v3022_v39  ;;  %v4435_v40 = vpop.permute.xlu0 %4434 }
 0x3a7   : > { %v12168_v10 = vmax.f32 %v12019_v36, %v6174_v57  ;;  %v6301_v63 = vmax.f32 %v6299_v31, %v6300_v35  ;;  %v7452_v30 = vmax.f32 %v11843_v43, %v7451_v54  ;;  %v7454_v13 = vsel %vm7317_vm1, %v6294_v28, -inf  ;;  %8594 = vmatmul.msk.bf16.gmra.mxu0 %vm3181_vm15, %v3150_v14  ;;  %v3575_v43 = vpop.f32.mrf.mxu1  ;;  %v13291_v14 = vld [vmem:[#allocation30_spill] sm:$0xff] }
 0x3a8   : > { %v8129_v56 = vsel %vm8088_vm3, %v8000_v8, %v8128_v34  ;;  %v6306_v4 = vmax.f32 %v6304_v19, %v6305_v51  ;;  %v7455_v18 = vmax.f32 %v11846_v53, %v7454_v13  ;;  %v4840_v39 = vadd.f32 %v4722_v0, %v3574_v47  ;;  %v9058_v8 = vld [vmem:[#allocation2 + $0x14c] sm:$0xff]  ;;  %v12200_v51 = vpop.f32.mrf.mxu3 }
 0x3a9   : > { %v6181_v42 = vrot.slane %v12047_v48, 1  ;;  %v8001_v36 = vunpack.c.l.b16 %v7745_v44  ;;  %v7457_v57 = vsel %vm7317_vm1, %v6301_v63, -inf  ;;  %v7746_v1 = vpack.c.bf16 %v7452_v30, %v7452_v30  ;;  %v2864_v44 = vpop.permute.xlu2 %2863 }
 0x3aa   : > { %v6307_v2 = vrot.slane %v6306_v4, 1  ;;  %v7458_v3 = vmax.f32 %v11867_v9, %v7457_v57  ;;  %v7747_v22 = vpack.c.bf16 %v7455_v18, %v7455_v18  ;;  %v4908_v53 = vmul.f32 %v12183_v50, %v4840_v39  ;;  %v12191_v9 = vld [vmem:[%s13161_s3] ss:$0 sm:$0xff] }
 0x3ab   : > { %v8130_v41 = vsel %vm8090_vm4, %v8001_v36, %v8129_v56  ;;  %v8002_v37 = vunpack.c.l.b16 %v7746_v1  ;;  %v4483_v5 = vsel %vm2137_vm13, %v9056_v58, %v4259_v16  ;;  %v3576_v11 = vadd.f32 %v3575_v43, %v3334_v61 }
 0x3ac   : > { %v6308_v0 = vmax.f32 %v6306_v4, %v6307_v2  ;;  %v7748_v29 = vpack.c.bf16 %v7458_v3, %v7458_v3  ;;  %v8003_v62 = vunpack.c.l.b16 %v7747_v22  ;;  %v4976_v31 = vadd.f32 %v12191_v9, %v4908_v53  ;;  %v9059_v4 = vld [vmem:[#allocation2 + $0xe0] sm:$0xff] }
 0x3ad   : > { %v8131_v33 = vsel %vm8092_vm5, %v8002_v37, %v8130_v41  ;;  %v4499_v6 = vsel %vm2137_vm13, %v9058_v8, %v12149_v21  ;;  %v4841_v16 = vadd.f32 %v4724_v26, %v3576_v11  ;;  %v4547_v19 = vsel %vm2202_vm14, %v4483_v5, %v4419_v55  ;;  %v3024_v1 = vpop.permute.xlu1 %3023  ;;  %v3337_v11 = vpop.f32.mrf.mxu0 }
 0x3ae   : > { %v7460_v28 = vsel %vm7317_vm1, %v6308_v0, -inf  ;;  %v8004_v35 = vunpack.c.l.b16 %v7748_v29  ;;  %v8132_v47 = vsel %vm8094_vm6, %v8003_v62, %v8131_v33  ;;  %v5040_v34 = vmax.f32 %v4976_v31, 0.0  ;;  %8765 = vmatmul.msk.bf16.gmra.mxu2 %vm3181_vm15, %v4547_v19 }
 0x3af   : > { %v6188_v54 = vrot.slane %v12052_v45, 1  ;;  %v7461_v63 = vmax.f32 %v13291_v14, %v7460_v28  ;;  %v4909_v21 = vmul.f32 %v12183_v50, %v4841_v16  ;;  %v4563_v30 = vsel %vm2202_vm14, %v4499_v6, %v4435_v40  ;;  %v3578_v43 = vpop.f32.mrf.mxu1 }
 0x3b0   : > { %v5224_v55 = vrot.slane %v5040_v34, 2  ;;  %v5225_v13 = vrot.slane %v5040_v34, 4  ;;  %v5226_v56 = vrot.slane %v5040_v34, 6  ;;  %v3088_v18 = vsel %vm2137_vm13, %v9059_v4, %v2864_v44  ;;  %8773 = vmatmul.msk.bf16.gmra.mxu3 %vm3181_vm15, %v4563_v30 }
 0x3b1   : > { %v7749_v39 = vpack.c.bf16 %v7461_v63, %v7461_v63  ;;  %v8133_v61 = vsel %vm8096_vm7, %v8004_v35, %v8132_v47  ;;  %v6309_v36 = vsel %vm5524_vm0, %v5040_v34, -inf  ;;  %v4977_v57 = vadd.f32 %v12191_v9, %v4909_v21 }
 0x3b2   : > { %v6310_v2 = vrot.slane %v6309_v36, 4  ;;  %v6316_v3 = vsel %vm5524_vm0, %v5224_v55, -inf  ;;  %v6323_v22 = vsel %vm5524_vm0, %v5225_v13, -inf  ;;  %v6330_v53 = vsel %vm5524_vm0, %v5226_v56, -inf  ;;  %v12225_v55 = vpop.f32.mrf.mxu3 }
 0x3b3   : > { %v8005_v41 = vunpack.c.l.b16 %v7749_v39  ;;  %v6317_v37 = vrot.slane %v6316_v3, 4  ;;  %v6324_v58 = vrot.slane %v6323_v22, 4  ;;  %v6331_v5 = vrot.slane %v6330_v53, 4 }
 0x3b4   : > { %v6311_v0 = vmax.f32 %v6309_v36, %v6310_v2  ;;  %v5041_v29 = vmax.f32 %v4977_v57, 0.0  ;;  %v3152_v62 = vsel %vm2202_vm14, %v3088_v18, %v3024_v1  ;;  %v12216_v31 = vadd.f32 %v3578_v43, %v3337_v11 }
 0x3b5   : > { %v8134_v26 = vsel %vm8098_vm8, %v8005_v41, %v8133_v61  ;;  %v6318_v40 = vmax.f32 %v6316_v3, %v6317_v37  ;;  %v6325_v33 = vmax.f32 %v6323_v22, %v6324_v58  ;;  %v6332_v8 = vmax.f32 %v6330_v53, %v6331_v5  ;;  %v2116_v58 = vpop.permute.xlu0 %2115 }
 0x3b6   : > { %v8210_v6 = vpack.c.b16 %v8134_v26, %v8134_v26  ;;  %v6312_v16 = vrot.slane %v6311_v0, 2  ;;  %v5227_v19 = vrot.slane %v5041_v29, 2  ;;  %v5228_v44 = vrot.slane %v5041_v29, 4 }
 0x3b7   : > { %v6319_v28 = vrot.slane %v6318_v40, 2  ;;  %v6326_v35 = vrot.slane %v6325_v33, 2  ;;  %v6333_v47 = vrot.slane %v6332_v8, 2  ;;  %v5229_v34 = vrot.slane %v5041_v29, 6  ;;  %8595 = vmatmul.msk.bf16.gmra.mxu0 %vm3181_vm15, %v3152_v62 }
 0x3b8   : > { %8243 = vst.msk [vmem:[%s9280_s9 + $0x14] sm:$0xf] %vm8237_vm11, %v8210_v6  ;;  %v6313_v14 = vmax.f32 %v6311_v0, %v6312_v16  ;;  %v6337_v63 = vsel %vm5524_vm0, %v5041_v29, -inf  ;;  %v6344_v21 = vsel %vm5524_vm0, %v5227_v19, -inf  ;;  %v6351_v30 = vsel %vm5524_vm0, %v5228_v44, -inf  ;;  %v13292_v6 = vld [vmem:[#allocation31_spill] sm:$0xff] }
 0x3b9   : > { %v6320_v13 = vmax.f32 %v6318_v40, %v6319_v28  ;;  %v6327_v56 = vmax.f32 %v6325_v33, %v6326_v35  ;;  %v6334_v4 = vmax.f32 %v6332_v8, %v6333_v47  ;;  %v6338_v18 = vrot.slane %v6337_v63, 4  ;;  %v4261_v8 = vpop.permute.xlu2 %4260  ;;  %v13293_v35 = vld [vmem:[#allocation33_spill] sm:$0xff] }
 0x3ba   : > { %v6314_v39 = vrot.slane %v6313_v14, 1  ;;  %v6345_v61 = vrot.slane %v6344_v21, 4  ;;  %v6352_v36 = vrot.slane %v6351_v30, 4  ;;  %v6358_v57 = vsel %vm5524_vm0, %v5229_v34, -inf }
 0x3bb   : > { %v6321_v1 = vrot.slane %v6320_v13, 1  ;;  %v6328_v43 = vrot.slane %v6327_v56, 1  ;;  %v6335_v2 = vrot.slane %v6334_v4, 1  ;;  %v6339_v3 = vmax.f32 %v6337_v63, %v6338_v18 }
 0x3bc   : > { %v6315_v22 = vmax.f32 %v6313_v14, %v6314_v39  ;;  %v6346_v53 = vmax.f32 %v6344_v21, %v6345_v61  ;;  %v6353_v41 = vmax.f32 %v6351_v30, %v6352_v36  ;;  %v6359_v37 = vrot.slane %v6358_v57, 4 }
 0x3bd   : > { %v6322_v5 = vmax.f32 %v6320_v13, %v6321_v1  ;;  %v6329_v11 = vmax.f32 %v6327_v56, %v6328_v43  ;;  %v6336_v0 = vmax.f32 %v6334_v4, %v6335_v2  ;;  %v6340_v29 = vrot.slane %v6339_v3, 2  ;;  %v4727_v4 = vpop.f32.mrf.mxu2 }
 0x3be   : > { %v7463_v62 = vsel %vm7317_vm1, %v6315_v22, -inf  ;;  %v6347_v26 = vrot.slane %v6346_v53, 2  ;;  %v6354_v40 = vrot.slane %v6353_v41, 2  ;;  %v6360_v33 = vmax.f32 %v6358_v57, %v6359_v37  ;;  %v12236_v57 = vpop.f32.mrf.mxu3  ;;  %v9060_v22 = vld [vmem:[#allocation2 + $0xbc] sm:$0xff] }
 0x3bf   : > { %v7464_v16 = vmax.f32 %v13292_v6, %v7463_v62  ;;  %v7466_v19 = vsel %vm7317_vm1, %v6322_v5, -inf  ;;  %v7469_v44 = vsel %vm7317_vm1, %v6329_v11, -inf  ;;  %v7472_v28 = vsel %vm7317_vm1, %v6336_v0, -inf  ;;  %v4277_v6 = vpop.permute.xlu0 %4276 }
 0x3c0   : > { %v7467_v47 = vmax.f32 %v13293_v35, %v7466_v19  ;;  %v7470_v34 = vmax.f32 %v11972_v17, %v7469_v44  ;;  %v7473_v14 = vmax.f32 %v11978_v46, %v7472_v28  ;;  %v6341_v63 = vmax.f32 %v6339_v3, %v6340_v29  ;;  %v9061_v44 = vld [vmem:[#allocation2 + $0x10c] sm:$0xff] }
 0x3c1   : > { %v7750_v21 = vpack.c.bf16 %v7464_v16, %v7464_v16  ;;  %v6348_v30 = vmax.f32 %v6346_v53, %v6347_v26  ;;  %v6355_v13 = vmax.f32 %v6353_v41, %v6354_v40  ;;  %v6361_v56 = vrot.slane %v6360_v33, 2 }
 0x3c2   : > { %v7751_v18 = vpack.c.bf16 %v7467_v47, %v7467_v47  ;;  %v7752_v39 = vpack.c.bf16 %v7470_v34, %v7470_v34  ;;  %v7753_v61 = vpack.c.bf16 %v7473_v14, %v7473_v14  ;;  %v6342_v36 = vrot.slane %v6341_v63, 1  ;;  %v13294_v47 = vld [vmem:[#allocation35_spill] sm:$0xff] }
 0x3c3   : > { %v6349_v1 = vrot.slane %v6348_v30, 1  ;;  %v6356_v43 = vrot.slane %v6355_v13, 1  ;;  %v6362_v2 = vmax.f32 %v6360_v33, %v6361_v56  ;;  %v2181_v17 = vsel %vm2137_vm13, %v9060_v22, %v12173_v24  ;;  %v4421_v33 = vpop.permute.xlu1 %4420  ;;  %v3339_v56 = vpop.f32.mrf.mxu0 }
 0x3c4   : > { %v8006_v46 = vunpack.c.l.b16 %v7750_v21  ;;  %v8007_v3 = vunpack.c.l.b16 %v7751_v18  ;;  %v8008_v37 = vunpack.c.l.b16 %v7752_v39  ;;  %v6343_v53 = vmax.f32 %v6341_v63, %v6342_v36  ;;  %v4437_v63 = vpop.permute.xlu2 %4436  ;;  %v13295_v21 = vld [vmem:[#allocation36_spill] sm:$0xff] }
 0x3c5   : > { %v6350_v41 = vmax.f32 %v6348_v30, %v6349_v1  ;;  %v6357_v5 = vmax.f32 %v6355_v13, %v6356_v43  ;;  %v6363_v11 = vrot.slane %v6362_v2, 1  ;;  %v4842_v0 = vadd.f32 %v4727_v4, %v12216_v31  ;;  %v3580_v31 = vpop.f32.mrf.mxu1  ;;  %v13296_v4 = vld [vmem:[#allocation37_spill] sm:$0xff] }
 0x3c6   : > { %v8009_v29 = vunpack.c.l.b16 %v7753_v61  ;;  %v8135_v62 = vsel %vm8086_vm2, %v8007_v3, %v8006_v46  ;;  %v7475_v26 = vsel %vm7317_vm1, %v6343_v53, -inf  ;;  %v2246_v40 = vsel %vm2202_vm14, %v2181_v17, %v2116_v58  ;;  %v4772_v1 = vpop.f32.mrf.mxu3  ;;  %v4729_v17 = vpop.f32.mrf.mxu2  ;;  %v9062_v46 = vld [vmem:[#allocation2 + $0x154] sm:$0xff] }
 0x3c7   : > { %v6364_v16 = vmax.f32 %v6362_v2, %v6363_v11  ;;  %v7476_v24 = vmax.f32 %v11981_v12, %v7475_v26  ;;  %v7478_v19 = vsel %vm7317_vm1, %v6350_v41, -inf  ;;  %v4485_v28 = vsel %vm2137_vm13, %v9061_v44, %v4261_v8  ;;  %8631 = vmatmul.msk.bf16.gmra.mxu1 %vm3181_vm15, %v2246_v40  ;;  %v13297_v26 = vld [vmem:[#allocation16_spill] sm:$0xff] }
 0x3c8   : > { %v8136_v35 = vsel %vm8088_vm3, %v8008_v37, %v8135_v62  ;;  %v7479_v34 = vmax.f32 %v13294_v47, %v7478_v19  ;;  %v7481_v14 = vsel %vm7317_vm1, %v6357_v5, -inf  ;;  %v4910_v58 = vmul.f32 %v12183_v50, %v4842_v0 }
 0x3c9   : > { %v7482_v30 = vmax.f32 %v13295_v21, %v7481_v14  ;;  %v7484_v12 = vsel %vm7317_vm1, %v6364_v16, -inf  ;;  %v7754_v13 = vpack.c.bf16 %v7476_v24, %v7476_v24  ;;  %v4549_v8 = vsel %vm2202_vm14, %v4485_v28, %v4421_v33  ;;  %v1957_v14 = vpop.permute.xlu0 %1956 }
 0x3ca   : > { %v7485_v18 = vmax.f32 %v13296_v4, %v7484_v12  ;;  %v7755_v39 = vpack.c.bf16 %v7479_v34, %v7479_v34  ;;  %v4978_v61 = vadd.f32 %v12191_v9, %v4910_v58  ;;  %v3581_v36 = vadd.f32 %v3580_v31, %v3339_v56  ;;  %8766 = vmatmul.msk.bf16.gmra.mxu2 %vm3181_vm15, %v4549_v8 }
 0x3cb   : > { %v8137_v43 = vsel %vm8090_vm4, %v8009_v29, %v8136_v35  ;;  %v7756_v2 = vpack.c.bf16 %v7482_v30, %v7482_v30  ;;  %v8010_v22 = vunpack.c.l.b16 %v7754_v13  ;;  %v4501_v3 = vsel %vm2137_vm13, %v9062_v46, %v4277_v6 }
 0x3cc   : > { %v7757_v37 = vpack.c.bf16 %v7485_v18, %v7485_v18  ;;  %v8011_v53 = vunpack.c.l.b16 %v7755_v39  ;;  %v5042_v41 = vmax.f32 %v4978_v61, 0.0  ;;  %v4843_v5 = vadd.f32 %v4729_v17, %v3581_v36  ;;  %v2118_v4 = vpop.permute.xlu2 %2117  ;;  %v9063_v36 = vld [vmem:[#allocation2 + $0xc4] sm:$0xff] }
 0x3cd   : > { %v8012_v11 = vunpack.c.l.b16 %v7756_v2  ;;  %v8138_v0 = vsel %vm8092_vm5, %v8010_v22, %v8137_v43  ;;  %v4565_v62 = vsel %vm2202_vm14, %v4501_v3, %v4437_v63  ;;  %v4860_v40 = vadd.f32 %v4772_v1, %v13297_v26 }
 0x3ce   : > { %v8013_v33 = vunpack.c.l.b16 %v7757_v37  ;;  %v8139_v29 = vsel %vm8094_vm6, %v8011_v53, %v8138_v0  ;;  %v5230_v16 = vrot.slane %v5042_v41, 2  ;;  %v5231_v24 = vrot.slane %v5042_v41, 4  ;;  %8774 = vmatmul.msk.bf16.gmra.mxu3 %vm3181_vm15, %v4565_v62 }
 0x3cf   : > { %v8140_v6 = vsel %vm8096_vm7, %v8012_v11, %v8139_v29  ;;  %v5232_v19 = vrot.slane %v5042_v41, 6  ;;  %v6365_v44 = vsel %vm5524_vm0, %v5042_v41, -inf  ;;  %v4911_v28 = vmul.f32 %v12183_v50, %v4843_v5 }
 0x3d0   : > { %v8141_v31 = vsel %vm8098_vm8, %v8013_v33, %v8140_v6  ;;  %v6366_v35 = vrot.slane %v6365_v44, 4  ;;  %v6372_v47 = vsel %vm5524_vm0, %v5230_v16, -inf  ;;  %v6379_v34 = vsel %vm5524_vm0, %v5231_v24, -inf }
 0x3d1   : > { %v8211_v58 = vpack.c.b16 %v8141_v31, %v8141_v31  ;;  %v6373_v63 = vrot.slane %v6372_v47, 4  ;;  %v6380_v21 = vrot.slane %v6379_v34, 4  ;;  %v6386_v30 = vsel %vm5524_vm0, %v5232_v19, -inf }
 0x3d2   : > { %v6195_v12 = vrot.slane %v12137_v25, 1  ;;  %v6367_v13 = vmax.f32 %v6365_v44, %v6366_v35  ;;  %v6387_v56 = vrot.slane %v6386_v30, 4  ;;  %v4979_v8 = vadd.f32 %v12191_v9, %v4911_v28 }
 0x3d3   : > { %v12277_v18 = vmax.f32 %v12047_v48, %v6181_v42  ;;  %8244 = vst.msk [vmem:[%s9280_s9 + $0x18] sm:$0xf] %vm8237_vm11, %v8211_v58  ;;  %v6374_v39 = vmax.f32 %v6372_v47, %v6373_v63  ;;  %v6381_v61 = vmax.f32 %v6379_v34, %v6380_v21  ;;  %v2183_v1 = vsel %vm2137_vm13, %v9063_v36, %v1957_v14 }
 0x3d4   : > { %v12285_v43 = vmax.f32 %v12052_v45, %v6188_v54  ;;  %v6368_v2 = vrot.slane %v6367_v13, 2  ;;  %v6388_v22 = vmax.f32 %v6386_v30, %v6387_v56  ;;  %v5043_v17 = vmax.f32 %v4979_v8, 0.0 }
 0x3d5   : > { %v6375_v46 = vrot.slane %v6374_v39, 2  ;;  %v6382_v3 = vrot.slane %v6381_v61, 2  ;;  %v4928_v48 = vmul.f32 %v12183_v50, %v4860_v40  ;;  %v2248_v42 = vsel %vm2202_vm14, %v2183_v1, %v2118_v4 }
 0x3d6   : > { %v6369_v37 = vmax.f32 %v6367_v13, %v6368_v2  ;;  %v6389_v53 = vrot.slane %v6388_v22, 2  ;;  %v5233_v41 = vrot.slane %v5043_v17, 2  ;;  %v5234_v5 = vrot.slane %v5043_v17, 4  ;;  %v12295_v13 = vpop.permute.xlu1 %2865 }
 0x3d7   : > { %v6376_v11 = vmax.f32 %v6374_v39, %v6375_v46  ;;  %v6383_v0 = vmax.f32 %v6381_v61, %v6382_v3  ;;  %v5235_v62 = vrot.slane %v5043_v17, 6  ;;  %v6393_v26 = vsel %vm5524_vm0, %v5043_v17, -inf  ;;  %8632 = vmatmul.msk.bf16.gmra.mxu1 %vm3181_vm15, %v2248_v42 }
 0x3d8   : > { %v6370_v45 = vrot.slane %v6369_v37, 1  ;;  %v6390_v54 = vmax.f32 %v6388_v22, %v6389_v53  ;;  %v6394_v33 = vrot.slane %v6393_v26, 4  ;;  %v6400_v29 = vsel %vm5524_vm0, %v5233_v41, -inf }
 0x3d9   : > { %v6377_v16 = vrot.slane %v6376_v11, 1  ;;  %v6384_v40 = vrot.slane %v6383_v0, 1  ;;  %v6401_v24 = vrot.slane %v6400_v29, 4  ;;  %v6407_v6 = vsel %vm5524_vm0, %v5234_v5, -inf }
 0x3da   : > { %v6371_v19 = vmax.f32 %v6369_v37, %v6370_v45  ;;  %v6391_v44 = vrot.slane %v6390_v54, 1  ;;  %v6395_v28 = vmax.f32 %v6393_v26, %v6394_v33  ;;  %v6408_v31 = vrot.slane %v6407_v6, 4 }
 0x3db   : > { %v6378_v35 = vmax.f32 %v6376_v11, %v6377_v16  ;;  %v6385_v47 = vmax.f32 %v6383_v0, %v6384_v40  ;;  %v6402_v34 = vmax.f32 %v6400_v29, %v6401_v24  ;;  %v6414_v14 = vsel %vm5524_vm0, %v5235_v62, -inf }
 0x3dc   : > { %v6392_v58 = vmax.f32 %v6390_v54, %v6391_v44  ;;  %v7487_v63 = vsel %vm7317_vm1, %v6371_v19, -inf  ;;  %v6396_v21 = vrot.slane %v6395_v28, 2  ;;  %v6409_v30 = vmax.f32 %v6407_v6, %v6408_v31  ;;  %v4774_v6 = vpop.f32.mrf.mxu3 }
 0x3dd   : > { %v7488_v56 = vmax.f32 %v12012_v52, %v7487_v63  ;;  %v7490_v8 = vsel %vm7317_vm1, %v6378_v35, -inf  ;;  %v7493_v4 = vsel %vm7317_vm1, %v6385_v47, -inf  ;;  %v6403_v39 = vrot.slane %v6402_v34, 2  ;;  %v13298_v63 = vld [vmem:[#allocation17_spill] sm:$0xff] }
 0x3de   : > { %v7491_v61 = vmax.f32 %v12024_v15, %v7490_v8  ;;  %v7494_v36 = vmax.f32 %v12035_v49, %v7493_v4  ;;  %v7496_v1 = vsel %vm7317_vm1, %v6392_v58, -inf  ;;  %v6397_v2 = vmax.f32 %v6395_v28, %v6396_v21 }
 0x3df   : > { %v7497_v22 = vmax.f32 %v12038_v38, %v7496_v1  ;;  %v7758_v17 = vpack.c.bf16 %v7488_v56, %v7488_v56  ;;  %v6404_v46 = vmax.f32 %v6402_v34, %v6403_v39  ;;  %v6410_v3 = vrot.slane %v6409_v30, 2  ;;  %v12315_v34 = vpop.permute.xlu1 %4262 }
 0x3e0   : > { %v7759_v42 = vpack.c.bf16 %v7491_v61, %v7491_v61  ;;  %v7760_v37 = vpack.c.bf16 %v7494_v36, %v7494_v36  ;;  %v6398_v52 = vrot.slane %v6397_v2, 1  ;;  %v6415_v53 = vrot.slane %v6414_v14, 4 }
 0x3e1   : > { %v8014_v41 = vunpack.c.l.b16 %v7758_v17  ;;  %v6405_v5 = vrot.slane %v6404_v46, 1  ;;  %v6411_v11 = vmax.f32 %v6409_v30, %v6410_v3  ;;  %v4996_v0 = vadd.f32 %v12191_v9, %v4928_v48 }
 0x3e2   : > { %v8015_v15 = vunpack.c.l.b16 %v7759_v42  ;;  %v8016_v62 = vunpack.c.l.b16 %v7760_v37  ;;  %v6399_v49 = vmax.f32 %v6397_v2, %v6398_v52  ;;  %v6416_v26 = vmax.f32 %v6414_v14, %v6415_v53  ;;  %v3342_v42 = vpop.f32.mrf.mxu0 }
 0x3e3   : > { %v7498_v45 = vsel %vm7317_vm1, %v12168_v10, -inf  ;;  %v7761_v38 = vpack.c.bf16 %v7497_v22, %v7497_v22  ;;  %v6406_v54 = vmax.f32 %v6404_v46, %v6405_v5  ;;  %v6412_v33 = vrot.slane %v6411_v11, 1  ;;  %v3583_v5 = vpop.f32.mrf.mxu1 }
 0x3e4   : > { %v7501_v29 = vsel %vm7317_vm1, %v12277_v18, -inf  ;;  %v8142_v16 = vsel %vm8086_vm2, %v8015_v15, %v8014_v41  ;;  %v6417_v40 = vrot.slane %v6416_v26, 2  ;;  %v7499_v24 = vsel %vm7317_vm1, %v6399_v49, -inf  ;;  %v4732_v49 = vpop.f32.mrf.mxu2 }
 0x3e5   : > { %v6413_v48 = vmax.f32 %v6411_v11, %v6412_v33  ;;  %v7500_v19 = vmax.f32 %v7498_v45, %v7499_v24  ;;  %v7502_v44 = vsel %vm7317_vm1, %v6406_v54, -inf  ;;  %v5060_v28 = vmax.f32 %v4996_v0, 0.0  ;;  %v3026_v11 = vpop.permute.xlu0 %3025  ;;  %v4279_v33 = vpop.permute.xlu2 %4278 }
 0x3e6   : > { %v7504_v10 = vsel %vm7317_vm1, %v12285_v43, -inf  ;;  %v8143_v31 = vsel %vm8088_vm3, %v8016_v62, %v8142_v16  ;;  %v6418_v35 = vmax.f32 %v6416_v26, %v6417_v40  ;;  %v7503_v47 = vmax.f32 %v7501_v29, %v7502_v44  ;;  %v9064_v26 = vld [vmem:[#allocation2 + $0xe8] sm:$0xff] }
 0x3e7   : > { %v8017_v18 = vunpack.c.l.b16 %v7761_v38  ;;  %v7505_v14 = vsel %vm7317_vm1, %v6413_v48, -inf  ;;  %v7762_v58 = vpack.c.bf16 %v7500_v19, %v7500_v19  ;;  %v4861_v21 = vadd.f32 %v4774_v6, %v13298_v63  ;;  %v4439_v6 = vpop.permute.xlu1 %4438  ;;  %v13302_v63 = vld [vmem:[#allocation29_spill] sm:$0xff] }
 0x3e8   : > { %v6196_v30 = vmax.f32 %v12137_v25, %v6195_v12  ;;  %v6419_v56 = vrot.slane %v6418_v35, 1  ;;  %v7506_v8 = vmax.f32 %v7504_v10, %v7505_v14  ;;  %v7763_v4 = vpack.c.bf16 %v7503_v47, %v7503_v47  ;;  %v13300_v14 = vld [vmem:[#allocation28_spill] sm:$0xff] }
 0x3e9   : > { %v8144_v43 = vsel %vm8090_vm4, %v8017_v18, %v8143_v31  ;;  %v8018_v39 = vunpack.c.l.b16 %v7762_v58  ;;  %v5284_v61 = vrot.slane %v5060_v28, 2  ;;  %v6869_v22 = vsel %vm5524_vm0, %v5060_v28, -inf  ;;  %v13299_v18 = vld [vmem:[#allocation18_spill] sm:$0xff]  ;;  %v13301_v58 = vld [vmem:[#allocation3_spill] sm:$0xff] }
 0x3ea   : > { %v6420_v36 = vmax.f32 %v6418_v35, %v6419_v56  ;;  %v7764_v1 = vpack.c.bf16 %v7506_v8, %v7506_v8  ;;  %v8019_v2 = vunpack.c.l.b16 %v7763_v4  ;;  %v5285_v46 = vrot.slane %v5060_v28, 4  ;;  %v13303_v8 = vld [vmem:[#allocation4_spill] sm:$0xff] }
 0x3eb   : > { %v8145_v17 = vsel %vm8092_vm5, %v8018_v39, %v8144_v43  ;;  %v4929_v3 = vmul.f32 %v12183_v50, %v4861_v21  ;;  %v7507_v25 = vsel %vm7317_vm1, %v6196_v30, -inf  ;;  %v6870_v41 = vrot.slane %v6869_v22, 4  ;;  %v13304_v4 = vld [vmem:[#allocation32_spill] sm:$0xff]  ;;  %v13305_v39 = vld [vmem:[#allocation19_spill] sm:$0xff] }
 0x3ec   : > { %v7508_v12 = vsel %vm7317_vm1, %v6420_v36, -inf  ;;  %v8020_v37 = vunpack.c.l.b16 %v7764_v1  ;;  %v8146_v53 = vsel %vm8094_vm6, %v8019_v2, %v8145_v17  ;;  %v6876_v0 = vsel %vm5524_vm0, %v5284_v61, -inf  ;;  %v13306_v61 = vld [vmem:[#allocation34_spill] sm:$0xff]  ;;  %v13307_v1 = vld [vmem:[#allocation5_spill] sm:$0xff] }
 0x3ed   : > { %v7509_v52 = vmax.f32 %v7507_v25, %v7508_v12  ;;  %v3584_v15 = vadd.f32 %v3583_v5, %v3342_v42  ;;  %v3090_v45 = vsel %vm2137_vm13, %v9064_v26, %v12295_v13  ;;  %v6883_v38 = vsel %vm5524_vm0, %v5285_v46, -inf  ;;  %v3344_v25 = vpop.f32.mrf.mxu0  ;;  %v13308_v12 = vld [vmem:[#allocation6_spill] sm:$0xff]  ;;  %v4423_v5 = vpop.permute.xlu0 %4422 }
 0x3ee   : > { %v4997_v54 = vadd.f32 %v12191_v9, %v4929_v3  ;;  %v8147_v29 = vsel %vm8096_vm7, %v8020_v37, %v8146_v53  ;;  %v5286_v16 = vrot.slane %v5060_v28, 6  ;;  %v3154_v24 = vsel %vm2202_vm14, %v3090_v45, %v3026_v11  ;;  %v1959_v45 = vpop.permute.xlu2 %1958 }
 0x3ef   : > { %v7765_v62 = vpack.c.bf16 %v7509_v52, %v7509_v52  ;;  %v4844_v40 = vadd.f32 %v4732_v49, %v3584_v15  ;;  %v6871_v19 = vmax.f32 %v6869_v22, %v6870_v41  ;;  %v6877_v44 = vrot.slane %v6876_v0, 4  ;;  %8596 = vmatmul.msk.bf16.gmra.mxu0 %vm3181_vm15, %v3154_v24  ;;  %v9065_v41 = vld [vmem:[#allocation2 + $0x15c] sm:$0xff]  ;;  %v9066_v15 = vld [vmem:[#allocation2 + $0x114] sm:$0xff]  ;;  %v3585_v49 = vpop.f32.mrf.mxu1  ;;  %v4734_v24 = vpop.f32.mrf.mxu2 }
 0x3f0   : > { %v6884_v10 = vrot.slane %v6883_v38, 4  ;;  %v5061_v31 = vmax.f32 %v4997_v54, 0.0  ;;  %v6890_v47 = vsel %vm5524_vm0, %v5286_v16, -inf  ;;  %v3629_v28 = vadd.f32 %v13300_v14, %v13299_v18  ;;  %v4777_v16 = vpop.f32.mrf.mxu3  ;;  %v13310_v18 = vld [vmem:[#allocation8_spill] sm:$0xff] }
 0x3f1   : > { %v8021_v48 = vunpack.c.l.b16 %v7765_v62  ;;  %v12343_v21 = vadd.f32 %v13302_v63, %v13301_v58  ;;  %v6872_v30 = vrot.slane %v6871_v19, 2  ;;  %v6878_v56 = vmax.f32 %v6876_v0, %v6877_v44 }
 0x3f2   : > { %v12347_v43 = vadd.f32 %v13304_v4, %v13303_v8  ;;  %v12351_v36 = vadd.f32 %v13306_v61, %v13305_v39  ;;  %v12355_v2 = vadd.f32 %v12004_v23, %v13307_v1  ;;  %v6885_v22 = vmax.f32 %v6883_v38, %v6884_v10  ;;  %v13312_v1 = vld [vmem:[#allocation10_spill] sm:$0xff] }
 0x3f3   : > { %v8148_v13 = vsel %vm8098_vm8, %v8021_v48, %v8147_v29  ;;  %v6891_v17 = vrot.slane %v6890_v47, 4  ;;  %v5287_v46 = vrot.slane %v5061_v31, 2  ;;  %v5288_v3 = vrot.slane %v5061_v31, 4 }
 0x3f4   : > { %v8212_v35 = vpack.c.b16 %v8148_v13, %v8148_v13  ;;  %v6897_v42 = vsel %vm5524_vm0, %v5061_v31, -inf  ;;  %v12362_v37 = vadd.f32 %v12064_v27, %v13308_v12  ;;  %v5289_v52 = vrot.slane %v5061_v31, 6  ;;  %v9067_v13 = vld [vmem:[#allocation2 + $0xcc] sm:$0xff] }
 0x3f5   : > { %v4912_v53 = vmul.f32 %v12183_v50, %v4844_v40  ;;  %v4503_v23 = vsel %vm2137_vm13, %v9065_v41, %v4279_v33  ;;  %v6873_v11 = vmax.f32 %v6871_v19, %v6872_v30  ;;  %v6879_v0 = vrot.slane %v6878_v56, 2  ;;  %v2120_v33 = vpop.permute.xlu1 %2119  ;;  %v13311_v30 = vld [vmem:[#allocation9_spill] sm:$0xff] }
 0x3f6   : > { %8245 = vst.msk [vmem:[%s9280_s9 + $0x1c] sm:$0xf] %vm8237_vm11, %v8212_v35  ;;  %v4487_v62 = vsel %vm2137_vm13, %v9066_v15, %v12315_v34  ;;  %v4567_v26 = vsel %vm2202_vm14, %v4503_v23, %v4439_v6  ;;  %v6886_v38 = vrot.slane %v6885_v22, 2  ;;  %v6898_v27 = vrot.slane %v6897_v42, 4  ;;  %v13309_v35 = vld [vmem:[#allocation7_spill] sm:$0xff]  ;;  %v13319_v23 = vld [vmem:[#allocation14_spill] sm:$0xff]  ;;  %v2868_v15 = vpop.permute.xlu0 %2867 }
 0x3f7   : > { %v4980_v54 = vadd.f32 %v12191_v9, %v4912_v53  ;;  %v3586_v29 = vadd.f32 %v3585_v49, %v3344_v25  ;;  %8775 = vmatmul.msk.bf16.gmra.mxu3 %vm3181_vm15, %v4567_v26  ;;  %v6892_v40 = vmax.f32 %v6890_v47, %v6891_v17  ;;  %v6904_v48 = vsel %vm5524_vm0, %v5287_v46, -inf  ;;  %v13317_v53 = vld [vmem:[#allocation21_spill] sm:$0xff] }
 0x3f8   : > { %v6911_v19 = vsel %vm5524_vm0, %v5288_v3, -inf  ;;  %v4551_v34 = vsel %vm2202_vm14, %v4487_v62, %v4423_v5  ;;  %v6918_v6 = vsel %vm5524_vm0, %v5289_v52, -inf  ;;  %v2185_v31 = vsel %vm2137_vm13, %v9067_v13, %v1959_v45  ;;  %v13313_v3 = vld [vmem:[#allocation20_spill] sm:$0xff] }
 0x3f9   : > { %v12375_v44 = vmax.f32 %v4980_v54, 0.0  ;;  %v4845_v10 = vadd.f32 %v4734_v24, %v3586_v29  ;;  %8767 = vmatmul.msk.bf16.gmra.mxu2 %vm3181_vm15, %v4551_v34  ;;  %v12381_v47 = vadd.f32 %v12087_v60, %v13309_v35  ;;  %v12385_v14 = vadd.f32 %v12100_v59, %v13310_v18  ;;  %v3028_v29 = vpop.permute.xlu2 %3027  ;;  %v3588_v24 = vpop.f32.mrf.mxu1 }
 0x3fa   : > { %v4862_v58 = vadd.f32 %v4777_v16, %v3629_v28  ;;  %v2250_v63 = vsel %vm2202_vm14, %v2185_v31, %v2120_v33  ;;  %v12390_v8 = vadd.f32 %v12123_v32, %v13311_v30  ;;  %v6899_v4 = vmax.f32 %v6897_v42, %v6898_v27  ;;  %v13315_v42 = vld [vmem:[#allocation13_spill] sm:$0xff]  ;;  %v4737_v35 = vpop.f32.mrf.mxu2 }
 0x3fb   : > { %v6905_v39 = vrot.slane %v6904_v48, 4  ;;  %v6912_v61 = vrot.slane %v6911_v19, 4  ;;  %8633 = vmatmul.msk.bf16.gmra.mxu1 %vm3181_vm15, %v2250_v63  ;;  %v12395_v60 = vadd.f32 %v12146_v20, %v13312_v1  ;;  %v6874_v17 = vrot.slane %v6873_v11, 1 }
 0x3fc   : > { %v6880_v46 = vmax.f32 %v6878_v56, %v6879_v0  ;;  %v6919_v59 = vrot.slane %v6918_v6, 4  ;;  %v12399_v28 = vadd.f32 %v12160_v7, %v13313_v3  ;;  %v6887_v25 = vmax.f32 %v6885_v22, %v6886_v38 }
 0x3fd   : > { %v6893_v12 = vrot.slane %v6892_v40, 2  ;;  %v5236_v32 = vrot.slane %v12375_v44, 2  ;;  %v12404_v52 = vadd.f32 %v12200_v51, %v13315_v42  ;;  %v12408_v41 = vadd.f32 %v12225_v55, %v13317_v53  ;;  %v3347_v55 = vpop.f32.mrf.mxu0 }
 0x3fe   : > { %13314 = vst [vmem:[#allocation22_spill] sm:$0xff] %v12399_v28  ;;  %v5237_v20 = vrot.slane %v12375_v44, 4  ;;  %v6421_v56 = vsel %vm5524_vm0, %v12375_v44, -inf  ;;  %v12415_v7 = vadd.f32 %v12236_v57, %v13319_v23  ;;  %v6900_v22 = vrot.slane %v6899_v4, 2 }
 0x3ff   : > { %13316 = vst [vmem:[#allocation23_spill] sm:$0xff] %v12404_v52  ;;  %v6906_v5 = vmax.f32 %v6904_v48, %v6905_v39  ;;  %v6913_v0 = vmax.f32 %v6911_v19, %v6912_v61  ;;  %v6875_v62 = vmax.f32 %v6873_v11, %v6874_v17  ;;  %v6881_v51 = vrot.slane %v6880_v46, 1  ;;  %v9068_v48 = vld [vmem:[#allocation2 + $0xf0] sm:$0xff] }
 0x400   : > { %13318 = vst [vmem:[#allocation24_spill] sm:$0xff] %v12408_v41  ;;  %v6920_v49 = vmax.f32 %v6918_v6, %v6919_v59  ;;  %v4913_v26 = vmul.f32 %v12183_v50, %v4845_v10  ;;  %v6888_v45 = vrot.slane %v6887_v25, 1  ;;  %v6894_v38 = vmax.f32 %v6892_v40, %v6893_v12 }
 0x401   : > { %13320 = vst [vmem:[#allocation25_spill] sm:$0xff] %v12415_v7  ;;  %v6422_v27 = vrot.slane %v6421_v56, 4  ;;  %v6428_v54 = vsel %vm5524_vm0, %v5236_v32, -inf  ;;  %v5238_v16 = vrot.slane %v12375_v44, 6  ;;  %v6435_v57 = vsel %vm5524_vm0, %v5237_v20, -inf }
 0x402   : > { %v4981_v33 = vadd.f32 %v12191_v9, %v4913_v26  ;;  %v3092_v11 = vsel %vm2137_vm13, %v9068_v48, %v2868_v15  ;;  %v6901_v19 = vmax.f32 %v6899_v4, %v6900_v22  ;;  %v6907_v34 = vrot.slane %v6906_v5, 2 }
 0x403   : > { %v6914_v6 = vrot.slane %v6913_v0, 2  ;;  %v3589_v10 = vadd.f32 %v3588_v24, %v3347_v55  ;;  %v6921_v13 = vrot.slane %v6920_v49, 2  ;;  %v6429_v40 = vrot.slane %v6428_v54, 4 }
 0x404   : > { %v5045_v31 = vmax.f32 %v4981_v33, 0.0  ;;  %v3156_v18 = vsel %vm2202_vm14, %v3092_v11, %v3028_v29  ;;  %v6882_v63 = vmax.f32 %v6880_v46, %v6881_v51  ;;  %v6423_v44 = vmax.f32 %v6421_v56, %v6422_v27 }
 0x405   : > { %v6436_v30 = vrot.slane %v6435_v57, 4  ;;  %v4846_v39 = vadd.f32 %v4737_v35, %v3589_v10  ;;  %8597 = vmatmul.msk.bf16.gmra.mxu0 %vm3181_vm15, %v3156_v18  ;;  %v6895_v61 = vrot.slane %v6894_v38, 1  ;;  %v6442_v1 = vsel %vm5524_vm0, %v5238_v16, -inf }
 0x406   : > { %v5239_v17 = vrot.slane %v5045_v31, 2  ;;  %v4930_v4 = vmul.f32 %v12183_v50, %v4862_v58  ;;  %v6902_v59 = vrot.slane %v6901_v19, 1  ;;  %v6908_v3 = vmax.f32 %v6906_v5, %v6907_v34 }
 0x407   : > { %v6915_v12 = vmax.f32 %v6913_v0, %v6914_v6  ;;  %v6449_v32 = vsel %vm5524_vm0, %v5045_v31, -inf  ;;  %v6922_v42 = vmax.f32 %v6920_v49, %v6921_v13  ;;  %v6430_v53 = vmax.f32 %v6428_v54, %v6429_v40 }
 0x408   : > { %v5240_v20 = vrot.slane %v5045_v31, 4  ;;  %v5241_v46 = vrot.slane %v5045_v31, 6  ;;  %v6424_v56 = vrot.slane %v6423_v44, 2  ;;  %v6437_v23 = vmax.f32 %v6435_v57, %v6436_v30 }
 0x409   : > { %v6443_v22 = vrot.slane %v6442_v1, 4  ;;  %v6456_v15 = vsel %vm5524_vm0, %v5239_v17, -inf  ;;  %v6889_v51 = vmax.f32 %v6887_v25, %v6888_v45  ;;  %v12430_v26 = vsel %vm7317_vm1, %v6875_v62, -inf }
 0x40a   : > { %v6450_v55 = vrot.slane %v6449_v32, 4  ;;  %v4998_v58 = vadd.f32 %v12191_v9, %v4930_v4  ;;  %v6896_v5 = vmax.f32 %v6894_v38, %v6895_v61  ;;  %v6903_v0 = vmax.f32 %v6901_v19, %v6902_v59  ;;  %v4779_v19 = vpop.f32.mrf.mxu3 }
 0x40b   : > { %v6909_v27 = vrot.slane %v6908_v3, 1  ;;  %v6916_v29 = vrot.slane %v6915_v12, 1  ;;  %v6923_v49 = vrot.slane %v6922_v42, 1  ;;  %v6457_v54 = vrot.slane %v6456_v15, 4 }
 0x40c   : > { %v6463_v16 = vsel %vm5524_vm0, %v5240_v20, -inf  ;;  %v6470_v57 = vsel %vm5524_vm0, %v5241_v46, -inf  ;;  %v6425_v33 = vmax.f32 %v6423_v44, %v6424_v56  ;;  %v6431_v24 = vrot.slane %v6430_v53, 2 }
 0x40d   : > { %v6438_v48 = vrot.slane %v6437_v23, 2  ;;  %v6444_v25 = vmax.f32 %v6442_v1, %v6443_v22  ;;  %v12436_v62 = vsel %vm7317_vm1, %v6882_v63, -inf  ;;  %v12439_v45 = vsel %vm7317_vm1, %v6889_v51, -inf }
 0x40e   : > { %v6451_v38 = vmax.f32 %v6449_v32, %v6450_v55  ;;  %v5062_v11 = vmax.f32 %v4998_v58, 0.0  ;;  %v12442_v34 = vsel %vm7317_vm1, %v6896_v5, -inf  ;;  %v6910_v6 = vmax.f32 %v6908_v3, %v6909_v27  ;;  %v3349_v55 = vpop.f32.mrf.mxu0 }
 0x40f   : > { %v6464_v10 = vrot.slane %v6463_v16, 4  ;;  %v6471_v13 = vrot.slane %v6470_v57, 4  ;;  %v6917_v40 = vmax.f32 %v6915_v12, %v6916_v29  ;;  %v6924_v31 = vmax.f32 %v6922_v42, %v6923_v49 }
 0x410   : > { %v12445_v35 = vsel %vm7317_vm1, %v6903_v0, -inf  ;;  %v6458_v18 = vmax.f32 %v6456_v15, %v6457_v54  ;;  %v6426_v63 = vrot.slane %v6425_v33, 1  ;;  %v6432_v44 = vmax.f32 %v6430_v53, %v6431_v24 }
 0x411   : > { %v6439_v30 = vmax.f32 %v6437_v23, %v6438_v48  ;;  %v6445_v61 = vrot.slane %v6444_v25, 2  ;;  %v6452_v1 = vrot.slane %v6451_v38, 2  ;;  %v5290_v17 = vrot.slane %v5062_v11, 2 }
 0x412   : > { %v6925_v4 = vsel %vm5524_vm0, %v5062_v11, -inf  ;;  %v4914_v59 = vmul.f32 %v12183_v50, %v4846_v39  ;;  %v6465_v32 = vmax.f32 %v6463_v16, %v6464_v10  ;;  %v6472_v3 = vmax.f32 %v6470_v57, %v6471_v13  ;;  %v4782_v27 = vpop.f32.mrf.mxu3  ;;  %v3590_v57 = vpop.f32.mrf.mxu1 }
 0x413   : > { %v5291_v20 = vrot.slane %v5062_v11, 4  ;;  %v5292_v46 = vrot.slane %v5062_v11, 6  ;;  %v12450_v12 = vsel %vm7317_vm1, %v6910_v6, -inf  ;;  %v12453_v42 = vsel %vm7317_vm1, %v6917_v40, -inf }
 0x414   : > { %v6459_v56 = vrot.slane %v6458_v18, 2  ;;  %v4863_v53 = vadd.f32 %v4779_v19, %v12343_v21  ;;  %v6427_v23 = vmax.f32 %v6425_v33, %v6426_v63  ;;  %v6433_v22 = vrot.slane %v6432_v44, 1 }
 0x415   : > { %v6440_v15 = vrot.slane %v6439_v30, 1  ;;  %v6926_v51 = vrot.slane %v6925_v4, 4  ;;  %v6446_v58 = vmax.f32 %v6444_v25, %v6445_v61  ;;  %v6453_v39 = vmax.f32 %v6451_v38, %v6452_v1 }
 0x416   : > { %v6932_v5 = vsel %vm5524_vm0, %v5290_v17, -inf  ;;  %v4982_v0 = vadd.f32 %v12191_v9, %v4914_v59  ;;  %v6466_v29 = vrot.slane %v6465_v32, 2  ;;  %v6473_v49 = vrot.slane %v6472_v3, 2 }
 0x417   : > { %v6939_v54 = vsel %vm5524_vm0, %v5291_v20, -inf  ;;  %v6946_v16 = vsel %vm5524_vm0, %v5292_v46, -inf  ;;  %v6460_v21 = vmax.f32 %v6458_v18, %v6459_v56  ;;  %v4931_v24 = vmul.f32 %v12183_v50, %v4863_v53 }
 0x418   : > { %v5046_v33 = vmax.f32 %v4982_v0, 0.0  ;;  %v3591_v48 = vadd.f32 %v3590_v57, %v3349_v55  ;;  %v12462_v25 = vsel %vm7317_vm1, %v6924_v31, -inf  ;;  %v6927_v38 = vmax.f32 %v6925_v4, %v6926_v51 }
 0x419   : > { %v6933_v11 = vrot.slane %v6932_v5, 4  ;;  %v12465_v19 = vadd.f32 %v4782_v27, %v12347_v43  ;;  %v6434_v6 = vmax.f32 %v6432_v44, %v6433_v22  ;;  %v6940_v10 = vrot.slane %v6939_v54, 4 }
 0x41a   : > { %v6947_v13 = vrot.slane %v6946_v16, 4  ;;  %v5242_v40 = vrot.slane %v5046_v33, 2  ;;  %v6441_v63 = vmax.f32 %v6439_v30, %v6440_v15  ;;  %v6447_v61 = vrot.slane %v6446_v58, 1  ;;  %v4739_v15 = vpop.f32.mrf.mxu2 }
 0x41b   : > { %v6467_v1 = vmax.f32 %v6465_v32, %v6466_v29  ;;  %v6474_v18 = vmax.f32 %v6472_v3, %v6473_v49  ;;  %v12468_v17 = vsel %vm7317_vm1, %v6427_v23, -inf  ;;  %v6454_v50 = vrot.slane %v6453_v39, 1 }
 0x41c   : > { %v6461_v59 = vrot.slane %v6460_v21, 1  ;;  %v4999_v31 = vadd.f32 %v12191_v9, %v4931_v24  ;;  %v6928_v4 = vrot.slane %v6927_v38, 2  ;;  %v6934_v20 = vmax.f32 %v6932_v5, %v6933_v11 }
 0x41d   : > { %v5243_v46 = vrot.slane %v5046_v33, 4  ;;  %v6477_v43 = vsel %vm5524_vm0, %v5046_v33, -inf  ;;  %v6941_v44 = vmax.f32 %v6939_v54, %v6940_v10  ;;  %v6948_v56 = vmax.f32 %v6946_v16, %v6947_v13 }
 0x41e   : > { %v5244_v53 = vrot.slane %v5046_v33, 6  ;;  %v6484_v30 = vsel %vm5524_vm0, %v5242_v40, -inf  ;;  %v6448_v22 = vmax.f32 %v6446_v58, %v6447_v61  ;;  %v12474_v32 = vsel %vm7317_vm1, %v6434_v6, -inf }
 0x41f   : > { %v6468_v3 = vrot.slane %v6467_v1, 1  ;;  %v6475_v23 = vrot.slane %v6474_v18, 1  ;;  %v6455_v51 = vmax.f32 %v6453_v39, %v6454_v50  ;;  %v6478_v55 = vrot.slane %v6477_v43, 4 }
 0x420   : > { %v5063_v9 = vmax.f32 %v4999_v31, 0.0  ;;  %v4847_v0 = vadd.f32 %v4739_v15, %v3591_v48  ;;  %v6462_v5 = vmax.f32 %v6460_v21, %v6461_v59  ;;  %v6935_v27 = vrot.slane %v6934_v20, 2  ;;  %v3593_v15 = vpop.f32.mrf.mxu1 }
 0x421   : > { %v6485_v29 = vrot.slane %v6484_v30, 4  ;;  %v6491_v49 = vsel %vm5524_vm0, %v5243_v46, -inf  ;;  %v6929_v54 = vmax.f32 %v6927_v38, %v6928_v4  ;;  %v6942_v16 = vrot.slane %v6941_v44, 2 }
 0x422   : > { %v6949_v57 = vrot.slane %v6948_v56, 2  ;;  %v6498_v58 = vsel %vm5524_vm0, %v5244_v53, -inf  ;;  %v12479_v33 = vsel %vm7317_vm1, %v6441_v63, -inf  ;;  %v12482_v24 = vsel %vm7317_vm1, %v6448_v22, -inf }
 0x423   : > { %v6469_v39 = vmax.f32 %v6467_v1, %v6468_v3  ;;  %v6476_v11 = vmax.f32 %v6474_v18, %v6475_v23  ;;  %v6479_v6 = vmax.f32 %v6477_v43, %v6478_v55  ;;  %v6492_v48 = vrot.slane %v6491_v49, 4 }
 0x424   : > { %v5293_v21 = vrot.slane %v5063_v9, 2  ;;  %v6953_v10 = vsel %vm5524_vm0, %v5063_v9, -inf  ;;  %v12486_v13 = vsel %vm7317_vm1, %v6455_v51, -inf  ;;  %v6936_v38 = vmax.f32 %v6934_v20, %v6935_v27 }
 0x425   : > { %v6486_v40 = vmax.f32 %v6484_v30, %v6485_v29  ;;  %v6499_v61 = vrot.slane %v6498_v58, 4  ;;  %v12489_v50 = vsel %vm7317_vm1, %v6462_v5, -inf  ;;  %v6930_v63 = vrot.slane %v6929_v54, 1 }
 0x426   : > { %v6943_v59 = vmax.f32 %v6941_v44, %v6942_v16  ;;  %v6950_v31 = vmax.f32 %v6948_v56, %v6949_v57  ;;  %v12492_v1 = vsel %vm7317_vm1, %v6469_v39, -inf  ;;  %v5294_v18 = vrot.slane %v5063_v9, 4  ;;  %v12501_v44 = vld [vmem:[%s13160_s2] ss:$0 sm:$0xff]  ;;  %v3352_v57 = vpop.f32.mrf.mxu0 }
 0x427   : > { %v5295_v4 = vrot.slane %v5063_v9, 6  ;;  %v6954_v46 = vrot.slane %v6953_v10, 4  ;;  %v12495_v43 = vsel %vm7317_vm1, %v6476_v11, -inf  ;;  %v6480_v53 = vrot.slane %v6479_v6, 2  ;;  %v12511_v11 = vld [vmem:[%s13161_s3] ss:$0 sm:$0xff] }
 0x428   : > { %v6493_v22 = vmax.f32 %v6491_v49, %v6492_v48  ;;  %v6960_v20 = vsel %vm5524_vm0, %v5293_v21, -inf  ;;  %v6937_v30 = vrot.slane %v6936_v38, 1  ;;  %v6487_v3 = vrot.slane %v6486_v40, 2 }
 0x429   : > { %v6500_v23 = vmax.f32 %v6498_v58, %v6499_v61  ;;  %v4932_v56 = vmul.f32 %v12501_v44, %v12465_v19  ;;  %v6931_v51 = vmax.f32 %v6929_v54, %v6930_v63  ;;  %v6944_v55 = vrot.slane %v6943_v59, 1 }
 0x42a   : > { %v6951_v9 = vrot.slane %v6950_v31, 1  ;;  %v4915_v5 = vmul.f32 %v12501_v44, %v4847_v0  ;;  %v6955_v27 = vmax.f32 %v6953_v10, %v6954_v46  ;;  %v6961_v29 = vrot.slane %v6960_v20, 4  ;;  %v4742_v10 = vpop.f32.mrf.mxu2 }
 0x42b   : > { %v6967_v49 = vsel %vm5524_vm0, %v5294_v18, -inf  ;;  %v6974_v16 = vsel %vm5524_vm0, %v5295_v4, -inf  ;;  %v6481_v58 = vmax.f32 %v6479_v6, %v6480_v53  ;;  %v6494_v39 = vrot.slane %v6493_v22, 2 }
 0x42c   : > { %v4983_v19 = vadd.f32 %v12511_v11, %v4915_v5  ;;  %v3594_v54 = vadd.f32 %v3593_v15, %v3352_v57  ;;  %v6938_v48 = vmax.f32 %v6936_v38, %v6937_v30  ;;  %v6488_v21 = vmax.f32 %v6486_v40, %v6487_v3 }
 0x42d   : > { %v6501_v0 = vrot.slane %v6500_v23, 2  ;;  %v5000_v61 = vadd.f32 %v12511_v11, %v4932_v56  ;;  %v6968_v63 = vrot.slane %v6967_v49, 4  ;;  %v6975_v18 = vrot.slane %v6974_v16, 4 }
 0x42e   : > { %v5047_v4 = vmax.f32 %v4983_v19, 0.0  ;;  %v12515_v46 = vadd.f32 %v4742_v10, %v3594_v54  ;;  %v6945_v6 = vmax.f32 %v6943_v59, %v6944_v55  ;;  %v12518_v53 = vsel %vm7317_vm1, %v6931_v51, -inf }
 0x42f   : > { %13321 = vst [vmem:[#allocation11_spill] sm:$0xff] %v12518_v53  ;;  %v6956_v7 = vrot.slane %v6955_v27, 2  ;;  %v6962_v41 = vmax.f32 %v6960_v20, %v6961_v29  ;;  %v6952_v52 = vmax.f32 %v6950_v31, %v6951_v9  ;;  %v6482_v5 = vrot.slane %v6481_v58, 1 }
 0x430   : > { %v6495_v15 = vmax.f32 %v6493_v22, %v6494_v39  ;;  %v5245_v38 = vrot.slane %v5047_v4, 2  ;;  %v6502_v40 = vmax.f32 %v6500_v23, %v6501_v0  ;;  %v5246_v30 = vrot.slane %v5047_v4, 4 }
 0x431   : > { %v6505_v3 = vsel %vm5524_vm0, %v5047_v4, -inf  ;;  %v5064_v56 = vmax.f32 %v5000_v61, 0.0  ;;  %v6489_v57 = vrot.slane %v6488_v21, 1  ;;  %v6969_v28 = vmax.f32 %v6967_v49, %v6968_v63  ;;  %v4784_v63 = vpop.f32.mrf.mxu3 }
 0x432   : > { %v6976_v19 = vmax.f32 %v6974_v16, %v6975_v18  ;;  %v5247_v54 = vrot.slane %v5047_v4, 6  ;;  %v12522_v59 = vsel %vm7317_vm1, %v6938_v48, -inf  ;;  %v12525_v51 = vsel %vm7317_vm1, %v6945_v6, -inf }
 0x433   : > { %13322 = vst [vmem:[#allocation15_spill] sm:$0xff] %v12522_v59  ;;  %v6957_v20 = vmax.f32 %v6955_v27, %v6956_v7  ;;  %v6963_v31 = vrot.slane %v6962_v41, 2  ;;  %v12528_v22 = vsel %vm7317_vm1, %v6952_v52, -inf  ;;  %v6496_v23 = vrot.slane %v6495_v15, 1 }
 0x434   : > { %13323 = vst [vmem:[#allocation12_spill] sm:$0xff] %v12525_v51  ;;  %v6506_v55 = vrot.slane %v6505_v3, 4  ;;  %v6512_v9 = vsel %vm5524_vm0, %v5245_v38, -inf  ;;  %v6483_v29 = vmax.f32 %v6481_v58, %v6482_v5  ;;  %v6503_v39 = vrot.slane %v6502_v40, 1 }
 0x435   : > { %13324 = vst [vmem:[#allocation26_spill] sm:$0xff] %v12528_v22  ;;  %v6519_v49 = vsel %vm5524_vm0, %v5246_v30, -inf  ;;  %v5296_v16 = vrot.slane %v5064_v56, 2  ;;  %v6490_v0 = vmax.f32 %v6488_v21, %v6489_v57  ;;  %v6970_v48 = vrot.slane %v6969_v28, 2  ;;  %v3595_v57 = vpop.f32.mrf.mxu1 }
 0x436   : > { %v6977_v10 = vrot.slane %v6976_v19, 2  ;;  %v6526_v61 = vsel %vm5524_vm0, %v5247_v54, -inf  ;;  %v6958_v7 = vrot.slane %v6957_v20, 1  ;;  %v6964_v27 = vmax.f32 %v6962_v41, %v6963_v31 }
 0x437   : > { %v6513_v18 = vrot.slane %v6512_v9, 4  ;;  %v6981_v52 = vsel %vm5524_vm0, %v5064_v56, -inf  ;;  %v6497_v4 = vmax.f32 %v6495_v15, %v6496_v23  ;;  %v6507_v6 = vmax.f32 %v6505_v3, %v6506_v55  ;;  %v3354_v23 = vpop.f32.mrf.mxu0 }
 0x438   : > { %v6520_v22 = vrot.slane %v6519_v49, 4  ;;  %v5297_v38 = vrot.slane %v5064_v56, 4  ;;  %v6504_v58 = vmax.f32 %v6502_v40, %v6503_v39  ;;  %v12535_v5 = vsel %vm7317_vm1, %v6483_v29, -inf }
 0x439   : > { %13325 = vst [vmem:[#allocation27_spill] sm:$0xff] %v12535_v5  ;;  %v6527_v30 = vrot.slane %v6526_v61, 4  ;;  %v6988_v21 = vsel %vm5524_vm0, %v5296_v16, -inf  ;;  %v6971_v51 = vmax.f32 %v6969_v28, %v6970_v48  ;;  %v6978_v54 = vmax.f32 %v6976_v19, %v6977_v10 }
 0x43a   : > { %v5298_v59 = vrot.slane %v5064_v56, 6  ;;  %v6982_v53 = vrot.slane %v6981_v52, 4  ;;  %v12539_v41 = vsel %vm7317_vm1, %v6490_v0, -inf  ;;  %v6959_v31 = vmax.f32 %v6957_v20, %v6958_v7 }
 0x43b   : > { %13326 = vst [vmem:[#allocation30_spill] sm:$0xff] %v12539_v41  ;;  %v6965_v15 = vrot.slane %v6964_v27, 1  ;;  %v6514_v3 = vmax.f32 %v6512_v9, %v6513_v18  ;;  %v6508_v55 = vrot.slane %v6507_v6, 2  ;;  %v6521_v40 = vmax.f32 %v6519_v49, %v6520_v22 }
 0x43c   : > { %v6989_v39 = vrot.slane %v6988_v21, 4  ;;  %v6995_v29 = vsel %vm5524_vm0, %v5297_v38, -inf  ;;  %v12543_v5 = vsel %vm7317_vm1, %v6497_v4, -inf  ;;  %v12546_v28 = vsel %vm7317_vm1, %v6504_v58, -inf }
 0x43d   : > { %13327 = vst [vmem:[#allocation31_spill] sm:$0xff] %v12543_v5  ;;  %v6528_v56 = vmax.f32 %v6526_v61, %v6527_v30  ;;  %v4865_v19 = vadd.f32 %v4784_v63, %v12351_v36  ;;  %v6972_v16 = vrot.slane %v6971_v51, 1  ;;  %v6979_v0 = vrot.slane %v6978_v54, 1  ;;  %v4787_v61 = vpop.f32.mrf.mxu3  ;;  %v4744_v30 = vpop.f32.mrf.mxu2 }
 0x43e   : > { %13328 = vst [vmem:[#allocation33_spill] sm:$0xff] %v12546_v28  ;;  %v6983_v20 = vmax.f32 %v6981_v52, %v6982_v53  ;;  %v7002_v9 = vsel %vm5524_vm0, %v5298_v59, -inf  ;;  %v6966_v48 = vmax.f32 %v6964_v27, %v6965_v15  ;;  %v12551_v22 = vsel %vm7317_vm1, %v6959_v31, -inf }
 0x43f   : > { %13329 = vst [vmem:[#allocation35_spill] sm:$0xff] %v12551_v22  ;;  %v6515_v49 = vrot.slane %v6514_v3, 2  ;;  %v6996_v10 = vrot.slane %v6995_v29, 4  ;;  %v6509_v7 = vmax.f32 %v6507_v6, %v6508_v55  ;;  %v6522_v18 = vrot.slane %v6521_v40, 2 }
 0x440   : > { %v6990_v4 = vmax.f32 %v6988_v21, %v6989_v39  ;;  %v4916_v38 = vmul.f32 %v12501_v44, %v12515_v46  ;;  %v6529_v58 = vrot.slane %v6528_v56, 2  ;;  %v7003_v36 = vrot.slane %v7002_v9, 4  ;;  %v3598_v46 = vpop.f32.mrf.mxu1  ;;  %v3357_v39 = vpop.f32.mrf.mxu0 }
 0x441   : > { %v4933_v63 = vmul.f32 %v12501_v44, %v4865_v19  ;;  %v3596_v53 = vadd.f32 %v3595_v57, %v3354_v23  ;;  %v6973_v52 = vmax.f32 %v6971_v51, %v6972_v16  ;;  %v6980_v59 = vmax.f32 %v6978_v54, %v6979_v0 }
 0x442   : > { %v6984_v27 = vrot.slane %v6983_v20, 2  ;;  %v4984_v31 = vadd.f32 %v12511_v11, %v4916_v38  ;;  %v6997_v15 = vmax.f32 %v6995_v29, %v6996_v10  ;;  %v12559_v21 = vadd.f32 %v4787_v61, %v12355_v2 }
 0x443   : > { %v5001_v6 = vadd.f32 %v12511_v11, %v4933_v63  ;;  %v4849_v55 = vadd.f32 %v4744_v30, %v3596_v53  ;;  %v6516_v22 = vmax.f32 %v6514_v3, %v6515_v49  ;;  %v6523_v28 = vmax.f32 %v6521_v40, %v6522_v18 }
 0x444   : > { %v5048_v5 = vmax.f32 %v4984_v31, 0.0  ;;  %v12561_v19 = vadd.f32 %v3598_v46, %v3357_v39  ;;  %v6510_v51 = vrot.slane %v6509_v7, 1  ;;  %v6530_v57 = vmax.f32 %v6528_v56, %v6529_v58 }
 0x445   : > { %v6991_v54 = vrot.slane %v6990_v4, 2  ;;  %v7004_v23 = vmax.f32 %v7002_v9, %v7003_v36  ;;  %v12565_v38 = vsel %vm7317_vm1, %v6966_v48, -inf  ;;  %v6985_v2 = vmax.f32 %v6983_v20, %v6984_v27 }
 0x446   : > { %v5248_v16 = vrot.slane %v5048_v5, 2  ;;  %v5249_v0 = vrot.slane %v5048_v5, 4  ;;  %v5250_v29 = vrot.slane %v5048_v5, 6  ;;  %v6533_v10 = vsel %vm5524_vm0, %v5048_v5, -inf  ;;  %13330 = vst [vmem:[#allocation36_spill] sm:$0xff] %v12565_v38 }
 0x447   : > { %v6998_v61 = vrot.slane %v6997_v15, 2  ;;  %v5065_v63 = vmax.f32 %v5001_v6, 0.0  ;;  %v12568_v3 = vsel %vm7317_vm1, %v6973_v52, -inf  ;;  %v12571_v40 = vsel %vm7317_vm1, %v6980_v59, -inf }
 0x448   : > { %13331 = vst [vmem:[#allocation37_spill] sm:$0xff] %v12568_v3  ;;  %v6517_v56 = vrot.slane %v6516_v22, 1  ;;  %v6534_v49 = vrot.slane %v6533_v10, 4  ;;  %v6511_v9 = vmax.f32 %v6509_v7, %v6510_v51  ;;  %v6524_v18 = vrot.slane %v6523_v28, 1 }
 0x449   : > { %13332 = vst [vmem:[#allocation16_spill] sm:$0xff] %v12571_v40  ;;  %v7005_v58 = vrot.slane %v7004_v23, 2  ;;  %v6540_v36 = vsel %vm5524_vm0, %v5248_v16, -inf  ;;  %v6531_v5 = vrot.slane %v6530_v57, 1  ;;  %v6992_v53 = vmax.f32 %v6990_v4, %v6991_v54 }
 0x44a   : > { %v6547_v48 = vsel %vm5524_vm0, %v5249_v0, -inf  ;;  %v6554_v20 = vsel %vm5524_vm0, %v5250_v29, -inf  ;;  %v6986_v27 = vrot.slane %v6985_v2, 1  ;;  %v6999_v30 = vmax.f32 %v6997_v15, %v6998_v61 }
 0x44b   : > { %v5299_v52 = vrot.slane %v5065_v63, 2  ;;  %v7009_v31 = vsel %vm5524_vm0, %v5065_v63, -inf  ;;  %v6535_v59 = vmax.f32 %v6533_v10, %v6534_v49  ;;  %v6541_v6 = vrot.slane %v6540_v36, 4 }
 0x44c   : > { %v5300_v46 = vrot.slane %v5065_v63, 4  ;;  %v5301_v39 = vrot.slane %v5065_v63, 6  ;;  %v6518_v7 = vmax.f32 %v6516_v22, %v6517_v56  ;;  %v7006_v51 = vmax.f32 %v7004_v23, %v7005_v58  ;;  %v4747_v23 = vpop.f32.mrf.mxu2 }
 0x44d   : > { %v6548_v40 = vrot.slane %v6547_v48, 4  ;;  %v6555_v3 = vrot.slane %v6554_v20, 4  ;;  %v6525_v16 = vmax.f32 %v6523_v28, %v6524_v18  ;;  %v12578_v4 = vsel %vm7317_vm1, %v6511_v9, -inf }
 0x44e   : > { %13333 = vst [vmem:[#allocation17_spill] sm:$0xff] %v12578_v4  ;;  %v6993_v54 = vrot.slane %v6992_v53, 1  ;;  %v7010_v0 = vrot.slane %v7009_v31, 4  ;;  %v6532_v29 = vmax.f32 %v6530_v57, %v6531_v5  ;;  %v6987_v38 = vmax.f32 %v6985_v2, %v6986_v27 }
 0x44f   : > { %v7000_v15 = vrot.slane %v6999_v30, 1  ;;  %v7016_v61 = vsel %vm5524_vm0, %v5299_v52, -inf  ;;  %v6536_v41 = vrot.slane %v6535_v59, 2  ;;  %v6542_v10 = vmax.f32 %v6540_v36, %v6541_v6  ;;  %v4789_v6 = vpop.f32.mrf.mxu3 }
 0x450   : > { %v7023_v49 = vsel %vm5524_vm0, %v5300_v46, -inf  ;;  %v7030_v22 = vsel %vm5524_vm0, %v5301_v39, -inf  ;;  %v7007_v63 = vrot.slane %v7006_v51, 1  ;;  %v6549_v56 = vmax.f32 %v6547_v48, %v6548_v40 }
 0x451   : > { %v6556_v28 = vmax.f32 %v6554_v20, %v6555_v3  ;;  %v4917_v9 = vmul.f32 %v12501_v44, %v4849_v55  ;;  %v12585_v18 = vsel %vm7317_vm1, %v6518_v7, -inf  ;;  %v12588_v57 = vsel %vm7317_vm1, %v6525_v16, -inf }
 0x452   : > { %13334 = vst [vmem:[#allocation18_spill] sm:$0xff] %v12585_v18  ;;  %v7011_v2 = vmax.f32 %v7009_v31, %v7010_v0  ;;  %v7017_v58 = vrot.slane %v7016_v61, 4  ;;  %v12591_v36 = vsel %vm7317_vm1, %v6532_v29, -inf  ;;  %v6994_v5 = vmax.f32 %v6992_v53, %v6993_v54  ;;  %v3359_v31 = vpop.f32.mrf.mxu0 }
 0x453   : > { %13335 = vst [vmem:[#allocation28_spill] sm:$0xff] %v12588_v57  ;;  %v7024_v27 = vrot.slane %v7023_v49, 4  ;;  %v7031_v52 = vrot.slane %v7030_v22, 4  ;;  %v7001_v46 = vmax.f32 %v6999_v30, %v7000_v15  ;;  %v12594_v3 = vsel %vm7317_vm1, %v6987_v38, -inf }
 0x454   : > { %13336 = vst [vmem:[#allocation3_spill] sm:$0xff] %v12591_v36  ;;  %v6537_v55 = vmax.f32 %v6535_v59, %v6536_v41  ;;  %v6543_v40 = vrot.slane %v6542_v10, 2  ;;  %v7008_v48 = vmax.f32 %v7006_v51, %v7007_v63  ;;  %v6550_v20 = vrot.slane %v6549_v56, 2  ;;  %v3600_v41 = vpop.f32.mrf.mxu1 }
 0x455   : > { %13337 = vst [vmem:[#allocation29_spill] sm:$0xff] %v12594_v3  ;;  %v6557_v39 = vrot.slane %v6556_v28, 2  ;;  %v4985_v7 = vadd.f32 %v12511_v11, %v4917_v9  ;;  %v7012_v16 = vrot.slane %v7011_v2, 2  ;;  %v7018_v0 = vmax.f32 %v7016_v61, %v7017_v58 }
 0x456   : > { %v4934_v53 = vmul.f32 %v12501_v44, %v12559_v21  ;;  %v4867_v54 = vadd.f32 %v4789_v6, %v12362_v37  ;;  %v7025_v29 = vmax.f32 %v7023_v49, %v7024_v27  ;;  %v7032_v30 = vmax.f32 %v7030_v22, %v7031_v52  ;;  %v4749_v22 = vpop.f32.mrf.mxu2 }
 0x457   : > { %v5049_v15 = vmax.f32 %v4985_v7, 0.0  ;;  %v12601_v38 = vadd.f32 %v4747_v23, %v12561_v19  ;;  %v12604_v59 = vsel %vm7317_vm1, %v6994_v5, -inf  ;;  %v6538_v51 = vrot.slane %v6537_v55, 1 }
 0x458   : > { %13338 = vst [vmem:[#allocation4_spill] sm:$0xff] %v12604_v59  ;;  %v6544_v63 = vmax.f32 %v6542_v10, %v6543_v40  ;;  %v3601_v9 = vadd.f32 %v3600_v41, %v3359_v31  ;;  %v6551_v3 = vmax.f32 %v6549_v56, %v6550_v20  ;;  %v6558_v61 = vmax.f32 %v6556_v28, %v6557_v39 }
 0x459   : > { %v5251_v58 = vrot.slane %v5049_v15, 2  ;;  %v6561_v21 = vsel %vm5524_vm0, %v5049_v15, -inf  ;;  %v7019_v36 = vrot.slane %v7018_v0, 2  ;;  %v5252_v37 = vrot.slane %v5049_v15, 4 }
 0x45a   : > { %v5002_v49 = vadd.f32 %v12511_v11, %v4934_v53  ;;  %v4935_v19 = vmul.f32 %v12501_v44, %v4867_v54  ;;  %v7013_v23 = vmax.f32 %v7011_v2, %v7012_v16  ;;  %v7026_v27 = vrot.slane %v7025_v29, 2 }
 0x45b   : > { %v7033_v52 = vrot.slane %v7032_v30, 2  ;;  %v12609_v5 = vadd.f32 %v4749_v22, %v3601_v9  ;;  %v6545_v6 = vrot.slane %v6544_v63, 1  ;;  %v5253_v10 = vrot.slane %v5049_v15, 6 }
 0x45c   : > { %v6562_v40 = vrot.slane %v6561_v21, 4  ;;  %v6568_v56 = vsel %vm5524_vm0, %v5251_v58, -inf  ;;  %v12613_v28 = vsel %vm7317_vm1, %v7001_v46, -inf  ;;  %v6539_v20 = vmax.f32 %v6537_v55, %v6538_v51 }
 0x45d   : > { %13339 = vst [vmem:[#allocation32_spill] sm:$0xff] %v12613_v28  ;;  %v6552_v39 = vrot.slane %v6551_v3, 1  ;;  %v6559_v7 = vrot.slane %v6558_v61, 1  ;;  %v12616_v31 = vsel %vm7317_vm1, %v7008_v48, -inf  ;;  %v7020_v53 = vmax.f32 %v7018_v0, %v7019_v36 }
 0x45e   : > { %13340 = vst [vmem:[#allocation19_spill] sm:$0xff] %v12616_v31  ;;  %v6575_v2 = vsel %vm5524_vm0, %v5252_v37, -inf  ;;  %v5066_v16 = vmax.f32 %v5002_v49, 0.0  ;;  %v7014_v54 = vrot.slane %v7013_v23, 1  ;;  %v7027_v41 = vmax.f32 %v7025_v29, %v7026_v27 }
 0x45f   : > { %v7034_v9 = vmax.f32 %v7032_v30, %v7033_v52  ;;  %v6569_v15 = vrot.slane %v6568_v56, 4  ;;  %v6546_v22 = vmax.f32 %v6544_v63, %v6545_v6  ;;  %v6563_v59 = vmax.f32 %v6561_v21, %v6562_v40 }
 0x460   : > { %v6582_v58 = vsel %vm5524_vm0, %v5253_v10, -inf  ;;  %v5003_v46 = vadd.f32 %v12511_v11, %v4935_v19  ;;  %v6553_v55 = vmax.f32 %v6551_v3, %v6552_v39  ;;  %v6560_v51 = vmax.f32 %v6558_v61, %v6559_v7 }
 0x461   : > { %v12622_v28 = vsel %vm7317_vm1, %v6539_v20, -inf  ;;  %v6576_v48 = vrot.slane %v6575_v2, 4  ;;  %v7021_v36 = vrot.slane %v7020_v53, 1  ;;  %v5302_v0 = vrot.slane %v5066_v16, 2 }
 0x462   : > { %13341 = vst [vmem:[#allocation34_spill] sm:$0xff] %v12622_v28  ;;  %v5303_v37 = vrot.slane %v5066_v16, 4  ;;  %v5304_v49 = vrot.slane %v5066_v16, 6  ;;  %v7015_v31 = vmax.f32 %v7013_v23, %v7014_v54  ;;  %v7028_v29 = vrot.slane %v7027_v41, 1 }
 0x463   : > { %v6570_v30 = vmax.f32 %v6568_v56, %v6569_v15  ;;  %v6583_v27 = vrot.slane %v6582_v58, 4  ;;  %v7035_v63 = vrot.slane %v7034_v9, 1  ;;  %v6564_v21 = vrot.slane %v6563_v59, 2 }
 0x464   : > { %v7037_v52 = vsel %vm5524_vm0, %v5066_v16, -inf  ;;  %v5067_v6 = vmax.f32 %v5003_v46, 0.0  ;;  %v12626_v3 = vsel %vm7317_vm1, %v6546_v22, -inf  ;;  %v12629_v61 = vsel %vm7317_vm1, %v6553_v55, -inf }
 0x465   : > { %13342 = vst [vmem:[#allocation5_spill] sm:$0xff] %v12626_v3  ;;  %v12632_v19 = vsel %vm7317_vm1, %v6560_v51, -inf  ;;  %v6577_v10 = vmax.f32 %v6575_v2, %v6576_v48  ;;  %v7022_v40 = vmax.f32 %v7020_v53, %v7021_v36  ;;  %v7044_v23 = vsel %vm5524_vm0, %v5302_v0, -inf }
 0x466   : > { %13343 = vst [vmem:[#allocation6_spill] sm:$0xff] %v12629_v61  ;;  %v7051_v56 = vsel %vm5524_vm0, %v5303_v37, -inf  ;;  %v7058_v20 = vsel %vm5524_vm0, %v5304_v49, -inf  ;;  %v7029_v39 = vmax.f32 %v7027_v41, %v7028_v29  ;;  %v6571_v7 = vrot.slane %v6570_v30, 2 }
 0x467   : > { %13344 = vst [vmem:[#allocation7_spill] sm:$0xff] %v12632_v19  ;;  %v6584_v16 = vmax.f32 %v6582_v58, %v6583_v27  ;;  %v7038_v54 = vrot.slane %v7037_v52, 4  ;;  %v7036_v15 = vmax.f32 %v7034_v9, %v7035_v63  ;;  %v6565_v22 = vmax.f32 %v6563_v59, %v6564_v21 }
 0x468   : > { %v5305_v46 = vrot.slane %v5067_v6, 2  ;;  %v4918_v55 = vmul.f32 %v12501_v44, %v12601_v38  ;;  %v6578_v51 = vrot.slane %v6577_v10, 2  ;;  %v7045_v19 = vrot.slane %v7044_v23, 4 }
 0x469   : > { %v7052_v2 = vrot.slane %v7051_v56, 4  ;;  %v7059_v53 = vrot.slane %v7058_v20, 4  ;;  %v5306_v48 = vrot.slane %v5067_v6, 4  ;;  %v5307_v36 = vrot.slane %v5067_v6, 6 }
 0x46a   : > { %v7065_v0 = vsel %vm5524_vm0, %v5067_v6, -inf  ;;  %v7072_v37 = vsel %vm5524_vm0, %v5305_v46, -inf  ;;  %v12642_v41 = vsel %vm7317_vm1, %v7015_v31, -inf  ;;  %v6572_v58 = vmax.f32 %v6570_v30, %v6571_v7 }
 0x46b   : > { %13345 = vst [vmem:[#allocation8_spill] sm:$0xff] %v12642_v41  ;;  %v6585_v9 = vrot.slane %v6584_v16, 2  ;;  %v7039_v59 = vmax.f32 %v7037_v52, %v7038_v54  ;;  %v7066_v49 = vrot.slane %v7065_v0, 4  ;;  %v7073_v29 = vrot.slane %v7072_v37, 4 }
 0x46c   : > { %v7079_v38 = vsel %vm5524_vm0, %v5306_v48, -inf  ;;  %v7086_v27 = vsel %vm5524_vm0, %v5307_v36, -inf  ;;  %v6579_v63 = vmax.f32 %v6577_v10, %v6578_v51  ;;  %v7046_v21 = vmax.f32 %v7044_v23, %v7045_v19 }
 0x46d   : > { %v7053_v61 = vmax.f32 %v7051_v56, %v7052_v2  ;;  %v7080_v3 = vrot.slane %v7079_v38, 4  ;;  %v6566_v28 = vrot.slane %v6565_v22, 1  ;;  %v7060_v6 = vmax.f32 %v7058_v20, %v7059_v53 }
 0x46e   : > { %v7087_v57 = vrot.slane %v7086_v27, 4  ;;  %v4986_v46 = vadd.f32 %v12511_v11, %v4918_v55  ;;  %v6586_v31 = vmax.f32 %v6584_v16, %v6585_v9  ;;  %v7040_v41 = vrot.slane %v7039_v59, 2 }
 0x46f   : > { %v7067_v30 = vmax.f32 %v7065_v0, %v7066_v49  ;;  %v7074_v7 = vmax.f32 %v7072_v37, %v7073_v29  ;;  %v6573_v52 = vrot.slane %v6572_v58, 1  ;;  %v7081_v54 = vmax.f32 %v7079_v38, %v7080_v3  ;;  %v4792_v3 = vpop.f32.mrf.mxu3 }
 0x470   : > { %v7088_v18 = vmax.f32 %v7086_v27, %v7087_v57  ;;  %v5050_v4 = vmax.f32 %v4986_v46, 0.0  ;;  %v12648_v48 = vsel %vm7317_vm1, %v7022_v40, -inf  ;;  %v6580_v10 = vrot.slane %v6579_v63, 1 }
 0x471   : > { %13346 = vst [vmem:[#allocation9_spill] sm:$0xff] %v12648_v48  ;;  %v7047_v19 = vrot.slane %v7046_v21, 2  ;;  %v7054_v23 = vrot.slane %v7053_v61, 2  ;;  %v12651_v56 = vsel %vm7317_vm1, %v7029_v39, -inf  ;;  %v12654_v20 = vsel %vm7317_vm1, %v7036_v15, -inf }
 0x472   : > { %13347 = vst [vmem:[#allocation10_spill] sm:$0xff] %v12651_v56  ;;  %v6567_v16 = vmax.f32 %v6565_v22, %v6566_v28  ;;  %v7061_v55 = vrot.slane %v7060_v6, 2  ;;  %v6587_v51 = vrot.slane %v6586_v31, 1  ;;  %v7068_v2 = vrot.slane %v7067_v30, 2 }
 0x473   : > { %13348 = vst [vmem:[#allocation20_spill] sm:$0xff] %v12654_v20  ;;  %v7075_v53 = vrot.slane %v7074_v7, 2  ;;  %v6589_v57 = vsel %vm5524_vm0, %v5050_v4, -inf  ;;  %v6574_v36 = vmax.f32 %v6572_v58, %v6573_v52  ;;  %v7041_v40 = vmax.f32 %v7039_v59, %v7040_v41 }
 0x474   : > { %v7082_v0 = vrot.slane %v7081_v54, 2  ;;  %v7089_v37 = vrot.slane %v7088_v18, 2  ;;  %v6581_v9 = vmax.f32 %v6579_v63, %v6580_v10  ;;  %v7048_v49 = vmax.f32 %v7046_v21, %v7047_v19 }
 0x475   : > { %v7055_v29 = vmax.f32 %v7053_v61, %v7054_v23  ;;  %v5254_v39 = vrot.slane %v5050_v4, 2  ;;  %v7062_v38 = vmax.f32 %v7060_v6, %v7061_v55  ;;  %v5255_v27 = vrot.slane %v5050_v4, 4 }
 0x476   : > { %v6590_v15 = vrot.slane %v6589_v57, 4  ;;  %v4868_v28 = vadd.f32 %v4792_v3, %v12381_v47  ;;  %v6588_v22 = vmax.f32 %v6586_v31, %v6587_v51  ;;  %v7069_v46 = vmax.f32 %v7067_v30, %v7068_v2  ;;  %v3603_v3 = vpop.f32.mrf.mxu1 }
 0x477   : > { %v7076_v20 = vmax.f32 %v7074_v7, %v7075_v53  ;;  %v5256_v56 = vrot.slane %v5050_v4, 6  ;;  %v12659_v48 = vsel %vm7317_vm1, %v6567_v16, -inf  ;;  %v7042_v58 = vrot.slane %v7041_v40, 1 }
 0x478   : > { %v7083_v41 = vmax.f32 %v7081_v54, %v7082_v0  ;;  %v7090_v59 = vmax.f32 %v7088_v18, %v7089_v37  ;;  %v12662_v63 = vsel %vm7317_vm1, %v6574_v36, -inf  ;;  %v7049_v61 = vrot.slane %v7048_v49, 1  ;;  %v3362_v54 = vpop.f32.mrf.mxu0 }
 0x479   : > { %v7056_v21 = vrot.slane %v7055_v29, 1  ;;  %v6596_v6 = vsel %vm5524_vm0, %v5254_v39, -inf  ;;  %v7063_v52 = vrot.slane %v7062_v38, 1  ;;  %v6591_v10 = vmax.f32 %v6589_v57, %v6590_v15 }
 0x47a   : > { %v6603_v47 = vsel %vm5524_vm0, %v5255_v27, -inf  ;;  %v4936_v31 = vmul.f32 %v12501_v44, %v4868_v28  ;;  %v7070_v4 = vrot.slane %v7069_v46, 1  ;;  %v7077_v30 = vrot.slane %v7076_v20, 1 }
 0x47b   : > { %v6610_v7 = vsel %vm5524_vm0, %v5256_v56, -inf  ;;  %v4919_v18 = vmul.f32 %v12501_v44, %v12609_v5  ;;  %v12671_v19 = vsel %vm7317_vm1, %v6581_v9, -inf  ;;  %v7084_v23 = vrot.slane %v7083_v41, 1 }
 0x47c   : > { %13349 = vst [vmem:[#allocation13_spill] sm:$0xff] %v12671_v19  ;;  %v7091_v16 = vrot.slane %v7090_v59, 1  ;;  %v6597_v55 = vrot.slane %v6596_v6, 4  ;;  %v7043_v51 = vmax.f32 %v7041_v40, %v7042_v58  ;;  %v7050_v2 = vmax.f32 %v7048_v49, %v7049_v61 }
 0x47d   : > { %v7057_v53 = vmax.f32 %v7055_v29, %v7056_v21  ;;  %v6604_v57 = vrot.slane %v6603_v47, 4  ;;  %v6592_v36 = vrot.slane %v6591_v10, 2  ;;  %v6611_v0 = vrot.slane %v6610_v7, 4 }
 0x47e   : > { %v5004_v37 = vadd.f32 %v12511_v11, %v4936_v31  ;;  %v3604_v56 = vadd.f32 %v3603_v3, %v3362_v54  ;;  %v7064_v39 = vmax.f32 %v7062_v38, %v7063_v52  ;;  %v7071_v27 = vmax.f32 %v7069_v46, %v7070_v4  ;;  %v4752_v46 = vpop.f32.mrf.mxu2 }
 0x47f   : > { %v7078_v5 = vmax.f32 %v7076_v20, %v7077_v30  ;;  %v4987_v15 = vadd.f32 %v12511_v11, %v4919_v18  ;;  %v12676_v9 = vsel %vm7317_vm1, %v6588_v22, -inf  ;;  %v7085_v28 = vmax.f32 %v7083_v41, %v7084_v23 }
 0x480   : > { %v7092_v19 = vmax.f32 %v7090_v59, %v7091_v16  ;;  %v6598_v40 = vmax.f32 %v6596_v6, %v6597_v55  ;;  %v12679_v49 = vsel %vm7317_vm1, %v7043_v51, -inf  ;;  %v12682_v29 = vsel %vm7317_vm1, %v7050_v2, -inf }
 0x481   : > { %v12685_v58 = vsel %vm7317_vm1, %v7057_v53, -inf  ;;  %v6605_v38 = vmax.f32 %v6603_v47, %v6604_v57  ;;  %v6593_v20 = vmax.f32 %v6591_v10, %v6592_v36  ;;  %v6612_v61 = vmax.f32 %v6610_v7, %v6611_v0 }
 0x482   : > { %v5068_v21 = vmax.f32 %v5004_v37, 0.0  ;;  %v4852_v52 = vadd.f32 %v4752_v46, %v3604_v56  ;;  %v12688_v22 = vsel %vm7317_vm1, %v7064_v39, -inf  ;;  %v12691_v41 = vsel %vm7317_vm1, %v7071_v27, -inf }
 0x483   : > { %v12694_v59 = vsel %vm7317_vm1, %v7078_v5, -inf  ;;  %v12696_v6 = vmax.f32 %v4987_v15, 0.0  ;;  %v12699_v31 = vsel %vm7317_vm1, %v7085_v28, -inf  ;;  %v12702_v47 = vsel %vm7317_vm1, %v7092_v19, -inf }
 0x484   : > { %13350 = vst [vmem:[#allocation21_spill] sm:$0xff] %v12694_v59  ;;  %v6599_v10 = vrot.slane %v6598_v40, 2  ;;  %v5308_v4 = vrot.slane %v5068_v21, 2  ;;  %v6606_v30 = vrot.slane %v6605_v38, 2  ;;  %v5309_v7 = vrot.slane %v5068_v21, 4 }
 0x485   : > { %13351 = vst [vmem:[#allocation14_spill] sm:$0xff] %v12699_v31  ;;  %v5310_v18 = vrot.slane %v5068_v21, 6  ;;  %v7093_v54 = vsel %vm5524_vm0, %v5068_v21, -inf  ;;  %v6594_v23 = vrot.slane %v6593_v20, 1  ;;  %v6613_v16 = vrot.slane %v6612_v61, 2 }
 0x486   : > { %13352 = vst [vmem:[#allocation38_spill] sm:$0xff] %v12702_v47  ;;  %v7094_v55 = vrot.slane %v7093_v54, 4  ;;  %v4920_v51 = vmul.f32 %v12501_v44, %v4852_v52  ;;  %v5257_v2 = vrot.slane %v12696_v6, 2  ;;  %v7100_v53 = vsel %vm5524_vm0, %v5308_v4, -inf  ;;  %v4794_v52 = vpop.f32.mrf.mxu3  ;;  %v3364_v47 = vpop.f32.mrf.mxu0 }
 0x487   : > { %v7107_v57 = vsel %vm5524_vm0, %v5309_v7, -inf  ;;  %v7114_v19 = vsel %vm5524_vm0, %v5310_v18, -inf  ;;  %v5258_v3 = vrot.slane %v12696_v6, 4  ;;  %v12714_v0 = vsel %vm5524_vm0, %v12696_v6, -inf }
 0x488   : > { %v7095_v37 = vmax.f32 %v7093_v54, %v7094_v55  ;;  %v12716_v56 = vmax.f32 %v6598_v40, %v6599_v10  ;;  %v7101_v39 = vrot.slane %v7100_v53, 4  ;;  %v7108_v27 = vrot.slane %v7107_v57, 4 }
 0x489   : > { %v7115_v5 = vrot.slane %v7114_v19, 4  ;;  %v12718_v15 = vmax.f32 %v6593_v20, %v6594_v23  ;;  %v12720_v28 = vmax.f32 %v6605_v38, %v6606_v30  ;;  %v12722_v46 = vmax.f32 %v6612_v61, %v6613_v16  ;;  %v3605_v16 = vpop.f32.mrf.mxu1 }
 0x48a   : > { %v7096_v21 = vrot.slane %v7095_v37, 2  ;;  %v7102_v7 = vmax.f32 %v7100_v53, %v7101_v39  ;;  %v7109_v18 = vmax.f32 %v7107_v57, %v7108_v27  ;;  %v12726_v40 = vsel %vm5524_vm0, %v5257_v2, -inf }
 0x48b   : > { %v7116_v36 = vmax.f32 %v7114_v19, %v7115_v5  ;;  %v12729_v10 = vsel %vm5524_vm0, %v5258_v3, -inf  ;;  %v4988_v38 = vadd.f32 %v12511_v11, %v4920_v51  ;;  %v4869_v23 = vadd.f32 %v4794_v52, %v12385_v14 }
 0x48c   : > { %v7097_v20 = vmax.f32 %v7095_v37, %v7096_v21  ;;  %v7103_v30 = vrot.slane %v7102_v7, 2  ;;  %v7110_v61 = vrot.slane %v7109_v18, 2  ;;  %v3606_v19 = vadd.f32 %v3605_v16, %v3364_v47 }
 0x48d   : > { %v7117_v54 = vrot.slane %v7116_v36, 2  ;;  %v5052_v57 = vmax.f32 %v4988_v38, 0.0  ;;  %v4937_v3 = vmul.f32 %v12501_v44, %v4869_v23 }
 0x48e   : > { %v7098_v53 = vrot.slane %v7097_v20, 1  ;;  %v7104_v39 = vmax.f32 %v7102_v7, %v7103_v30  ;;  %v7111_v2 = vmax.f32 %v7109_v18, %v7110_v61 }
 0x48f   : > { %v7118_v27 = vmax.f32 %v7116_v36, %v7117_v54  ;;  %v5260_v37 = vrot.slane %v5052_v57, 2  ;;  %v5261_v21 = vrot.slane %v5052_v57, 4  ;;  %v5262_v51 = vrot.slane %v5052_v57, 6 }
 0x490   : > { %v7099_v5 = vmax.f32 %v7097_v20, %v7098_v53  ;;  %v7105_v4 = vrot.slane %v7104_v39, 1  ;;  %v7112_v31 = vrot.slane %v7111_v2, 1  ;;  %v6645_v14 = vsel %vm5524_vm0, %v5052_v57, -inf }
 0x491   : > { %v7119_v59 = vrot.slane %v7118_v27, 1  ;;  %v6646_v55 = vrot.slane %v6645_v14, 4  ;;  %v6652_v38 = vsel %vm5524_vm0, %v5260_v37, -inf  ;;  %v6659_v47 = vsel %vm5524_vm0, %v5261_v21, -inf }
 0x492   : > { %v7607_v52 = vsel %vm7317_vm1, %v7099_v5, -inf  ;;  %v7106_v7 = vmax.f32 %v7104_v39, %v7105_v4  ;;  %v7113_v36 = vmax.f32 %v7111_v2, %v7112_v31  ;;  %v6653_v30 = vrot.slane %v6652_v38, 4 }
 0x493   : > { %v7120_v18 = vmax.f32 %v7118_v27, %v7119_v59  ;;  %v7608_v44 = vmax.f32 %v12430_v26, %v7607_v52  ;;  %v6647_v20 = vmax.f32 %v6645_v14, %v6646_v55  ;;  %v6660_v61 = vrot.slane %v6659_v47, 4 }
 0x494   : > { %v6666_v54 = vsel %vm5524_vm0, %v5262_v51, -inf  ;;  %v7610_v23 = vsel %vm7317_vm1, %v7106_v7, -inf  ;;  %v7613_v16 = vsel %vm7317_vm1, %v7113_v36, -inf  ;;  %v6654_v55 = vmax.f32 %v6652_v38, %v6653_v30 }
 0x495   : > { %v7616_v53 = vsel %vm7317_vm1, %v7120_v18, -inf  ;;  %v7798_v57 = vpack.c.bf16 %v7608_v44, %v7608_v44  ;;  %v7611_v5 = vmax.f32 %v12436_v62, %v7610_v23  ;;  %v7614_v4 = vmax.f32 %v12439_v45, %v7613_v16  ;;  %v4797_v18 = vpop.f32.mrf.mxu3 }
 0x496   : > { %v7617_v59 = vmax.f32 %v12442_v34, %v7616_v53  ;;  %v6648_v31 = vrot.slane %v6647_v20, 2  ;;  %v6661_v39 = vmax.f32 %v6659_v47, %v6660_v61  ;;  %v6667_v2 = vrot.slane %v6666_v54, 4  ;;  %v4754_v47 = vpop.f32.mrf.mxu2 }
 0x497   : > { %v8054_v26 = vunpack.c.l.b16 %v7798_v57  ;;  %v7799_v27 = vpack.c.bf16 %v7611_v5, %v7611_v5  ;;  %v7800_v37 = vpack.c.bf16 %v7614_v4, %v7614_v4  ;;  %v6655_v14 = vrot.slane %v6654_v55, 2 }
 0x498   : > { %v7801_v21 = vpack.c.bf16 %v7617_v59, %v7617_v59  ;;  %v6649_v51 = vmax.f32 %v6647_v20, %v6648_v31  ;;  %v6662_v52 = vrot.slane %v6661_v39, 2  ;;  %v6668_v7 = vmax.f32 %v6666_v54, %v6667_v2 }
 0x499   : > { %v5005_v36 = vadd.f32 %v12511_v11, %v4937_v3  ;;  %v8055_v62 = vunpack.c.l.b16 %v7799_v27  ;;  %v8056_v44 = vunpack.c.l.b16 %v7800_v37  ;;  %v6656_v34 = vmax.f32 %v6654_v55, %v6655_v14 }
 0x49a   : > { %v8057_v45 = vunpack.c.l.b16 %v7801_v21  ;;  %v6650_v23 = vrot.slane %v6649_v51, 1  ;;  %v6663_v16 = vmax.f32 %v6661_v39, %v6662_v52  ;;  %v6669_v53 = vrot.slane %v6668_v7, 2 }
 0x49b   : > { %v5069_v38 = vmax.f32 %v5005_v36, 0.0  ;;  %v8177_v30 = vsel %vm8086_vm2, %v8055_v62, %v8054_v26  ;;  %v4853_v57 = vadd.f32 %v4754_v47, %v3606_v19  ;;  %v4870_v20 = vadd.f32 %v4797_v18, %v12390_v8 }
 0x49c   : > { %v6651_v61 = vmax.f32 %v6649_v51, %v6650_v23  ;;  %v8178_v54 = vsel %vm8088_vm3, %v8056_v44, %v8177_v30  ;;  %v6657_v5 = vrot.slane %v6656_v34, 1  ;;  %v6664_v11 = vrot.slane %v6663_v16, 1 }
 0x49d   : > { %v6670_v3 = vmax.f32 %v6668_v7, %v6669_v53  ;;  %v12752_v4 = vsel %vm8090_vm4, %v8057_v45, %v8178_v54  ;;  %v5311_v31 = vrot.slane %v5069_v38, 2  ;;  %v5312_v55 = vrot.slane %v5069_v38, 4 }
 0x49e   : > { %v7511_v59 = vsel %vm7317_vm1, %v6651_v61, -inf  ;;  %v6658_v39 = vmax.f32 %v6656_v34, %v6657_v5  ;;  %v6665_v2 = vmax.f32 %v6663_v16, %v6664_v11  ;;  %v5313_v19 = vrot.slane %v5069_v38, 6 }
 0x49f   : > { %v6671_v27 = vrot.slane %v6670_v3, 1  ;;  %v7512_v26 = vmax.f32 %v12468_v17, %v7511_v59  ;;  %v7121_v8 = vsel %vm5524_vm0, %v5069_v38, -inf  ;;  %v7128_v37 = vsel %vm5524_vm0, %v5311_v31, -inf }
 0x4a0   : > { %v7135_v21 = vsel %vm5524_vm0, %v5312_v55, -inf  ;;  %v7514_v14 = vsel %vm7317_vm1, %v6658_v39, -inf  ;;  %v7517_v52 = vsel %vm7317_vm1, %v6665_v2, -inf  ;;  %v7122_v62 = vrot.slane %v7121_v8, 4  ;;  %v12775_v39 = vld [vmem:[%s13161_s3] ss:$0 sm:$0xff] }
 0x4a1   : > { %v6672_v51 = vmax.f32 %v6670_v3, %v6671_v27  ;;  %v7766_v7 = vpack.c.bf16 %v7512_v26, %v7512_v26  ;;  %v7515_v36 = vmax.f32 %v12474_v32, %v7514_v14  ;;  %v7518_v18 = vmax.f32 %v12479_v33, %v7517_v52  ;;  %v12769_v32 = vld [vmem:[%s13160_s2] ss:$0 sm:$0xff] }
 0x4a2   : > { %v7129_v44 = vrot.slane %v7128_v37, 4  ;;  %v7136_v23 = vrot.slane %v7135_v21, 4  ;;  %v7142_v34 = vsel %vm5524_vm0, %v5313_v19, -inf  ;;  %v7123_v47 = vmax.f32 %v7121_v8, %v7122_v62  ;;  %v3608_v8 = vpop.f32.mrf.mxu1 }
 0x4a3   : > { %v7520_v17 = vsel %vm7317_vm1, %v6672_v51, -inf  ;;  %v8022_v45 = vunpack.c.l.b16 %v7766_v7  ;;  %v7767_v53 = vpack.c.bf16 %v7515_v36, %v7515_v36  ;;  %v7768_v38 = vpack.c.bf16 %v7518_v18, %v7518_v18  ;;  %v3367_v18 = vpop.f32.mrf.mxu0 }
 0x4a4   : > { %v7521_v16 = vmax.f32 %v12482_v24, %v7520_v17  ;;  %v7130_v30 = vmax.f32 %v7128_v37, %v7129_v44  ;;  %v7137_v61 = vmax.f32 %v7135_v21, %v7136_v23  ;;  %v7143_v54 = vrot.slane %v7142_v34, 4 }
 0x4a5   : > { %v4921_v33 = vmul.f32 %v12769_v32, %v4853_v57  ;;  %v8023_v11 = vunpack.c.l.b16 %v7767_v53  ;;  %v8024_v3 = vunpack.c.l.b16 %v7768_v38  ;;  %v7124_v59 = vrot.slane %v7123_v47, 2 }
 0x4a6   : > { %v7769_v5 = vpack.c.bf16 %v7521_v16, %v7521_v16  ;;  %v7131_v31 = vrot.slane %v7130_v30, 2  ;;  %v7138_v55 = vrot.slane %v7137_v61, 2  ;;  %v7144_v24 = vmax.f32 %v7142_v34, %v7143_v54 }
 0x4a7   : > { %v4989_v2 = vadd.f32 %v12775_v39, %v4921_v33  ;;  %v8149_v26 = vsel %vm8086_vm2, %v8023_v11, %v8022_v45  ;;  %v7125_v19 = vmax.f32 %v7123_v47, %v7124_v59  ;;  %v4938_v57 = vmul.f32 %v12769_v32, %v4870_v20 }
 0x4a8   : > { %v8025_v27 = vunpack.c.l.b16 %v7769_v5  ;;  %v8150_v37 = vsel %vm8088_vm3, %v8024_v3, %v8149_v26  ;;  %v7132_v21 = vmax.f32 %v7130_v30, %v7131_v31  ;;  %v7139_v51 = vmax.f32 %v7137_v61, %v7138_v55 }
 0x4a9   : > { %v7145_v14 = vrot.slane %v7144_v24, 2  ;;  %v7126_v7 = vrot.slane %v7125_v19, 1  ;;  %v5053_v36 = vmax.f32 %v4989_v2, 0.0  ;;  %v5006_v62 = vadd.f32 %v12775_v39, %v4938_v57 }
 0x4aa   : > { %v12782_v52 = vsel %vm8090_vm4, %v8025_v27, %v8150_v37  ;;  %v7133_v44 = vrot.slane %v7132_v21, 1  ;;  %v7140_v17 = vrot.slane %v7139_v51, 1  ;;  %v12785_v23 = vadd.f32 %v3608_v8, %v3367_v18 }
 0x4ab   : > { %v7146_v45 = vmax.f32 %v7144_v24, %v7145_v14  ;;  %v7127_v20 = vmax.f32 %v7125_v19, %v7126_v7  ;;  %v5263_v34 = vrot.slane %v5053_v36, 2  ;;  %v5264_v16 = vrot.slane %v5053_v36, 4 }
 0x4ac   : > { %v5265_v53 = vrot.slane %v5053_v36, 6  ;;  %v7134_v38 = vmax.f32 %v7132_v21, %v7133_v44  ;;  %v7141_v47 = vmax.f32 %v7139_v51, %v7140_v17  ;;  %v6673_v61 = vsel %vm5524_vm0, %v5053_v36, -inf }
 0x4ad   : > { %v7147_v30 = vrot.slane %v7146_v45, 1  ;;  %v7619_v54 = vsel %vm7317_vm1, %v7127_v20, -inf  ;;  %v6674_v33 = vrot.slane %v6673_v61, 4  ;;  %v6680_v5 = vsel %vm5524_vm0, %v5263_v34, -inf }
 0x4ae   : > { %v6687_v11 = vsel %vm5524_vm0, %v5264_v16, -inf  ;;  %v7620_v59 = vmax.f32 %v12445_v35, %v7619_v54  ;;  %v7622_v31 = vsel %vm7317_vm1, %v7134_v38, -inf  ;;  %v7625_v55 = vsel %vm7317_vm1, %v7141_v47, -inf }
 0x4af   : > { %v7148_v3 = vmax.f32 %v7146_v45, %v7147_v30  ;;  %v7623_v24 = vmax.f32 %v12450_v12, %v7622_v31  ;;  %v7626_v2 = vmax.f32 %v12453_v42, %v7625_v55  ;;  %v6675_v27 = vmax.f32 %v6673_v61, %v6674_v33 }
 0x4b0   : > { %v6681_v26 = vrot.slane %v6680_v5, 4  ;;  %v7802_v57 = vpack.c.bf16 %v7620_v59, %v7620_v59  ;;  %v6688_v8 = vrot.slane %v6687_v11, 4  ;;  %v6694_v37 = vsel %vm5524_vm0, %v5265_v53, -inf }
 0x4b1   : > { %v7628_v19 = vsel %vm7317_vm1, %v7148_v3, -inf  ;;  %v7803_v51 = vpack.c.bf16 %v7623_v24, %v7623_v24  ;;  %v7804_v35 = vpack.c.bf16 %v7626_v2, %v7626_v2  ;;  %v6676_v14 = vrot.slane %v6675_v27, 2 }
 0x4b2   : > { %v7629_v21 = vmax.f32 %v12462_v25, %v7628_v19  ;;  %v8058_v7 = vunpack.c.l.b16 %v7802_v57  ;;  %v6682_v36 = vmax.f32 %v6680_v5, %v6681_v26  ;;  %v6689_v18 = vmax.f32 %v6687_v11, %v6688_v8 }
 0x4b3   : > { %v6695_v44 = vrot.slane %v6694_v37, 4  ;;  %v8059_v17 = vunpack.c.l.b16 %v7803_v51  ;;  %v8060_v42 = vunpack.c.l.b16 %v7804_v35  ;;  %v6677_v45 = vmax.f32 %v6675_v27, %v6676_v14 }
 0x4b4   : > { %v7805_v12 = vpack.c.bf16 %v7629_v21, %v7629_v21  ;;  %v8180_v20 = vsel %vm8092_vm5, %v8058_v7, %v12752_v4  ;;  %v6683_v34 = vrot.slane %v6682_v36, 2  ;;  %v6690_v16 = vrot.slane %v6689_v18, 2 }
 0x4b5   : > { %v6696_v38 = vmax.f32 %v6694_v37, %v6695_v44  ;;  %v8181_v25 = vsel %vm8094_vm6, %v8059_v17, %v8180_v20  ;;  %v6678_v47 = vrot.slane %v6677_v45, 1  ;;  %v5070_v30 = vmax.f32 %v5006_v62, 0.0 }
 0x4b6   : > { %v8061_v53 = vunpack.c.l.b16 %v7805_v12  ;;  %v8182_v61 = vsel %vm8096_vm7, %v8060_v42, %v8181_v25  ;;  %v6684_v54 = vmax.f32 %v6682_v36, %v6683_v34  ;;  %v6691_v33 = vmax.f32 %v6689_v18, %v6690_v16  ;;  %v4799_v34 = vpop.f32.mrf.mxu3 }
 0x4b7   : > { %v6697_v5 = vrot.slane %v6696_v38, 2  ;;  %v6679_v3 = vmax.f32 %v6677_v45, %v6678_v47  ;;  %v5314_v59 = vrot.slane %v5070_v30, 2  ;;  %v5315_v31 = vrot.slane %v5070_v30, 4 }
 0x4b8   : > { %v8183_v11 = vsel %vm8098_vm8, %v8061_v53, %v8182_v61  ;;  %v6685_v55 = vrot.slane %v6684_v54, 1  ;;  %v6692_v24 = vrot.slane %v6691_v33, 1  ;;  %v5316_v26 = vrot.slane %v5070_v30, 6 }
 0x4b9   : > { %v8217_v4 = vpack.c.b16 %v8183_v11, %v8183_v11  ;;  %v6698_v2 = vmax.f32 %v6696_v38, %v6697_v5  ;;  %v7523_v27 = vsel %vm7317_vm1, %v6679_v3, -inf  ;;  %v7149_v62 = vsel %vm5524_vm0, %v5070_v30, -inf  ;;  %v4757_v38 = vpop.f32.mrf.mxu2 }
 0x4ba   : > { %v7156_v19 = vsel %vm5524_vm0, %v5314_v59, -inf  ;;  %v6686_v57 = vmax.f32 %v6684_v54, %v6685_v55  ;;  %v6693_v8 = vmax.f32 %v6691_v33, %v6692_v24  ;;  %v7524_v21 = vmax.f32 %v12486_v13, %v7523_v27 }
 0x4bb   : > { %8250 = vst.msk [vmem:[%s9280_s9 + $0x30] sm:$0xf] %vm8237_vm11, %v8217_v4  ;;  %v6699_v37 = vrot.slane %v6698_v2, 1  ;;  %v7150_v51 = vrot.slane %v7149_v62, 4  ;;  %v7157_v35 = vrot.slane %v7156_v19, 4  ;;  %v7163_v14 = vsel %vm5524_vm0, %v5315_v31, -inf }
 0x4bc   : > { %v7170_v7 = vsel %vm5524_vm0, %v5316_v26, -inf  ;;  %v7526_v18 = vsel %vm7317_vm1, %v6686_v57, -inf  ;;  %v7529_v44 = vsel %vm7317_vm1, %v6693_v8, -inf  ;;  %v7770_v12 = vpack.c.bf16 %v7524_v21, %v7524_v21 }
 0x4bd   : > { %v6700_v36 = vmax.f32 %v6698_v2, %v6699_v37  ;;  %v7527_v17 = vmax.f32 %v12489_v50, %v7526_v18  ;;  %v7530_v42 = vmax.f32 %v12492_v1, %v7529_v44  ;;  %v7151_v45 = vmax.f32 %v7149_v62, %v7150_v51  ;;  %v3610_v37 = vpop.f32.mrf.mxu1  ;;  %v3369_v44 = vpop.f32.mrf.mxu0 }
 0x4be   : > { %v7158_v20 = vmax.f32 %v7156_v19, %v7157_v35  ;;  %v8026_v16 = vunpack.c.l.b16 %v7770_v12  ;;  %v7164_v53 = vrot.slane %v7163_v14, 4  ;;  %v7171_v25 = vrot.slane %v7170_v7, 4 }
 0x4bf   : > { %v7532_v13 = vsel %vm7317_vm1, %v6700_v36, -inf  ;;  %v7771_v30 = vpack.c.bf16 %v7527_v17, %v7527_v17  ;;  %v7772_v61 = vpack.c.bf16 %v7530_v42, %v7530_v42  ;;  %v7152_v54 = vrot.slane %v7151_v45, 2 }
 0x4c0   : > { %v7533_v47 = vmax.f32 %v12495_v43, %v7532_v13  ;;  %v8152_v33 = vsel %vm8092_vm5, %v8026_v16, %v12782_v52  ;;  %v7159_v50 = vrot.slane %v7158_v20, 2  ;;  %v7165_v5 = vmax.f32 %v7163_v14, %v7164_v53  ;;  %v13353_v13 = vld [vmem:[#allocation11_spill] sm:$0xff] }
 0x4c1   : > { %v7172_v1 = vmax.f32 %v7170_v7, %v7171_v25  ;;  %v8027_v3 = vunpack.c.l.b16 %v7771_v30  ;;  %v8028_v59 = vunpack.c.l.b16 %v7772_v61  ;;  %v7153_v31 = vmax.f32 %v7151_v45, %v7152_v54  ;;  %v4802_v45 = vpop.f32.mrf.mxu3  ;;  %v4759_v53 = vpop.f32.mrf.mxu2  ;;  %v13354_v25 = vld [vmem:[#allocation15_spill] sm:$0xff] }
 0x4c2   : > { %v7773_v11 = vpack.c.bf16 %v7533_v47, %v7533_v47  ;;  %v7160_v4 = vmax.f32 %v7158_v20, %v7159_v50  ;;  %v7166_v55 = vrot.slane %v7165_v5, 2  ;;  %v4854_v2 = vadd.f32 %v4757_v38, %v12785_v23 }
 0x4c3   : > { %v7173_v24 = vrot.slane %v7172_v1, 2  ;;  %v8153_v43 = vsel %vm8094_vm6, %v8027_v3, %v8152_v33  ;;  %v7154_v26 = vrot.slane %v7153_v31, 1  ;;  %v4871_v62 = vadd.f32 %v4799_v34, %v12395_v60  ;;  %v13356_v3 = vld [vmem:[#allocation12_spill] sm:$0xff] }
 0x4c4   : > { %v8029_v27 = vunpack.c.l.b16 %v7773_v11  ;;  %v8154_v52 = vsel %vm8096_vm7, %v8028_v59, %v8153_v43  ;;  %v7161_v19 = vrot.slane %v7160_v4, 1  ;;  %v7167_v57 = vmax.f32 %v7165_v5, %v7166_v55 }
 0x4c5   : > { %v7174_v8 = vmax.f32 %v7172_v1, %v7173_v24  ;;  %v7155_v51 = vmax.f32 %v7153_v31, %v7154_v26  ;;  %v4922_v35 = vmul.f32 %v12769_v32, %v4854_v2  ;;  %v4939_v23 = vmul.f32 %v12769_v32, %v4871_v62  ;;  %v13355_v1 = vld [vmem:[#allocation22_spill] sm:$0xff] }
 0x4c6   : > { %v8155_v21 = vsel %vm8098_vm8, %v8029_v27, %v8154_v52  ;;  %v7162_v7 = vmax.f32 %v7160_v4, %v7161_v19  ;;  %v7168_v36 = vrot.slane %v7167_v57, 1  ;;  %v3611_v42 = vadd.f32 %v3610_v37, %v3369_v44  ;;  %v13357_v31 = vld [vmem:[#allocation26_spill] sm:$0xff] }
 0x4c7   : > { %v8213_v14 = vpack.c.b16 %v8155_v21, %v8155_v21  ;;  %v7175_v18 = vrot.slane %v7174_v8, 1  ;;  %v7631_v60 = vsel %vm7317_vm1, %v7155_v51, -inf  ;;  %v4990_v12 = vadd.f32 %v12775_v39, %v4922_v35 }
 0x4c8   : > { %v5007_v17 = vadd.f32 %v12775_v39, %v4939_v23  ;;  %v7169_v20 = vmax.f32 %v7167_v57, %v7168_v36  ;;  %v7632_v16 = vmax.f32 %v13353_v13, %v7631_v60  ;;  %v7634_v38 = vsel %vm7317_vm1, %v7162_v7, -inf }
 0x4c9   : > { %8246 = vst.msk [vmem:[%s9280_s9 + $0x20] sm:$0xf] %vm8237_vm11, %v8213_v14  ;;  %v7176_v34 = vmax.f32 %v7174_v8, %v7175_v18  ;;  %v7635_v47 = vmax.f32 %v13354_v25, %v7634_v38  ;;  %v5054_v30 = vmax.f32 %v4990_v12, 0.0  ;;  %v12835_v54 = vadd.f32 %v4759_v53, %v3611_v42 }
 0x4ca   : > { %v5071_v61 = vmax.f32 %v5007_v17, 0.0  ;;  %v7637_v33 = vsel %vm7317_vm1, %v7169_v20, -inf  ;;  %v7806_v5 = vpack.c.bf16 %v7632_v16, %v7632_v16  ;;  %v12840_v11 = vadd.f32 %v4802_v45, %v13355_v1 }
 0x4cb   : > { %v7640_v50 = vsel %vm7317_vm1, %v7176_v34, -inf  ;;  %v7638_v59 = vmax.f32 %v13356_v3, %v7637_v33  ;;  %v7807_v55 = vpack.c.bf16 %v7635_v47, %v7635_v47  ;;  %v5266_v24 = vrot.slane %v5054_v30, 2 }
 0x4cc   : > { %v7641_v4 = vmax.f32 %v13357_v31, %v7640_v50  ;;  %v8062_v2 = vunpack.c.l.b16 %v7806_v5  ;;  %v5267_v27 = vrot.slane %v5054_v30, 4  ;;  %v5268_v43 = vrot.slane %v5054_v30, 6 }
 0x4cd   : > { %v6701_v26 = vsel %vm5524_vm0, %v5054_v30, -inf  ;;  %v7808_v62 = vpack.c.bf16 %v7638_v59, %v7638_v59  ;;  %v8063_v19 = vunpack.c.l.b16 %v7807_v55  ;;  %v6708_v8 = vsel %vm5524_vm0, %v5266_v24, -inf }
 0x4ce   : > { %v7809_v52 = vpack.c.bf16 %v7641_v4, %v7641_v4  ;;  %v6702_v57 = vrot.slane %v6701_v26, 4  ;;  %v6715_v37 = vsel %vm5524_vm0, %v5267_v27, -inf  ;;  %v6722_v21 = vsel %vm5524_vm0, %v5268_v43, -inf }
 0x4cf   : > { %v5317_v51 = vrot.slane %v5071_v61, 2  ;;  %v8064_v35 = vunpack.c.l.b16 %v7808_v62  ;;  %v8184_v14 = vsel %vm8086_vm2, %v8063_v19, %v8062_v2  ;;  %v6709_v36 = vrot.slane %v6708_v8, 4 }
 0x4d0   : > { %v8065_v23 = vunpack.c.l.b16 %v7809_v52  ;;  %v6703_v7 = vmax.f32 %v6701_v26, %v6702_v57  ;;  %v6716_v18 = vrot.slane %v6715_v37, 4  ;;  %v6723_v44 = vrot.slane %v6722_v21, 4 }
 0x4d1   : > { %v5318_v60 = vrot.slane %v5071_v61, 4  ;;  %v8185_v12 = vsel %vm8088_vm3, %v8064_v35, %v8184_v14  ;;  %v5319_v42 = vrot.slane %v5071_v61, 6  ;;  %v7177_v45 = vsel %vm5524_vm0, %v5071_v61, -inf }
 0x4d2   : > { %v6704_v17 = vrot.slane %v6703_v7, 2  ;;  %v12852_v20 = vsel %vm8090_vm4, %v8065_v23, %v8185_v12  ;;  %v6710_v34 = vmax.f32 %v6708_v8, %v6709_v36  ;;  %v6717_v13 = vmax.f32 %v6715_v37, %v6716_v18 }
 0x4d3   : > { %v6724_v16 = vmax.f32 %v6722_v21, %v6723_v44  ;;  %v7178_v53 = vrot.slane %v7177_v45, 4  ;;  %v7184_v25 = vsel %vm5524_vm0, %v5317_v51, -inf  ;;  %v7191_v47 = vsel %vm5524_vm0, %v5318_v60, -inf }
 0x4d4   : > { %v6705_v38 = vmax.f32 %v6703_v7, %v6704_v17  ;;  %v6711_v30 = vrot.slane %v6710_v34, 2  ;;  %v6718_v33 = vrot.slane %v6717_v13, 2  ;;  %v7185_v5 = vrot.slane %v7184_v25, 4  ;;  %v13358_v7 = vld [vmem:[#allocation27_spill] sm:$0xff] }
 0x4d5   : > { %v6725_v50 = vrot.slane %v6724_v16, 2  ;;  %v7179_v3 = vmax.f32 %v7177_v45, %v7178_v53  ;;  %v7192_v59 = vrot.slane %v7191_v47, 4  ;;  %v7198_v61 = vsel %vm5524_vm0, %v5319_v42, -inf }
 0x4d6   : > { %v6706_v1 = vrot.slane %v6705_v38, 1  ;;  %v6712_v31 = vmax.f32 %v6710_v34, %v6711_v30  ;;  %v6719_v4 = vmax.f32 %v6717_v13, %v6718_v33  ;;  %v7186_v24 = vmax.f32 %v7184_v25, %v7185_v5  ;;  %v13359_v13 = vld [vmem:[#allocation30_spill] sm:$0xff]  ;;  %v13361_v25 = vld [vmem:[#allocation33_spill] sm:$0xff] }
 0x4d7   : > { %v6726_v55 = vmax.f32 %v6724_v16, %v6725_v50  ;;  %v7180_v27 = vrot.slane %v7179_v3, 2  ;;  %v7193_v43 = vmax.f32 %v7191_v47, %v7192_v59  ;;  %v7199_v26 = vrot.slane %v7198_v61, 4 }
 0x4d8   : > { %v6707_v2 = vmax.f32 %v6705_v38, %v6706_v1  ;;  %v6713_v62 = vrot.slane %v6712_v31, 1  ;;  %v6720_v52 = vrot.slane %v6719_v4, 1  ;;  %v7187_v57 = vrot.slane %v7186_v24, 2  ;;  %v13360_v38 = vld [vmem:[#allocation31_spill] sm:$0xff] }
 0x4d9   : > { %v6727_v19 = vrot.slane %v6726_v55, 1  ;;  %v7181_v37 = vmax.f32 %v7179_v3, %v7180_v27  ;;  %v7194_v21 = vrot.slane %v7193_v43, 2  ;;  %v7200_v51 = vmax.f32 %v7198_v61, %v7199_v26 }
 0x4da   : > { %v7535_v8 = vsel %vm7317_vm1, %v6707_v2, -inf  ;;  %v6714_v35 = vmax.f32 %v6712_v31, %v6713_v62  ;;  %v6721_v23 = vmax.f32 %v6719_v4, %v6720_v52  ;;  %v7188_v44 = vmax.f32 %v7186_v24, %v7187_v57  ;;  %v13362_v2 = vld [vmem:[#allocation35_spill] sm:$0xff] }
 0x4db   : > { %v6728_v14 = vmax.f32 %v6726_v55, %v6727_v19  ;;  %v7536_v36 = vmax.f32 %v13358_v7, %v7535_v8  ;;  %v7182_v18 = vrot.slane %v7181_v37, 1  ;;  %v7195_v60 = vmax.f32 %v7193_v43, %v7194_v21 }
 0x4dc   : > { %v7201_v12 = vrot.slane %v7200_v51, 2  ;;  %v7538_v17 = vsel %vm7317_vm1, %v6714_v35, -inf  ;;  %v7541_v42 = vsel %vm7317_vm1, %v6721_v23, -inf  ;;  %v7189_v50 = vrot.slane %v7188_v44, 1  ;;  %v13364_v23 = vld [vmem:[#allocation37_spill] sm:$0xff] }
 0x4dd   : > { %v7544_v45 = vsel %vm7317_vm1, %v6728_v14, -inf  ;;  %v7774_v34 = vpack.c.bf16 %v7536_v36, %v7536_v36  ;;  %v7539_v16 = vmax.f32 %v13359_v13, %v7538_v17  ;;  %v7542_v53 = vmax.f32 %v13360_v38, %v7541_v42  ;;  %v4804_v36 = vpop.f32.mrf.mxu3  ;;  %v13365_v42 = vld [vmem:[#allocation16_spill] sm:$0xff] }
 0x4de   : > { %v7545_v47 = vmax.f32 %v13361_v25, %v7544_v45  ;;  %v7183_v30 = vmax.f32 %v7181_v37, %v7182_v18  ;;  %v7196_v5 = vrot.slane %v7195_v60, 1  ;;  %v7202_v1 = vmax.f32 %v7200_v51, %v7201_v12  ;;  %v13363_v51 = vld [vmem:[#allocation36_spill] sm:$0xff]  ;;  %v3372_v12 = vpop.f32.mrf.mxu0  ;;  %v3613_v25 = vpop.f32.mrf.mxu1 }
 0x4df   : > { %v8030_v33 = vunpack.c.l.b16 %v7774_v34  ;;  %v7775_v3 = vpack.c.bf16 %v7539_v16, %v7539_v16  ;;  %v7776_v59 = vpack.c.bf16 %v7542_v53, %v7542_v53  ;;  %v7190_v4 = vmax.f32 %v7188_v44, %v7189_v50 }
 0x4e0   : > { %v7777_v61 = vpack.c.bf16 %v7545_v47, %v7545_v47  ;;  %v7643_v31 = vsel %vm7317_vm1, %v7183_v30, -inf  ;;  %v7197_v55 = vmax.f32 %v7195_v60, %v7196_v5  ;;  %v7203_v24 = vrot.slane %v7202_v1, 1  ;;  %v13366_v47 = vld [vmem:[#allocation23_spill] sm:$0xff] }
 0x4e1   : > { %v7644_v27 = vmax.f32 %v13362_v2, %v7643_v31  ;;  %v8031_v43 = vunpack.c.l.b16 %v7775_v3  ;;  %v8032_v26 = vunpack.c.l.b16 %v7776_v59  ;;  %v4923_v52 = vmul.f32 %v12769_v32, %v12835_v54 }
 0x4e2   : > { %v8033_v62 = vunpack.c.l.b16 %v7777_v61  ;;  %v7204_v19 = vmax.f32 %v7202_v1, %v7203_v24  ;;  %v7646_v57 = vsel %vm7317_vm1, %v7190_v4, -inf  ;;  %v7649_v8 = vsel %vm7317_vm1, %v7197_v55, -inf }
 0x4e3   : > { %v7810_v37 = vpack.c.bf16 %v7644_v27, %v7644_v27  ;;  %v8156_v21 = vsel %vm8086_vm2, %v8031_v43, %v8030_v33  ;;  %v7647_v35 = vmax.f32 %v13363_v51, %v7646_v57  ;;  %v7650_v14 = vmax.f32 %v13364_v23, %v7649_v8 }
 0x4e4   : > { %v4991_v7 = vadd.f32 %v12775_v39, %v4923_v52  ;;  %v8157_v18 = vsel %vm8088_vm3, %v8032_v26, %v8156_v21  ;;  %v7652_v44 = vsel %vm7317_vm1, %v7204_v19, -inf  ;;  %v4940_v60 = vmul.f32 %v12769_v32, %v12840_v11 }
 0x4e5   : > { %v8066_v54 = vunpack.c.l.b16 %v7810_v37  ;;  %v12880_v17 = vsel %vm8090_vm4, %v8033_v62, %v8157_v18  ;;  %v7653_v45 = vmax.f32 %v13365_v42, %v7652_v44  ;;  %v7811_v34 = vpack.c.bf16 %v7647_v35, %v7647_v35 }
 0x4e6   : > { %v7812_v13 = vpack.c.bf16 %v7650_v14, %v7650_v14  ;;  %v5055_v38 = vmax.f32 %v4991_v7, 0.0  ;;  %v5008_v53 = vadd.f32 %v12775_v39, %v4940_v60  ;;  %v12887_v30 = vadd.f32 %v4804_v36, %v13366_v47 }
 0x4e7   : > { %v8187_v16 = vsel %vm8092_vm5, %v8066_v54, %v12852_v20  ;;  %v7813_v33 = vpack.c.bf16 %v7653_v45, %v7653_v45  ;;  %v8067_v11 = vunpack.c.l.b16 %v7811_v34  ;;  %v12889_v5 = vadd.f32 %v3613_v25, %v3372_v12 }
 0x4e8   : > { %v8068_v50 = vunpack.c.l.b16 %v7812_v13  ;;  %v5269_v1 = vrot.slane %v5055_v38, 2  ;;  %v5270_v3 = vrot.slane %v5055_v38, 4  ;;  %v5271_v59 = vrot.slane %v5055_v38, 6 }
 0x4e9   : > { %v6729_v61 = vsel %vm5524_vm0, %v5055_v38, -inf  ;;  %v8069_v31 = vunpack.c.l.b16 %v7813_v33  ;;  %v8188_v20 = vsel %vm8094_vm6, %v8067_v11, %v8187_v16  ;;  %v5072_v55 = vmax.f32 %v5008_v53, 0.0 }
 0x4ea   : > { %v6730_v4 = vrot.slane %v6729_v61, 4  ;;  %v8189_v24 = vsel %vm8096_vm7, %v8068_v50, %v8188_v20  ;;  %v6736_v2 = vsel %vm5524_vm0, %v5269_v1, -inf  ;;  %v6743_v27 = vsel %vm5524_vm0, %v5270_v3, -inf }
 0x4eb   : > { %v6750_v43 = vsel %vm5524_vm0, %v5271_v59, -inf  ;;  %v8190_v26 = vsel %vm8098_vm8, %v8069_v31, %v8189_v24  ;;  %v6737_v52 = vrot.slane %v6736_v2, 4  ;;  %v6744_v19 = vrot.slane %v6743_v27, 4 }
 0x4ec   : > { %v6731_v62 = vmax.f32 %v6729_v61, %v6730_v4  ;;  %v8218_v57 = vpack.c.b16 %v8190_v26, %v8190_v26  ;;  %v6751_v8 = vrot.slane %v6750_v43, 4  ;;  %v5320_v37 = vrot.slane %v5072_v55, 2 }
 0x4ed   : > { %v5321_v21 = vrot.slane %v5072_v55, 4  ;;  %v6738_v35 = vmax.f32 %v6736_v2, %v6737_v52  ;;  %v6745_v23 = vmax.f32 %v6743_v27, %v6744_v19  ;;  %v5322_v14 = vrot.slane %v5072_v55, 6  ;;  %v13367_v52 = vld [vmem:[#allocation17_spill] sm:$0xff] }
 0x4ee   : > { %v6732_v51 = vrot.slane %v6731_v62, 2  ;;  %8251 = vst.msk [vmem:[%s9280_s9 + $0x34] sm:$0xf] %vm8237_vm11, %v8218_v57  ;;  %v6752_v7 = vmax.f32 %v6750_v43, %v6751_v8  ;;  %v7205_v36 = vsel %vm5524_vm0, %v5072_v55, -inf  ;;  %v7212_v18 = vsel %vm5524_vm0, %v5320_v37, -inf }
 0x4ef   : > { %v7219_v44 = vsel %vm5524_vm0, %v5321_v21, -inf  ;;  %v6739_v60 = vrot.slane %v6738_v35, 2  ;;  %v6746_v12 = vrot.slane %v6745_v23, 2  ;;  %v7206_v42 = vrot.slane %v7205_v36, 4 }
 0x4f0   : > { %v6733_v54 = vmax.f32 %v6731_v62, %v6732_v51  ;;  %v6753_v45 = vrot.slane %v6752_v7, 2  ;;  %v7213_v34 = vrot.slane %v7212_v18, 4  ;;  %v7220_v13 = vrot.slane %v7219_v44, 4 }
 0x4f1   : > { %v7226_v16 = vsel %vm5524_vm0, %v5322_v14, -inf  ;;  %v6740_v53 = vmax.f32 %v6738_v35, %v6739_v60  ;;  %v6747_v25 = vmax.f32 %v6745_v23, %v6746_v12  ;;  %v7207_v47 = vmax.f32 %v7205_v36, %v7206_v42  ;;  %v13368_v23 = vld [vmem:[#allocation18_spill] sm:$0xff]  ;;  %v4762_v12 = vpop.f32.mrf.mxu2 }
 0x4f2   : > { %v6734_v38 = vrot.slane %v6733_v54, 1  ;;  %v6754_v33 = vmax.f32 %v6752_v7, %v6753_v45  ;;  %v7214_v11 = vmax.f32 %v7212_v18, %v7213_v34  ;;  %v7221_v50 = vmax.f32 %v7219_v44, %v7220_v13  ;;  %v13369_v7 = vld [vmem:[#allocation28_spill] sm:$0xff] }
 0x4f3   : > { %v7227_v1 = vrot.slane %v7226_v16, 4  ;;  %v6741_v59 = vrot.slane %v6740_v53, 1  ;;  %v6748_v61 = vrot.slane %v6747_v25, 1  ;;  %v7208_v31 = vrot.slane %v7207_v47, 2 }
 0x4f4   : > { %v6735_v3 = vmax.f32 %v6733_v54, %v6734_v38  ;;  %v6755_v20 = vrot.slane %v6754_v33, 1  ;;  %v7215_v4 = vrot.slane %v7214_v11, 2  ;;  %v7222_v55 = vrot.slane %v7221_v50, 2  ;;  %v13370_v54 = vld [vmem:[#allocation3_spill] sm:$0xff] }
 0x4f5   : > { %v7228_v24 = vmax.f32 %v7226_v16, %v7227_v1  ;;  %v6742_v2 = vmax.f32 %v6740_v53, %v6741_v59  ;;  %v6749_v27 = vmax.f32 %v6747_v25, %v6748_v61  ;;  %v7209_v26 = vmax.f32 %v7207_v47, %v7208_v31  ;;  %v13371_v31 = vld [vmem:[#allocation29_spill] sm:$0xff] }
 0x4f6   : > { %v7547_v43 = vsel %vm7317_vm1, %v6735_v3, -inf  ;;  %v6756_v62 = vmax.f32 %v6754_v33, %v6755_v20  ;;  %v7216_v57 = vmax.f32 %v7214_v11, %v7215_v4  ;;  %v7223_v8 = vmax.f32 %v7221_v50, %v7222_v55 }
 0x4f7   : > { %v7548_v19 = vmax.f32 %v13367_v52, %v7547_v43  ;;  %v7550_v37 = vsel %vm7317_vm1, %v6742_v2, -inf  ;;  %v7553_v21 = vsel %vm7317_vm1, %v6749_v27, -inf  ;;  %v7210_v51 = vrot.slane %v7209_v26, 1  ;;  %v13372_v27 = vld [vmem:[#allocation4_spill] sm:$0xff] }
 0x4f8   : > { %v7229_v35 = vrot.slane %v7228_v24, 2  ;;  %v7551_v14 = vmax.f32 %v13368_v23, %v7550_v37  ;;  %v7554_v36 = vmax.f32 %v13369_v7, %v7553_v21  ;;  %v7556_v18 = vsel %vm7317_vm1, %v6756_v62, -inf }
 0x4f9   : > { %v7778_v44 = vpack.c.bf16 %v7548_v19, %v7548_v19  ;;  %v7557_v60 = vmax.f32 %v13370_v54, %v7556_v18  ;;  %v7211_v42 = vmax.f32 %v7209_v26, %v7210_v51  ;;  %v7217_v45 = vrot.slane %v7216_v57, 1  ;;  %v13373_v26 = vld [vmem:[#allocation32_spill] sm:$0xff]  ;;  %v4807_v54 = vpop.f32.mrf.mxu3 }
 0x4fa   : > { %v7224_v34 = vrot.slane %v7223_v8, 1  ;;  %v7779_v13 = vpack.c.bf16 %v7551_v14, %v7551_v14  ;;  %v7780_v16 = vpack.c.bf16 %v7554_v36, %v7554_v36  ;;  %v7230_v53 = vmax.f32 %v7228_v24, %v7229_v35  ;;  %v13374_v14 = vld [vmem:[#allocation19_spill] sm:$0xff] }
 0x4fb   : > { %v8034_v38 = vunpack.c.l.b16 %v7778_v44  ;;  %v7781_v25 = vpack.c.bf16 %v7557_v60, %v7557_v60  ;;  %v7218_v47 = vmax.f32 %v7216_v57, %v7217_v45  ;;  %v7655_v11 = vsel %vm7317_vm1, %v7211_v42, -inf  ;;  %v3615_v44 = vpop.f32.mrf.mxu1 }
 0x4fc   : > { %v7225_v33 = vmax.f32 %v7223_v8, %v7224_v34  ;;  %v8035_v50 = vunpack.c.l.b16 %v7779_v13  ;;  %v8036_v1 = vunpack.c.l.b16 %v7780_v16  ;;  %v7231_v59 = vrot.slane %v7230_v53, 1  ;;  %v3374_v8 = vpop.f32.mrf.mxu0  ;;  %v4764_v13 = vpop.f32.mrf.mxu2 }
 0x4fd   : > { %v8159_v3 = vsel %vm8092_vm5, %v8034_v38, %v12880_v17  ;;  %v8037_v61 = vunpack.c.l.b16 %v7781_v25  ;;  %v7656_v20 = vmax.f32 %v13371_v31, %v7655_v11  ;;  %v7658_v4 = vsel %vm7317_vm1, %v7218_v47, -inf  ;;  %v13375_v47 = vld [vmem:[#allocation24_spill] sm:$0xff] }
 0x4fe   : > { %v7661_v55 = vsel %vm7317_vm1, %v7225_v33, -inf  ;;  %v8160_v24 = vsel %vm8094_vm6, %v8035_v50, %v8159_v3  ;;  %v7232_v2 = vmax.f32 %v7230_v53, %v7231_v59  ;;  %v7659_v43 = vmax.f32 %v13372_v27, %v7658_v4 }
 0x4ff   : > { %v7662_v62 = vmax.f32 %v13373_v26, %v7661_v55  ;;  %v8161_v52 = vsel %vm8096_vm7, %v8036_v1, %v8160_v24  ;;  %v7814_v19 = vpack.c.bf16 %v7656_v20, %v7656_v20  ;;  %v4941_v17 = vmul.f32 %v12769_v32, %v12887_v30 }
 0x500   : > { %v4856_v57 = vadd.f32 %v4762_v12, %v12889_v5  ;;  %v8162_v37 = vsel %vm8098_vm8, %v8037_v61, %v8161_v52  ;;  %v7664_v21 = vsel %vm7317_vm1, %v7232_v2, -inf  ;;  %v7815_v51 = vpack.c.bf16 %v7659_v43, %v7659_v43 }
 0x501   : > { %v7816_v35 = vpack.c.bf16 %v7662_v62, %v7662_v62  ;;  %v8214_v23 = vpack.c.b16 %v8162_v37, %v8162_v37  ;;  %v7665_v7 = vmax.f32 %v13374_v14, %v7664_v21  ;;  %v8070_v36 = vunpack.c.l.b16 %v7814_v19 }
 0x502   : > { %v5009_v18 = vadd.f32 %v12775_v39, %v4941_v17  ;;  %v8071_v60 = vunpack.c.l.b16 %v7815_v51  ;;  %v4924_v5 = vmul.f32 %v12769_v32, %v4856_v57  ;;  %v3616_v12 = vadd.f32 %v3615_v44, %v3374_v8 }
 0x503   : > { %v8072_v30 = vunpack.c.l.b16 %v7816_v35  ;;  %v6608_v42 = vrot.slane %v12720_v28, 1  ;;  %v6615_v45 = vrot.slane %v12722_v46, 1  ;;  %8247 = vst.msk [vmem:[%s9280_s9 + $0x24] sm:$0xf] %vm8237_vm11, %v8214_v23  ;;  %v7817_v34 = vpack.c.bf16 %v7665_v7, %v7665_v7 }
 0x504   : > { %v5073_v16 = vmax.f32 %v5009_v18, 0.0  ;;  %v8191_v38 = vsel %vm8086_vm2, %v8071_v60, %v8070_v36  ;;  %v4992_v53 = vadd.f32 %v12775_v39, %v4924_v5  ;;  %v4857_v25 = vadd.f32 %v4764_v13, %v3616_v12 }
 0x505   : > { %v12937_v33 = vadd.f32 %v4807_v54, %v13375_v47  ;;  %v8073_v11 = vunpack.c.l.b16 %v7817_v34  ;;  %v8192_v50 = vsel %vm8088_vm3, %v8072_v30, %v8191_v38 }
 0x506   : > { %v5323_v1 = vrot.slane %v5073_v16, 2  ;;  %v5324_v3 = vrot.slane %v5073_v16, 4  ;;  %v5325_v59 = vrot.slane %v5073_v16, 6  ;;  %v7233_v61 = vsel %vm5524_vm0, %v5073_v16, -inf }
 0x507   : > { %v5056_v31 = vmax.f32 %v4992_v53, 0.0  ;;  %v12942_v20 = vmul.f32 %v12769_v32, %v4857_v25  ;;  %v12945_v4 = vsel %vm8090_vm4, %v8073_v11, %v8192_v50  ;;  %v7234_v55 = vrot.slane %v7233_v61, 4 }
 0x508   : > { %v7240_v24 = vsel %vm5524_vm0, %v5323_v1, -inf  ;;  %v7247_v2 = vsel %vm5524_vm0, %v5324_v3, -inf  ;;  %v7254_v26 = vsel %vm5524_vm0, %v5325_v59, -inf }
 0x509   : > { %v7241_v27 = vrot.slane %v7240_v24, 4  ;;  %v7248_v43 = vrot.slane %v7247_v2, 4  ;;  %v5272_v62 = vrot.slane %v5056_v31, 2  ;;  %v7235_v52 = vmax.f32 %v7233_v61, %v7234_v55 }
 0x50a   : > { %v7255_v19 = vrot.slane %v7254_v26, 4  ;;  %v5273_v17 = vrot.slane %v5056_v31, 4  ;;  %v5274_v57 = vrot.slane %v5056_v31, 6  ;;  %v6757_v21 = vsel %vm5524_vm0, %v5056_v31, -inf }
 0x50b   : > { %v7242_v8 = vmax.f32 %v7240_v24, %v7241_v27  ;;  %v7249_v37 = vmax.f32 %v7247_v2, %v7248_v43  ;;  %v6764_v51 = vsel %vm5524_vm0, %v5272_v62, -inf  ;;  %v7236_v35 = vrot.slane %v7235_v52, 2 }
 0x50c   : > { %v7256_v23 = vmax.f32 %v7254_v26, %v7255_v19  ;;  %v6758_v14 = vrot.slane %v6757_v21, 4  ;;  %v6765_v7 = vrot.slane %v6764_v51, 4  ;;  %v6771_v44 = vsel %vm5524_vm0, %v5273_v17, -inf }
 0x50d   : > { %v7243_v36 = vrot.slane %v7242_v8, 2  ;;  %v7250_v18 = vrot.slane %v7249_v37, 2  ;;  %v6778_v54 = vsel %vm5524_vm0, %v5274_v57, -inf  ;;  %v7237_v60 = vmax.f32 %v7235_v52, %v7236_v35  ;;  %v13376_v57 = vld [vmem:[#allocation8_spill] sm:$0xff]  ;;  %v13377_v35 = vld [vmem:[#allocation9_spill] sm:$0xff] }
 0x50e   : > { %v7257_v30 = vrot.slane %v7256_v23, 2  ;;  %v6759_v5 = vmax.f32 %v6757_v21, %v6758_v14  ;;  %v6766_v12 = vmax.f32 %v6764_v51, %v6765_v7  ;;  %v6772_v16 = vrot.slane %v6771_v44, 4  ;;  %v13378_v14 = vld [vmem:[#allocation10_spill] sm:$0xff] }
 0x50f   : > { %v7244_v34 = vmax.f32 %v7242_v8, %v7243_v36  ;;  %v7251_v13 = vmax.f32 %v7249_v37, %v7250_v18  ;;  %v6779_v38 = vrot.slane %v6778_v54, 4  ;;  %v7238_v53 = vrot.slane %v7237_v60, 1 }
 0x510   : > { %v7258_v25 = vmax.f32 %v7256_v23, %v7257_v30  ;;  %v6760_v47 = vrot.slane %v6759_v5, 2  ;;  %v6767_v11 = vrot.slane %v6766_v12, 2  ;;  %v6773_v3 = vmax.f32 %v6771_v44, %v6772_v16  ;;  %v13379_v44 = vld [vmem:[#allocation20_spill] sm:$0xff] }
 0x511   : > { %v7245_v50 = vrot.slane %v7244_v34, 1  ;;  %v7252_v1 = vrot.slane %v7251_v13, 1  ;;  %v6780_v59 = vmax.f32 %v6778_v54, %v6779_v38  ;;  %v7239_v61 = vmax.f32 %v7237_v60, %v7238_v53 }
 0x512   : > { %v7259_v31 = vrot.slane %v7258_v25, 1  ;;  %v6761_v55 = vmax.f32 %v6759_v5, %v6760_v47  ;;  %v6768_v24 = vmax.f32 %v6766_v12, %v6767_v11  ;;  %v6774_v43 = vrot.slane %v6773_v3, 2  ;;  %v13380_v47 = vld [vmem:[#allocation34_spill] sm:$0xff] }
 0x513   : > { %v7246_v2 = vmax.f32 %v7244_v34, %v7245_v50  ;;  %v7253_v27 = vmax.f32 %v7251_v13, %v7252_v1  ;;  %v6781_v26 = vrot.slane %v6780_v59, 2  ;;  %v7667_v52 = vsel %vm7317_vm1, %v7239_v61, -inf }
 0x514   : > { %v7260_v62 = vmax.f32 %v7258_v25, %v7259_v31  ;;  %v6762_v19 = vrot.slane %v6761_v55, 1  ;;  %v6769_v17 = vrot.slane %v6768_v24, 1  ;;  %v7668_v8 = vmax.f32 %v13376_v57, %v7667_v52 }
 0x515   : > { %v7670_v37 = vsel %vm7317_vm1, %v7246_v2, -inf  ;;  %v7673_v21 = vsel %vm7317_vm1, %v7253_v27, -inf  ;;  %v6775_v51 = vmax.f32 %v6773_v3, %v6774_v43  ;;  %v6782_v13 = vmax.f32 %v6780_v59, %v6781_v26  ;;  %v13382_v26 = vld [vmem:[#allocation6_spill] sm:$0xff] }
 0x516   : > { %v7671_v23 = vmax.f32 %v13377_v35, %v7670_v37  ;;  %v7674_v7 = vmax.f32 %v13378_v14, %v7673_v21  ;;  %v7676_v36 = vsel %vm7317_vm1, %v7260_v62, -inf  ;;  %v6763_v18 = vmax.f32 %v6761_v55, %v6762_v19  ;;  %v4809_v37 = vpop.f32.mrf.mxu3 }
 0x517   : > { %v7677_v54 = vmax.f32 %v13379_v44, %v7676_v36  ;;  %v7818_v60 = vpack.c.bf16 %v7668_v8, %v7668_v8  ;;  %v6770_v30 = vmax.f32 %v6768_v24, %v6769_v17  ;;  %v6776_v5 = vrot.slane %v6775_v51, 1  ;;  %v13381_v24 = vld [vmem:[#allocation5_spill] sm:$0xff] }
 0x518   : > { %v7819_v12 = vpack.c.bf16 %v7671_v23, %v7671_v23  ;;  %v7820_v34 = vpack.c.bf16 %v7674_v7, %v7674_v7  ;;  %v7559_v16 = vsel %vm7317_vm1, %v6763_v18, -inf  ;;  %v6783_v3 = vrot.slane %v6782_v13, 1  ;;  %v13383_v7 = vld [vmem:[#allocation7_spill] sm:$0xff] }
 0x519   : > { %v7821_v38 = vpack.c.bf16 %v7677_v54, %v7677_v54  ;;  %v8074_v53 = vunpack.c.l.b16 %v7818_v60  ;;  %v6777_v25 = vmax.f32 %v6775_v51, %v6776_v5  ;;  %v7560_v11 = vmax.f32 %v13380_v47, %v7559_v16  ;;  %v3618_v54 = vpop.f32.mrf.mxu1 }
 0x51a   : > { %v8075_v50 = vunpack.c.l.b16 %v7819_v12  ;;  %v8076_v1 = vunpack.c.l.b16 %v7820_v34  ;;  %v7562_v61 = vsel %vm7317_vm1, %v6770_v30, -inf  ;;  %v6784_v43 = vmax.f32 %v6782_v13, %v6783_v3 }
 0x51b   : > { %v8077_v31 = vunpack.c.l.b16 %v7821_v38  ;;  %v8194_v55 = vsel %vm8092_vm5, %v8074_v53, %v12945_v4  ;;  %v7563_v2 = vmax.f32 %v13381_v24, %v7562_v61  ;;  %v7565_v59 = vsel %vm7317_vm1, %v6777_v25, -inf  ;;  %v3377_v4 = vpop.f32.mrf.mxu0 }
 0x51c   : > { %v8195_v27 = vsel %vm8094_vm6, %v8075_v50, %v8194_v55  ;;  %v7566_v62 = vmax.f32 %v13382_v26, %v7565_v59  ;;  %v7782_v52 = vpack.c.bf16 %v7560_v11, %v7560_v11  ;;  %v4993_v57 = vadd.f32 %v12775_v39, %v12942_v20 }
 0x51d   : > { %v8196_v19 = vsel %vm8096_vm7, %v8076_v1, %v8195_v27  ;;  %v7783_v17 = vpack.c.bf16 %v7563_v2, %v7563_v2  ;;  %v4942_v8 = vmul.f32 %v12769_v32, %v12937_v33  ;;  %v7568_v51 = vsel %vm7317_vm1, %v6784_v43, -inf  ;;  %v13384_v32 = vld [vmem:[#allocation25_spill] sm:$0xff] }
 0x51e   : > { %v8197_v21 = vsel %vm8098_vm8, %v8077_v31, %v8196_v19  ;;  %v7784_v35 = vpack.c.bf16 %v7566_v62, %v7566_v62  ;;  %v8038_v23 = vunpack.c.l.b16 %v7782_v52  ;;  %v7569_v36 = vmax.f32 %v13383_v7, %v7568_v51 }
 0x51f   : > { %v8219_v14 = vpack.c.b16 %v8197_v21, %v8197_v21  ;;  %v8039_v18 = vunpack.c.l.b16 %v7783_v17  ;;  %v5057_v44 = vmax.f32 %v4993_v57, 0.0  ;;  %v5010_v20 = vadd.f32 %v12775_v39, %v4942_v8 }
 0x520   : > { %v8040_v60 = vunpack.c.l.b16 %v7784_v35  ;;  %v12980_v30 = vadd.f32 %v3618_v54, %v3377_v4  ;;  %v12983_v33 = vadd.f32 %v4809_v37, %v13384_v32  ;;  %v7785_v5 = vpack.c.bf16 %v7569_v36, %v7569_v36 }
 0x521   : > { %8252 = vst.msk [vmem:[%s9280_s9 + $0x38] sm:$0xf] %vm8237_vm11, %v8219_v14  ;;  %v8163_v12 = vsel %vm8086_vm2, %v8039_v18, %v8038_v23  ;;  %v5275_v34 = vrot.slane %v5057_v44, 2  ;;  %v5276_v13 = vrot.slane %v5057_v44, 4  ;;  %v5277_v38 = vrot.slane %v5057_v44, 6 }
 0x522   : > { %v8164_v16 = vsel %vm8088_vm3, %v8040_v60, %v8163_v12  ;;  %v6785_v53 = vsel %vm5524_vm0, %v5057_v44, -inf  ;;  %v5074_v25 = vmax.f32 %v5010_v20, 0.0  ;;  %v8041_v47 = vunpack.c.l.b16 %v7785_v5 }
 0x523   : > { %v6786_v39 = vrot.slane %v6785_v53, 4  ;;  %v6792_v11 = vsel %vm5524_vm0, %v5275_v34, -inf  ;;  %v6799_v50 = vsel %vm5524_vm0, %v5276_v13, -inf  ;;  %v6806_v61 = vsel %vm5524_vm0, %v5277_v38, -inf }
 0x524   : > { %v6793_v1 = vrot.slane %v6792_v11, 4  ;;  %v6800_v3 = vrot.slane %v6799_v50, 4  ;;  %v5326_v31 = vrot.slane %v5074_v25, 2  ;;  %v12994_v55 = vsel %vm8090_vm4, %v8041_v47, %v8164_v16 }
 0x525   : > { %v6787_v24 = vmax.f32 %v6785_v53, %v6786_v39  ;;  %v6807_v2 = vrot.slane %v6806_v61, 4  ;;  %v5327_v59 = vrot.slane %v5074_v25, 4  ;;  %v5328_v26 = vrot.slane %v5074_v25, 6 }
 0x526   : > { %v6794_v27 = vmax.f32 %v6792_v11, %v6793_v1  ;;  %v6801_v43 = vmax.f32 %v6799_v50, %v6800_v3  ;;  %v7261_v62 = vsel %vm5524_vm0, %v5074_v25, -inf  ;;  %v7268_v57 = vsel %vm5524_vm0, %v5326_v31, -inf }
 0x527   : > { %v6788_v52 = vrot.slane %v6787_v24, 2  ;;  %v6808_v19 = vmax.f32 %v6806_v61, %v6807_v2  ;;  %v7262_v17 = vrot.slane %v7261_v62, 4  ;;  %v7269_v37 = vrot.slane %v7268_v57, 4 }
 0x528   : > { %v6795_v8 = vrot.slane %v6794_v27, 2  ;;  %v6802_v4 = vrot.slane %v6801_v43, 2  ;;  %v7275_v21 = vsel %vm5524_vm0, %v5327_v59, -inf  ;;  %v7282_v44 = vsel %vm5524_vm0, %v5328_v26, -inf  ;;  %v13385_v26 = vld [vmem:[#allocation13_spill] sm:$0xff] }
 0x529   : > { %v6789_v51 = vmax.f32 %v6787_v24, %v6788_v52  ;;  %v6809_v35 = vrot.slane %v6808_v19, 2  ;;  %v7263_v23 = vmax.f32 %v7261_v62, %v7262_v17  ;;  %v7276_v14 = vrot.slane %v7275_v21, 4 }
 0x52a   : > { %v6796_v7 = vmax.f32 %v6794_v27, %v6795_v8  ;;  %v6803_v36 = vmax.f32 %v6801_v43, %v6802_v4  ;;  %v7270_v18 = vmax.f32 %v7268_v57, %v7269_v37  ;;  %v7283_v13 = vrot.slane %v7282_v44, 4 }
 0x52b   : > { %v6790_v54 = vrot.slane %v6789_v51, 1  ;;  %v6810_v60 = vmax.f32 %v6808_v19, %v6809_v35  ;;  %v7264_v20 = vrot.slane %v7263_v23, 2  ;;  %v7277_v32 = vmax.f32 %v7275_v21, %v7276_v14 }
 0x52c   : > { %v6797_v5 = vrot.slane %v6796_v7, 1  ;;  %v6804_v12 = vrot.slane %v6803_v36, 1  ;;  %v7271_v34 = vrot.slane %v7270_v18, 2  ;;  %v7284_v50 = vmax.f32 %v7282_v44, %v7283_v13 }
 0x52d   : > { %v6791_v16 = vmax.f32 %v6789_v51, %v6790_v54  ;;  %v6811_v38 = vrot.slane %v6810_v60, 1  ;;  %v7265_v53 = vmax.f32 %v7263_v23, %v7264_v20  ;;  %v7278_v25 = vrot.slane %v7277_v32, 2 }
 0x52e   : > { %v6798_v47 = vmax.f32 %v6796_v7, %v6797_v5  ;;  %v6805_v39 = vmax.f32 %v6803_v36, %v6804_v12  ;;  %v7272_v11 = vmax.f32 %v7270_v18, %v7271_v34 }
 0x52f   : > { %v6812_v1 = vmax.f32 %v6810_v60, %v6811_v38  ;;  %v7571_v3 = vsel %vm7317_vm1, %v6791_v16, -inf  ;;  %v7266_v61 = vrot.slane %v7265_v53, 1  ;;  %v7279_v31 = vmax.f32 %v7277_v32, %v7278_v25 }
 0x530   : > { %v7572_v24 = vmax.f32 %v12659_v48, %v7571_v3  ;;  %v7574_v2 = vsel %vm7317_vm1, %v6798_v47, -inf  ;;  %v7577_v59 = vsel %vm7317_vm1, %v6805_v39, -inf  ;;  %v7273_v27 = vrot.slane %v7272_v11, 1 }
 0x531   : > { %v7575_v43 = vmax.f32 %v12662_v63, %v7574_v2  ;;  %v7578_v62 = vmax.f32 %v13385_v26, %v7577_v59  ;;  %v7580_v52 = vsel %vm7317_vm1, %v6812_v1, -inf  ;;  %v7267_v19 = vmax.f32 %v7265_v53, %v7266_v61 }
 0x532   : > { %v7581_v17 = vmax.f32 %v12676_v9, %v7580_v52  ;;  %v7786_v57 = vpack.c.bf16 %v7572_v24, %v7572_v24  ;;  %v7274_v8 = vmax.f32 %v7272_v11, %v7273_v27  ;;  %v7280_v4 = vrot.slane %v7279_v31, 1 }
 0x533   : > { %v7787_v37 = vpack.c.bf16 %v7575_v43, %v7575_v43  ;;  %v7788_v21 = vpack.c.bf16 %v7578_v62, %v7578_v62  ;;  %v7285_v48 = vrot.slane %v7284_v50, 2  ;;  %v7679_v51 = vsel %vm7317_vm1, %v7267_v19, -inf }
 0x534   : > { %v7789_v35 = vpack.c.bf16 %v7581_v17, %v7581_v17  ;;  %v8042_v23 = vunpack.c.l.b16 %v7786_v57  ;;  %v7281_v14 = vmax.f32 %v7279_v31, %v7280_v4  ;;  %v7680_v63 = vmax.f32 %v12679_v49, %v7679_v51  ;;  %v4767_v49 = vpop.f32.mrf.mxu2 }
 0x535   : > { %v8043_v7 = vunpack.c.l.b16 %v7787_v37  ;;  %v8044_v36 = vunpack.c.l.b16 %v7788_v21  ;;  %v7286_v18 = vmax.f32 %v7284_v50, %v7285_v48  ;;  %v7682_v44 = vsel %vm7317_vm1, %v7274_v8, -inf }
 0x536   : > { %v8045_v54 = vunpack.c.l.b16 %v7789_v35  ;;  %v8166_v9 = vsel %vm8092_vm5, %v8042_v23, %v12994_v55  ;;  %v7683_v60 = vmax.f32 %v12682_v29, %v7682_v44  ;;  %v7685_v20 = vsel %vm7317_vm1, %v7281_v14, -inf  ;;  %v13022_v55 = vld [vmem:[%s13160_s2] ss:$0 sm:$0xff] }
 0x537   : > { %v8167_v32 = vsel %vm8094_vm6, %v8043_v7, %v8166_v9  ;;  %v7287_v5 = vrot.slane %v7286_v18, 1  ;;  %v7686_v12 = vmax.f32 %v12685_v58, %v7685_v20  ;;  %v7822_v34 = vpack.c.bf16 %v7680_v63, %v7680_v63 }
 0x538   : > { %v8168_v13 = vsel %vm8096_vm7, %v8044_v36, %v8167_v32  ;;  %v7823_v16 = vpack.c.bf16 %v7683_v60, %v7683_v60  ;;  %v4858_v38 = vadd.f32 %v4767_v49, %v12980_v30  ;;  %v4943_v29 = vmul.f32 %v13022_v55, %v12983_v33  ;;  %v13031_v30 = vld [vmem:[%s13161_s3] ss:$0 sm:$0xff] }
 0x539   : > { %v8169_v53 = vsel %vm8098_vm8, %v8045_v54, %v8168_v13  ;;  %v7288_v25 = vmax.f32 %v7286_v18, %v7287_v5  ;;  %v7824_v58 = vpack.c.bf16 %v7686_v12, %v7686_v12  ;;  %v8078_v47 = vunpack.c.l.b16 %v7822_v34 }
 0x53a   : > { %v8215_v39 = vpack.c.b16 %v8169_v53, %v8169_v53  ;;  %v8079_v11 = vunpack.c.l.b16 %v7823_v16  ;;  %v4926_v50 = vmul.f32 %v13022_v55, %v4858_v38  ;;  %v5011_v1 = vadd.f32 %v13031_v30, %v4943_v29 }
 0x53b   : > { %v13036_v3 = vsel %vm7317_vm1, %v12718_v15, -inf  ;;  %v6625_v33 = vrot.slane %v12726_v40, 4  ;;  %v7688_v61 = vsel %vm7317_vm1, %v7288_v25, -inf  ;;  %v8080_v31 = vunpack.c.l.b16 %v7824_v58  ;;  %v3379_v58 = vpop.f32.mrf.mxu0 }
 0x53c   : > { %8248 = vst.msk [vmem:[%s9280_s9 + $0x28] sm:$0xf] %vm8237_vm11, %v8215_v39  ;;  %v7689_v24 = vmax.f32 %v12688_v22, %v7688_v61  ;;  %v8198_v2 = vsel %vm8086_vm2, %v8079_v11, %v8078_v47  ;;  %v4994_v59 = vadd.f32 %v13031_v30, %v4926_v50  ;;  %v5075_v27 = vmax.f32 %v5011_v1, 0.0 }
 0x53d   : > { %v13386_v43 = vrot.slane %v12714_v0, 4  ;;  %v6632_v15 = vrot.slane %v12729_v10, 4  ;;  %v13387_v62 = vrot.slane %v12696_v6, 6  ;;  %v8199_v19 = vsel %vm8088_vm3, %v8080_v31, %v8198_v2 }
 0x53e   : > { %v7825_v22 = vpack.c.bf16 %v7689_v24, %v7689_v24  ;;  %v5058_v17 = vmax.f32 %v4994_v59, 0.0  ;;  %v5329_v57 = vrot.slane %v5075_v27, 2  ;;  %v5330_v8 = vrot.slane %v5075_v27, 4 }
 0x53f   : > { %v13048_v26 = vmax.f32 %v12714_v0, %v13386_v43  ;;  %v13054_v52 = vsel %vm5524_vm0, %v13387_v62, -inf  ;;  %v13388_v4 = vrot.slane %v12716_v56, 1  ;;  %v6609_v0 = vmax.f32 %v12720_v28, %v6608_v42 }
 0x540   : > { %v5331_v21 = vrot.slane %v5075_v27, 6  ;;  %v7289_v6 = vsel %vm5524_vm0, %v5075_v27, -inf  ;;  %v8081_v48 = vunpack.c.l.b16 %v7825_v22  ;;  %v5278_v51 = vrot.slane %v5058_v17, 2 }
 0x541   : > { %v6602_v37 = vmax.f32 %v12716_v56, %v13388_v4  ;;  %v5279_v35 = vrot.slane %v5058_v17, 4  ;;  %v5280_v23 = vrot.slane %v5058_v17, 6  ;;  %v6813_v14 = vsel %vm5524_vm0, %v5058_v17, -inf }
 0x542   : > { %v7290_v63 = vrot.slane %v7289_v6, 4  ;;  %v7296_v7 = vsel %vm5524_vm0, %v5329_v57, -inf  ;;  %v7303_v36 = vsel %vm5524_vm0, %v5330_v8, -inf  ;;  %v13068_v56 = vsel %vm8090_vm4, %v8081_v48, %v8199_v19  ;;  %v4769_v48 = vpop.f32.mrf.mxu2 }
 0x543   : > { %v6814_v18 = vrot.slane %v6813_v14, 4  ;;  %v6820_v28 = vsel %vm5524_vm0, %v5278_v51, -inf  ;;  %v6827_v42 = vsel %vm5524_vm0, %v5279_v35, -inf  ;;  %v6834_v9 = vsel %vm5524_vm0, %v5280_v23, -inf }
 0x544   : > { %v6821_v44 = vrot.slane %v6820_v28, 4  ;;  %v6828_v54 = vrot.slane %v6827_v42, 4  ;;  %v7291_v60 = vmax.f32 %v7289_v6, %v7290_v63  ;;  %v6835_v32 = vrot.slane %v6834_v9, 4 }
 0x545   : > { %v6815_v20 = vmax.f32 %v6813_v14, %v6814_v18  ;;  %v7297_v5 = vrot.slane %v7296_v7, 4  ;;  %v7304_v12 = vrot.slane %v7303_v36, 4  ;;  %v6616_v34 = vmax.f32 %v12722_v46, %v6615_v45  ;;  %v3620_v46 = vpop.f32.mrf.mxu1 }
 0x546   : > { %v6822_v49 = vmax.f32 %v6820_v28, %v6821_v44  ;;  %v7292_v13 = vrot.slane %v7291_v60, 2  ;;  %v7310_v16 = vsel %vm5524_vm0, %v5331_v21, -inf  ;;  %v6626_v38 = vmax.f32 %v12726_v40, %v6625_v33 }
 0x547   : > { %v6829_v29 = vmax.f32 %v6827_v42, %v6828_v54  ;;  %v7298_v53 = vmax.f32 %v7296_v7, %v7297_v5  ;;  %v7305_v25 = vmax.f32 %v7303_v36, %v7304_v12  ;;  %v6620_v47 = vrot.slane %v13048_v26, 2 }
 0x548   : > { %v6823_v39 = vrot.slane %v6822_v49, 2  ;;  %v7293_v11 = vmax.f32 %v7291_v60, %v7292_v13  ;;  %v7311_v50 = vrot.slane %v7310_v16, 4  ;;  %v6816_v1 = vrot.slane %v6815_v20, 2 }
 0x549   : > { %v6836_v61 = vmax.f32 %v6834_v9, %v6835_v32  ;;  %v7299_v31 = vrot.slane %v7298_v53, 2  ;;  %v7306_v24 = vrot.slane %v7305_v25, 2  ;;  %v6633_v45 = vmax.f32 %v12729_v10, %v6632_v15 }
 0x54a   : > { %v7294_v2 = vrot.slane %v7293_v11, 1  ;;  %v7312_v59 = vmax.f32 %v7310_v16, %v7311_v50  ;;  %v3621_v27 = vadd.f32 %v3620_v46, %v3379_v58  ;;  %v6639_v40 = vrot.slane %v13054_v52, 4  ;;  %v13391_v58 = vld [vmem:[#allocation38_spill] sm:$0xff] }
 0x54b   : > { %v6830_v33 = vrot.slane %v6829_v29, 2  ;;  %v7300_v43 = vmax.f32 %v7298_v53, %v7299_v31  ;;  %v7307_v62 = vmax.f32 %v7305_v25, %v7306_v24  ;;  %v7585_v19 = vsel %vm7317_vm1, %v6602_v37, -inf }
 0x54c   : > { %v6824_v22 = vmax.f32 %v6822_v49, %v6823_v39  ;;  %v7295_v17 = vmax.f32 %v7293_v11, %v7294_v2  ;;  %v7313_v57 = vrot.slane %v7312_v59, 2  ;;  %v6817_v8 = vmax.f32 %v6815_v20, %v6816_v1 }
 0x54d   : > { %v6837_v4 = vrot.slane %v6836_v61, 2  ;;  %v7301_v21 = vrot.slane %v7300_v43, 1  ;;  %v7308_v6 = vrot.slane %v7307_v62, 1  ;;  %v13083_v10 = vsel %vm7317_vm1, %v6609_v0, -inf }
 0x54e   : > { %v7314_v15 = vmax.f32 %v7312_v59, %v7313_v57  ;;  %v7691_v51 = vsel %vm7317_vm1, %v7295_v17, -inf  ;;  %v4859_v35 = vadd.f32 %v4769_v48, %v3621_v27  ;;  %v6627_v23 = vrot.slane %v6626_v38, 2 }
 0x54f   : > { %v6831_v14 = vmax.f32 %v6829_v29, %v6830_v33  ;;  %v7302_v63 = vmax.f32 %v7300_v43, %v7301_v21  ;;  %v7309_v7 = vmax.f32 %v7307_v62, %v7308_v6  ;;  %v13087_v37 = vsel %vm7317_vm1, %v6616_v34, -inf  ;;  %v13389_v34 = vld [vmem:[#allocation21_spill] sm:$0xff]  ;;  %v13390_v29 = vld [vmem:[#allocation14_spill] sm:$0xff] }
 0x550   : > { %v13090_v36 = vmax.f32 %v13048_v26, %v6620_v47  ;;  %v6825_v18 = vrot.slane %v6824_v22, 1  ;;  %v7315_v28 = vrot.slane %v7314_v15, 1  ;;  %v6634_v42 = vrot.slane %v6633_v45, 2 }
 0x551   : > { %v6818_v44 = vrot.slane %v6817_v8, 1  ;;  %v6838_v0 = vmax.f32 %v6836_v61, %v6837_v4  ;;  %v7692_v54 = vmax.f32 %v12691_v41, %v7691_v51  ;;  %v6640_v9 = vmax.f32 %v13054_v52, %v6639_v40 }
 0x552   : > { %v7316_v60 = vmax.f32 %v7314_v15, %v7315_v28  ;;  %v7694_v20 = vsel %vm7317_vm1, %v7302_v63, -inf  ;;  %v4927_v32 = vmul.f32 %v13022_v55, %v4859_v35  ;;  %v13096_v5 = vmax.f32 %v6626_v38, %v6627_v23 }
 0x553   : > { %v6832_v12 = vrot.slane %v6831_v14, 1  ;;  %v7695_v26 = vmax.f32 %v13389_v34, %v7694_v20  ;;  %v7697_v49 = vsel %vm7317_vm1, %v7309_v7, -inf  ;;  %v6622_v13 = vrot.slane %v13090_v36, 1 }
 0x554   : > { %v6826_v16 = vmax.f32 %v6824_v22, %v6825_v18  ;;  %v7698_v53 = vmax.f32 %v13390_v29, %v7697_v49  ;;  %v7700_v41 = vsel %vm7317_vm1, %v7316_v60, -inf  ;;  %v6819_v52 = vmax.f32 %v6817_v8, %v6818_v44 }
 0x555   : > { %v6839_v25 = vrot.slane %v6838_v0, 1  ;;  %v7701_v47 = vmax.f32 %v13391_v58, %v7700_v41  ;;  %v7826_v39 = vpack.c.bf16 %v7692_v54, %v7692_v54  ;;  %v6635_v55 = vmax.f32 %v6633_v45, %v6634_v42 }
 0x556   : > { %v7827_v38 = vpack.c.bf16 %v7695_v26, %v7695_v26  ;;  %v7828_v11 = vpack.c.bf16 %v7698_v53, %v7698_v53  ;;  %v4995_v50 = vadd.f32 %v13031_v30, %v4927_v32  ;;  %v6641_v1 = vrot.slane %v6640_v9, 2 }
 0x557   : > { %v6833_v61 = vmax.f32 %v6831_v14, %v6832_v12  ;;  %v7829_v31 = vpack.c.bf16 %v7701_v47, %v7701_v47  ;;  %v8082_v24 = vunpack.c.l.b16 %v7826_v39  ;;  %v7586_v46 = vsel %vm7317_vm1, %v6826_v16, -inf }
 0x558   : > { %v8083_v2 = vunpack.c.l.b16 %v7827_v38  ;;  %v8084_v59 = vunpack.c.l.b16 %v7828_v11  ;;  %v5059_v27 = vmax.f32 %v4995_v50, 0.0  ;;  %v6840_v40 = vmax.f32 %v6838_v0, %v6839_v25 }
 0x559   : > { %v7583_v33 = vsel %vm7317_vm1, %v6819_v52, -inf  ;;  %v8085_v43 = vunpack.c.l.b16 %v7829_v31  ;;  %v8201_v45 = vsel %vm8092_vm5, %v8082_v24, %v13068_v56  ;;  %v7587_v57 = vmax.f32 %v7585_v19, %v7586_v46 }
 0x55a   : > { %v8202_v62 = vsel %vm8094_vm6, %v8083_v2, %v8201_v45  ;;  %v5281_v22 = vrot.slane %v5059_v27, 2  ;;  %v5282_v30 = vrot.slane %v5059_v27, 4  ;;  %v5283_v17 = vrot.slane %v5059_v27, 6 }
 0x55b   : > { %v7589_v8 = vsel %vm7317_vm1, %v6833_v61, -inf  ;;  %v8203_v4 = vsel %vm8096_vm7, %v8084_v59, %v8202_v62  ;;  %v6841_v21 = vsel %vm5524_vm0, %v5059_v27, -inf  ;;  %v6642_v19 = vmax.f32 %v6640_v9, %v6641_v1 }
 0x55c   : > { %v8204_v6 = vsel %vm8098_vm8, %v8085_v43, %v8203_v4  ;;  %v6842_v48 = vrot.slane %v6841_v21, 4  ;;  %v6848_v15 = vsel %vm5524_vm0, %v5281_v22, -inf  ;;  %v6855_v56 = vsel %vm5524_vm0, %v5282_v30, -inf }
 0x55d   : > { %v8220_v51 = vpack.c.b16 %v8204_v6, %v8204_v6  ;;  %v6849_v35 = vrot.slane %v6848_v15, 4  ;;  %v6856_v23 = vrot.slane %v6855_v56, 4  ;;  %v6862_v14 = vsel %vm5524_vm0, %v5283_v17, -inf }
 0x55e   : > { %v7584_v63 = vmax.f32 %v13036_v3, %v7583_v33  ;;  %v6843_v7 = vmax.f32 %v6841_v21, %v6842_v48  ;;  %v6863_v18 = vrot.slane %v6862_v14, 4  ;;  %v6629_v28 = vrot.slane %v13096_v5, 1 }
 0x55f   : > { %v7590_v42 = vmax.f32 %v13083_v10, %v7589_v8  ;;  %8253 = vst.msk [vmem:[%s9280_s9 + $0x3c] sm:$0xf] %vm8237_vm11, %v8220_v51  ;;  %v6850_v44 = vmax.f32 %v6848_v15, %v6849_v35  ;;  %v6857_v0 = vmax.f32 %v6855_v56, %v6856_v23  ;;  %v6623_v54 = vmax.f32 %v13090_v36, %v6622_v13 }
 0x560   : > { %v7791_v60 = vpack.c.bf16 %v7587_v57, %v7587_v57  ;;  %v6844_v20 = vrot.slane %v6843_v7, 2  ;;  %v6864_v32 = vmax.f32 %v6862_v14, %v6863_v18  ;;  %v6636_v12 = vrot.slane %v6635_v55, 1 }
 0x561   : > { %v7592_v9 = vsel %vm7317_vm1, %v6840_v40, -inf  ;;  %v6851_v34 = vrot.slane %v6850_v44, 2  ;;  %v6858_v3 = vrot.slane %v6857_v0, 2  ;;  %v6643_v26 = vrot.slane %v6642_v19, 1 }
 0x562   : > { %v7790_v49 = vpack.c.bf16 %v7584_v63, %v7584_v63  ;;  %v6845_v16 = vmax.f32 %v6843_v7, %v6844_v20  ;;  %v6865_v29 = vrot.slane %v6864_v32, 2  ;;  %v6630_v10 = vmax.f32 %v13096_v5, %v6629_v28 }
 0x563   : > { %v7792_v53 = vpack.c.bf16 %v7590_v42, %v7590_v42  ;;  %v6852_v41 = vmax.f32 %v6850_v44, %v6851_v34  ;;  %v6859_v52 = vmax.f32 %v6857_v0, %v6858_v3  ;;  %v7593_v25 = vmax.f32 %v13087_v37, %v7592_v9 }
 0x564   : > { %v8047_v36 = vunpack.c.l.b16 %v7791_v60  ;;  %v6846_v13 = vrot.slane %v6845_v16, 1  ;;  %v6866_v58 = vmax.f32 %v6864_v32, %v6865_v29  ;;  %v6637_v47 = vmax.f32 %v6635_v55, %v6636_v12 }
 0x565   : > { %v7594_v39 = vsel %vm7317_vm1, %v6623_v54, -inf  ;;  %v6853_v38 = vrot.slane %v6852_v41, 1  ;;  %v6860_v11 = vrot.slane %v6859_v52, 1  ;;  %v6644_v50 = vmax.f32 %v6642_v19, %v6643_v26 }
 0x566   : > { %v8046_v1 = vunpack.c.l.b16 %v7790_v49  ;;  %v6847_v61 = vmax.f32 %v6845_v16, %v6846_v13  ;;  %v6867_v31 = vrot.slane %v6866_v58, 1  ;;  %v7597_v24 = vsel %vm7317_vm1, %v6630_v10, -inf }
 0x567   : > { %v8048_v5 = vunpack.c.l.b16 %v7792_v53  ;;  %v6854_v46 = vmax.f32 %v6852_v41, %v6853_v38  ;;  %v6861_v2 = vmax.f32 %v6859_v52, %v6860_v11  ;;  %v7793_v59 = vpack.c.bf16 %v7593_v25, %v7593_v25 }
 0x568   : > { %v8170_v37 = vsel %vm8086_vm2, %v8047_v36, %v8046_v1  ;;  %v6868_v27 = vmax.f32 %v6866_v58, %v6867_v31  ;;  %v7595_v40 = vsel %vm7317_vm1, %v6847_v61, -inf  ;;  %v7600_v55 = vsel %vm7317_vm1, %v6637_v47, -inf }
 0x569   : > { %v7596_v33 = vmax.f32 %v7594_v39, %v7595_v40  ;;  %v7598_v43 = vsel %vm7317_vm1, %v6854_v46, -inf  ;;  %v7601_v45 = vsel %vm7317_vm1, %v6861_v2, -inf  ;;  %v7603_v62 = vsel %vm7317_vm1, %v6644_v50, -inf }
 0x56a   : > { %v7599_v22 = vmax.f32 %v7597_v24, %v7598_v43  ;;  %v7602_v30 = vmax.f32 %v7600_v55, %v7601_v45  ;;  %v7604_v17 = vsel %vm7317_vm1, %v6868_v27, -inf  ;;  %v8171_v57 = vsel %vm8088_vm3, %v8048_v5, %v8170_v37 }
 0x56b   : > { %v7605_v8 = vmax.f32 %v7603_v62, %v7604_v17  ;;  %v7794_v4 = vpack.c.bf16 %v7596_v33, %v7596_v33  ;;  %v8049_v21 = vunpack.c.l.b16 %v7793_v59 }
 0x56c   : > { %v7795_v6 = vpack.c.bf16 %v7599_v22, %v7599_v22  ;;  %v7796_v48 = vpack.c.bf16 %v7602_v30, %v7602_v30 }
 0x56d   : > { %v7797_v15 = vpack.c.bf16 %v7605_v8, %v7605_v8  ;;  %v8050_v56 = vunpack.c.l.b16 %v7794_v4  ;;  %v8172_v51 = vsel %vm8090_vm4, %v8049_v21, %v8171_v57 }
 0x56e   : > { %v8051_v35 = vunpack.c.l.b16 %v7795_v6  ;;  %v8052_v23 = vunpack.c.l.b16 %v7796_v48 }
 0x56f   : > { %v8173_v14 = vsel %vm8092_vm5, %v8050_v56, %v8172_v51  ;;  %v8053_v19 = vunpack.c.l.b16 %v7797_v15 }
 0x570   : > { %v8174_v63 = vsel %vm8094_vm6, %v8051_v35, %v8173_v14 }
 0x571   : > { %v8175_v7 = vsel %vm8096_vm7, %v8052_v23, %v8174_v63 }
 0x572   : > { %v8176_v18 = vsel %vm8098_vm8, %v8053_v19, %v8175_v7 }
 0x573   : > { %v8216_v28 = vpack.c.b16 %v8176_v18, %v8176_v18 }
 0x575   : > { %8249 = vst.msk [vmem:[%s9280_s9 + $0x2c] sm:$0xf] %vm8237_vm11, %v8216_v28 }
 0x576 PF: > { %s14_s19 = sadd.s32 1, %s9149_s19   ;;  %s13392_s15 = smov %s9141_s17 }
 0x577   : > { %p11_p11 = scmp.ge.s32.totalorder %s14_s19, 18   ;;  %s13393_s16 = smov %s9145_s18 }
 0x578   : > { %s13394_s17 = smov %s13397_s20  ;;  %s13395_s18 = smov %s13401_s21 }
 0x579   :  { %13 = sbr.rel (!%p11_p11) target bundleno = 3 (0x3), region = 91 }

</bundles_post_ra>
